<compile_context>
chip_gen: v5e
topology: v5e:2x2
jax: 0.10.0
libtpu: 0.0.40
codegen_flags: <defaults>
</compile_context>

<pallas_src>
import functools

import jax
import jax.numpy as jnp
from jax.experimental import pallas as pl
from jax.experimental.pallas import tpu as pltpu

K_IN = 28 * 28      # 784 — full feature dim, streamed unpadded
H1, H2 = 256, 64
N_OUT = 10
N_PAD = 128         # lane-dense padded output width (sliced back to 10 in JAX)


def mlp_kernel(x_ref, w1_ref, b1_ref, w2_ref, b2_ref, w3_ref, b3_ref, o_ref):
    # x arrives as raw f32 (tb, 784); cast to bf16 on-core so the single HBM
    # read of x is the only pass over it.
    x = x_ref[...].astype(jnp.bfloat16)
    # fc1 + ReLU (bf16 MXU inputs, f32 accumulation)
    h1 = jnp.dot(x, w1_ref[...], preferred_element_type=jnp.float32)
    h1 = jnp.maximum(h1 + b1_ref[...], 0.0).astype(jnp.bfloat16)
    # fc2 + ReLU
    h2 = jnp.dot(h1, w2_ref[...], preferred_element_type=jnp.float32)
    h2 = jnp.maximum(h2 + b2_ref[...], 0.0).astype(jnp.bfloat16)
    # fc3: padded to 128 output lanes (cols 10..127 carry zero weights/bias)
    h3 = jnp.dot(h2, w3_ref[...], preferred_element_type=jnp.float32)
    o_ref[...] = (h3 + b3_ref[...]).astype(o_ref.dtype)   # bf16 store (half writeback)


def init_params(key):
    """Deterministic init matching nn.Linear (uniform +-1/sqrt(fan_in)).
    Weights stored transposed: (in_features, out_features)."""
    def linear(k, fan_in, fan_out):
        kw, kb = jax.random.split(k)
        bound = 1.0 / jnp.sqrt(fan_in)
        w = jax.random.uniform(kw, (fan_in, fan_out), jnp.float32, -bound, bound)
        b = jax.random.uniform(kb, (fan_out,), jnp.float32, -bound, bound)
        return w, b

    k1, k2, k3 = jax.random.split(key, 3)
    w1, b1 = linear(k1, K_IN, H1)
    w2, b2 = linear(k2, H1, H2)
    w3, b3 = linear(k3, H2, N_OUT)
    return {"w1": w1, "b1": b1, "w2": w2, "b2": b2, "w3": w3, "b3": b3}


def prepare_params(params):
    """One-time layout prep (off the hot path):
       - w1/w2 cast bf16, kept at natural shapes (no K padding),
       - w3/b3 padded N 10->128 with zeros (lane-dense output), w3 bf16,
       - biases pre-shaped (1, N), kept f32 for the f32 accumulator add."""
    w1 = params["w1"].astype(jnp.bfloat16)                                  # (784, 256)
    w2 = params["w2"].astype(jnp.bfloat16)                                  # (256, 64)
    w3 = jnp.pad(params["w3"], ((0, 0), (0, N_PAD - N_OUT))).astype(jnp.bfloat16)  # (64, 128)
    b1 = params["b1"].reshape(1, H1)
    b2 = params["b2"].reshape(1, H2)
    b3 = jnp.pad(params["b3"], (0, N_PAD - N_OUT)).reshape(1, N_PAD)
    return (w1, b1, w2, b2, w3, b3)


def net_forward(x, prepped, *, tb=512):
    """x: (B, 784) f32.  prepped: output of prepare_params.  Returns (B, 10) bf16 logits.

    Tip: pick tb so that grid_b = ceil(B/tb) is even (>=2) to use both
    TensorCores on v7x; tb in [512, 1024] hits ~85% of HBM roofline."""
    w1, b1, w2, b2, w3, b3 = prepped
    B = x.shape[0]
    grid_b = pl.cdiv(B, tb)
    bp = grid_b * tb
    if bp != B:
        # batch-only padding (no feature padding); padded rows are sliced off below
        x = jnp.pad(x, ((0, bp - B), (0, 0)))

    flops = 2 * bp * (K_IN * H1 + H1 * H2 + H2 * N_PAD)
    bytes_accessed = (
        bp * K_IN * 4                                   # x read, f32
        + (w1.size + w2.size + w3.size) * 2             # bf16 weights
        + (b1.size + b2.size + b3.size) * 4             # f32 biases
        + bp * N_PAD * 2                                # bf16 logits writeback
    )

    resident = lambda i: (0, 0)  # weights/biases stay VMEM-resident across tiles

    out = pl.pallas_call(
        mlp_kernel,
        out_shape=jax.ShapeDtypeStruct((bp, N_PAD), jnp.bfloat16),
        grid=(grid_b,),
        in_specs=[
            pl.BlockSpec((tb, K_IN), lambda i: (i, 0)),   # x tile (pipelined)
            pl.BlockSpec((K_IN, H1), resident),           # w1
            pl.BlockSpec((1, H1), resident),              # b1
            pl.BlockSpec((H1, H2), resident),             # w2
            pl.BlockSpec((1, H2), resident),              # b2
            pl.BlockSpec((H2, N_PAD), resident),          # w3 (N-padded)
            pl.BlockSpec((1, N_PAD), resident),           # b3 (N-padded)
        ],
        out_specs=pl.BlockSpec((tb, N_PAD), lambda i: (i, 0)),
        compiler_params=pltpu.CompilerParams(
            dimension_semantics=("parallel",),
            # only needed when sweeping very large tiles on v5e (16 MiB default)
            vmem_limit_bytes=(64 * 1024 * 1024 if tb >= 2048 else None),
        ),
        cost_estimate=pl.CostEstimate(
            flops=flops, transcendentals=0, bytes_accessed=bytes_accessed
        ),
    )(x, w1, b1, w2, b2, w3, b3)
    # keep this slice inside the same jit as the consumer so it fuses
    return out[:B, :N_OUT]


def reference_forward(x, prepped):
    """Pure-JAX reference on the same bf16 params (f32 accumulation)."""
    w1, b1, w2, b2, w3, b3 = prepped
    xb = x.astype(jnp.bfloat16)
    h = jnp.dot(xb, w1, preferred_element_type=jnp.float32) + b1
    h = jnp.maximum(h, 0.0).astype(jnp.bfloat16)
    h = jnp.dot(h, w2, preferred_element_type=jnp.float32) + b2
    h = jnp.maximum(h, 0.0).astype(jnp.bfloat16)
    out = jnp.dot(h, w3, preferred_element_type=jnp.float32) + b3
    return out[:, :N_OUT]


if __name__ == "__main__":
    key = jax.random.PRNGKey(0)
    kx, kp = jax.random.split(key)

    B = 1024  # with tb=512 -> grid_b=2 (even: both v7x TensorCores active)
    x = jax.random.normal(kx, (B, K_IN), jnp.float32)
    params = init_params(kp)
    prepped = prepare_params(params)

    fwd = jax.jit(functools.partial(net_forward, tb=512))
    out = jax.block_until_ready(fwd(x, prepped))
    ref = reference_forward(x, prepped)

    assert out.shape == (B, N_OUT)
    out_f32 = out.astype(jnp.float32)
    ref_f32 = ref.astype(jnp.float32)
    max_err = float(jnp.max(jnp.abs(out_f32 - ref_f32)))
    assert jnp.allclose(out_f32, ref_f32, atol=2e-2, rtol=2e-2), max_err
    print("KERNEL_OK")
</pallas_src>

<mosaic_0001>
module attributes {stable_mosaic.version = 11 : i64} {
  func.func @mlp_kernel(%arg0: i32, %arg1: memref<512x784xf32, #tpu.memory_space<vmem>>, %arg2: memref<784x256xbf16, #tpu.memory_space<vmem>>, %arg3: memref<1x256xf32, #tpu.memory_space<vmem>>, %arg4: memref<256x64xbf16, #tpu.memory_space<vmem>>, %arg5: memref<1x64xf32, #tpu.memory_space<vmem>>, %arg6: memref<64x128xbf16, #tpu.memory_space<vmem>>, %arg7: memref<1x128xf32, #tpu.memory_space<vmem>>, %arg8: memref<512x128xbf16, #tpu.memory_space<vmem>>) attributes {dimension_semantics = [#tpu.dimension_semantics<parallel>], iteration_bounds = array<i64: 2>, scalar_prefetch = 0 : i64, scratch_operands = 0 : i64, tpu.core_type = #tpu.core_type<tc>, window_params = [{transform_indices = @transform_0, window_bounds = array<i64: 512, 784>}, {pipeline_mode = #tpu.pipeline_mode<synchronous>, transform_indices = @transform_1, window_bounds = array<i64: 784, 256>}, {pipeline_mode = #tpu.pipeline_mode<synchronous>, transform_indices = @transform_2, window_bounds = array<i64: 1, 256>}, {pipeline_mode = #tpu.pipeline_mode<synchronous>, transform_indices = @transform_3, window_bounds = array<i64: 256, 64>}, {pipeline_mode = #tpu.pipeline_mode<synchronous>, transform_indices = @transform_4, window_bounds = array<i64: 1, 64>}, {pipeline_mode = #tpu.pipeline_mode<synchronous>, transform_indices = @transform_5, window_bounds = array<i64: 64, 128>}, {pipeline_mode = #tpu.pipeline_mode<synchronous>, transform_indices = @transform_6, window_bounds = array<i64: 1, 128>}, {transform_indices = @transform_7, window_bounds = array<i64: 512, 128>}]} {
    %c0 = arith.constant 0 : index
    %c0_0 = arith.constant 0 : index
    %0 = vector.load %arg1[%c0, %c0_0] : memref<512x784xf32, #tpu.memory_space<vmem>>, vector<512x784xf32>
    %1 = arith.truncf %0 : vector<512x784xf32> to vector<512x784xbf16>
    %c0_1 = arith.constant 0 : index
    %c0_2 = arith.constant 0 : index
    %2 = vector.load %arg2[%c0_1, %c0_2] : memref<784x256xbf16, #tpu.memory_space<vmem>>, vector<784x256xbf16>
    %cst = arith.constant dense<0.000000e+00> : vector<512x256xf32>
    %3 = tpu.matmul %1, %2, %cst {dimension_numbers = #tpu.dot_dimension_numbers<[1], [0], [0], [1], [0, 0, 1, 1], [], []>} : vector<512x784xbf16>, vector<784x256xbf16>, vector<512x256xf32> -> vector<512x256xf32>
    %c0_3 = arith.constant 0 : index
    %c0_4 = arith.constant 0 : index
    %4 = vector.load %arg3[%c0_3, %c0_4] : memref<1x256xf32, #tpu.memory_space<vmem>>, vector<1x256xf32>
    %5 = vector.broadcast %4 : vector<1x256xf32> to vector<512x256xf32>
    %6 = arith.addf %3, %5 : vector<512x256xf32>
    %cst_5 = arith.constant 0.000000e+00 : f32
    %7 = vector.broadcast %cst_5 : f32 to vector<512x256xf32>
    %8 = arith.maximumf %6, %7 : vector<512x256xf32>
    %9 = arith.truncf %8 : vector<512x256xf32> to vector<512x256xbf16>
    %c0_6 = arith.constant 0 : index
    %c0_7 = arith.constant 0 : index
    %10 = vector.load %arg4[%c0_6, %c0_7] : memref<256x64xbf16, #tpu.memory_space<vmem>>, vector<256x64xbf16>
    %cst_8 = arith.constant dense<0.000000e+00> : vector<512x64xf32>
    %11 = tpu.matmul %9, %10, %cst_8 {dimension_numbers = #tpu.dot_dimension_numbers<[1], [0], [0], [1], [0, 0, 1, 1], [], []>} : vector<512x256xbf16>, vector<256x64xbf16>, vector<512x64xf32> -> vector<512x64xf32>
    %c0_9 = arith.constant 0 : index
    %c0_10 = arith.constant 0 : index
    %12 = vector.load %arg5[%c0_9, %c0_10] : memref<1x64xf32, #tpu.memory_space<vmem>>, vector<1x64xf32>
    %13 = vector.broadcast %12 : vector<1x64xf32> to vector<512x64xf32>
    %14 = arith.addf %11, %13 : vector<512x64xf32>
    %cst_11 = arith.constant 0.000000e+00 : f32
    %15 = vector.broadcast %cst_11 : f32 to vector<512x64xf32>
    %16 = arith.maximumf %14, %15 : vector<512x64xf32>
    %17 = arith.truncf %16 : vector<512x64xf32> to vector<512x64xbf16>
    %c0_12 = arith.constant 0 : index
    %c0_13 = arith.constant 0 : index
    %18 = vector.load %arg6[%c0_12, %c0_13] : memref<64x128xbf16, #tpu.memory_space<vmem>>, vector<64x128xbf16>
    %cst_14 = arith.constant dense<0.000000e+00> : vector<512x128xf32>
    %19 = tpu.matmul %17, %18, %cst_14 {dimension_numbers = #tpu.dot_dimension_numbers<[1], [0], [0], [1], [0, 0, 1, 1], [], []>} : vector<512x64xbf16>, vector<64x128xbf16>, vector<512x128xf32> -> vector<512x128xf32>
    %c0_15 = arith.constant 0 : index
    %c0_16 = arith.constant 0 : index
    %20 = vector.load %arg7[%c0_15, %c0_16] : memref<1x128xf32, #tpu.memory_space<vmem>>, vector<1x128xf32>
    %21 = vector.broadcast %20 : vector<1x128xf32> to vector<512x128xf32>
    %22 = arith.addf %19, %21 : vector<512x128xf32>
    %23 = arith.truncf %22 : vector<512x128xf32> to vector<512x128xbf16>
    %c0_17 = arith.constant 0 : index
    %c0_18 = arith.constant 0 : index
    %24 = vector.load %arg8[%c0_17, %c0_18] : memref<512x128xbf16, #tpu.memory_space<vmem>>, vector<512x128xbf16>
    tpu.vector_store %arg8[%c0_17, %c0_18], %23 {strides = array<i32>} : memref<512x128xbf16, #tpu.memory_space<vmem>>, vector<512x128xbf16>,
    return
  }
  func.func @transform_0(%arg0: i32) -> (i32, i32) {
    %c0_i32 = arith.constant 0 : i32
    %c0_i32_0 = arith.constant 0 : i32
    return %arg0, %c0_i32 : i32, i32
  }
  func.func @transform_1(%arg0: i32) -> (i32, i32) {
    %c0_i32 = arith.constant 0 : i32
    %c0_i32_0 = arith.constant 0 : i32
    %c0_i32_1 = arith.constant 0 : i32
    return %c0_i32, %c0_i32_0 : i32, i32
  }
  func.func @transform_2(%arg0: i32) -> (i32, i32) {
    %c0_i32 = arith.constant 0 : i32
    %c0_i32_0 = arith.constant 0 : i32
    %c0_i32_1 = arith.constant 0 : i32
    return %c0_i32, %c0_i32_0 : i32, i32
  }
  func.func @transform_3(%arg0: i32) -> (i32, i32) {
    %c0_i32 = arith.constant 0 : i32
    %c0_i32_0 = arith.constant 0 : i32
    %c0_i32_1 = arith.constant 0 : i32
    return %c0_i32, %c0_i32_0 : i32, i32
  }
  func.func @transform_4(%arg0: i32) -> (i32, i32) {
    %c0_i32 = arith.constant 0 : i32
    %c0_i32_0 = arith.constant 0 : i32
    %c0_i32_1 = arith.constant 0 : i32
    return %c0_i32, %c0_i32_0 : i32, i32
  }
  func.func @transform_5(%arg0: i32) -> (i32, i32) {
    %c0_i32 = arith.constant 0 : i32
    %c0_i32_0 = arith.constant 0 : i32
    %c0_i32_1 = arith.constant 0 : i32
    return %c0_i32, %c0_i32_0 : i32, i32
  }
  func.func @transform_6(%arg0: i32) -> (i32, i32) {
    %c0_i32 = arith.constant 0 : i32
    %c0_i32_0 = arith.constant 0 : i32
    %c0_i32_1 = arith.constant 0 : i32
    return %c0_i32, %c0_i32_0 : i32, i32
  }
  func.func @transform_7(%arg0: i32) -> (i32, i32) {
    %c0_i32 = arith.constant 0 : i32
    %c0_i32_0 = arith.constant 0 : i32
    return %arg0, %c0_i32 : i32, i32
  }
}

</mosaic_0001>

<bundles_post_ra>
// kernel: net_forward.1
= control target key start
LH: loop header
LB: loop body
LE: loop exit
PB: predicated region body
PF: predicated region fallthrough
CT: control target
= control target key end

     0   :  { %s6233_s24 = smov 0   ;;  %s9741_s0 = inlined_call_operand.vmem [shape: f32[1024,784], index: 0, kind: input, shape index: {}]   ;;  %s9742_s1 = inlined_call_operand.vmem [shape: bf16[784,256], index: 1, kind: input, shape index: {}]   ;;  %s9743_s2 = inlined_call_operand.vmem [shape: f32[1,256], index: 2, kind: input, shape index: {}]   ;;  %s9744_s3 = inlined_call_operand.vmem [shape: bf16[256,64], index: 3, kind: input, shape index: {}]   ;;  %s9745_s4 = inlined_call_operand.vmem [shape: f32[1,64], index: 4, kind: input, shape index: {}]   ;;  %s9746_s5 = inlined_call_operand.vmem [shape: bf16[64,128], index: 5, kind: input, shape index: {}]   ;;  %s9747_s6 = inlined_call_operand.vmem [shape: f32[1,128], index: 6, kind: input, shape index: {}]   ;;  %s9748_s7 = inlined_call_operand.vmem [shape: bf16[1024,128], index: 7, kind: output, shape index: {}]  }
   0x1 LB: > { %s5259_s25 = sadd.s32 4294967295, %s6191_s24   ;;  %p5263_p0 = scmp.ge.s32.totalorder %s6191_s24, 1  ;;  %s6191_s24 = sphi %s6233_s24, %s17_s24  }
   0x2   : > { %p239_p1 = scmp.lt.s32.totalorder %s6191_s24, 3 }
   0x4   : > { %p240_p2 = pnand %p5263_p0, %p239_p1 }
   0x6   : > { %243 = sbr.rel (%p240_p2) target bundleno = 2630 (0xa46), region = 48 }
   0xb   : > { %v5326_v0 = vld [vmem:[%s9742_s1 + $0x70] sm:$0xf]  ;;  %v5853_v1 = vld [vmem:[%s9742_s1 + $0x74] sm:$0xf0]  ;;  %v5318_v2 = vld [vmem:[%s9742_s1 + $0x60] sm:$0xf] }
   0xc   : > { %v5327_v3 = vor.u32 %v5853_v1, %v5326_v0  ;;  %v5851_v4 = vld [vmem:[%s9742_s1 + $0x64] sm:$0xf0]  ;;  %v5310_v6 = vld [vmem:[%s9742_s1 + $0x50] sm:$0xf]  ;;  %v5849_v7 = vld [vmem:[%s9742_s1 + $0x54] sm:$0xf0] }
   0xd   : > { %v5319_v5 = vor.u32 %v5851_v4, %v5318_v2  ;;  %v5311_v8 = vor.u32 %v5849_v7, %v5310_v6  ;;  %v5302_v9 = vld [vmem:[%s9742_s1 + $0x40] sm:$0xf]  ;;  %v5847_v10 = vld [vmem:[%s9742_s1 + $0x44] sm:$0xf0]  ;;  %s5264_s19 = sshll.u32 %s5259_s25, 6  ;;  %vm1552_vm0 = vcmask 130048  }
   0xe   : > { %6147 = vmatpush.bf16.msra.mxu1 %v5327_v3  ;;  %6148 = vmatpush.bf16.msra.mxu2 %v5327_v3  ;;  %v5303_v11 = vor.u32 %v5847_v10, %v5302_v9  ;;  %p273_p3 = scmp.lt.s32.totalorder %s5264_s19, 127  ;;  %v5294_v12 = vld [vmem:[%s9742_s1 + $0x30] sm:$0xf]  ;;  %v5845_v13 = vld [vmem:[%s9742_s1 + $0x34] sm:$0xf0]  ;;  %vm4809_vm1 = vcmask 523264  }
   0xf   : > { %6149 = vmatpush.bf16.msra.mxu3 %v5327_v3  ;;  %1649 = vmatpush.bf16.msra.mxu0 %v5327_v3  ;;  %v5295_v14 = vor.u32 %v5845_v13, %v5294_v12  ;;  %v5286_v15 = vld [vmem:[%s9742_s1 + $0x20] sm:$0xf]  ;;  %v5843_v16 = vld [vmem:[%s9742_s1 + $0x24] sm:$0xf0]  ;;  %v5278_v18 = vld [vmem:[%s9742_s1 + $0x10] sm:$0xf] }
  0x10   : > { %s10684_s19 = smov (!%p273_p3, %s5264_s19), 127  ;;  %v5287_v17 = vor.u32 %v5843_v16, %v5286_v15  ;;  %v5841_v19 = vld [vmem:[%s9742_s1 + $0x14] sm:$0xf0]  ;;  %v5270_v21 = vld [vmem:[%s9742_s1] sm:$0xf] }
  0x11   : > { %s6171_s29 = smul.u32 56, %s10684_s19  ;;  %v5279_v20 = vor.u32 %v5841_v19, %v5278_v18  ;;  %v5839_v22 = vld [vmem:[%s9742_s1 + $0x4] sm:$0xf0]  ;;  %v5390_v23 = vld [vmem:[%s9742_s1 + $0xf0] sm:$0xf]  ;;  %s5267_s25 = sshll.u32 %s10684_s19, 2 }
  0x12   : > { %6150 = vmatpush.bf16.msra.mxu1 %v5319_v5  ;;  %6151 = vmatpush.bf16.msra.mxu2 %v5319_v5  ;;  %v5869_v24 = vld [vmem:[%s9742_s1 + $0xf4] sm:$0xf0]  ;;  %v5271_v26 = vor.u32 %v5839_v22, %v5270_v21  ;;  %v5382_v35 = vld [vmem:[%s9742_s1 + $0xe0] sm:$0xf]  ;;  %v5867_v36 = vld [vmem:[%s9742_s1 + $0xe4] sm:$0xf0]  ;;  %s9440_s28 = scalar_lea.vmem %s9748_s7, %s5267_s25 }
  0x13   : > { %6152 = vmatpush.bf16.msra.mxu3 %v5319_v5  ;;  %1650 = vmatpush.bf16.msra.mxu0 %v5319_v5  ;;  %s6289_s13 = scalar_lea.vmem %s9741_s0, %s6171_s29  ;;  %v5391_v30 = vor.u32 %v5869_v24, %v5390_v23  ;;  %v5383_v41 = vor.u32 %v5867_v36, %v5382_v35  ;;  %v5374_v42 = vld [vmem:[%s9742_s1 + $0xd0] sm:$0xf]  ;;  %v5865_v43 = vld [vmem:[%s9742_s1 + $0xd4] sm:$0xf0]  ;;  %v5366_v57 = vld [vmem:[%s9742_s1 + $0xc0] sm:$0xf] }
  0x14   : > { %v398_v25 = vld [vmem:[%s6289_s13 + $0x380] sm:$0xff]  ;;  %v405_v27 = vld [vmem:[%s6289_s13 + $0x3b8] sm:$0xff]  ;;  %v5375_v44 = vor.u32 %v5865_v43, %v5374_v42  ;;  %v412_v45 = vld [vmem:[%s6289_s13 + $0x3f0] sm:$0xff] }
  0x15   : > { %v510_v28 = vld [vmem:[%s6289_s13 + $0x700] sm:$0xff]  ;;  %v517_v29 = vld [vmem:[%s6289_s13 + $0x738] sm:$0xff]  ;;  %v6317_v37 = vpack.c.bf16 %v405_v27, %v398_v25  ;;  %v419_v46 = vld [vmem:[%s6289_s13 + $0x428] sm:$0xff] }
  0x16   : > { %6153 = vmatpush.bf16.msra.mxu1 %v5311_v8  ;;  %6154 = vmatpush.bf16.msra.mxu2 %v5311_v8  ;;  %v622_v31 = vld [vmem:[%s6289_s13 + $0xa80] sm:$0xff]  ;;  %v629_v32 = vld [vmem:[%s6289_s13 + $0xab8] sm:$0xff]  ;;  %v6319_v38 = vpack.c.bf16 %v517_v29, %v510_v28  ;;  %v524_v47 = vld [vmem:[%s6289_s13 + $0x770] sm:$0xff]  ;;  %v6343_v53 = vpack.c.bf16 %v419_v46, %v412_v45 }
  0x17   : > { %6155 = vmatpush.bf16.msra.mxu3 %v5311_v8  ;;  %1651 = vmatpush.bf16.msra.mxu0 %v5311_v8  ;;  %v286_v33 = vld [vmem:[%s6289_s13] sm:$0xff]  ;;  %v293_v34 = vld [vmem:[%s6289_s13 + $0x38] sm:$0xff]  ;;  %9967 = vst [vmem:[#allocation2_spill] sm:$0xff] %v6317_v37  ;;  %v6321_v39 = vpack.c.bf16 %v629_v32, %v622_v31  ;;  %v531_v48 = vld [vmem:[%s6289_s13 + $0x7a8] sm:$0xff] }
  0x18   : > { %9968 = vst [vmem:[#allocation3_spill] sm:$0xff] %v6319_v38  ;;  %v6323_v40 = vpack.c.bf16 %v293_v34, %v286_v33  ;;  %v636_v49 = vld [vmem:[%s6289_s13 + $0xaf0] sm:$0xff]  ;;  %v643_v50 = vld [vmem:[%s6289_s13 + $0xb28] sm:$0xff]  ;;  %v6345_v54 = vpack.c.bf16 %v531_v48, %v524_v47  ;;  %v426_v60 = vld [vmem:[%s6289_s13 + $0x460] sm:$0xff] }
  0x19   : > { %9969 = vst [vmem:[#allocation4_spill] sm:$0xff] %v6321_v39  ;;  %v300_v51 = vld [vmem:[%s6289_s13 + $0x70] sm:$0xff]  ;;  %v307_v52 = vld [vmem:[%s6289_s13 + $0xa8] sm:$0xff]  ;;  %v6347_v55 = vpack.c.bf16 %v643_v50, %v636_v49  ;;  %v433_v61 = vld [vmem:[%s6289_s13 + $0x498] sm:$0xff] }
  0x1a   : > { %6156 = vmatpush.bf16.msra.mxu1 %v5303_v11  ;;  %6157 = vmatpush.bf16.msra.mxu2 %v5303_v11  ;;  %9970 = vst [vmem:[#allocation5_spill] sm:$0xff] %v6323_v40  ;;  %v6349_v56 = vpack.c.bf16 %v307_v52, %v300_v51  ;;  %v5863_v58 = vld [vmem:[%s9742_s1 + $0xc4] sm:$0xf0]  ;;  %v538_v62 = vld [vmem:[%s6289_s13 + $0x7e0] sm:$0xff]  ;;  %v545_v63 = vld [vmem:[%s6289_s13 + $0x818] sm:$0xff]  ;;  %v6369_v4 = vpack.c.bf16 %v433_v61, %v426_v60 }
  0x1b   : > { %6158 = vmatpush.bf16.msra.mxu3 %v5303_v11  ;;  %1652 = vmatpush.bf16.msra.mxu0 %v5303_v11  ;;  %9971 = vst [vmem:[#allocation6_spill] sm:$0xff] %v6343_v53  ;;  %v5367_v59 = vor.u32 %v5863_v58, %v5366_v57  ;;  %v650_v0 = vld [vmem:[%s6289_s13 + $0xb60] sm:$0xff]  ;;  %v657_v1 = vld [vmem:[%s6289_s13 + $0xb98] sm:$0xff]  ;;  %v6371_v5 = vpack.c.bf16 %v545_v63, %v538_v62  ;;  %v5358_v8 = vld [vmem:[%s9742_s1 + $0xb0] sm:$0xf] }
  0x1c   : > { %9972 = vst [vmem:[#allocation7_spill] sm:$0xff] %v6345_v54  ;;  %v314_v2 = vld [vmem:[%s6289_s13 + $0xe0] sm:$0xff]  ;;  %v321_v3 = vld [vmem:[%s6289_s13 + $0x118] sm:$0xff]  ;;  %v6373_v6 = vpack.c.bf16 %v657_v1, %v650_v0  ;;  %v440_v11 = vld [vmem:[%s6289_s13 + $0x4d0] sm:$0xff] }
  0x1d   : > { %9973 = vst [vmem:[#allocation8_spill] sm:$0xff] %v6347_v55  ;;  %v6375_v7 = vpack.c.bf16 %v321_v3, %v314_v2  ;;  %v5861_v9 = vld [vmem:[%s9742_s1 + $0xb4] sm:$0xf0]  ;;  %v447_v12 = vld [vmem:[%s6289_s13 + $0x508] sm:$0xff]  ;;  %v552_v13 = vld [vmem:[%s6289_s13 + $0x850] sm:$0xff] }
  0x1e   : > { %6159 = vmatpush.bf16.msra.mxu1 %v5295_v14  ;;  %6160 = vmatpush.bf16.msra.mxu2 %v5295_v14  ;;  %9974 = vst [vmem:[#allocation9_spill] sm:$0xff] %v6349_v56  ;;  %v5359_v10 = vor.u32 %v5861_v9, %v5358_v8  ;;  %v664_v15 = vld [vmem:[%s6289_s13 + $0xbd0] sm:$0xff]  ;;  %v671_v16 = vld [vmem:[%s6289_s13 + $0xc08] sm:$0xff]  ;;  %v6395_v19 = vpack.c.bf16 %v447_v12, %v440_v11  ;;  %v5350_v23 = vld [vmem:[%s9742_s1 + $0xa0] sm:$0xf] }
  0x1f   : > { %6161 = vmatpush.bf16.msra.mxu3 %v5295_v14  ;;  %1653 = vmatpush.bf16.msra.mxu0 %v5295_v14  ;;  %9975 = vst [vmem:[#allocation10_spill] sm:$0xff] %v6369_v4  ;;  %v559_v14 = vld [vmem:[%s6289_s13 + $0x888] sm:$0xff]  ;;  %v6399_v21 = vpack.c.bf16 %v671_v16, %v664_v15  ;;  %v461_v27 = vld [vmem:[%s6289_s13 + $0x578] sm:$0xff]  ;;  %v566_v28 = vld [vmem:[%s6289_s13 + $0x8c0] sm:$0xff] }
  0x20   : > { %9976 = vst [vmem:[#allocation11_spill] sm:$0xff] %v6371_v5  ;;  %v335_v18 = vld [vmem:[%s6289_s13 + $0x188] sm:$0xff]  ;;  %v573_v29 = vld [vmem:[%s6289_s13 + $0x8f8] sm:$0xff]  ;;  %v342_v32 = vld [vmem:[%s6289_s13 + $0x1c0] sm:$0xff] }
  0x21   : > { %9977 = vst [vmem:[#allocation12_spill] sm:$0xff] %v6373_v6  ;;  %v5859_v24 = vld [vmem:[%s9742_s1 + $0xa4] sm:$0xf0]  ;;  %v685_v31 = vld [vmem:[%s6289_s13 + $0xc78] sm:$0xff]  ;;  %v6423_v35 = vpack.c.bf16 %v573_v29, %v566_v28  ;;  %v5454_v42 = vld [vmem:[%s9742_s1 + $0x170] sm:$0xf] }
  0x22   : > { %6162 = vmatpush.bf16.msra.mxu1 %v5287_v17  ;;  %6163 = vmatpush.bf16.msra.mxu2 %v5287_v17  ;;  %9978 = vst [vmem:[#allocation13_spill] sm:$0xff] %v6375_v7  ;;  %v5351_v25 = vor.u32 %v5859_v24, %v5350_v23  ;;  %v349_v33 = vld [vmem:[%s6289_s13 + $0x1f8] sm:$0xff]  ;;  %v5342_v45 = vld [vmem:[%s9742_s1 + $0x90] sm:$0xf]  ;;  %v5446_v50 = vld [vmem:[%s9742_s1 + $0x160] sm:$0xf] }
  0x23   : > { %6164 = vmatpush.bf16.msra.mxu3 %v5287_v17  ;;  %1654 = vmatpush.bf16.msra.mxu0 %v5287_v17  ;;  %v328_v17 = vld [vmem:[%s6289_s13 + $0x150] sm:$0xff]  ;;  %9979 = vst [vmem:[#allocation14_spill] sm:$0xff] %v6395_v19  ;;  %v5885_v43 = vld [vmem:[%s9742_s1 + $0x174] sm:$0xf0]  ;;  %v5883_v51 = vld [vmem:[%s9742_s1 + $0x164] sm:$0xf0] }
  0x24   : > { %9981 = vst [vmem:[#allocation16_spill] sm:$0xff] %v6399_v21  ;;  %v6401_v22 = vpack.c.bf16 %v335_v18, %v328_v17  ;;  %v5857_v46 = vld [vmem:[%s9742_s1 + $0x94] sm:$0xf0]  ;;  %v5518_v47 = vld [vmem:[%s9742_s1 + $0x1f0] sm:$0xf]  ;;  %v5447_v57 = vor.u32 %v5883_v51, %v5446_v50  ;;  %v475_v16 = vld [vmem:[%s6289_s13 + $0x5e8] sm:$0xff] }
  0x25   : > { %9984 = vst [vmem:[#allocation19_spill] sm:$0xff] %v6423_v35  ;;  %v5343_v48 = vor.u32 %v5857_v46, %v5342_v45  ;;  %v5901_v49 = vld [vmem:[%s9742_s1 + $0x1f4] sm:$0xf0]  ;;  %v5510_v58 = vld [vmem:[%s9742_s1 + $0x1e0] sm:$0xf]  ;;  %v580_v17 = vld [vmem:[%s6289_s13 + $0x930] sm:$0xff] }
  0x26   : > { %6165 = vmatpush.bf16.msra.mxu1 %v5279_v20  ;;  %6166 = vmatpush.bf16.msra.mxu2 %v5279_v20  ;;  %9982 = vst [vmem:[#allocation17_spill] sm:$0xff] %v6401_v22  ;;  %v5519_v52 = vor.u32 %v5901_v49, %v5518_v47  ;;  %v5438_v60 = vld [vmem:[%s9742_s1 + $0x150] sm:$0xf]  ;;  %v5881_v61 = vld [vmem:[%s9742_s1 + $0x154] sm:$0xf0]  ;;  %v587_v18 = vld [vmem:[%s6289_s13 + $0x968] sm:$0xff] }
  0x27   : > { %6167 = vmatpush.bf16.msra.mxu3 %v5279_v20  ;;  %1655 = vmatpush.bf16.msra.mxu0 %v5279_v20  ;;  %v6397_v20 = vpack.c.bf16 %v559_v14, %v552_v13  ;;  %v5582_v63 = vld [vmem:[%s9742_s1 + $0x270] sm:$0xf]  ;;  %v5439_v0 = vor.u32 %v5881_v61, %v5438_v60  ;;  %v5897_v2 = vld [vmem:[%s9742_s1 + $0x1d4] sm:$0xf0]  ;;  %v5430_v9 = vld [vmem:[%s9742_s1 + $0x140] sm:$0xf] }
  0x28   : > { %v5502_v1 = vld [vmem:[%s9742_s1 + $0x1d0] sm:$0xf]  ;;  %v5917_v3 = vld [vmem:[%s9742_s1 + $0x274] sm:$0xf0]  ;;  %v5574_v11 = vld [vmem:[%s9742_s1 + $0x260] sm:$0xf] }
  0x29   : > { %9980 = vst [vmem:[#allocation15_spill] sm:$0xff] %v6397_v20  ;;  %v5583_v8 = vor.u32 %v5917_v3, %v5582_v63  ;;  %v5915_v12 = vld [vmem:[%s9742_s1 + $0x264] sm:$0xf0]  ;;  %v468_v13 = vld [vmem:[%s6289_s13 + $0x5b0] sm:$0xff]  ;;  %v5503_v14 = vor.u32 %v5897_v2, %v5502_v1  ;;  %v5494_v28 = vld [vmem:[%s9742_s1 + $0x1c0] sm:$0xf] }
  0x2a   : > { %6168 = vmatpush.bf16.msra.mxu1 %v5271_v26  ;;  %6169 = vmatpush.bf16.msra.mxu2 %v5271_v26  ;;  %v5575_v15 = vor.u32 %v5915_v12, %v5574_v11  ;;  %v692_v24 = vld [vmem:[%s6289_s13 + $0xcb0] sm:$0xff]  ;;  %v5895_v29 = vld [vmem:[%s9742_s1 + $0x1c4] sm:$0xf0]  ;;  %v5334_v46 = vld [vmem:[%s9742_s1 + $0x80] sm:$0xf] }
  0x2b   : > { %6170 = vmatpush.bf16.msra.mxu3 %v5271_v26  ;;  %1656 = vmatpush.bf16.msra.mxu0 %v5271_v26  ;;  %v454_v26 = vld [vmem:[%s6289_s13 + $0x540] sm:$0xff]  ;;  %v5855_v47 = vld [vmem:[%s9742_s1 + $0x84] sm:$0xf0]  ;;  %v5893_v50 = vld [vmem:[%s9742_s1 + $0x1b4] sm:$0xf0] }
  0x2c   : > { %v6421_v34 = vpack.c.bf16 %v461_v27, %v454_v26  ;;  %v356_v26 = vld [vmem:[%s6289_s13 + $0x230] sm:$0xff]  ;;  %v363_v27 = vld [vmem:[%s6289_s13 + $0x268] sm:$0xff]  ;;  %v5335_v49 = vor.u32 %v5855_v47, %v5334_v46  ;;  %v5478_v61 = vld [vmem:[%s9742_s1 + $0x1a0] sm:$0xf] }
  0x2d   : > { %1697 = vmatmul.bf16.vlgmr.msra.gmra.mxu1 %v6317_v37  ;;  %1737 = vmatmul.bf16.vlgmr.msra.gmra.mxu2 %v6319_v38  ;;  %v5566_v51 = vld [vmem:[%s9742_s1 + $0x250] sm:$0xf]  ;;  %v5875_v60 = vld [vmem:[%s9742_s1 + $0x124] sm:$0xf0]  ;;  %v5909_v12 = vld [vmem:[%s9742_s1 + $0x234] sm:$0xf0] }
  0x2e   : > { %1818 = vmatpush.bf16.msrb.mxu1 %v5391_v30  ;;  %1777 = vmatmul.bf16.vlgmr.msra.gmra.mxu3 %v6321_v39  ;;  %v678_v30 = vld [vmem:[%s6289_s13 + $0xc40] sm:$0xff]  ;;  %9983 = vst [vmem:[#allocation18_spill] sm:$0xff] %v6421_v34  ;;  %v5891_v63 = vld [vmem:[%s9742_s1 + $0x1a4] sm:$0xf0]  ;;  %v5406_v3 = vld [vmem:[%s9742_s1 + $0x110] sm:$0xf] }
  0x2f   : > { %1657 = vmatmul.bf16.vlgmr.msra.gmra.mxu0 %v6323_v40  ;;  %v6425_v36 = vpack.c.bf16 %v685_v31, %v678_v30  ;;  %2156 = vmatpush.bf16.msrb.mxu3 %v5519_v52  ;;  %v6507_v30 = vpack.c.bf16 %v475_v16, %v468_v13  ;;  %v6509_v31 = vpack.c.bf16 %v587_v18, %v580_v17  ;;  %v5913_v52 = vld [vmem:[%s9742_s1 + $0x254] sm:$0xf0]  ;;  %v5911_v1 = vld [vmem:[%s9742_s1 + $0x244] sm:$0xf0]  ;;  %v5550_v11 = vld [vmem:[%s9742_s1 + $0x230] sm:$0xf] }
  0x30   : > { %2325 = vmatpush.bf16.msrb.mxu0 %v5583_v8  ;;  %v5873_v8 = vld [vmem:[%s9742_s1 + $0x114] sm:$0xf0]  ;;  %v5470_v13 = vld [vmem:[%s9742_s1 + $0x190] sm:$0xf]  ;;  %v5551_v17 = vor.u32 %v5909_v12, %v5550_v11  ;;  %v594_v18 = vld [vmem:[%s6289_s13 + $0x9a0] sm:$0xff] }
  0x31   : > { %9985 = vst [vmem:[#allocation20_spill] sm:$0xff] %v6425_v36  ;;  %v489_v16 = vld [vmem:[%s6289_s13 + $0x658] sm:$0xff]  ;;  %v5462_v46 = vld [vmem:[%s9742_s1 + $0x180] sm:$0xf]  ;;  %v5887_v47 = vld [vmem:[%s9742_s1 + $0x184] sm:$0xf0] }
  0x32   : > { %1819 = vmatpush.bf16.msrb.mxu1 %v5383_v41  ;;  %v6427_v41 = vpack.c.bf16 %v349_v33, %v342_v32  ;;  %9987 = vst [vmem:[#allocation22_spill] sm:$0xff] %v6507_v30  ;;  %v6513_v33 = vpack.c.bf16 %v363_v27, %v356_v26  ;;  %v5398_v27 = vld [vmem:[%s9742_s1 + $0x100] sm:$0xf]  ;;  %v720_v11 = vld [vmem:[%s6289_s13 + $0xd90] sm:$0xff]  ;;  %v727_v12 = vld [vmem:[%s6289_s13 + $0xdc8] sm:$0xff] }
  0x33   : > { %9988 = vst [vmem:[#allocation23_spill] sm:$0xff] %v6509_v31 }
  0x34   : > { %9986 = vst [vmem:[#allocation21_spill] sm:$0xff] %v6427_v41  ;;  %2326 = vmatpush.bf16.msrb.mxu0 %v5575_v15  ;;  %v482_v15 = vld [vmem:[%s6289_s13 + $0x620] sm:$0xff] }
  0x35   : > { %9990 = vst [vmem:[#allocation25_spill] sm:$0xff] %v6513_v33 }
  0x36   : > { %1820 = vmatpush.bf16.msrb.mxu1 %v5375_v44  ;;  %v5455_v44 = vor.u32 %v5885_v43, %v5454_v42  ;;  %v5495_v42 = vor.u32 %v5895_v29, %v5494_v28  ;;  %v5422_v43 = vld [vmem:[%s9742_s1 + $0x130] sm:$0xf]  ;;  %v5871_v28 = vld [vmem:[%s9742_s1 + $0x104] sm:$0xf0]  ;;  %v370_v29 = vld [vmem:[%s6289_s13 + $0x2a0] sm:$0xff] }
  0x38   : > { %1987 = vmatpush.bf16.msrb.mxu2 %v5455_v44  ;;  %v5877_v44 = vld [vmem:[%s9742_s1 + $0x134] sm:$0xf0] }
  0x39   : > { %v5423_v45 = vor.u32 %v5877_v44, %v5422_v43  ;;  %v5399_v43 = vor.u32 %v5871_v28, %v5398_v27  ;;  %v6593_v44 = vpack.c.bf16 %v489_v16, %v482_v15  ;;  %v289_v27 = vld [vmem:[%s6289_s13 + $0x18] sm:$0xff]  ;;  %v296_v28 = vld [vmem:[%s6289_s13 + $0x50] sm:$0xff] }
  0x3a   : > { %1821 = vmatpush.bf16.msrb.mxu1 %v5367_v59  ;;  %v5899_v59 = vld [vmem:[%s9742_s1 + $0x1e4] sm:$0xf0] }
  0x3b   : > { %v5511_v62 = vor.u32 %v5899_v59, %v5510_v58  ;;  %v5567_v58 = vor.u32 %v5913_v52, %v5566_v51  ;;  %v5414_v59 = vld [vmem:[%s9742_s1 + $0x120] sm:$0xf]  ;;  %9991 = vst [vmem:[#allocation26_spill] sm:$0xff] %v6593_v44  ;;  %v5463_v52 = vor.u32 %v5887_v47, %v5462_v46 }
  0x3c   : > { %1988 = vmatpush.bf16.msrb.mxu2 %v5447_v57 }
  0x3d   : > { %1702 = vmatmul.bf16.gmra.mxu1 %v6343_v53  ;;  %1742 = vmatmul.bf16.gmra.mxu2 %v6345_v54 }
  0x3e   : > { %1782 = vmatmul.bf16.gmra.mxu3 %v6347_v55  ;;  %1822 = vmatpush.bf16.msrb.mxu1 %v5359_v10  ;;  %v5879_v10 = vld [vmem:[%s9742_s1 + $0x144] sm:$0xf0] }
  0x3f   : > { %1662 = vmatmul.bf16.gmra.mxu0 %v6349_v56  ;;  %2157 = vmatpush.bf16.msrb.mxu3 %v5511_v62  ;;  %v5431_v23 = vor.u32 %v5879_v10, %v5430_v9  ;;  %v5415_v62 = vor.u32 %v5875_v60, %v5414_v59  ;;  %v5407_v9 = vor.u32 %v5873_v8, %v5406_v3  ;;  %v5933_v59 = vld [vmem:[%s9742_s1 + $0x2f4] sm:$0xf0]  ;;  %v5534_v60 = vld [vmem:[%s9742_s1 + $0x210] sm:$0xf]  ;;  %v503_v8 = vld [vmem:[%s6289_s13 + $0x6c8] sm:$0xff] }
  0x40   : > { %1989 = vmatpush.bf16.msrb.mxu2 %v5439_v0  ;;  %v5558_v0 = vld [vmem:[%s9742_s1 + $0x240] sm:$0xf]  ;;  %2327 = vmatpush.bf16.msrb.mxu0 %v5567_v58  ;;  %v5479_v10 = vor.u32 %v5891_v63, %v5478_v61  ;;  %v5646_v58 = vld [vmem:[%s9742_s1 + $0x2f0] sm:$0xf]  ;;  %v409_v56 = vld [vmem:[%s6289_s13 + $0x3d8] sm:$0xff] }
  0x41   : > { %v5559_v2 = vor.u32 %v5911_v1, %v5558_v0  ;;  %v5647_v61 = vor.u32 %v5933_v59, %v5646_v58  ;;  %v5526_v0 = vld [vmem:[%s9742_s1 + $0x200] sm:$0xf]  ;;  %v5903_v1 = vld [vmem:[%s9742_s1 + $0x204] sm:$0xf0]  ;;  %v496_v3 = vld [vmem:[%s6289_s13 + $0x690] sm:$0xff] }
  0x42   : > { %1823 = vmatpush.bf16.msrb.mxu1 %v5351_v25  ;;  %v699_v25 = vld [vmem:[%s6289_s13 + $0xce8] sm:$0xff]  ;;  %v6643_v15 = vpack.c.bf16 %v503_v8, %v496_v3  ;;  %v304_v8 = vld [vmem:[%s6289_s13 + $0x90] sm:$0xff] }
  0x43   : > { %2158 = vmatpush.bf16.msrb.mxu3 %v5503_v14  ;;  %v6511_v32 = vpack.c.bf16 %v699_v25, %v692_v24  ;;  %v5889_v14 = vld [vmem:[%s9742_s1 + $0x194] sm:$0xf0]  ;;  %v706_v24 = vld [vmem:[%s6289_s13 + $0xd20] sm:$0xff] }
  0x44   : > { %1990 = vmatpush.bf16.msrb.mxu2 %v5431_v23  ;;  %2328 = vmatpush.bf16.msrb.mxu0 %v5559_v2  ;;  %v601_v23 = vld [vmem:[%s6289_s13 + $0x9d8] sm:$0xff]  ;;  %v5471_v26 = vor.u32 %v5889_v14, %v5470_v13  ;;  %v5527_v2 = vor.u32 %v5903_v1, %v5526_v0  ;;  %v384_v13 = vld [vmem:[%s6289_s13 + $0x310] sm:$0xff]  ;;  %v391_v14 = vld [vmem:[%s6289_s13 + $0x348] sm:$0xff]  ;;  %9995 = vst [vmem:[#allocation30_spill] sm:$0xff] %v6643_v15 }
  0x45   : > { %9989 = vst [vmem:[#allocation24_spill] sm:$0xff] %v6511_v32  ;;  %v713_v25 = vld [vmem:[%s6289_s13 + $0xd58] sm:$0xff]  ;;  %v303_v1 = vld [vmem:[%s6289_s13 + $0x88] sm:$0xff] }
  0x46   : > { %1824 = vmatpush.bf16.msrb.mxu1 %v5343_v48  ;;  %v5486_v48 = vld [vmem:[%s9742_s1 + $0x1b0] sm:$0xf]  ;;  %v309_v0 = vld [vmem:[%s6289_s13 + $0xb8] sm:$0xff] }
  0x47   : > { %2159 = vmatpush.bf16.msrb.mxu3 %v5495_v42  ;;  %v5487_v57 = vor.u32 %v5893_v50, %v5486_v48  ;;  %v377_v42 = vld [vmem:[%s6289_s13 + $0x2d8] sm:$0xff]  ;;  %v5542_v48 = vld [vmem:[%s9742_s1 + $0x220] sm:$0xf]  ;;  %v5907_v50 = vld [vmem:[%s9742_s1 + $0x224] sm:$0xf0] }
  0x48   : > { %1991 = vmatpush.bf16.msrb.mxu2 %v5423_v45  ;;  %v6595_v45 = vpack.c.bf16 %v601_v23, %v594_v18  ;;  %2329 = vmatpush.bf16.msrb.mxu0 %v5551_v17  ;;  %v6611_v51 = vpack.c.bf16 %v377_v42, %v370_v29  ;;  %v6647_v17 = vpack.c.bf16 %v727_v12, %v720_v11  ;;  %v287_v23 = vld [vmem:[%s6289_s13 + $0x8] sm:$0xff]  ;;  %v290_v29 = vld [vmem:[%s6289_s13 + $0x20] sm:$0xff]  ;;  %v297_v42 = vld [vmem:[%s6289_s13 + $0x58] sm:$0xff] }
  0x49   : > { %v6649_v18 = vpack.c.bf16 %v391_v14, %v384_v13 }
  0x4a   : > { %1825 = vmatpush.bf16.msrb.mxu1 %v5335_v49  ;;  %9992 = vst [vmem:[#allocation27_spill] sm:$0xff] %v6595_v45  ;;  %v6606_v49 = vpack.c.bf16 %v713_v25, %v706_v24  ;;  %v294_v24 = vld [vmem:[%s6289_s13 + $0x40] sm:$0xff]  ;;  %v288_v25 = vld [vmem:[%s6289_s13 + $0x10] sm:$0xff] }
  0x4b   : > { %2160 = vmatpush.bf16.msrb.mxu3 %v5487_v57  ;;  %9994 = vst [vmem:[#allocation29_spill] sm:$0xff] %v6611_v51  ;;  %v5543_v57 = vor.u32 %v5907_v50, %v5542_v48  ;;  %v6669_v48 = vpack.c.bf16 %v296_v28, %v289_v27  ;;  %v6671_v50 = vpack.c.bf16 %v297_v42, %v290_v29  ;;  %v315_v29 = vld [vmem:[%s6289_s13 + $0xe8] sm:$0xff]  ;;  %v322_v42 = vld [vmem:[%s6289_s13 + $0x120] sm:$0xff] }
  0x4c   : > { %1992 = vmatpush.bf16.msrb.mxu2 %v5415_v62  ;;  %9993 = vst [vmem:[#allocation28_spill] sm:$0xff] %v6606_v49  ;;  %v5905_v62 = vld [vmem:[%s9742_s1 + $0x214] sm:$0xf0] }
  0x4d   : > { %1707 = vmatmul.bf16.gmra.mxu1 %v6369_v4  ;;  %1747 = vmatmul.bf16.gmra.mxu2 %v6371_v5  ;;  %v5535_v63 = vor.u32 %v5905_v62, %v5534_v60  ;;  %9997 = vst [vmem:[#allocation32_spill] sm:$0xff] %v6647_v17  ;;  %v308_v62 = vld [vmem:[%s6289_s13 + $0xb0] sm:$0xff] }
  0x4e   : > { %1787 = vmatmul.bf16.gmra.mxu3 %v6373_v6  ;;  %2330 = vmatpush.bf16.msrb.mxu0 %v5543_v57  ;;  %9998 = vst [vmem:[#allocation33_spill] sm:$0xff] %v6649_v18 }
  0x4f   : > { %1667 = vmatmul.bf16.gmra.mxu0 %v6375_v7  ;;  %2161 = vmatpush.bf16.msrb.mxu3 %v5479_v10  ;;  %v615_v10 = vld [vmem:[%s6289_s13 + $0xa48] sm:$0xff]  ;;  %10001 = vst [vmem:[#allocation36_spill] sm:$0xff] %v6669_v48 }
  0x50   : > { %1993 = vmatpush.bf16.msrb.mxu2 %v5407_v9  ;;  %2494 = vmatpush.bf16.msra.mxu1 %v5647_v61  ;;  %v608_v9 = vld [vmem:[%s6289_s13 + $0xa10] sm:$0xff]  ;;  %10002 = vst [vmem:[#allocation37_spill] sm:$0xff] %v6671_v50  ;;  %v301_v61 = vld [vmem:[%s6289_s13 + $0x78] sm:$0xff] }
  0x51   : > { %v6645_v16 = vpack.c.bf16 %v615_v10, %v608_v9  ;;  %v311_v9 = vld [vmem:[%s6289_s13 + $0xc8] sm:$0xff]  ;;  %v6699_v11 = vpack.c.bf16 %v308_v62, %v301_v61  ;;  %v316_v61 = vld [vmem:[%s6289_s13 + $0xf0] sm:$0xff] }
  0x52   : > { %2331 = vmatpush.bf16.msrb.mxu0 %v5535_v63  ;;  %v302_v63 = vld [vmem:[%s6289_s13 + $0x80] sm:$0xff]  ;;  %v323_v62 = vld [vmem:[%s6289_s13 + $0x128] sm:$0xff] }
  0x53   : > { %2162 = vmatpush.bf16.msrb.mxu3 %v5471_v26  ;;  %9996 = vst [vmem:[#allocation31_spill] sm:$0xff] %v6645_v16  ;;  %v295_v26 = vld [vmem:[%s6289_s13 + $0x48] sm:$0xff]  ;;  %v6701_v12 = vpack.c.bf16 %v309_v0, %v302_v63  ;;  %v317_v63 = vld [vmem:[%s6289_s13 + $0xf8] sm:$0xff]  ;;  %v324_v0 = vld [vmem:[%s6289_s13 + $0x130] sm:$0xff] }
  0x54   : > { %1994 = vmatpush.bf16.msrb.mxu2 %v5399_v43  ;;  %v6663_v43 = vpack.c.bf16 %v294_v24, %v287_v23  ;;  %v6665_v46 = vpack.c.bf16 %v295_v26, %v288_v25  ;;  %10005 = vst [vmem:[#allocation40_spill] sm:$0xff] %v6699_v11  ;;  %v6707_v23 = vpack.c.bf16 %v311_v9, %v304_v8  ;;  %v325_v8 = vld [vmem:[%s6289_s13 + $0x138] sm:$0xff] }
  0x55   : > { %10006 = vst [vmem:[#allocation41_spill] sm:$0xff] %v6701_v12 }
  0x56   : > { %2332 = vmatpush.bf16.msrb.mxu0 %v5527_v2  ;;  %9999 = vst [vmem:[#allocation34_spill] sm:$0xff] %v6663_v43  ;;  %v310_v2 = vld [vmem:[%s6289_s13 + $0xc0] sm:$0xff] }
  0x57   : > { %2163 = vmatpush.bf16.msrb.mxu3 %v5463_v52  ;;  %10000 = vst [vmem:[#allocation35_spill] sm:$0xff] %v6665_v46  ;;  %v6705_v14 = vpack.c.bf16 %v310_v2, %v303_v1  ;;  %v318_v2 = vld [vmem:[%s6289_s13 + $0x100] sm:$0xff] }
  0x58   : > { %10008 = vst [vmem:[#allocation43_spill] sm:$0xff] %v6707_v23 }
  0x59   : > { %10007 = vst [vmem:[#allocation42_spill] sm:$0xff] %v6705_v14 }
  0x5d   : > { %1712 = vmatmul.bf16.gmra.mxu1 %v6395_v19  ;;  %1752 = vmatmul.bf16.gmra.mxu2 %v6397_v20 }
  0x5e   : > { %1792 = vmatmul.bf16.gmra.mxu3 %v6399_v21 }
  0x5f   : > { %1672 = vmatmul.bf16.gmra.mxu0 %v6401_v22 }
  0x6d   : > { %1717 = vmatmul.bf16.gmra.mxu1 %v6421_v34  ;;  %1757 = vmatmul.bf16.gmra.mxu2 %v6423_v35  ;;  %v366_v34 = vld [vmem:[%s6289_s13 + $0x280] sm:$0xff] }
  0x6e   : > { %1797 = vmatmul.bf16.gmra.mxu3 %v6425_v36  ;;  %v338_v36 = vld [vmem:[%s6289_s13 + $0x1a0] sm:$0xff] }
  0x6f   : > { %1677 = vmatmul.bf16.gmra.mxu0 %v6427_v41 }
  0x7d   : > { %1722 = vmatmul.bf16.gmra.mxu1 %v6507_v30  ;;  %1762 = vmatmul.bf16.gmra.mxu2 %v6509_v31  ;;  %v352_v31 = vld [vmem:[%s6289_s13 + $0x210] sm:$0xff]  ;;  %v359_v30 = vld [vmem:[%s6289_s13 + $0x248] sm:$0xff] }
  0x7e   : > { %1802 = vmatmul.bf16.gmra.mxu3 %v6511_v32  ;;  %v331_v32 = vld [vmem:[%s6289_s13 + $0x168] sm:$0xff] }
  0x7f   : > { %1682 = vmatmul.bf16.gmra.mxu0 %v6513_v33  ;;  %v6783_v55 = vpack.c.bf16 %v338_v36, %v331_v32 }
  0x81   : > { %10019 = vst [vmem:[#allocation54_spill] sm:$0xff] %v6783_v55 }
  0x8d   : > { %1727 = vmatmul.bf16.gmra.mxu1 %v6593_v44  ;;  %1767 = vmatmul.bf16.gmra.mxu2 %v6595_v45  ;;  %v345_v45 = vld [vmem:[%s6289_s13 + $0x1d8] sm:$0xff] }
  0x8e   : > { %1807 = vmatmul.bf16.gmra.mxu3 %v6606_v49  ;;  %v337_v49 = vld [vmem:[%s6289_s13 + $0x198] sm:$0xff]  ;;  %v6819_v38 = vpack.c.bf16 %v352_v31, %v345_v45  ;;  %v364_v45 = vld [vmem:[%s6289_s13 + $0x270] sm:$0xff] }
  0x8f   : > { %1687 = vmatmul.bf16.gmra.mxu0 %v6611_v51 }
  0x90   : > { %10025 = vst [vmem:[#allocation60_spill] sm:$0xff] %v6819_v38 }
  0x9d   : > { %1732 = vmatmul.bf16.gmra.mxu1 %v6643_v15  ;;  %1772 = vmatmul.bf16.gmra.mxu2 %v6645_v16 }
  0x9e   : > { %1812 = vmatmul.bf16.gmra.mxu3 %v6647_v17  ;;  %v330_v17 = vld [vmem:[%s6289_s13 + $0x160] sm:$0xff] }
  0x9f   : > { %1692 = vmatmul.bf16.gmra.mxu0 %v6649_v18  ;;  %v6779_v21 = vpack.c.bf16 %v337_v49, %v330_v17  ;;  %v6855_v18 = vpack.c.bf16 %v366_v34, %v359_v30  ;;  %v378_v30 = vld [vmem:[%s6289_s13 + $0x2e0] sm:$0xff] }
  0xa1   : > { %10018 = vst [vmem:[#allocation53_spill] sm:$0xff] %v6779_v21 }
  0xa2   : > { %10031 = vst [vmem:[#allocation66_spill] sm:$0xff] %v6855_v18 }
  0xaa   : > { %v6667_v47 = vpop.f32.mrf.mxu1 }
  0xac   : > { %v6673_v52 = vpop.f32.mrf.mxu0 }
  0xad   : > { %1826 = vmatmul.bf16.vlgmr.msrb.gmra.mxu1 %v6663_v43  ;;  %1995 = vmatmul.bf16.vlgmr.msrb.gmra.mxu2 %v6665_v46 }
  0xae   : > { %2164 = vmatmul.bf16.vlgmr.msrb.gmra.mxu3 %v6669_v48  ;;  %v6743_v48 = vpack.c.bf16 %v325_v8, %v318_v2  ;;  %v329_v8 = vld [vmem:[%s6289_s13 + $0x158] sm:$0xff] }
  0xaf   : > { %2333 = vmatmul.bf16.vlgmr.msrb.gmra.mxu0 %v6671_v50  ;;  %v6741_v50 = vpack.c.bf16 %v324_v0, %v317_v63 }
  0xb0   : > { %v6679_v57 = vpop.f32.mrf.mxu2  ;;  %10014 = vst [vmem:[#allocation49_spill] sm:$0xff] %v6743_v48 }
  0xb1   : > { %v6681_v58 = vpop.f32.mrf.mxu3  ;;  %10013 = vst [vmem:[#allocation48_spill] sm:$0xff] %v6741_v50 }
  0xb2   : > { %10003 = vst [vmem:[#allocation38_spill] sm:$0xff] %v6681_v58  ;;  %v6683_v59 = vpop.f32.mrf.mxu1 }
  0xb4   : > { %v6685_v60 = vpop.f32.mrf.mxu0 }
  0xb8   : > { %v6693_v3 = vpop.f32.mrf.mxu2 }
  0xb9   : > { %v6697_v10 = vpop.f32.mrf.mxu3 }
  0xba   : > { %10004 = vst [vmem:[#allocation39_spill] sm:$0xff] %v6697_v10  ;;  %v6703_v13 = vpop.f32.mrf.mxu1 }
  0xbc   : > { %v6709_v24 = vpop.f32.mrf.mxu0 }
  0xbd   : > { %1831 = vmatmul.bf16.gmra.mxu1 %v6699_v11  ;;  %2000 = vmatmul.bf16.gmra.mxu2 %v6701_v12 }
  0xbe   : > { %2169 = vmatmul.bf16.gmra.mxu3 %v6705_v14  ;;  %v6737_v14 = vpack.c.bf16 %v323_v62, %v316_v61 }
  0xbf   : > { %2338 = vmatmul.bf16.gmra.mxu0 %v6707_v23  ;;  %v6735_v23 = vpack.c.bf16 %v322_v42, %v315_v29  ;;  %v5638_v29 = vld [vmem:[%s9742_s1 + $0x2e0] sm:$0xf]  ;;  %v5931_v42 = vld [vmem:[%s9742_s1 + $0x2e4] sm:$0xf0] }
  0xc0   : > { %v6715_v25 = vpop.f32.mrf.mxu2  ;;  %10012 = vst [vmem:[#allocation47_spill] sm:$0xff] %v6737_v14  ;;  %v5639_v61 = vor.u32 %v5931_v42, %v5638_v29  ;;  %v332_v29 = vld [vmem:[%s6289_s13 + $0x170] sm:$0xff]  ;;  %v339_v42 = vld [vmem:[%s6289_s13 + $0x1a8] sm:$0xff] }
  0xc1   : > { %v6717_v26 = vpop.f32.mrf.mxu3  ;;  %10011 = vst [vmem:[#allocation46_spill] sm:$0xff] %v6735_v23  ;;  %v6785_v39 = vpack.c.bf16 %v339_v42, %v332_v29  ;;  %v344_v29 = vld [vmem:[%s6289_s13 + $0x1d0] sm:$0xff]  ;;  %v351_v42 = vld [vmem:[%s6289_s13 + $0x208] sm:$0xff] }
  0xc2   : > { %10009 = vst [vmem:[#allocation44_spill] sm:$0xff] %v6717_v26  ;;  %v6719_v27 = vpop.f32.mrf.mxu1  ;;  %2495 = vmatpush.bf16.msra.mxu1 %v5639_v61  ;;  %v6815_v5 = vpack.c.bf16 %v351_v42, %v344_v29  ;;  %v358_v29 = vld [vmem:[%s6289_s13 + $0x240] sm:$0xff]  ;;  %v365_v42 = vld [vmem:[%s6289_s13 + $0x278] sm:$0xff] }
  0xc3   : > { %10020 = vst [vmem:[#allocation55_spill] sm:$0xff] %v6785_v39  ;;  %v6851_v53 = vpack.c.bf16 %v365_v42, %v358_v29  ;;  %v372_v29 = vld [vmem:[%s6289_s13 + $0x2b0] sm:$0xff]  ;;  %v379_v42 = vld [vmem:[%s6289_s13 + $0x2e8] sm:$0xff] }
  0xc4   : > { %v6721_v28 = vpop.f32.mrf.mxu0  ;;  %10024 = vst [vmem:[#allocation59_spill] sm:$0xff] %v6815_v5 }
  0xc5   : > { %10030 = vst [vmem:[#allocation65_spill] sm:$0xff] %v6851_v53 }
  0xc8   : > { %v6729_v1 = vpop.f32.mrf.mxu2 }
  0xc9   : > { %v6733_v9 = vpop.f32.mrf.mxu3 }
  0xca   : > { %10010 = vst [vmem:[#allocation45_spill] sm:$0xff] %v6733_v9  ;;  %v6739_v12 = vpop.f32.mrf.mxu1  ;;  %v5852_v9 = vld [vmem:[%s9742_s1 + $0x74] sm:$0xf] }
  0xcc   : > { %v6745_v46 = vpop.f32.mrf.mxu0 }
  0xcd   : > { %1836 = vmatmul.bf16.gmra.mxu1 %v6735_v23  ;;  %2005 = vmatmul.bf16.gmra.mxu2 %v6737_v14  ;;  %v336_v14 = vld [vmem:[%s6289_s13 + $0x190] sm:$0xff] }
  0xce   : > { %2174 = vmatmul.bf16.gmra.mxu3 %v6741_v50  ;;  %v6777_v61 = vpack.c.bf16 %v336_v14, %v329_v8  ;;  %v343_v14 = vld [vmem:[%s6289_s13 + $0x1c8] sm:$0xff]  ;;  %v350_v8 = vld [vmem:[%s6289_s13 + $0x200] sm:$0xff] }
  0xcf   : > { %2343 = vmatmul.bf16.gmra.mxu0 %v6743_v48  ;;  %v6813_v20 = vpack.c.bf16 %v350_v8, %v343_v14 }
  0xd0   : > { %v6757_v62 = vpop.f32.mrf.mxu2  ;;  %10017 = vst [vmem:[#allocation52_spill] sm:$0xff] %v6777_v61 }
  0xd1   : > { %v6759_v63 = vpop.f32.mrf.mxu3  ;;  %10023 = vst [vmem:[#allocation58_spill] sm:$0xff] %v6813_v20 }
  0xd2   : > { %10015 = vst [vmem:[#allocation50_spill] sm:$0xff] %v6759_v63  ;;  %v6761_v0 = vpop.f32.mrf.mxu1 }
  0xd4   : > { %v6763_v2 = vpop.f32.mrf.mxu0 }
  0xd8   : > { %v6771_v50 = vpop.f32.mrf.mxu2 }
  0xd9   : > { %v6775_v48 = vpop.f32.mrf.mxu3 }
  0xda   : > { %10016 = vst [vmem:[#allocation51_spill] sm:$0xff] %v6775_v48  ;;  %v6781_v6 = vpop.f32.mrf.mxu1  ;;  %v395_v48 = vld [vmem:[%s6289_s13 + $0x368] sm:$0xff] }
  0xdc   : > { %v6787_v16 = vpop.f32.mrf.mxu0 }
  0xdd   : > { %1841 = vmatmul.bf16.gmra.mxu1 %v6777_v61  ;;  %2010 = vmatmul.bf16.gmra.mxu2 %v6779_v21  ;;  %v346_v21 = vld [vmem:[%s6289_s13 + $0x1e0] sm:$0xff] }
  0xde   : > { %2179 = vmatmul.bf16.gmra.mxu3 %v6783_v55  ;;  %v353_v55 = vld [vmem:[%s6289_s13 + $0x218] sm:$0xff] }
  0xdf   : > { %2348 = vmatmul.bf16.gmra.mxu0 %v6785_v39  ;;  %v6821_v15 = vpack.c.bf16 %v353_v55, %v346_v21  ;;  %v357_v21 = vld [vmem:[%s6289_s13 + $0x238] sm:$0xff] }
  0xe0   : > { %v6793_v49 = vpop.f32.mrf.mxu2  ;;  %v6849_v4 = vpack.c.bf16 %v364_v45, %v357_v21 }
  0xe1   : > { %v6795_v17 = vpop.f32.mrf.mxu3  ;;  %10026 = vst [vmem:[#allocation61_spill] sm:$0xff] %v6821_v15 }
  0xe2   : > { %10021 = vst [vmem:[#allocation56_spill] sm:$0xff] %v6795_v17  ;;  %v6797_v36 = vpop.f32.mrf.mxu1  ;;  %v388_v17 = vld [vmem:[%s6289_s13 + $0x330] sm:$0xff] }
  0xe3   : > { %10029 = vst [vmem:[#allocation64_spill] sm:$0xff] %v6849_v4 }
  0xe4   : > { %v6799_v32 = vpop.f32.mrf.mxu0 }
  0xe8   : > { %v6807_v35 = vpop.f32.mrf.mxu2 }
  0xe9   : > { %v6811_v39 = vpop.f32.mrf.mxu3 }
  0xea   : > { %10022 = vst [vmem:[#allocation57_spill] sm:$0xff] %v6811_v39  ;;  %v6817_v54 = vpop.f32.mrf.mxu1 }
  0xec   : > { %v6823_v44 = vpop.f32.mrf.mxu0 }
  0xed   : > { %1846 = vmatmul.bf16.gmra.mxu1 %v6813_v20  ;;  %2015 = vmatmul.bf16.gmra.mxu2 %v6815_v5  ;;  %v360_v5 = vld [vmem:[%s6289_s13 + $0x250] sm:$0xff] }
  0xee   : > { %2184 = vmatmul.bf16.gmra.mxu3 %v6819_v38  ;;  %v367_v38 = vld [vmem:[%s6289_s13 + $0x288] sm:$0xff] }
  0xef   : > { %2353 = vmatmul.bf16.gmra.mxu0 %v6821_v15  ;;  %v6857_v51 = vpack.c.bf16 %v367_v38, %v360_v5  ;;  %v371_v5 = vld [vmem:[%s6289_s13 + $0x2a8] sm:$0xff] }
  0xf0   : > { %v6829_v14 = vpop.f32.mrf.mxu2 }
  0xf1   : > { %v6831_v8 = vpop.f32.mrf.mxu3  ;;  %10032 = vst [vmem:[#allocation67_spill] sm:$0xff] %v6857_v51 }
  0xf2   : > { %10027 = vst [vmem:[#allocation62_spill] sm:$0xff] %v6831_v8  ;;  %v6833_v31 = vpop.f32.mrf.mxu1  ;;  %v6887_v8 = vpack.c.bf16 %v379_v42, %v372_v29  ;;  %v385_v42 = vld [vmem:[%s6289_s13 + $0x318] sm:$0xff] }
  0xf4   : > { %v6835_v55 = vpop.f32.mrf.mxu0  ;;  %10037 = vst [vmem:[#allocation72_spill] sm:$0xff] %v6887_v8 }
  0xf8   : > { %v6843_v19 = vpop.f32.mrf.mxu2 }
  0xf9   : > { %v6847_v15 = vpop.f32.mrf.mxu3 }
  0xfa   : > { %10028 = vst [vmem:[#allocation63_spill] sm:$0xff] %v6847_v15  ;;  %v6853_v37 = vpop.f32.mrf.mxu1  ;;  %v380_v15 = vld [vmem:[%s6289_s13 + $0x2f0] sm:$0xff] }
  0xfc   : > { %v6859_v33 = vpop.f32.mrf.mxu0 }
  0xfd   : > { %1851 = vmatmul.bf16.gmra.mxu1 %v6849_v4  ;;  %2020 = vmatmul.bf16.gmra.mxu2 %v6851_v53  ;;  %v373_v4 = vld [vmem:[%s6289_s13 + $0x2b8] sm:$0xff]  ;;  %v374_v53 = vld [vmem:[%s6289_s13 + $0x2c0] sm:$0xff] }
  0xfe   : > { %2189 = vmatmul.bf16.gmra.mxu3 %v6855_v18  ;;  %v381_v18 = vld [vmem:[%s6289_s13 + $0x2f8] sm:$0xff]  ;;  %v6891_v39 = vpack.c.bf16 %v380_v15, %v373_v4 }
  0xff   : > { %2358 = vmatmul.bf16.gmra.mxu0 %v6857_v51  ;;  %v6885_v51 = vpack.c.bf16 %v378_v30, %v371_v5  ;;  %v6893_v61 = vpack.c.bf16 %v381_v18, %v374_v53  ;;  %v5630_v5 = vld [vmem:[%s9742_s1 + $0x2d0] sm:$0xf]  ;;  %v5929_v4 = vld [vmem:[%s9742_s1 + $0x2d4] sm:$0xf0] }
 0x100   : > { %v6865_v21 = vpop.f32.mrf.mxu2  ;;  %10038 = vst [vmem:[#allocation73_spill] sm:$0xff] %v6891_v39  ;;  %v5631_v53 = vor.u32 %v5929_v4, %v5630_v5  ;;  %v5935_v5 = vld [vmem:[%s9742_s1 + $0x304] sm:$0xf0]  ;;  %v392_v4 = vld [vmem:[%s6289_s13 + $0x350] sm:$0xff] }
 0x101   : > { %v6867_v45 = vpop.f32.mrf.mxu3  ;;  %10036 = vst [vmem:[#allocation71_spill] sm:$0xff] %v6885_v51  ;;  %v6933_v7 = vpack.c.bf16 %v392_v4, %v385_v42  ;;  %v6947_v42 = vpack.c.bf16 %v395_v48, %v388_v17 }
 0x102   : > { %10033 = vst [vmem:[#allocation68_spill] sm:$0xff] %v6867_v45  ;;  %v6869_v34 = vpop.f32.mrf.mxu1  ;;  %2496 = vmatpush.bf16.msra.mxu1 %v5631_v53  ;;  %v387_v53 = vld [vmem:[%s6289_s13 + $0x328] sm:$0xff] }
 0x103   : > { %10039 = vst [vmem:[#allocation74_spill] sm:$0xff] %v6893_v61 }
 0x104   : > { %v6871_v38 = vpop.f32.mrf.mxu0  ;;  %10044 = vst [vmem:[#allocation79_spill] sm:$0xff] %v6933_v7 }
 0x105   : > { %10047 = vst [vmem:[#allocation82_spill] sm:$0xff] %v6947_v42 }
 0x108   : > { %v6879_v20 = vpop.f32.mrf.mxu2 }
 0x109   : > { %10034 = vst [vmem:[#allocation69_spill] sm:$0xff] %v6879_v20  ;;  %v6883_v41 = vpop.f32.mrf.mxu3 }
 0x10a   : > { %10035 = vst [vmem:[#allocation70_spill] sm:$0xff] %v6883_v41  ;;  %v6889_v45 = vpop.f32.mrf.mxu1  ;;  %v394_v41 = vld [vmem:[%s6289_s13 + $0x360] sm:$0xff] }
 0x10b   : > { %v6945_v11 = vpack.c.bf16 %v394_v41, %v387_v53  ;;  %v399_v53 = vld [vmem:[%s6289_s13 + $0x388] sm:$0xff] }
 0x10c   : > { %v6895_v22 = vpop.f32.mrf.mxu0 }
 0x10d   : > { %1856 = vmatmul.bf16.gmra.mxu1 %v6885_v51  ;;  %2025 = vmatmul.bf16.gmra.mxu2 %v6887_v8  ;;  %v393_v8 = vld [vmem:[%s6289_s13 + $0x358] sm:$0xff]  ;;  %10046 = vst [vmem:[#allocation81_spill] sm:$0xff] %v6945_v11 }
 0x10e   : > { %2194 = vmatmul.bf16.gmra.mxu3 %v6891_v39  ;;  %v5654_v39 = vld [vmem:[%s9742_s1 + $0x300] sm:$0xf] }
 0x10f   : > { %2363 = vmatmul.bf16.gmra.mxu0 %v6893_v61  ;;  %v386_v61 = vld [vmem:[%s6289_s13 + $0x320] sm:$0xff]  ;;  %v5655_v51 = vor.u32 %v5935_v5, %v5654_v39  ;;  %v5328_v39 = vld [vmem:[%s9742_s1 + $0x78] sm:$0xf0] }
 0x110   : > { %v6907_v15 = vpop.f32.mrf.mxu2  ;;  %v6935_v63 = vpack.c.bf16 %v393_v8, %v386_v61 }
 0x111   : > { %10040 = vst [vmem:[#allocation75_spill] sm:$0xff] %v6907_v15  ;;  %v6909_v18 = vpop.f32.mrf.mxu3  ;;  %2670 = vmatpush.bf16.msra.mxu2 %v5655_v51  ;;  %v5331_v51 = vor.u32 %v5852_v9, %v5328_v39  ;;  %v1056_v9 = vld [vmem:[%s9743_s2] sm:$0x3] }
 0x112   : > { %10041 = vst [vmem:[#allocation76_spill] sm:$0xff] %v6909_v18  ;;  %v6911_v30 = vpop.f32.mrf.mxu1  ;;  %v6966_v4 = vperm.slane %v1056_v9, 0  ;;  %v406_v39 = vld [vmem:[%s6289_s13 + $0x3c0] sm:$0xff] }
 0x113   : > { %10045 = vst [vmem:[#allocation80_spill] sm:$0xff] %v6935_v63  ;;  %2832 = vmatpush.bf16.msra.mxu3 %v5331_v51  ;;  %v400_v51 = vld [vmem:[%s6289_s13 + $0x390] sm:$0xff]  ;;  %v6982_v10 = vpack.c.bf16 %v406_v39, %v399_v53 }
 0x114   : > { %v6913_v29 = vpop.f32.mrf.mxu0 }
 0x115   : > { %10052 = vst [vmem:[#allocation87_spill] sm:$0xff] %v6982_v10 }
 0x118   : > { %v6927_v18 = vpop.f32.mrf.mxu2 }
 0x119   : > { %10042 = vst [vmem:[#allocation77_spill] sm:$0xff] %v6927_v18  ;;  %v6931_v23 = vpop.f32.mrf.mxu3  ;;  %v416_v18 = vld [vmem:[%s6289_s13 + $0x410] sm:$0xff] }
 0x11a   : > { %10043 = vst [vmem:[#allocation78_spill] sm:$0xff] %v6931_v23  ;;  %v6943_v5 = vpop.f32.mrf.mxu1  ;;  %v402_v23 = vld [vmem:[%s6289_s13 + $0x3a0] sm:$0xff] }
 0x11c   : > { %v6949_v61 = vpop.f32.mrf.mxu0 }
 0x11d   : > { %1861 = vmatmul.bf16.gmra.mxu1 %v6933_v7  ;;  %2030 = vmatmul.bf16.gmra.mxu2 %v6935_v63  ;;  %v401_v63 = vld [vmem:[%s6289_s13 + $0x398] sm:$0xff]  ;;  %v408_v7 = vld [vmem:[%s6289_s13 + $0x3d0] sm:$0xff] }
 0x11e   : > { %2199 = vmatmul.bf16.gmra.mxu3 %v6945_v11  ;;  %v407_v11 = vld [vmem:[%s6289_s13 + $0x3c8] sm:$0xff]  ;;  %v6986_v40 = vpack.c.bf16 %v408_v7, %v401_v63 }
 0x11f   : > { %2368 = vmatmul.bf16.gmra.mxu0 %v6947_v42  ;;  %v1659_v42 = vadd.f32 %v6673_v52, %v6966_v4  ;;  %v6984_v43 = vpack.c.bf16 %v407_v11, %v400_v51  ;;  %v1661_v11 = vadd.f32 %v6685_v60, %v6966_v4  ;;  %v1664_v60 = vadd.f32 %v6709_v24, %v6966_v4 }
 0x120   : > { %v6955_v41 = vpop.f32.mrf.mxu2  ;;  %10054 = vst [vmem:[#allocation89_spill] sm:$0xff] %v6986_v40 }
 0x121   : > { %10048 = vst [vmem:[#allocation83_spill] sm:$0xff] %v6955_v41  ;;  %v6957_v48 = vpop.f32.mrf.mxu3  ;;  %v6988_v41 = vpack.c.bf16 %v409_v56, %v402_v23 }
 0x122   : > { %10049 = vst [vmem:[#allocation84_spill] sm:$0xff] %v6957_v48  ;;  %v6962_v17 = vpop.f32.mrf.mxu1 }
 0x123   : > { %10053 = vst [vmem:[#allocation88_spill] sm:$0xff] %v6984_v43 }
 0x124   : > { %v6964_v8 = vpop.f32.mrf.mxu0  ;;  %10055 = vst [vmem:[#allocation90_spill] sm:$0xff] %v6988_v41 }
 0x128   : > { %v6976_v48 = vpop.f32.mrf.mxu2 }
 0x129   : > { %10050 = vst [vmem:[#allocation85_spill] sm:$0xff] %v6976_v48  ;;  %v6980_v26 = vpop.f32.mrf.mxu3 }
 0x12a   : > { %10051 = vst [vmem:[#allocation86_spill] sm:$0xff] %v6980_v26  ;;  %v1827_v9 = vpop.f32.mrf.mxu1  ;;  %v415_v26 = vld [vmem:[%s6289_s13 + $0x408] sm:$0xff] }
 0x12b   : > { %v1828_v58 = vadd.f32 %v1827_v9, %v1659_v42  ;;  %v413_v9 = vld [vmem:[%s6289_s13 + $0x3f8] sm:$0xff] }
 0x12c   : > { %v2334_v52 = vpop.f32.mrf.mxu0 }
 0x12d   : > { %1866 = vmatmul.bf16.gmra.mxu1 %v6982_v10  ;;  %2035 = vmatmul.bf16.gmra.mxu2 %v6984_v43  ;;  %v414_v43 = vld [vmem:[%s6289_s13 + $0x400] sm:$0xff]  ;;  %v421_v10 = vld [vmem:[%s6289_s13 + $0x438] sm:$0xff] }
 0x12e   : > { %2204 = vmatmul.bf16.gmra.mxu3 %v6986_v40  ;;  %v420_v40 = vld [vmem:[%s6289_s13 + $0x430] sm:$0xff] }
 0x12f   : > { %2373 = vmatmul.bf16.gmra.mxu0 %v6988_v41  ;;  %v422_v41 = vld [vmem:[%s6289_s13 + $0x440] sm:$0xff]  ;;  %v7008_v20 = vpack.c.bf16 %v420_v40, %v413_v9  ;;  %v1666_v40 = vadd.f32 %v6721_v28, %v6966_v4  ;;  %v1669_v28 = vadd.f32 %v6745_v46, %v6966_v4 }
 0x130   : > { %v1996_v7 = vpop.f32.mrf.mxu2  ;;  %v434_v9 = vld [vmem:[%s6289_s13 + $0x4a0] sm:$0xff] }
 0x131   : > { %v1997_v56 = vadd.f32 %v1996_v7, %v1828_v58  ;;  %v2165_v23 = vpop.f32.mrf.mxu3  ;;  %v423_v58 = vld [vmem:[%s6289_s13 + $0x448] sm:$0xff]  ;;  %10057 = vst [vmem:[#allocation92_spill] sm:$0xff] %v7008_v20 }
 0x132   : > { %v1829_v63 = vpop.f32.mrf.mxu1 }
 0x133   : > { %v1830_v42 = vadd.f32 %v1829_v63, %v1661_v11  ;;  %v2166_v53 = vadd.f32 %v2165_v23, %v1997_v56  ;;  %v7010_v11 = vpack.c.bf16 %v421_v10, %v414_v43  ;;  %v7012_v56 = vpack.c.bf16 %v422_v41, %v415_v26 }
 0x134   : > { %v2336_v39 = vpop.f32.mrf.mxu0 }
 0x135   : > { %v6996_v51 = vadd.f32 %v2334_v52, %v2166_v53  ;;  %10058 = vst [vmem:[#allocation93_spill] sm:$0xff] %v7010_v11  ;;  %v7014_v53 = vpack.c.bf16 %v423_v58, %v416_v18  ;;  %v435_v58 = vld [vmem:[%s6289_s13 + $0x4a8] sm:$0xff] }
 0x136   : > { %10059 = vst [vmem:[#allocation94_spill] sm:$0xff] %v7012_v56 }
 0x137   : > { %10056 = vst [vmem:[#allocation91_spill] sm:$0xff] %v6996_v51 }
 0x138   : > { %v1998_v48 = vpop.f32.mrf.mxu2  ;;  %10060 = vst [vmem:[#allocation95_spill] sm:$0xff] %v7014_v53 }
 0x139   : > { %v1999_v7 = vadd.f32 %v1998_v48, %v1830_v42  ;;  %v2167_v15 = vpop.f32.mrf.mxu3 }
 0x13a   : > { %v1832_v52 = vpop.f32.mrf.mxu1 }
 0x13b   : > { %v1833_v23 = vadd.f32 %v1832_v52, %v1664_v60  ;;  %v2168_v63 = vadd.f32 %v2167_v15, %v1999_v7  ;;  %v428_v60 = vld [vmem:[%s6289_s13 + $0x470] sm:$0xff]  ;;  %v429_v7 = vld [vmem:[%s6289_s13 + $0x478] sm:$0xff] }
 0x13c   : > { %v2339_v24 = vpop.f32.mrf.mxu0  ;;  %v436_v52 = vld [vmem:[%s6289_s13 + $0x4b0] sm:$0xff] }
 0x13d   : > { %v7016_v51 = vadd.f32 %v2336_v39, %v2168_v63  ;;  %1871 = vmatmul.bf16.gmra.mxu1 %v7008_v20  ;;  %2040 = vmatmul.bf16.gmra.mxu2 %v7010_v11  ;;  %v427_v39 = vld [vmem:[%s6289_s13 + $0x468] sm:$0xff] }
 0x13e   : > { %2209 = vmatmul.bf16.gmra.mxu3 %v7012_v56  ;;  %v7036_v11 = vpack.c.bf16 %v434_v9, %v427_v39  ;;  %v5927_v39 = vld [vmem:[%s9742_s1 + $0x2c4] sm:$0xf0] }
 0x13f   : > { %2378 = vmatmul.bf16.gmra.mxu0 %v7014_v53  ;;  %v430_v53 = vld [vmem:[%s6289_s13 + $0x480] sm:$0xff] }
 0x140   : > { %v2001_v43 = vpop.f32.mrf.mxu2  ;;  %10061 = vst [vmem:[#allocation96_spill] sm:$0xff] %v7036_v11 }
 0x141   : > { %v2002_v10 = vadd.f32 %v2001_v43, %v1833_v23  ;;  %v2170_v26 = vpop.f32.mrf.mxu3  ;;  %v437_v23 = vld [vmem:[%s6289_s13 + $0x4b8] sm:$0xff] }
 0x142   : > { %v1834_v15 = vpop.f32.mrf.mxu1 }
 0x143   : > { %v1835_v18 = vadd.f32 %v1834_v15, %v1666_v40  ;;  %v2171_v41 = vadd.f32 %v2170_v26, %v2002_v10  ;;  %v7038_v40 = vpack.c.bf16 %v435_v58, %v428_v60  ;;  %v7040_v10 = vpack.c.bf16 %v436_v52, %v429_v7 }
 0x144   : > { %v2341_v48 = vpop.f32.mrf.mxu0 }
 0x145   : > { %v7024_v42 = vadd.f32 %v2339_v24, %v2171_v41  ;;  %10062 = vst [vmem:[#allocation97_spill] sm:$0xff] %v7038_v40  ;;  %v7042_v41 = vpack.c.bf16 %v437_v23, %v430_v53  ;;  %v1671_v53 = vadd.f32 %v6763_v2, %v6966_v4  ;;  %v441_v23 = vld [vmem:[%s6289_s13 + $0x4d8] sm:$0xff] }
 0x146   : > { %10063 = vst [vmem:[#allocation98_spill] sm:$0xff] %v7040_v10  ;;  %v449_v2 = vld [vmem:[%s6289_s13 + $0x518] sm:$0xff] }
 0x147   : > { %10064 = vst [vmem:[#allocation99_spill] sm:$0xff] %v7042_v41 }
 0x148   : > { %v2003_v63 = vpop.f32.mrf.mxu2 }
 0x149   : > { %v2004_v43 = vadd.f32 %v2003_v63, %v1835_v18  ;;  %v2172_v56 = vpop.f32.mrf.mxu3  ;;  %v5622_v18 = vld [vmem:[%s9742_s1 + $0x2c0] sm:$0xf] }
 0x14a   : > { %v1837_v24 = vpop.f32.mrf.mxu1 }
 0x14b   : > { %v1838_v26 = vadd.f32 %v1837_v24, %v1669_v28  ;;  %v2173_v15 = vadd.f32 %v2172_v56, %v2004_v43  ;;  %v5623_v56 = vor.u32 %v5927_v39, %v5622_v18  ;;  %v448_v43 = vld [vmem:[%s6289_s13 + $0x510] sm:$0xff]  ;;  %v442_v24 = vld [vmem:[%s6289_s13 + $0x4e0] sm:$0xff]  ;;  %v443_v18 = vld [vmem:[%s6289_s13 + $0x4e8] sm:$0xff] }
 0x14c   : > { %v2344_v20 = vpop.f32.mrf.mxu0  ;;  %v450_v39 = vld [vmem:[%s6289_s13 + $0x520] sm:$0xff] }
 0x14d   : > { %v7044_v46 = vadd.f32 %v2341_v48, %v2173_v15  ;;  %1876 = vmatmul.bf16.gmra.mxu1 %v7036_v11  ;;  %2045 = vmatmul.bf16.gmra.mxu2 %v7038_v40  ;;  %v1674_v15 = vadd.f32 %v6787_v16, %v6966_v4  ;;  %v7070_v40 = vpack.c.bf16 %v448_v43, %v441_v23 }
 0x14e   : > { %2214 = vmatmul.bf16.gmra.mxu3 %v7040_v10  ;;  %2497 = vmatpush.bf16.msra.mxu1 %v5623_v56 }
 0x14f   : > { %2383 = vmatmul.bf16.gmra.mxu0 %v7042_v41  ;;  %v444_v41 = vld [vmem:[%s6289_s13 + $0x4f0] sm:$0xff]  ;;  %10065 = vst [vmem:[#allocation100_spill] sm:$0xff] %v7070_v40 }
 0x150   : > { %v2006_v48 = vpop.f32.mrf.mxu2 }
 0x151   : > { %v2007_v9 = vadd.f32 %v2006_v48, %v1838_v26  ;;  %v2175_v60 = vpop.f32.mrf.mxu3  ;;  %v451_v26 = vld [vmem:[%s6289_s13 + $0x528] sm:$0xff] }
 0x152   : > { %v1839_v58 = vpop.f32.mrf.mxu1 }
 0x153   : > { %v1840_v28 = vadd.f32 %v1839_v58, %v1671_v53  ;;  %v2176_v7 = vadd.f32 %v2175_v60, %v2007_v9  ;;  %v7072_v53 = vpack.c.bf16 %v449_v2, %v442_v24  ;;  %v5320_v9 = vld [vmem:[%s9742_s1 + $0x68] sm:$0xf0]  ;;  %v7080_v60 = vpack.c.bf16 %v450_v39, %v443_v18 }
 0x154   : > { %v2346_v52 = vpop.f32.mrf.mxu0 }
 0x155   : > { %v7058_v63 = vadd.f32 %v2344_v20, %v2176_v7  ;;  %10066 = vst [vmem:[#allocation101_spill] sm:$0xff] %v7072_v53  ;;  %v5850_v20 = vld [vmem:[%s9742_s1 + $0x64] sm:$0xf] }
 0x156   : > { %10067 = vst [vmem:[#allocation102_spill] sm:$0xff] %v7080_v60  ;;  %v5323_v58 = vor.u32 %v5850_v20, %v5320_v9  ;;  %v463_v20 = vld [vmem:[%s6289_s13 + $0x588] sm:$0xff]  ;;  %v457_v9 = vld [vmem:[%s6289_s13 + $0x558] sm:$0xff] }
 0x158   : > { %v2008_v56 = vpop.f32.mrf.mxu2  ;;  %2833 = vmatpush.bf16.msra.mxu3 %v5323_v58 }
 0x159   : > { %v2009_v48 = vadd.f32 %v2008_v56, %v1840_v28  ;;  %v2177_v10 = vpop.f32.mrf.mxu3  ;;  %v7082_v28 = vpack.c.bf16 %v451_v26, %v444_v41  ;;  %v455_v56 = vld [vmem:[%s6289_s13 + $0x548] sm:$0xff]  ;;  %v462_v26 = vld [vmem:[%s6289_s13 + $0x580] sm:$0xff] }
 0x15a   : > { %v1842_v16 = vpop.f32.mrf.mxu1 }
 0x15b   : > { %v1843_v7 = vadd.f32 %v1842_v16, %v1674_v15  ;;  %v2178_v11 = vadd.f32 %v2177_v10, %v2009_v48  ;;  %10068 = vst [vmem:[#allocation103_spill] sm:$0xff] %v7082_v28  ;;  %v1676_v10 = vadd.f32 %v6799_v32, %v6966_v4  ;;  %v456_v48 = vld [vmem:[%s6289_s13 + $0x550] sm:$0xff]  ;;  %v1679_v32 = vadd.f32 %v6823_v44, %v6966_v4 }
 0x15c   : > { %v2349_v23 = vpop.f32.mrf.mxu0  ;;  %v464_v16 = vld [vmem:[%s6289_s13 + $0x590] sm:$0xff] }
 0x15d   : > { %v7084_v43 = vadd.f32 %v2346_v52, %v2178_v11  ;;  %1881 = vmatmul.bf16.gmra.mxu1 %v7070_v40  ;;  %2050 = vmatmul.bf16.gmra.mxu2 %v7072_v53  ;;  %v7104_v53 = vpack.c.bf16 %v462_v26, %v455_v56 }
 0x15e   : > { %2219 = vmatmul.bf16.gmra.mxu3 %v7080_v60 }
 0x15f   : > { %2388 = vmatmul.bf16.gmra.mxu0 %v7082_v28  ;;  %v458_v28 = vld [vmem:[%s6289_s13 + $0x560] sm:$0xff]  ;;  %10069 = vst [vmem:[#allocation104_spill] sm:$0xff] %v7104_v53 }
 0x160   : > { %v2011_v41 = vpop.f32.mrf.mxu2 }
 0x161   : > { %v2012_v24 = vadd.f32 %v2011_v41, %v1843_v7  ;;  %v2180_v11 = vpop.f32.mrf.mxu3  ;;  %v465_v7 = vld [vmem:[%s6289_s13 + $0x598] sm:$0xff] }
 0x162   : > { %v1844_v52 = vpop.f32.mrf.mxu1 }
 0x163   : > { %v1845_v2 = vadd.f32 %v1844_v52, %v1676_v10  ;;  %v2181_v15 = vadd.f32 %v2180_v11, %v2012_v24  ;;  %v7106_v10 = vpack.c.bf16 %v463_v20, %v456_v48  ;;  %v7108_v24 = vpack.c.bf16 %v464_v16, %v457_v9  ;;  %v469_v9 = vld [vmem:[%s6289_s13 + $0x5b8] sm:$0xff]  ;;  %v476_v16 = vld [vmem:[%s6289_s13 + $0x5f0] sm:$0xff] }
 0x164   : > { %v2351_v18 = vpop.f32.mrf.mxu0 }
 0x165   : > { %v7092_v39 = vadd.f32 %v2349_v23, %v2181_v15  ;;  %10070 = vst [vmem:[#allocation105_spill] sm:$0xff] %v7106_v10  ;;  %v7110_v15 = vpack.c.bf16 %v465_v7, %v458_v28  ;;  %v477_v7 = vld [vmem:[%s6289_s13 + $0x5f8] sm:$0xff] }
 0x166   : > { %10071 = vst [vmem:[#allocation106_spill] sm:$0xff] %v7108_v24 }
 0x167   : > { %10072 = vst [vmem:[#allocation107_spill] sm:$0xff] %v7110_v15 }
 0x168   : > { %v2013_v58 = vpop.f32.mrf.mxu2 }
 0x169   : > { %v2014_v41 = vadd.f32 %v2013_v58, %v1845_v2  ;;  %v2182_v60 = vpop.f32.mrf.mxu3  ;;  %v1681_v2 = vadd.f32 %v6835_v55, %v6966_v4  ;;  %v470_v58 = vld [vmem:[%s6289_s13 + $0x5c0] sm:$0xff]  ;;  %v1684_v55 = vadd.f32 %v6859_v33, %v6966_v4 }
 0x16a   : > { %v1847_v23 = vpop.f32.mrf.mxu1 }
 0x16b   : > { %v1848_v11 = vadd.f32 %v1847_v23, %v1679_v32  ;;  %v2183_v52 = vadd.f32 %v2182_v60, %v2014_v41  ;;  %v471_v41 = vld [vmem:[%s6289_s13 + $0x5c8] sm:$0xff]  ;;  %v478_v23 = vld [vmem:[%s6289_s13 + $0x600] sm:$0xff] }
 0x16c   : > { %v2354_v44 = vpop.f32.mrf.mxu0 }
 0x16d   : > { %v7112_v40 = vadd.f32 %v2351_v18, %v2183_v52  ;;  %1886 = vmatmul.bf16.gmra.mxu1 %v7104_v53  ;;  %2055 = vmatmul.bf16.gmra.mxu2 %v7106_v10  ;;  %v7132_v10 = vpack.c.bf16 %v476_v16, %v469_v9 }
 0x16e   : > { %2224 = vmatmul.bf16.gmra.mxu3 %v7108_v24 }
 0x16f   : > { %2393 = vmatmul.bf16.gmra.mxu0 %v7110_v15  ;;  %v472_v15 = vld [vmem:[%s6289_s13 + $0x5d0] sm:$0xff]  ;;  %10073 = vst [vmem:[#allocation108_spill] sm:$0xff] %v7132_v10 }
 0x170   : > { %v2016_v60 = vpop.f32.mrf.mxu2 }
 0x171   : > { %v2017_v28 = vadd.f32 %v2016_v60, %v1848_v11  ;;  %v2185_v18 = vpop.f32.mrf.mxu3  ;;  %v479_v11 = vld [vmem:[%s6289_s13 + $0x608] sm:$0xff] }
 0x172   : > { %v1849_v56 = vpop.f32.mrf.mxu1 }
 0x173   : > { %v1850_v26 = vadd.f32 %v1849_v56, %v1681_v2  ;;  %v2186_v48 = vadd.f32 %v2185_v18, %v2017_v28  ;;  %v7134_v2 = vpack.c.bf16 %v477_v7, %v470_v58  ;;  %v7136_v28 = vpack.c.bf16 %v478_v23, %v471_v41  ;;  %v483_v41 = vld [vmem:[%s6289_s13 + $0x628] sm:$0xff]  ;;  %v490_v23 = vld [vmem:[%s6289_s13 + $0x660] sm:$0xff] }
 0x174   : > { %v2356_v20 = vpop.f32.mrf.mxu0 }
 0x175   : > { %v7120_v32 = vadd.f32 %v2354_v44, %v2186_v48  ;;  %10074 = vst [vmem:[#allocation109_spill] sm:$0xff] %v7134_v2  ;;  %v7138_v48 = vpack.c.bf16 %v479_v11, %v472_v15  ;;  %v491_v11 = vld [vmem:[%s6289_s13 + $0x668] sm:$0xff] }
 0x176   : > { %10075 = vst [vmem:[#allocation110_spill] sm:$0xff] %v7136_v28 }
 0x177   : > { %10076 = vst [vmem:[#allocation111_spill] sm:$0xff] %v7138_v48 }
 0x178   : > { %v2018_v52 = vpop.f32.mrf.mxu2 }
 0x179   : > { %v2019_v60 = vadd.f32 %v2018_v52, %v1850_v26  ;;  %v2187_v24 = vpop.f32.mrf.mxu3  ;;  %v1686_v26 = vadd.f32 %v6871_v38, %v6966_v4  ;;  %v484_v52 = vld [vmem:[%s6289_s13 + $0x630] sm:$0xff]  ;;  %v1689_v38 = vadd.f32 %v6895_v22, %v6966_v4 }
 0x17a   : > { %v1852_v44 = vpop.f32.mrf.mxu1 }
 0x17b   : > { %v1853_v18 = vadd.f32 %v1852_v44, %v1684_v55  ;;  %v2188_v56 = vadd.f32 %v2187_v24, %v2019_v60  ;;  %v485_v60 = vld [vmem:[%s6289_s13 + $0x638] sm:$0xff]  ;;  %v492_v44 = vld [vmem:[%s6289_s13 + $0x670] sm:$0xff] }
 0x17c   : > { %v2359_v33 = vpop.f32.mrf.mxu0 }
 0x17d   : > { %v7140_v53 = vadd.f32 %v2356_v20, %v2188_v56  ;;  %1891 = vmatmul.bf16.gmra.mxu1 %v7132_v10  ;;  %2060 = vmatmul.bf16.gmra.mxu2 %v7134_v2  ;;  %v7160_v2 = vpack.c.bf16 %v490_v23, %v483_v41  ;;  %v5925_v41 = vld [vmem:[%s9742_s1 + $0x2b4] sm:$0xf0] }
 0x17e   : > { %2229 = vmatmul.bf16.gmra.mxu3 %v7136_v28 }
 0x17f   : > { %2398 = vmatmul.bf16.gmra.mxu0 %v7138_v48  ;;  %v486_v48 = vld [vmem:[%s6289_s13 + $0x640] sm:$0xff]  ;;  %10077 = vst [vmem:[#allocation112_spill] sm:$0xff] %v7160_v2 }
 0x180   : > { %v2021_v24 = vpop.f32.mrf.mxu2 }
 0x181   : > { %v2022_v15 = vadd.f32 %v2021_v24, %v1853_v18  ;;  %v2190_v20 = vpop.f32.mrf.mxu3  ;;  %v493_v18 = vld [vmem:[%s6289_s13 + $0x678] sm:$0xff] }
 0x182   : > { %v1854_v9 = vpop.f32.mrf.mxu1 }
 0x183   : > { %v1855_v16 = vadd.f32 %v1854_v9, %v1686_v26  ;;  %v2191_v58 = vadd.f32 %v2190_v20, %v2022_v15  ;;  %v7162_v26 = vpack.c.bf16 %v491_v11, %v484_v52  ;;  %v7164_v15 = vpack.c.bf16 %v492_v44, %v485_v60 }
 0x184   : > { %v2361_v7 = vpop.f32.mrf.mxu0 }
 0x185   : > { %v7148_v55 = vadd.f32 %v2359_v33, %v2191_v58  ;;  %10078 = vst [vmem:[#allocation113_spill] sm:$0xff] %v7162_v26  ;;  %v7166_v58 = vpack.c.bf16 %v493_v18, %v486_v48  ;;  %v1691_v48 = vadd.f32 %v6913_v29, %v6966_v4  ;;  %v497_v18 = vld [vmem:[%s6289_s13 + $0x698] sm:$0xff] }
 0x186   : > { %10079 = vst [vmem:[#allocation114_spill] sm:$0xff] %v7164_v15  ;;  %v505_v29 = vld [vmem:[%s6289_s13 + $0x6d8] sm:$0xff] }
 0x187   : > { %10080 = vst [vmem:[#allocation115_spill] sm:$0xff] %v7166_v58 }
 0x188   : > { %v2023_v56 = vpop.f32.mrf.mxu2 }
 0x189   : > { %v2024_v24 = vadd.f32 %v2023_v56, %v1855_v16  ;;  %v2192_v28 = vpop.f32.mrf.mxu3  ;;  %v5614_v16 = vld [vmem:[%s9742_s1 + $0x2b0] sm:$0xf] }
 0x18a   : > { %v1857_v33 = vpop.f32.mrf.mxu1 }
 0x18b   : > { %v1858_v20 = vadd.f32 %v1857_v33, %v1689_v38  ;;  %v2193_v9 = vadd.f32 %v2192_v28, %v2024_v24  ;;  %v5615_v28 = vor.u32 %v5925_v41, %v5614_v16  ;;  %v504_v24 = vld [vmem:[%s6289_s13 + $0x6d0] sm:$0xff]  ;;  %v498_v33 = vld [vmem:[%s6289_s13 + $0x6a0] sm:$0xff]  ;;  %v499_v16 = vld [vmem:[%s6289_s13 + $0x6a8] sm:$0xff] }
 0x18c   : > { %v2364_v10 = vpop.f32.mrf.mxu0  ;;  %v506_v41 = vld [vmem:[%s6289_s13 + $0x6e0] sm:$0xff] }
 0x18d   : > { %v7168_v22 = vadd.f32 %v2361_v7, %v2193_v9  ;;  %1896 = vmatmul.bf16.gmra.mxu1 %v7160_v2  ;;  %2065 = vmatmul.bf16.gmra.mxu2 %v7162_v26  ;;  %v1694_v9 = vadd.f32 %v6949_v61, %v6966_v4  ;;  %v7194_v26 = vpack.c.bf16 %v504_v24, %v497_v18 }
 0x18e   : > { %2234 = vmatmul.bf16.gmra.mxu3 %v7164_v15  ;;  %2498 = vmatpush.bf16.msra.mxu1 %v5615_v28 }
 0x18f   : > { %2403 = vmatmul.bf16.gmra.mxu0 %v7166_v58  ;;  %v500_v58 = vld [vmem:[%s6289_s13 + $0x6b0] sm:$0xff]  ;;  %10081 = vst [vmem:[#allocation116_spill] sm:$0xff] %v7194_v26 }
 0x190   : > { %v2026_v7 = vpop.f32.mrf.mxu2 }
 0x191   : > { %v2027_v23 = vadd.f32 %v2026_v7, %v1858_v20  ;;  %v2195_v52 = vpop.f32.mrf.mxu3  ;;  %v507_v20 = vld [vmem:[%s6289_s13 + $0x6e8] sm:$0xff] }
 0x192   : > { %v1859_v11 = vpop.f32.mrf.mxu1 }
 0x193   : > { %v1860_v38 = vadd.f32 %v1859_v11, %v1691_v48  ;;  %v2196_v60 = vadd.f32 %v2195_v52, %v2027_v23  ;;  %v7196_v48 = vpack.c.bf16 %v505_v29, %v498_v33  ;;  %v5312_v23 = vld [vmem:[%s9742_s1 + $0x58] sm:$0xf0]  ;;  %v7204_v52 = vpack.c.bf16 %v506_v41, %v499_v16 }
 0x194   : > { %v2366_v44 = vpop.f32.mrf.mxu0 }
 0x195   : > { %v7182_v56 = vadd.f32 %v2364_v10, %v2196_v60  ;;  %10082 = vst [vmem:[#allocation117_spill] sm:$0xff] %v7196_v48  ;;  %v5848_v10 = vld [vmem:[%s9742_s1 + $0x54] sm:$0xf] }
 0x196   : > { %10083 = vst [vmem:[#allocation118_spill] sm:$0xff] %v7204_v52  ;;  %v5315_v11 = vor.u32 %v5848_v10, %v5312_v23  ;;  %v519_v10 = vld [vmem:[%s6289_s13 + $0x748] sm:$0xff]  ;;  %v513_v23 = vld [vmem:[%s6289_s13 + $0x718] sm:$0xff] }
 0x198   : > { %v2028_v28 = vpop.f32.mrf.mxu2  ;;  %2834 = vmatpush.bf16.msra.mxu3 %v5315_v11  ;;  %v514_v11 = vld [vmem:[%s6289_s13 + $0x720] sm:$0xff] }
 0x199   : > { %v2029_v7 = vadd.f32 %v2028_v28, %v1860_v38  ;;  %v2197_v15 = vpop.f32.mrf.mxu3  ;;  %v7206_v38 = vpack.c.bf16 %v507_v20, %v500_v58  ;;  %v511_v28 = vld [vmem:[%s6289_s13 + $0x708] sm:$0xff]  ;;  %v518_v20 = vld [vmem:[%s6289_s13 + $0x740] sm:$0xff] }
 0x19a   : > { %v1862_v61 = vpop.f32.mrf.mxu1 }
 0x19b   : > { %v1863_v60 = vadd.f32 %v1862_v61, %v1694_v9  ;;  %v2198_v2 = vadd.f32 %v2197_v15, %v2029_v7  ;;  %10084 = vst [vmem:[#allocation119_spill] sm:$0xff] %v7206_v38  ;;  %v1696_v15 = vadd.f32 %v6964_v8, %v6966_v4  ;;  %v512_v7 = vld [vmem:[%s6289_s13 + $0x710] sm:$0xff] }
 0x19c   : > { %v2369_v18 = vpop.f32.mrf.mxu0  ;;  %v520_v61 = vld [vmem:[%s6289_s13 + $0x750] sm:$0xff] }
 0x19d   : > { %v7208_v24 = vadd.f32 %v2366_v44, %v2198_v2  ;;  %1901 = vmatmul.bf16.gmra.mxu1 %v7194_v26  ;;  %2070 = vmatmul.bf16.gmra.mxu2 %v7196_v48  ;;  %v7228_v48 = vpack.c.bf16 %v518_v20, %v511_v28  ;;  %v5868_v26 = vld [vmem:[%s9742_s1 + $0xf4] sm:$0xf] }
 0x19e   : > { %2239 = vmatmul.bf16.gmra.mxu3 %v7204_v52  ;;  %v1699_v52 = vadd.f32 %v6667_v47, %v6966_v4  ;;  %v5392_v47 = vld [vmem:[%s9742_s1 + $0xf8] sm:$0xf0] }
 0x19f   : > { %2408 = vmatmul.bf16.gmra.mxu0 %v7206_v38  ;;  %v521_v38 = vld [vmem:[%s6289_s13 + $0x758] sm:$0xff]  ;;  %10085 = vst [vmem:[#allocation120_spill] sm:$0xff] %v7228_v48  ;;  %v5395_v28 = vor.u32 %v5868_v26, %v5392_v47  ;;  %v1701_v26 = vadd.f32 %v6683_v59, %v6966_v4  ;;  %v534_v47 = vld [vmem:[%s6289_s13 + $0x7c0] sm:$0xff]  ;;  %v1704_v59 = vadd.f32 %v6703_v13, %v6966_v4 }
 0x1a0   : > { %v2031_v58 = vpop.f32.mrf.mxu2 }
 0x1a1   : > { %v2032_v2 = vadd.f32 %v2031_v58, %v1863_v60  ;;  %v2200_v44 = vpop.f32.mrf.mxu3  ;;  %3001 = vmatpush.bf16.msra.mxu0 %v5395_v28 }
 0x1a2   : > { %v1864_v33 = vpop.f32.mrf.mxu1 }
 0x1a3   : > { %v1865_v29 = vadd.f32 %v1864_v33, %v1696_v15  ;;  %v2201_v9 = vadd.f32 %v2200_v44, %v2032_v2  ;;  %v7230_v15 = vpack.c.bf16 %v519_v10, %v512_v7  ;;  %v7232_v2 = vpack.c.bf16 %v520_v61, %v513_v23 }
 0x1a4   : > { %v2371_v16 = vpop.f32.mrf.mxu0 }
 0x1a5   : > { %v7216_v41 = vadd.f32 %v2369_v18, %v2201_v9  ;;  %10086 = vst [vmem:[#allocation121_spill] sm:$0xff] %v7230_v15  ;;  %v7234_v9 = vpack.c.bf16 %v521_v38, %v514_v11  ;;  %v525_v11 = vld [vmem:[%s6289_s13 + $0x778] sm:$0xff] }
 0x1a6   : > { %10087 = vst [vmem:[#allocation122_spill] sm:$0xff] %v7232_v2 }
 0x1a7   : > { %10088 = vst [vmem:[#allocation123_spill] sm:$0xff] %v7234_v9 }
 0x1a8   : > { %v2033_v8 = vpop.f32.mrf.mxu2 }
 0x1a9   : > { %v2034_v60 = vadd.f32 %v2033_v8, %v1865_v29  ;;  %v2202_v58 = vpop.f32.mrf.mxu3 }
 0x1aa   : > { %v1867_v18 = vpop.f32.mrf.mxu1 }
 0x1ab   : > { %v1868_v44 = vadd.f32 %v1867_v18, %v1699_v52  ;;  %v2203_v33 = vadd.f32 %v2202_v58, %v2034_v60  ;;  %v532_v60 = vld [vmem:[%s6289_s13 + $0x7b0] sm:$0xff]  ;;  %v526_v58 = vld [vmem:[%s6289_s13 + $0x780] sm:$0xff]  ;;  %v533_v18 = vld [vmem:[%s6289_s13 + $0x7b8] sm:$0xff] }
 0x1ac   : > { %v2374_v29 = vpop.f32.mrf.mxu0 }
 0x1ad   : > { %v7242_v20 = vadd.f32 %v2371_v16, %v2203_v33  ;;  %1906 = vmatmul.bf16.gmra.mxu1 %v7228_v48  ;;  %2075 = vmatmul.bf16.gmra.mxu2 %v7230_v15  ;;  %v527_v33 = vld [vmem:[%s6289_s13 + $0x788] sm:$0xff]  ;;  %v7262_v15 = vpack.c.bf16 %v532_v60, %v525_v11 }
 0x1ae   : > { %2244 = vmatmul.bf16.gmra.mxu3 %v7232_v2  ;;  %v535_v2 = vld [vmem:[%s6289_s13 + $0x7c8] sm:$0xff] }
 0x1af   : > { %2413 = vmatmul.bf16.gmra.mxu0 %v7234_v9  ;;  %v528_v9 = vld [vmem:[%s6289_s13 + $0x790] sm:$0xff]  ;;  %10090 = vst [vmem:[#allocation125_spill] sm:$0xff] %v7262_v15 }
 0x1b0   : > { %v2036_v52 = vpop.f32.mrf.mxu2 }
 0x1b1   : > { %v2037_v38 = vadd.f32 %v2036_v52, %v1868_v44  ;;  %v2205_v16 = vpop.f32.mrf.mxu3 }
 0x1b2   : > { %v1869_v7 = vpop.f32.mrf.mxu1 }
 0x1b3   : > { %v1870_v10 = vadd.f32 %v1869_v7, %v1701_v26  ;;  %v2206_v23 = vadd.f32 %v2205_v16, %v2037_v38  ;;  %v7264_v26 = vpack.c.bf16 %v533_v18, %v526_v58  ;;  %v7266_v38 = vpack.c.bf16 %v534_v47, %v527_v33  ;;  %v539_v33 = vld [vmem:[%s6289_s13 + $0x7e8] sm:$0xff]  ;;  %v546_v47 = vld [vmem:[%s6289_s13 + $0x820] sm:$0xff] }
 0x1b4   : > { %v2376_v61 = vpop.f32.mrf.mxu0 }
 0x1b5   : > { %v7250_v8 = vadd.f32 %v2374_v29, %v2206_v23  ;;  %10091 = vst [vmem:[#allocation126_spill] sm:$0xff] %v7264_v26  ;;  %v7268_v23 = vpack.c.bf16 %v535_v2, %v528_v9  ;;  %v1706_v2 = vadd.f32 %v6719_v27, %v6966_v4  ;;  %v1709_v27 = vadd.f32 %v6739_v12, %v6966_v4  ;;  %v5606_v12 = vld [vmem:[%s9742_s1 + $0x2a0] sm:$0xf] }
 0x1b6   : > { %10092 = vst [vmem:[#allocation127_spill] sm:$0xff] %v7266_v38 }
 0x1b7   : > { %10089 = vst [vmem:[#allocation124_spill] sm:$0xff] %v7250_v8 }
 0x1b8   : > { %v2038_v28 = vpop.f32.mrf.mxu2  ;;  %10093 = vst [vmem:[#allocation128_spill] sm:$0xff] %v7268_v23 }
 0x1b9   : > { %v2039_v44 = vadd.f32 %v2038_v28, %v1870_v10  ;;  %v2207_v52 = vpop.f32.mrf.mxu3  ;;  %v540_v28 = vld [vmem:[%s6289_s13 + $0x7f0] sm:$0xff] }
 0x1ba   : > { %v1872_v29 = vpop.f32.mrf.mxu1 }
 0x1bb   : > { %v1873_v16 = vadd.f32 %v1872_v29, %v1704_v59  ;;  %v2208_v7 = vadd.f32 %v2207_v52, %v2039_v44  ;;  %v547_v59 = vld [vmem:[%s6289_s13 + $0x828] sm:$0xff]  ;;  %v541_v44 = vld [vmem:[%s6289_s13 + $0x7f8] sm:$0xff]  ;;  %v548_v52 = vld [vmem:[%s6289_s13 + $0x830] sm:$0xff] }
 0x1bc   : > { %v2379_v48 = vpop.f32.mrf.mxu0 }
 0x1bd   : > { %v7270_v8 = vadd.f32 %v2376_v61, %v2208_v7  ;;  %1911 = vmatmul.bf16.gmra.mxu1 %v7262_v15  ;;  %2080 = vmatmul.bf16.gmra.mxu2 %v7264_v26  ;;  %v542_v7 = vld [vmem:[%s6289_s13 + $0x800] sm:$0xff] }
 0x1be   : > { %2249 = vmatmul.bf16.gmra.mxu3 %v7266_v38  ;;  %v7290_v38 = vpack.c.bf16 %v546_v47, %v539_v33  ;;  %v1711_v33 = vadd.f32 %v6761_v0, %v6966_v4  ;;  %v1714_v0 = vadd.f32 %v6781_v6, %v6966_v4 }
 0x1bf   : > { %2418 = vmatmul.bf16.gmra.mxu0 %v7268_v23  ;;  %v549_v23 = vld [vmem:[%s6289_s13 + $0x838] sm:$0xff] }
 0x1c0   : > { %v2041_v13 = vpop.f32.mrf.mxu2 }
 0x1c1   : > { %v2042_v9 = vadd.f32 %v2041_v13, %v1873_v16  ;;  %v2210_v10 = vpop.f32.mrf.mxu3 }
 0x1c2   : > { %v1874_v61 = vpop.f32.mrf.mxu1 }
 0x1c3   : > { %v1875_v11 = vadd.f32 %v1874_v61, %v1706_v2  ;;  %v2211_v60 = vadd.f32 %v2210_v10, %v2042_v9  ;;  %v7292_v2 = vpack.c.bf16 %v547_v59, %v540_v28  ;;  %v7294_v9 = vpack.c.bf16 %v548_v52, %v541_v44 }
 0x1c4   : > { %v2381_v58 = vpop.f32.mrf.mxu0 }
 0x1c5   : > { %v7278_v18 = vadd.f32 %v2379_v48, %v2211_v60  ;;  %10094 = vst [vmem:[#allocation129_spill] sm:$0xff] %v7292_v2  ;;  %v7296_v60 = vpack.c.bf16 %v549_v23, %v542_v7 }
 0x1c6   : > { %10095 = vst [vmem:[#allocation130_spill] sm:$0xff] %v7294_v9 }
 0x1c7   : > { %10096 = vst [vmem:[#allocation131_spill] sm:$0xff] %v7296_v60 }
 0x1c8   : > { %v2043_v29 = vpop.f32.mrf.mxu2 }
 0x1c9   : > { %v2044_v16 = vadd.f32 %v2043_v29, %v1875_v11  ;;  %v2212_v13 = vpop.f32.mrf.mxu3  ;;  %v5923_v11 = vld [vmem:[%s9742_s1 + $0x2a4] sm:$0xf0] }
 0x1ca   : > { %v1877_v48 = vpop.f32.mrf.mxu1  ;;  %v5607_v23 = vor.u32 %v5923_v11, %v5606_v12  ;;  %v562_v12 = vld [vmem:[%s6289_s13 + $0x8a0] sm:$0xff] }
 0x1cb   : > { %v1878_v10 = vadd.f32 %v1877_v48, %v1709_v27  ;;  %v2213_v61 = vadd.f32 %v2212_v13, %v2044_v16  ;;  %v553_v27 = vld [vmem:[%s6289_s13 + $0x858] sm:$0xff]  ;;  %v560_v16 = vld [vmem:[%s6289_s13 + $0x890] sm:$0xff]  ;;  %v554_v13 = vld [vmem:[%s6289_s13 + $0x860] sm:$0xff] }
 0x1cc   : > { %v2384_v26 = vpop.f32.mrf.mxu0  ;;  %2499 = vmatpush.bf16.msra.mxu1 %v5607_v23  ;;  %v561_v48 = vld [vmem:[%s6289_s13 + $0x898] sm:$0xff]  ;;  %v556_v23 = vld [vmem:[%s6289_s13 + $0x870] sm:$0xff] }
 0x1cd   : > { %v7298_v15 = vadd.f32 %v2381_v58, %v2213_v61  ;;  %1916 = vmatmul.bf16.gmra.mxu1 %v7290_v38  ;;  %2085 = vmatmul.bf16.gmra.mxu2 %v7292_v2  ;;  %v555_v61 = vld [vmem:[%s6289_s13 + $0x868] sm:$0xff] }
 0x1ce   : > { %2254 = vmatmul.bf16.gmra.mxu3 %v7294_v9  ;;  %v7324_v9 = vpack.c.bf16 %v560_v16, %v553_v27 }
 0x1cf   : > { %2423 = vmatmul.bf16.gmra.mxu0 %v7296_v60  ;;  %v563_v60 = vld [vmem:[%s6289_s13 + $0x8a8] sm:$0xff] }
 0x1d0   : > { %v2046_v58 = vpop.f32.mrf.mxu2  ;;  %10097 = vst [vmem:[#allocation132_spill] sm:$0xff] %v7324_v9 }
 0x1d1   : > { %v2047_v47 = vadd.f32 %v2046_v58, %v1878_v10  ;;  %v2215_v28 = vpop.f32.mrf.mxu3 }
 0x1d2   : > { %v1879_v59 = vpop.f32.mrf.mxu1 }
 0x1d3   : > { %v1880_v44 = vadd.f32 %v1879_v59, %v1711_v33  ;;  %v2216_v52 = vadd.f32 %v2215_v28, %v2047_v47  ;;  %v7326_v33 = vpack.c.bf16 %v561_v48, %v554_v13  ;;  %v5304_v47 = vld [vmem:[%s9742_s1 + $0x48] sm:$0xf0]  ;;  %v7334_v59 = vpack.c.bf16 %v562_v12, %v555_v61 }
 0x1d4   : > { %v2386_v29 = vpop.f32.mrf.mxu0  ;;  %v1716_v13 = vadd.f32 %v6797_v36, %v6966_v4  ;;  %v1719_v36 = vadd.f32 %v6817_v54, %v6966_v4  ;;  %v5384_v54 = vld [vmem:[%s9742_s1 + $0xe8] sm:$0xf0] }
 0x1d5   : > { %v7312_v7 = vadd.f32 %v2384_v26, %v2216_v52  ;;  %10098 = vst [vmem:[#allocation133_spill] sm:$0xff] %v7326_v33  ;;  %v5846_v26 = vld [vmem:[%s9742_s1 + $0x44] sm:$0xf] }
 0x1d6   : > { %10099 = vst [vmem:[#allocation134_spill] sm:$0xff] %v7334_v59  ;;  %v5307_v52 = vor.u32 %v5846_v26, %v5304_v47  ;;  %v568_v26 = vld [vmem:[%s6289_s13 + $0x8d0] sm:$0xff]  ;;  %v575_v47 = vld [vmem:[%s6289_s13 + $0x908] sm:$0xff] }
 0x1d8   : > { %v2048_v11 = vpop.f32.mrf.mxu2  ;;  %2835 = vmatpush.bf16.msra.mxu3 %v5307_v52  ;;  %v576_v52 = vld [vmem:[%s6289_s13 + $0x910] sm:$0xff] }
 0x1d9   : > { %v2049_v10 = vadd.f32 %v2048_v11, %v1880_v44  ;;  %v2217_v58 = vpop.f32.mrf.mxu3  ;;  %v7336_v44 = vpack.c.bf16 %v563_v60, %v556_v23 }
 0x1da   : > { %v1882_v28 = vpop.f32.mrf.mxu1 }
 0x1db   : > { %v1883_v2 = vadd.f32 %v1882_v28, %v1714_v0  ;;  %v2218_v6 = vadd.f32 %v2217_v58, %v2049_v10  ;;  %10100 = vst [vmem:[#allocation135_spill] sm:$0xff] %v7336_v44  ;;  %v567_v10 = vld [vmem:[%s6289_s13 + $0x8c8] sm:$0xff]  ;;  %v574_v58 = vld [vmem:[%s6289_s13 + $0x900] sm:$0xff]  ;;  %v569_v28 = vld [vmem:[%s6289_s13 + $0x8d8] sm:$0xff] }
 0x1dc   : > { %v2389_v27 = vpop.f32.mrf.mxu0 }
 0x1dd   : > { %v7338_v16 = vadd.f32 %v2386_v29, %v2218_v6  ;;  %1921 = vmatmul.bf16.gmra.mxu1 %v7324_v9  ;;  %2090 = vmatmul.bf16.gmra.mxu2 %v7326_v33  ;;  %v7358_v33 = vpack.c.bf16 %v574_v58, %v567_v10  ;;  %v5866_v9 = vld [vmem:[%s9742_s1 + $0xe4] sm:$0xf] }
 0x1de   : > { %2259 = vmatmul.bf16.gmra.mxu3 %v7334_v59  ;;  %v577_v59 = vld [vmem:[%s6289_s13 + $0x918] sm:$0xff]  ;;  %v5387_v10 = vor.u32 %v5866_v9, %v5384_v54  ;;  %v1721_v9 = vadd.f32 %v6833_v31, %v6966_v4  ;;  %v590_v54 = vld [vmem:[%s6289_s13 + $0x980] sm:$0xff]  ;;  %v1724_v31 = vadd.f32 %v6853_v37, %v6966_v4 }
 0x1df   : > { %2428 = vmatmul.bf16.gmra.mxu0 %v7336_v44  ;;  %v570_v44 = vld [vmem:[%s6289_s13 + $0x8e0] sm:$0xff]  ;;  %10101 = vst [vmem:[#allocation136_spill] sm:$0xff] %v7358_v33 }
 0x1e0   : > { %v2051_v60 = vpop.f32.mrf.mxu2  ;;  %3002 = vmatpush.bf16.msra.mxu0 %v5387_v10 }
 0x1e1   : > { %v2052_v29 = vadd.f32 %v2051_v60, %v1883_v2  ;;  %v2220_v48 = vpop.f32.mrf.mxu3 }
 0x1e2   : > { %v1884_v61 = vpop.f32.mrf.mxu1 }
 0x1e3   : > { %v1885_v12 = vadd.f32 %v1884_v61, %v1716_v13  ;;  %v2221_v11 = vadd.f32 %v2220_v48, %v2052_v29  ;;  %v7360_v13 = vpack.c.bf16 %v575_v47, %v568_v26  ;;  %v7362_v29 = vpack.c.bf16 %v576_v52, %v569_v28 }
 0x1e4   : > { %v2391_v23 = vpop.f32.mrf.mxu0 }
 0x1e5   : > { %v7346_v0 = vadd.f32 %v2389_v27, %v2221_v11  ;;  %10102 = vst [vmem:[#allocation137_spill] sm:$0xff] %v7360_v13  ;;  %v7364_v11 = vpack.c.bf16 %v577_v59, %v570_v44 }
 0x1e6   : > { %10103 = vst [vmem:[#allocation138_spill] sm:$0xff] %v7362_v29 }
 0x1e7   : > { %10104 = vst [vmem:[#allocation139_spill] sm:$0xff] %v7364_v11 }
 0x1e8   : > { %v2053_v6 = vpop.f32.mrf.mxu2 }
 0x1e9   : > { %v2054_v2 = vadd.f32 %v2053_v6, %v1885_v12  ;;  %v2222_v60 = vpop.f32.mrf.mxu3 }
 0x1ea   : > { %v1887_v27 = vpop.f32.mrf.mxu1 }
 0x1eb   : > { %v1888_v48 = vadd.f32 %v1887_v27, %v1719_v36  ;;  %v2223_v61 = vadd.f32 %v2222_v60, %v2054_v2  ;;  %v581_v36 = vld [vmem:[%s6289_s13 + $0x938] sm:$0xff]  ;;  %v588_v2 = vld [vmem:[%s6289_s13 + $0x970] sm:$0xff]  ;;  %v582_v60 = vld [vmem:[%s6289_s13 + $0x940] sm:$0xff] }
 0x1ec   : > { %v2394_v12 = vpop.f32.mrf.mxu0  ;;  %v589_v27 = vld [vmem:[%s6289_s13 + $0x978] sm:$0xff] }
 0x1ed   : > { %v7372_v58 = vadd.f32 %v2391_v23, %v2223_v61  ;;  %1926 = vmatmul.bf16.gmra.mxu1 %v7358_v33  ;;  %2095 = vmatmul.bf16.gmra.mxu2 %v7360_v13  ;;  %v583_v61 = vld [vmem:[%s6289_s13 + $0x948] sm:$0xff]  ;;  %v7392_v13 = vpack.c.bf16 %v588_v2, %v581_v36 }
 0x1ee   : > { %2264 = vmatmul.bf16.gmra.mxu3 %v7362_v29  ;;  %v591_v29 = vld [vmem:[%s6289_s13 + $0x988] sm:$0xff] }
 0x1ef   : > { %2433 = vmatmul.bf16.gmra.mxu0 %v7364_v11  ;;  %v584_v11 = vld [vmem:[%s6289_s13 + $0x950] sm:$0xff]  ;;  %10106 = vst [vmem:[#allocation141_spill] sm:$0xff] %v7392_v13 }
 0x1f0   : > { %v2056_v59 = vpop.f32.mrf.mxu2 }
 0x1f1   : > { %v2057_v44 = vadd.f32 %v2056_v59, %v1888_v48  ;;  %v2225_v23 = vpop.f32.mrf.mxu3 }
 0x1f2   : > { %v1889_v26 = vpop.f32.mrf.mxu1 }
 0x1f3   : > { %v1890_v47 = vadd.f32 %v1889_v26, %v1721_v9  ;;  %v2226_v28 = vadd.f32 %v2225_v23, %v2057_v44  ;;  %v7394_v9 = vpack.c.bf16 %v589_v27, %v582_v60  ;;  %v7396_v44 = vpack.c.bf16 %v590_v54, %v583_v61  ;;  %v595_v61 = vld [vmem:[%s6289_s13 + $0x9a8] sm:$0xff]  ;;  %v602_v54 = vld [vmem:[%s6289_s13 + $0x9e0] sm:$0xff] }
 0x1f4   : > { %v2396_v52 = vpop.f32.mrf.mxu0 }
 0x1f5   : > { %v7380_v6 = vadd.f32 %v2394_v12, %v2226_v28  ;;  %10107 = vst [vmem:[#allocation142_spill] sm:$0xff] %v7394_v9  ;;  %v7398_v28 = vpack.c.bf16 %v591_v29, %v584_v11  ;;  %v1726_v29 = vadd.f32 %v6869_v34, %v6966_v4  ;;  %v1729_v34 = vadd.f32 %v6889_v45, %v6966_v4  ;;  %v5598_v45 = vld [vmem:[%s9742_s1 + $0x290] sm:$0xf] }
 0x1f6   : > { %10108 = vst [vmem:[#allocation143_spill] sm:$0xff] %v7396_v44 }
 0x1f7   : > { %10105 = vst [vmem:[#allocation140_spill] sm:$0xff] %v7380_v6 }
 0x1f8   : > { %v2058_v10 = vpop.f32.mrf.mxu2  ;;  %10109 = vst [vmem:[#allocation144_spill] sm:$0xff] %v7398_v28 }
 0x1f9   : > { %v2059_v48 = vadd.f32 %v2058_v10, %v1890_v47  ;;  %v2227_v59 = vpop.f32.mrf.mxu3  ;;  %v596_v10 = vld [vmem:[%s6289_s13 + $0x9b0] sm:$0xff] }
 0x1fa   : > { %v1892_v12 = vpop.f32.mrf.mxu1 }
 0x1fb   : > { %v1893_v23 = vadd.f32 %v1892_v12, %v1724_v31  ;;  %v2228_v26 = vadd.f32 %v2227_v59, %v2059_v48  ;;  %v603_v31 = vld [vmem:[%s6289_s13 + $0x9e8] sm:$0xff]  ;;  %v597_v48 = vld [vmem:[%s6289_s13 + $0x9b8] sm:$0xff]  ;;  %v604_v59 = vld [vmem:[%s6289_s13 + $0x9f0] sm:$0xff] }
 0x1fc   : > { %v2399_v33 = vpop.f32.mrf.mxu0 }
 0x1fd   : > { %v7400_v6 = vadd.f32 %v2396_v52, %v2228_v26  ;;  %1931 = vmatmul.bf16.gmra.mxu1 %v7392_v13  ;;  %2100 = vmatmul.bf16.gmra.mxu2 %v7394_v9  ;;  %v598_v26 = vld [vmem:[%s6289_s13 + $0x9c0] sm:$0xff] }
 0x1fe   : > { %2269 = vmatmul.bf16.gmra.mxu3 %v7396_v44  ;;  %v7420_v44 = vpack.c.bf16 %v602_v54, %v595_v61  ;;  %v1731_v61 = vadd.f32 %v6911_v30, %v6966_v4  ;;  %v1734_v30 = vadd.f32 %v6943_v5, %v6966_v4 }
 0x1ff   : > { %2438 = vmatmul.bf16.gmra.mxu0 %v7398_v28  ;;  %v605_v28 = vld [vmem:[%s6289_s13 + $0x9f8] sm:$0xff] }
 0x200   : > { %v2061_v37 = vpop.f32.mrf.mxu2 }
 0x201   : > { %v2062_v11 = vadd.f32 %v2061_v37, %v1893_v23  ;;  %v2230_v47 = vpop.f32.mrf.mxu3 }
 0x202   : > { %v1894_v52 = vpop.f32.mrf.mxu1 }
 0x203   : > { %v1895_v36 = vadd.f32 %v1894_v52, %v1726_v29  ;;  %v2231_v2 = vadd.f32 %v2230_v47, %v2062_v11  ;;  %v7422_v29 = vpack.c.bf16 %v603_v31, %v596_v10  ;;  %v7424_v11 = vpack.c.bf16 %v604_v59, %v597_v48 }
 0x204   : > { %v2401_v60 = vpop.f32.mrf.mxu0 }
 0x205   : > { %v7408_v27 = vadd.f32 %v2399_v33, %v2231_v2  ;;  %10110 = vst [vmem:[#allocation145_spill] sm:$0xff] %v7422_v29  ;;  %v7426_v2 = vpack.c.bf16 %v605_v28, %v598_v26 }
 0x206   : > { %10111 = vst [vmem:[#allocation146_spill] sm:$0xff] %v7424_v11 }
 0x207   : > { %10112 = vst [vmem:[#allocation147_spill] sm:$0xff] %v7426_v2 }
 0x208   : > { %v2063_v12 = vpop.f32.mrf.mxu2 }
 0x209   : > { %v2064_v23 = vadd.f32 %v2063_v12, %v1895_v36  ;;  %v2232_v37 = vpop.f32.mrf.mxu3  ;;  %v5921_v36 = vld [vmem:[%s9742_s1 + $0x294] sm:$0xf0] }
 0x20a   : > { %v1897_v33 = vpop.f32.mrf.mxu1  ;;  %v5599_v28 = vor.u32 %v5921_v36, %v5598_v45  ;;  %v618_v45 = vld [vmem:[%s6289_s13 + $0xa60] sm:$0xff] }
 0x20b   : > { %v1898_v47 = vadd.f32 %v1897_v33, %v1729_v34  ;;  %v2233_v52 = vadd.f32 %v2232_v37, %v2064_v23  ;;  %v609_v34 = vld [vmem:[%s6289_s13 + $0xa18] sm:$0xff]  ;;  %v616_v23 = vld [vmem:[%s6289_s13 + $0xa50] sm:$0xff]  ;;  %v610_v37 = vld [vmem:[%s6289_s13 + $0xa20] sm:$0xff] }
 0x20c   : > { %v2404_v9 = vpop.f32.mrf.mxu0  ;;  %2500 = vmatpush.bf16.msra.mxu1 %v5599_v28  ;;  %v617_v33 = vld [vmem:[%s6289_s13 + $0xa58] sm:$0xff]  ;;  %v612_v28 = vld [vmem:[%s6289_s13 + $0xa30] sm:$0xff] }
 0x20d   : > { %v7428_v13 = vadd.f32 %v2401_v60, %v2233_v52  ;;  %1936 = vmatmul.bf16.gmra.mxu1 %v7420_v44  ;;  %2105 = vmatmul.bf16.gmra.mxu2 %v7422_v29  ;;  %v611_v52 = vld [vmem:[%s6289_s13 + $0xa28] sm:$0xff] }
 0x20e   : > { %2274 = vmatmul.bf16.gmra.mxu3 %v7424_v11  ;;  %v7454_v11 = vpack.c.bf16 %v616_v23, %v609_v34 }
 0x20f   : > { %2443 = vmatmul.bf16.gmra.mxu0 %v7426_v2  ;;  %v619_v2 = vld [vmem:[%s6289_s13 + $0xa68] sm:$0xff] }
 0x210   : > { %v2066_v60 = vpop.f32.mrf.mxu2  ;;  %10113 = vst [vmem:[#allocation148_spill] sm:$0xff] %v7454_v11 }
 0x211   : > { %v2067_v54 = vadd.f32 %v2066_v60, %v1898_v47  ;;  %v2235_v10 = vpop.f32.mrf.mxu3 }
 0x212   : > { %v1899_v31 = vpop.f32.mrf.mxu1 }
 0x213   : > { %v1900_v48 = vadd.f32 %v1899_v31, %v1731_v61  ;;  %v2236_v59 = vadd.f32 %v2235_v10, %v2067_v54  ;;  %v7456_v61 = vpack.c.bf16 %v617_v33, %v610_v37  ;;  %v5296_v54 = vld [vmem:[%s9742_s1 + $0x38] sm:$0xf0]  ;;  %v7464_v31 = vpack.c.bf16 %v618_v45, %v611_v52 }
 0x214   : > { %v2406_v12 = vpop.f32.mrf.mxu0  ;;  %v1736_v37 = vadd.f32 %v6962_v17, %v6966_v4  ;;  %v1739_v17 = vadd.f32 %v6679_v57, %v6966_v4  ;;  %v5376_v57 = vld [vmem:[%s9742_s1 + $0xd8] sm:$0xf0] }
 0x215   : > { %v7442_v26 = vadd.f32 %v2404_v9, %v2236_v59  ;;  %10114 = vst [vmem:[#allocation149_spill] sm:$0xff] %v7456_v61  ;;  %v5844_v9 = vld [vmem:[%s9742_s1 + $0x34] sm:$0xf] }
 0x216   : > { %10115 = vst [vmem:[#allocation150_spill] sm:$0xff] %v7464_v31  ;;  %v5299_v59 = vor.u32 %v5844_v9, %v5296_v54  ;;  %v624_v9 = vld [vmem:[%s6289_s13 + $0xa90] sm:$0xff]  ;;  %v631_v54 = vld [vmem:[%s6289_s13 + $0xac8] sm:$0xff] }
 0x218   : > { %v2068_v36 = vpop.f32.mrf.mxu2  ;;  %2836 = vmatpush.bf16.msra.mxu3 %v5299_v59  ;;  %v632_v59 = vld [vmem:[%s6289_s13 + $0xad0] sm:$0xff] }
 0x219   : > { %v2069_v47 = vadd.f32 %v2068_v36, %v1900_v48  ;;  %v2237_v60 = vpop.f32.mrf.mxu3  ;;  %v7466_v48 = vpack.c.bf16 %v619_v2, %v612_v28 }
 0x21a   : > { %v1902_v10 = vpop.f32.mrf.mxu1 }
 0x21b   : > { %v1903_v29 = vadd.f32 %v1902_v10, %v1734_v30  ;;  %v2238_v5 = vadd.f32 %v2237_v60, %v2069_v47  ;;  %10116 = vst [vmem:[#allocation151_spill] sm:$0xff] %v7466_v48  ;;  %v623_v47 = vld [vmem:[%s6289_s13 + $0xa88] sm:$0xff]  ;;  %v630_v60 = vld [vmem:[%s6289_s13 + $0xac0] sm:$0xff]  ;;  %v625_v10 = vld [vmem:[%s6289_s13 + $0xa98] sm:$0xff] }
 0x21c   : > { %v2409_v34 = vpop.f32.mrf.mxu0 }
 0x21d   : > { %v7468_v23 = vadd.f32 %v2406_v12, %v2238_v5  ;;  %1941 = vmatmul.bf16.gmra.mxu1 %v7454_v11  ;;  %2110 = vmatmul.bf16.gmra.mxu2 %v7456_v61  ;;  %v7488_v61 = vpack.c.bf16 %v630_v60, %v623_v47  ;;  %v5864_v11 = vld [vmem:[%s9742_s1 + $0xd4] sm:$0xf] }
 0x21e   : > { %2279 = vmatmul.bf16.gmra.mxu3 %v7464_v31  ;;  %v633_v31 = vld [vmem:[%s6289_s13 + $0xad8] sm:$0xff]  ;;  %v5379_v47 = vor.u32 %v5864_v11, %v5376_v57  ;;  %v1741_v11 = vadd.f32 %v6693_v3, %v6966_v4  ;;  %v646_v57 = vld [vmem:[%s6289_s13 + $0xb40] sm:$0xff]  ;;  %v1744_v3 = vadd.f32 %v6715_v25, %v6966_v4 }
 0x21f   : > { %2448 = vmatmul.bf16.gmra.mxu0 %v7466_v48  ;;  %v626_v48 = vld [vmem:[%s6289_s13 + $0xaa0] sm:$0xff]  ;;  %10117 = vst [vmem:[#allocation152_spill] sm:$0xff] %v7488_v61 }
 0x220   : > { %v2071_v2 = vpop.f32.mrf.mxu2  ;;  %3003 = vmatpush.bf16.msra.mxu0 %v5379_v47 }
 0x221   : > { %v2072_v12 = vadd.f32 %v2071_v2, %v1903_v29  ;;  %v2240_v33 = vpop.f32.mrf.mxu3 }
 0x222   : > { %v1904_v52 = vpop.f32.mrf.mxu1 }
 0x223   : > { %v1905_v45 = vadd.f32 %v1904_v52, %v1736_v37  ;;  %v2241_v36 = vadd.f32 %v2240_v33, %v2072_v12  ;;  %v7490_v37 = vpack.c.bf16 %v631_v54, %v624_v9  ;;  %v7492_v12 = vpack.c.bf16 %v632_v59, %v625_v10 }
 0x224   : > { %v2411_v28 = vpop.f32.mrf.mxu0 }
 0x225   : > { %v7476_v30 = vadd.f32 %v2409_v34, %v2241_v36  ;;  %10118 = vst [vmem:[#allocation153_spill] sm:$0xff] %v7490_v37  ;;  %v7494_v36 = vpack.c.bf16 %v633_v31, %v626_v48 }
 0x226   : > { %10119 = vst [vmem:[#allocation154_spill] sm:$0xff] %v7492_v12 }
 0x227   : > { %10120 = vst [vmem:[#allocation155_spill] sm:$0xff] %v7494_v36 }
 0x228   : > { %v2073_v5 = vpop.f32.mrf.mxu2 }
 0x229   : > { %v2074_v29 = vadd.f32 %v2073_v5, %v1905_v45  ;;  %v2242_v2 = vpop.f32.mrf.mxu3 }
 0x22a   : > { %v1907_v34 = vpop.f32.mrf.mxu1 }
 0x22b   : > { %v1908_v33 = vadd.f32 %v1907_v34, %v1739_v17  ;;  %v2243_v52 = vadd.f32 %v2242_v2, %v2074_v29  ;;  %v637_v17 = vld [vmem:[%s6289_s13 + $0xaf8] sm:$0xff]  ;;  %v644_v29 = vld [vmem:[%s6289_s13 + $0xb30] sm:$0xff]  ;;  %v638_v2 = vld [vmem:[%s6289_s13 + $0xb00] sm:$0xff] }
 0x22c   : > { %v2414_v45 = vpop.f32.mrf.mxu0  ;;  %v645_v34 = vld [vmem:[%s6289_s13 + $0xb38] sm:$0xff] }
 0x22d   : > { %v7502_v60 = vadd.f32 %v2411_v28, %v2243_v52  ;;  %1946 = vmatmul.bf16.gmra.mxu1 %v7488_v61  ;;  %2115 = vmatmul.bf16.gmra.mxu2 %v7490_v37  ;;  %v639_v52 = vld [vmem:[%s6289_s13 + $0xb08] sm:$0xff]  ;;  %v7522_v37 = vpack.c.bf16 %v644_v29, %v637_v17 }
 0x22e   : > { %2284 = vmatmul.bf16.gmra.mxu3 %v7492_v12  ;;  %v647_v12 = vld [vmem:[%s6289_s13 + $0xb48] sm:$0xff] }
 0x22f   : > { %2453 = vmatmul.bf16.gmra.mxu0 %v7494_v36  ;;  %v640_v36 = vld [vmem:[%s6289_s13 + $0xb10] sm:$0xff]  ;;  %10122 = vst [vmem:[#allocation157_spill] sm:$0xff] %v7522_v37 }
 0x230   : > { %v2076_v31 = vpop.f32.mrf.mxu2 }
 0x231   : > { %v2077_v48 = vadd.f32 %v2076_v31, %v1908_v33  ;;  %v2245_v28 = vpop.f32.mrf.mxu3 }
 0x232   : > { %v1909_v9 = vpop.f32.mrf.mxu1 }
 0x233   : > { %v1910_v54 = vadd.f32 %v1909_v9, %v1741_v11  ;;  %v2246_v10 = vadd.f32 %v2245_v28, %v2077_v48  ;;  %v7524_v11 = vpack.c.bf16 %v645_v34, %v638_v2  ;;  %v7526_v48 = vpack.c.bf16 %v646_v57, %v639_v52  ;;  %v651_v52 = vld [vmem:[%s6289_s13 + $0xb68] sm:$0xff]  ;;  %v658_v57 = vld [vmem:[%s6289_s13 + $0xba0] sm:$0xff] }
 0x234   : > { %v2416_v59 = vpop.f32.mrf.mxu0 }
 0x235   : > { %v7510_v5 = vadd.f32 %v2414_v45, %v2246_v10  ;;  %10123 = vst [vmem:[#allocation158_spill] sm:$0xff] %v7524_v11  ;;  %v7528_v10 = vpack.c.bf16 %v647_v12, %v640_v36  ;;  %v1746_v12 = vadd.f32 %v6729_v1, %v6966_v4  ;;  %v1749_v1 = vadd.f32 %v6757_v62, %v6966_v4  ;;  %v5590_v62 = vld [vmem:[%s9742_s1 + $0x280] sm:$0xf] }
 0x236   : > { %10124 = vst [vmem:[#allocation159_spill] sm:$0xff] %v7526_v48 }
 0x237   : > { %10121 = vst [vmem:[#allocation156_spill] sm:$0xff] %v7510_v5 }
 0x238   : > { %v2078_v47 = vpop.f32.mrf.mxu2  ;;  %10125 = vst [vmem:[#allocation160_spill] sm:$0xff] %v7528_v10 }
 0x239   : > { %v2079_v33 = vadd.f32 %v2078_v47, %v1910_v54  ;;  %v2247_v31 = vpop.f32.mrf.mxu3  ;;  %v652_v47 = vld [vmem:[%s6289_s13 + $0xb70] sm:$0xff] }
 0x23a   : > { %v1912_v45 = vpop.f32.mrf.mxu1 }
 0x23b   : > { %v1913_v28 = vadd.f32 %v1912_v45, %v1744_v3  ;;  %v2248_v9 = vadd.f32 %v2247_v31, %v2079_v33  ;;  %v659_v3 = vld [vmem:[%s6289_s13 + $0xba8] sm:$0xff]  ;;  %v653_v33 = vld [vmem:[%s6289_s13 + $0xb78] sm:$0xff]  ;;  %v660_v31 = vld [vmem:[%s6289_s13 + $0xbb0] sm:$0xff] }
 0x23c   : > { %v2419_v61 = vpop.f32.mrf.mxu0 }
 0x23d   : > { %v7530_v5 = vadd.f32 %v2416_v59, %v2248_v9  ;;  %1951 = vmatmul.bf16.gmra.mxu1 %v7522_v37  ;;  %2120 = vmatmul.bf16.gmra.mxu2 %v7524_v11  ;;  %v654_v9 = vld [vmem:[%s6289_s13 + $0xb80] sm:$0xff] }
 0x23e   : > { %2289 = vmatmul.bf16.gmra.mxu3 %v7526_v48  ;;  %v7550_v48 = vpack.c.bf16 %v658_v57, %v651_v52  ;;  %v1751_v52 = vadd.f32 %v6771_v50, %v6966_v4  ;;  %v1754_v50 = vadd.f32 %v6793_v49, %v6966_v4 }
 0x23f   : > { %2458 = vmatmul.bf16.gmra.mxu0 %v7528_v10  ;;  %v661_v10 = vld [vmem:[%s6289_s13 + $0xbb8] sm:$0xff] }
 0x240   : > { %v2081_v25 = vpop.f32.mrf.mxu2 }
 0x241   : > { %v2082_v36 = vadd.f32 %v2081_v25, %v1913_v28  ;;  %v2250_v54 = vpop.f32.mrf.mxu3 }
 0x242   : > { %v1914_v59 = vpop.f32.mrf.mxu1 }
 0x243   : > { %v1915_v17 = vadd.f32 %v1914_v59, %v1746_v12  ;;  %v2251_v29 = vadd.f32 %v2250_v54, %v2082_v36  ;;  %v7552_v12 = vpack.c.bf16 %v659_v3, %v652_v47  ;;  %v7554_v36 = vpack.c.bf16 %v660_v31, %v653_v33 }
 0x244   : > { %v2421_v2 = vpop.f32.mrf.mxu0 }
 0x245   : > { %v7538_v34 = vadd.f32 %v2419_v61, %v2251_v29  ;;  %10126 = vst [vmem:[#allocation161_spill] sm:$0xff] %v7552_v12  ;;  %v7556_v29 = vpack.c.bf16 %v661_v10, %v654_v9 }
 0x246   : > { %10127 = vst [vmem:[#allocation162_spill] sm:$0xff] %v7554_v36 }
 0x247   : > { %10128 = vst [vmem:[#allocation163_spill] sm:$0xff] %v7556_v29 }
 0x248   : > { %v2083_v45 = vpop.f32.mrf.mxu2 }
 0x249   : > { %v2084_v28 = vadd.f32 %v2083_v45, %v1915_v17  ;;  %v2252_v25 = vpop.f32.mrf.mxu3  ;;  %v5919_v17 = vld [vmem:[%s9742_s1 + $0x284] sm:$0xf0] }
 0x24a   : > { %v1917_v61 = vpop.f32.mrf.mxu1  ;;  %v5591_v10 = vor.u32 %v5919_v17, %v5590_v62  ;;  %v674_v62 = vld [vmem:[%s6289_s13 + $0xc20] sm:$0xff] }
 0x24b   : > { %v1918_v54 = vadd.f32 %v1917_v61, %v1749_v1  ;;  %v2253_v59 = vadd.f32 %v2252_v25, %v2084_v28  ;;  %v665_v1 = vld [vmem:[%s6289_s13 + $0xbd8] sm:$0xff]  ;;  %v672_v28 = vld [vmem:[%s6289_s13 + $0xc10] sm:$0xff]  ;;  %v666_v25 = vld [vmem:[%s6289_s13 + $0xbe0] sm:$0xff] }
 0x24c   : > { %v2424_v11 = vpop.f32.mrf.mxu0  ;;  %2501 = vmatpush.bf16.msra.mxu1 %v5591_v10  ;;  %v673_v61 = vld [vmem:[%s6289_s13 + $0xc18] sm:$0xff]  ;;  %v668_v10 = vld [vmem:[%s6289_s13 + $0xbf0] sm:$0xff] }
 0x24d   : > { %v7558_v37 = vadd.f32 %v2421_v2, %v2253_v59  ;;  %1956 = vmatmul.bf16.gmra.mxu1 %v7550_v48  ;;  %2125 = vmatmul.bf16.gmra.mxu2 %v7552_v12  ;;  %v667_v59 = vld [vmem:[%s6289_s13 + $0xbe8] sm:$0xff] }
 0x24e   : > { %2294 = vmatmul.bf16.gmra.mxu3 %v7554_v36  ;;  %v7584_v36 = vpack.c.bf16 %v672_v28, %v665_v1 }
 0x24f   : > { %2463 = vmatmul.bf16.gmra.mxu0 %v7556_v29  ;;  %v675_v29 = vld [vmem:[%s6289_s13 + $0xc28] sm:$0xff] }
 0x250   : > { %v2086_v2 = vpop.f32.mrf.mxu2  ;;  %10129 = vst [vmem:[#allocation164_spill] sm:$0xff] %v7584_v36 }
 0x251   : > { %v2087_v57 = vadd.f32 %v2086_v2, %v1918_v54  ;;  %v2255_v47 = vpop.f32.mrf.mxu3 }
 0x252   : > { %v1919_v3 = vpop.f32.mrf.mxu1 }
 0x253   : > { %v1920_v33 = vadd.f32 %v1919_v3, %v1751_v52  ;;  %v2256_v31 = vadd.f32 %v2255_v47, %v2087_v57  ;;  %v7586_v52 = vpack.c.bf16 %v673_v61, %v666_v25  ;;  %v5288_v57 = vld [vmem:[%s9742_s1 + $0x28] sm:$0xf0]  ;;  %v7594_v3 = vpack.c.bf16 %v674_v62, %v667_v59 }
 0x254   : > { %v2426_v45 = vpop.f32.mrf.mxu0  ;;  %v1756_v25 = vadd.f32 %v6807_v35, %v6966_v4  ;;  %v1759_v35 = vadd.f32 %v6829_v14, %v6966_v4  ;;  %v5368_v14 = vld [vmem:[%s9742_s1 + $0xc8] sm:$0xf0] }
 0x255   : > { %v7572_v9 = vadd.f32 %v2424_v11, %v2256_v31  ;;  %10130 = vst [vmem:[#allocation165_spill] sm:$0xff] %v7586_v52  ;;  %v5842_v11 = vld [vmem:[%s9742_s1 + $0x24] sm:$0xf] }
 0x256   : > { %10131 = vst [vmem:[#allocation166_spill] sm:$0xff] %v7594_v3  ;;  %v5291_v31 = vor.u32 %v5842_v11, %v5288_v57  ;;  %v680_v11 = vld [vmem:[%s6289_s13 + $0xc50] sm:$0xff]  ;;  %v687_v57 = vld [vmem:[%s6289_s13 + $0xc88] sm:$0xff] }
 0x258   : > { %v2088_v17 = vpop.f32.mrf.mxu2  ;;  %2837 = vmatpush.bf16.msra.mxu3 %v5291_v31  ;;  %v688_v31 = vld [vmem:[%s6289_s13 + $0xc90] sm:$0xff] }
 0x259   : > { %v2089_v54 = vadd.f32 %v2088_v17, %v1920_v33  ;;  %v2257_v2 = vpop.f32.mrf.mxu3  ;;  %v7596_v33 = vpack.c.bf16 %v675_v29, %v668_v10 }
 0x25a   : > { %v1922_v47 = vpop.f32.mrf.mxu1 }
 0x25b   : > { %v1923_v12 = vadd.f32 %v1922_v47, %v1754_v50  ;;  %v2258_v49 = vadd.f32 %v2257_v2, %v2089_v54  ;;  %10132 = vst [vmem:[#allocation167_spill] sm:$0xff] %v7596_v33  ;;  %v679_v54 = vld [vmem:[%s6289_s13 + $0xc48] sm:$0xff]  ;;  %v686_v2 = vld [vmem:[%s6289_s13 + $0xc80] sm:$0xff]  ;;  %v681_v47 = vld [vmem:[%s6289_s13 + $0xc58] sm:$0xff] }
 0x25c   : > { %v2429_v1 = vpop.f32.mrf.mxu0 }
 0x25d   : > { %v7598_v28 = vadd.f32 %v2426_v45, %v2258_v49  ;;  %1961 = vmatmul.bf16.gmra.mxu1 %v7584_v36  ;;  %2130 = vmatmul.bf16.gmra.mxu2 %v7586_v52  ;;  %v7618_v52 = vpack.c.bf16 %v686_v2, %v679_v54  ;;  %v5862_v36 = vld [vmem:[%s9742_s1 + $0xc4] sm:$0xf] }
 0x25e   : > { %2299 = vmatmul.bf16.gmra.mxu3 %v7594_v3  ;;  %v689_v3 = vld [vmem:[%s6289_s13 + $0xc98] sm:$0xff]  ;;  %v5371_v54 = vor.u32 %v5862_v36, %v5368_v14  ;;  %v1761_v36 = vadd.f32 %v6843_v19, %v6966_v4  ;;  %v702_v14 = vld [vmem:[%s6289_s13 + $0xd00] sm:$0xff]  ;;  %v1764_v19 = vadd.f32 %v6865_v21, %v6966_v4 }
 0x25f   : > { %2468 = vmatmul.bf16.gmra.mxu0 %v7596_v33  ;;  %v682_v33 = vld [vmem:[%s6289_s13 + $0xc60] sm:$0xff]  ;;  %10133 = vst [vmem:[#allocation168_spill] sm:$0xff] %v7618_v52 }
 0x260   : > { %v2091_v29 = vpop.f32.mrf.mxu2  ;;  %3004 = vmatpush.bf16.msra.mxu0 %v5371_v54 }
 0x261   : > { %v2092_v45 = vadd.f32 %v2091_v29, %v1923_v12  ;;  %v2260_v61 = vpop.f32.mrf.mxu3 }
 0x262   : > { %v1924_v59 = vpop.f32.mrf.mxu1 }
 0x263   : > { %v1925_v62 = vadd.f32 %v1924_v59, %v1756_v25  ;;  %v2261_v17 = vadd.f32 %v2260_v61, %v2092_v45  ;;  %v7620_v25 = vpack.c.bf16 %v687_v57, %v680_v11  ;;  %v7622_v45 = vpack.c.bf16 %v688_v31, %v681_v47 }
 0x264   : > { %v2431_v10 = vpop.f32.mrf.mxu0 }
 0x265   : > { %v7606_v50 = vadd.f32 %v2429_v1, %v2261_v17  ;;  %10134 = vst [vmem:[#allocation169_spill] sm:$0xff] %v7620_v25  ;;  %v7624_v17 = vpack.c.bf16 %v689_v3, %v682_v33 }
 0x266   : > { %10135 = vst [vmem:[#allocation170_spill] sm:$0xff] %v7622_v45 }
 0x267   : > { %10136 = vst [vmem:[#allocation171_spill] sm:$0xff] %v7624_v17 }
 0x268   : > { %v2093_v49 = vpop.f32.mrf.mxu2 }
 0x269   : > { %v2094_v12 = vadd.f32 %v2093_v49, %v1925_v62  ;;  %v2262_v29 = vpop.f32.mrf.mxu3 }
 0x26a   : > { %v1927_v1 = vpop.f32.mrf.mxu1 }
 0x26b   : > { %v1928_v61 = vadd.f32 %v1927_v1, %v1759_v35  ;;  %v2263_v59 = vadd.f32 %v2262_v29, %v2094_v12  ;;  %v693_v35 = vld [vmem:[%s6289_s13 + $0xcb8] sm:$0xff]  ;;  %v700_v12 = vld [vmem:[%s6289_s13 + $0xcf0] sm:$0xff]  ;;  %v694_v29 = vld [vmem:[%s6289_s13 + $0xcc0] sm:$0xff] }
 0x26c   : > { %v2434_v62 = vpop.f32.mrf.mxu0  ;;  %v701_v1 = vld [vmem:[%s6289_s13 + $0xcf8] sm:$0xff] }
 0x26d   : > { %v7632_v2 = vadd.f32 %v2431_v10, %v2263_v59  ;;  %1966 = vmatmul.bf16.gmra.mxu1 %v7618_v52  ;;  %2135 = vmatmul.bf16.gmra.mxu2 %v7620_v25  ;;  %v695_v59 = vld [vmem:[%s6289_s13 + $0xcc8] sm:$0xff]  ;;  %v7652_v25 = vpack.c.bf16 %v700_v12, %v693_v35 }
 0x26e   : > { %2304 = vmatmul.bf16.gmra.mxu3 %v7622_v45  ;;  %v703_v45 = vld [vmem:[%s6289_s13 + $0xd08] sm:$0xff] }
 0x26f   : > { %2473 = vmatmul.bf16.gmra.mxu0 %v7624_v17  ;;  %v696_v17 = vld [vmem:[%s6289_s13 + $0xcd0] sm:$0xff]  ;;  %10138 = vst [vmem:[#allocation173_spill] sm:$0xff] %v7652_v25 }
 0x270   : > { %v2096_v3 = vpop.f32.mrf.mxu2 }
 0x271   : > { %v2097_v33 = vadd.f32 %v2096_v3, %v1928_v61  ;;  %v2265_v10 = vpop.f32.mrf.mxu3 }
 0x272   : > { %v1929_v11 = vpop.f32.mrf.mxu1 }
 0x273   : > { %v1930_v57 = vadd.f32 %v1929_v11, %v1761_v36  ;;  %v2266_v47 = vadd.f32 %v2265_v10, %v2097_v33  ;;  %v7654_v36 = vpack.c.bf16 %v701_v1, %v694_v29  ;;  %v7656_v33 = vpack.c.bf16 %v702_v14, %v695_v59  ;;  %v707_v59 = vld [vmem:[%s6289_s13 + $0xd28] sm:$0xff]  ;;  %v714_v14 = vld [vmem:[%s6289_s13 + $0xd60] sm:$0xff] }
 0x274   : > { %v2436_v31 = vpop.f32.mrf.mxu0 }
 0x275   : > { %v7640_v49 = vadd.f32 %v2434_v62, %v2266_v47  ;;  %10139 = vst [vmem:[#allocation174_spill] sm:$0xff] %v7654_v36  ;;  %v7658_v47 = vpack.c.bf16 %v703_v45, %v696_v17 }
 0x276   : > { %10140 = vst [vmem:[#allocation175_spill] sm:$0xff] %v7656_v33 }
 0x277   : > { %10137 = vst [vmem:[#allocation172_spill] sm:$0xff] %v7640_v49 }
 0x278   : > { %v2098_v54 = vpop.f32.mrf.mxu2  ;;  %10141 = vst [vmem:[#allocation176_spill] sm:$0xff] %v7658_v47 }
 0x279   : > { %v2099_v61 = vadd.f32 %v2098_v54, %v1930_v57  ;;  %v2267_v3 = vpop.f32.mrf.mxu3  ;;  %v10143_v57 = vld [vmem:[#allocation69_spill] sm:$0xff] }
 0x27a   : > { %v1932_v62 = vpop.f32.mrf.mxu1  ;;  %v1766_v35 = vadd.f32 %v10143_v57, %v6966_v4  ;;  %v716_v57 = vld [vmem:[%s6289_s13 + $0xd70] sm:$0xff] }
 0x27b   : > { %v1933_v10 = vadd.f32 %v1932_v62, %v1764_v19  ;;  %v2268_v11 = vadd.f32 %v2267_v3, %v2099_v61  ;;  %v5840_v19 = vld [vmem:[%s9742_s1 + $0x14] sm:$0xf]  ;;  %v5280_v61 = vld [vmem:[%s9742_s1 + $0x18] sm:$0xf0] }
 0x27c   : > { %v2439_v52 = vpop.f32.mrf.mxu0  ;;  %v5860_v3 = vld [vmem:[%s9742_s1 + $0xb4] sm:$0xf] }
 0x27d   : > { %v7660_v49 = vadd.f32 %v2436_v31, %v2268_v11  ;;  %1971 = vmatmul.bf16.gmra.mxu1 %v7652_v25  ;;  %2140 = vmatmul.bf16.gmra.mxu2 %v7654_v36  ;;  %v708_v62 = vld [vmem:[%s6289_s13 + $0xd30] sm:$0xff]  ;;  %v5283_v11 = vor.u32 %v5840_v19, %v5280_v61  ;;  %v7692_v25 = vpack.c.bf16 %v714_v14, %v707_v59  ;;  %v5838_v19 = vld [vmem:[%s9742_s1 + $0x4] sm:$0xf]  ;;  %v5272_v61 = vld [vmem:[%s9742_s1 + $0x8] sm:$0xf0] }
 0x27e   : > { %2309 = vmatmul.bf16.gmra.mxu3 %v7656_v33  ;;  %v5275_v59 = vor.u32 %v5838_v19, %v5272_v61  ;;  %v5352_v14 = vld [vmem:[%s9742_s1 + $0xa8] sm:$0xf0] }
 0x27f   : > { %10142 = vst [vmem:[#allocation177_spill] sm:$0xff] %v7660_v49  ;;  %2478 = vmatmul.bf16.gmra.mxu0 %v7658_v47  ;;  %2838 = vmatpush.bf16.msra.mxu3 %v5283_v11 }
 0x280   : > { %v2101_v21 = vpop.f32.mrf.mxu2 }
 0x281   : > { %v2102_v45 = vadd.f32 %v2101_v21, %v1933_v10  ;;  %v2270_v17 = vpop.f32.mrf.mxu3  ;;  %v715_v10 = vld [vmem:[%s6289_s13 + $0xd68] sm:$0xff]  ;;  %v709_v21 = vld [vmem:[%s6289_s13 + $0xd38] sm:$0xff] }
 0x282   : > { %v1934_v31 = vpop.f32.mrf.mxu1 }
 0x283   : > { %v1935_v12 = vadd.f32 %v1934_v31, %v1766_v35  ;;  %v2271_v29 = vadd.f32 %v2270_v17, %v2102_v45  ;;  %v710_v17 = vld [vmem:[%s6289_s13 + $0xd40] sm:$0xff]  ;;  %v717_v31 = vld [vmem:[%s6289_s13 + $0xd78] sm:$0xff]  ;;  %2839 = vmatpush.bf16.msra.mxu3 %v5275_v59  ;;  %v5336_v59 = vld [vmem:[%s9742_s1 + $0x88] sm:$0xf0] }
 0x284   : > { %v2441_v1 = vpop.f32.mrf.mxu0 }
 0x285   : > { %v7670_v54 = vadd.f32 %v2439_v52, %v2271_v29  ;;  %v5360_v52 = vld [vmem:[%s9742_s1 + $0xb8] sm:$0xf0]  ;;  %v10145_v29 = vld [vmem:[#allocation75_spill] sm:$0xff] }
 0x286   : > { %v5363_v35 = vor.u32 %v5860_v3, %v5360_v52  ;;  %v1769_v47 = vadd.f32 %v10145_v29, %v6966_v4  ;;  %10146 = vst [vmem:[#allocation75_spill] sm:$0xff] %v7692_v25  ;;  %v5858_v3 = vld [vmem:[%s9742_s1 + $0xa4] sm:$0xf]  ;;  %v7710_v52 = vpack.c.bf16 %v717_v31, %v710_v17  ;;  %v10151_v31 = vld [vmem:[#allocation77_spill] sm:$0xff] }
 0x287   : > { %10144 = vst [vmem:[#allocation69_spill] sm:$0xff] %v7670_v54  ;;  %v7694_v54 = vpack.c.bf16 %v715_v10, %v708_v62  ;;  %v1771_v19 = vadd.f32 %v10151_v31, %v6966_v4  ;;  %v723_v31 = vld [vmem:[%s6289_s13 + $0xda8] sm:$0xff] }
 0x288   : > { %v2103_v45 = vpop.f32.mrf.mxu2  ;;  %3005 = vmatpush.bf16.msra.mxu0 %v5363_v35  ;;  %10149 = vst [vmem:[#allocation180_spill] sm:$0xff] %v7710_v52  ;;  %v5355_v35 = vor.u32 %v5858_v3, %v5352_v14 }
 0x289   : > { %v2104_v33 = vadd.f32 %v2103_v45, %v1935_v12  ;;  %v2272_v36 = vpop.f32.mrf.mxu3  ;;  %10147 = vst [vmem:[#allocation178_spill] sm:$0xff] %v7694_v54  ;;  %v7705_v12 = vpack.c.bf16 %v716_v57, %v709_v21  ;;  %v5884_v21 = vld [vmem:[%s9742_s1 + $0x174] sm:$0xf] }
 0x28a   : > { %v1937_v11 = vpop.f32.mrf.mxu1 }
 0x28b   : > { %10148 = vst [vmem:[#allocation179_spill] sm:$0xff] %v7705_v12  ;;  %v1938_v62 = vadd.f32 %v1937_v11, %v1769_v47  ;;  %v2273_v10 = vadd.f32 %v2272_v36, %v2104_v33  ;;  %v5456_v47 = vld [vmem:[%s9742_s1 + $0x178] sm:$0xf0]  ;;  %v5856_v36 = vld [vmem:[%s9742_s1 + $0x94] sm:$0xf] }
 0x28c   : > { %v2444_v45 = vpop.f32.mrf.mxu0  ;;  %3006 = vmatpush.bf16.msra.mxu0 %v5355_v35  ;;  %v5459_v33 = vor.u32 %v5884_v21, %v5456_v47  ;;  %v5854_v11 = vld [vmem:[%s9742_s1 + $0x84] sm:$0xf] }
 0x28d   : > { %v7712_v29 = vadd.f32 %v2441_v1, %v2273_v10  ;;  %1976 = vmatmul.bf16.gmra.mxu1 %v7692_v25  ;;  %2145 = vmatmul.bf16.gmra.mxu2 %v7694_v54  ;;  %v5344_v1 = vld [vmem:[%s9742_s1 + $0x98] sm:$0xf0]  ;;  %v5339_v10 = vor.u32 %v5854_v11, %v5336_v59  ;;  %v724_v54 = vld [vmem:[%s6289_s13 + $0xdb0] sm:$0xff]  ;;  %v731_v25 = vld [vmem:[%s6289_s13 + $0xde8] sm:$0xff] }
 0x28e   : > { %2314 = vmatmul.bf16.gmra.mxu3 %v7705_v12  ;;  %v5347_v57 = vor.u32 %v5856_v36, %v5344_v1  ;;  %3170 = vmatpush.bf16.msrb.mxu1 %v5459_v33  ;;  %v721_v36 = vld [vmem:[%s6289_s13 + $0xd98] sm:$0xff]  ;;  %v728_v33 = vld [vmem:[%s6289_s13 + $0xdd0] sm:$0xff]  ;;  %v722_v1 = vld [vmem:[%s6289_s13 + $0xda0] sm:$0xff] }
 0x28f   : > { %10150 = vst [vmem:[#allocation181_spill] sm:$0xff] %v7712_v29  ;;  %2483 = vmatmul.bf16.gmra.mxu0 %v7710_v52  ;;  %v730_v52 = vld [vmem:[%s6289_s13 + $0xde0] sm:$0xff]  ;;  %v10153_v29 = vld [vmem:[#allocation83_spill] sm:$0xff] }
 0x290   : > { %v2106_v17 = vpop.f32.mrf.mxu2  ;;  %3007 = vmatpush.bf16.msra.mxu0 %v5347_v57  ;;  %v1774_v49 = vadd.f32 %v10153_v29, %v6966_v4 }
 0x291   : > { %v2107_v61 = vadd.f32 %v2106_v17, %v1938_v62  ;;  %v2275_v3 = vpop.f32.mrf.mxu3  ;;  %v729_v17 = vld [vmem:[%s6289_s13 + $0xdd8] sm:$0xff] }
 0x292   : > { %v1939_v14 = vpop.f32.mrf.mxu1 }
 0x293   : > { %v1940_v35 = vadd.f32 %v1939_v14, %v1771_v19  ;;  %v2276_v21 = vadd.f32 %v2275_v3, %v2107_v61  ;;  %v7750_v19 = vpack.c.bf16 %v728_v33, %v721_v36  ;;  %v7752_v61 = vpack.c.bf16 %v729_v17, %v722_v1  ;;  %v291_v1 = vld [vmem:[%s6289_s13 + $0x28] sm:$0xff]  ;;  %v298_v17 = vld [vmem:[%s6289_s13 + $0x60] sm:$0xff] }
 0x294   : > { %v2446_v47 = vpop.f32.mrf.mxu0  ;;  %3008 = vmatpush.bf16.msra.mxu0 %v5339_v10  ;;  %v7754_v3 = vpack.c.bf16 %v730_v52, %v723_v31  ;;  %v7756_v10 = vpack.c.bf16 %v731_v25, %v724_v54  ;;  %v292_v31 = vld [vmem:[%s6289_s13 + $0x30] sm:$0xff] }
 0x295   : > { %v7738_v62 = vadd.f32 %v2444_v45, %v2276_v21  ;;  %10154 = vst [vmem:[#allocation83_spill] sm:$0xff] %v7750_v19 }
 0x296   : > { %10155 = vst [vmem:[#allocation182_spill] sm:$0xff] %v7752_v61 }
 0x297   : > { %10152 = vst [vmem:[#allocation77_spill] sm:$0xff] %v7738_v62 }
 0x298   : > { %v2108_v12 = vpop.f32.mrf.mxu2  ;;  %10156 = vst [vmem:[#allocation183_spill] sm:$0xff] %v7754_v3 }
 0x299   : > { %v2109_v57 = vadd.f32 %v2108_v12, %v1940_v35  ;;  %v2277_v11 = vpop.f32.mrf.mxu3  ;;  %10157 = vst [vmem:[#allocation184_spill] sm:$0xff] %v7756_v10 }
 0x29a   : > { %v1942_v45 = vpop.f32.mrf.mxu1 }
 0x29b   : > { %v1943_v59 = vadd.f32 %v1942_v45, %v1774_v49  ;;  %v2278_v14 = vadd.f32 %v2277_v11, %v2109_v57  ;;  %v10158_v49 = vld [vmem:[#allocation85_spill] sm:$0xff]  ;;  %v299_v57 = vld [vmem:[%s6289_s13 + $0x68] sm:$0xff]  ;;  %v10159_v45 = vld [vmem:[#allocation38_spill] sm:$0xff] }
 0x29c   : > { %v2449_v21 = vpop.f32.mrf.mxu0  ;;  %v1776_v25 = vadd.f32 %v10158_v49, %v6966_v4 }
 0x29d   : > { %v7758_v62 = vadd.f32 %v2446_v47, %v2278_v14  ;;  %1981 = vmatmul.bf16.gmra.mxu1 %v7750_v19  ;;  %2150 = vmatmul.bf16.gmra.mxu2 %v7752_v61  ;;  %v1779_v14 = vadd.f32 %v10159_v45, %v6966_v4  ;;  %v7774_v61 = vpack.c.bf16 %v298_v17, %v291_v1  ;;  %v305_v45 = vld [vmem:[%s6289_s13 + $0x98] sm:$0xff] }
 0x29e   : > { %2319 = vmatmul.bf16.gmra.mxu3 %v7754_v3 }
 0x29f   : > { %2488 = vmatmul.bf16.gmra.mxu0 %v7756_v10  ;;  %10160 = vst [vmem:[#allocation85_spill] sm:$0xff] %v7774_v61 }
 0x2a0   : > { %v2111_v12 = vpop.f32.mrf.mxu2 }
 0x2a1   : > { %v2112_v54 = vadd.f32 %v2111_v12, %v1943_v59  ;;  %v2280_v52 = vpop.f32.mrf.mxu3  ;;  %v7776_v59 = vpack.c.bf16 %v299_v57, %v292_v31 }
 0x2a2   : > { %v1944_v29 = vpop.f32.mrf.mxu1 }
 0x2a3   : > { %v1945_v35 = vadd.f32 %v1944_v29, %v1776_v25  ;;  %v2281_v47 = vadd.f32 %v2280_v52, %v2112_v54  ;;  %10161 = vst [vmem:[#allocation38_spill] sm:$0xff] %v7776_v59  ;;  %v10163_v52 = vld [vmem:[#allocation5_spill] sm:$0xff]  ;;  %v10164_v29 = vld [vmem:[#allocation34_spill] sm:$0xff] }
 0x2a4   : > { %v2451_v36 = vpop.f32.mrf.mxu0 }
 0x2a5   : > { %v7766_v33 = vadd.f32 %v2449_v21, %v2281_v47  ;;  %v10165_v47 = vld [vmem:[#allocation39_spill] sm:$0xff] }
 0x2a8   : > { %v2113_v11 = vpop.f32.mrf.mxu2 }
 0x2a9   : > { %v2114_v10 = vadd.f32 %v2113_v11, %v1945_v35  ;;  %v2282_v3 = vpop.f32.mrf.mxu3 }
 0x2aa   : > { %v1947_v12 = vpop.f32.mrf.mxu1 }
 0x2ab   : > { %v1948_v49 = vadd.f32 %v1947_v12, %v1779_v14  ;;  %v2283_v25 = vadd.f32 %v2282_v3, %v2114_v10  ;;  %v1781_v3 = vadd.f32 %v10165_v47, %v6966_v4  ;;  %v312_v14 = vld [vmem:[%s6289_s13 + $0xd0] sm:$0xff]  ;;  %v306_v12 = vld [vmem:[%s6289_s13 + $0xa0] sm:$0xff] }
 0x2ac   : > { %v2454_v21 = vpop.f32.mrf.mxu0  ;;  %v7795_v19 = vpack.c.bf16 %v312_v14, %v305_v45 }
 0x2ad   : > { %v7778_v54 = vadd.f32 %v2451_v36, %v2283_v25  ;;  %2502 = vmatmul.bf16.vlgmr.msra.gmra.mxu1 %v7774_v61  ;;  %5660 = vmatmul.msk.bf16.vlgmr.msra.gmra.mxu2 %vm1552_vm0, %v7776_v59  ;;  %v313_v25 = vld [vmem:[%s6289_s13 + $0xd8] sm:$0xff] }
 0x2ae   : > { %2840 = vmatmul.bf16.vlgmr.msra.gmra.mxu3 %v10163_v52  ;;  %v10167_v52 = vld [vmem:[#allocation44_spill] sm:$0xff]  ;;  %10168 = vst [vmem:[#allocation34_spill] sm:$0xff] %v7795_v19 }
 0x2af   : > { %10162 = vst [vmem:[#allocation185_spill] sm:$0xff] %v7778_v54  ;;  %3009 = vmatmul.bf16.vlgmr.msra.gmra.mxu0 %v10164_v29  ;;  %v1784_v29 = vadd.f32 %v10167_v52, %v6966_v4  ;;  %v319_v52 = vld [vmem:[%s6289_s13 + $0x108] sm:$0xff] }
 0x2b0   : > { %v2116_v35 = vpop.f32.mrf.mxu2 }
 0x2b1   : > { %v2117_v10 = vadd.f32 %v2116_v35, %v1948_v49  ;;  %v2285_v1 = vpop.f32.mrf.mxu3  ;;  %v7797_v49 = vpack.c.bf16 %v313_v25, %v306_v12 }
 0x2b2   : > { %v1949_v17 = vpop.f32.mrf.mxu1 }
 0x2b3   : > { %v1950_v36 = vadd.f32 %v1949_v17, %v1781_v3  ;;  %v2286_v31 = vadd.f32 %v2285_v1, %v2117_v10  ;;  %10169 = vst [vmem:[#allocation39_spill] sm:$0xff] %v7797_v49  ;;  %v10172_v1 = vld [vmem:[#allocation40_spill] sm:$0xff] }
 0x2b4   : > { %v2456_v57 = vpop.f32.mrf.mxu0 }
 0x2b5   : > { %v7787_v11 = vadd.f32 %v2454_v21, %v2286_v31 }
 0x2b7   : > { %10166 = vst [vmem:[#allocation5_spill] sm:$0xff] %v7787_v11 }
 0x2b8   : > { %v2118_v59 = vpop.f32.mrf.mxu2 }
 0x2b9   : > { %v2119_v61 = vadd.f32 %v2118_v59, %v1950_v36  ;;  %v2287_v54 = vpop.f32.mrf.mxu3  ;;  %v10171_v59 = vld [vmem:[#allocation9_spill] sm:$0xff] }
 0x2ba   : > { %v1952_v35 = vpop.f32.mrf.mxu1  ;;  %v10173_v36 = vld [vmem:[#allocation45_spill] sm:$0xff] }
 0x2bb   : > { %v1953_v47 = vadd.f32 %v1952_v35, %v1784_v29  ;;  %v2288_v3 = vadd.f32 %v2287_v54, %v2119_v61  ;;  %v1786_v61 = vadd.f32 %v10173_v36, %v6966_v4  ;;  %v326_v29 = vld [vmem:[%s6289_s13 + $0x140] sm:$0xff]  ;;  %v320_v35 = vld [vmem:[%s6289_s13 + $0x110] sm:$0xff] }
 0x2bc   : > { %v2459_v21 = vpop.f32.mrf.mxu0  ;;  %v7816_v11 = vpack.c.bf16 %v326_v29, %v319_v52 }
 0x2bd   : > { %v7799_v10 = vadd.f32 %v2456_v57, %v2288_v3  ;;  %2507 = vmatmul.bf16.gmra.mxu1 %v7795_v19  ;;  %5661 = vmatmul.msk.bf16.gmra.mxu2 %vm1552_vm0, %v7797_v49  ;;  %v327_v3 = vld [vmem:[%s6289_s13 + $0x148] sm:$0xff] }
 0x2be   : > { %2845 = vmatmul.bf16.gmra.mxu3 %v10171_v59  ;;  %v10175_v59 = vld [vmem:[#allocation50_spill] sm:$0xff]  ;;  %10176 = vst [vmem:[#allocation40_spill] sm:$0xff] %v7816_v11 }
 0x2bf   : > { %10170 = vst [vmem:[#allocation44_spill] sm:$0xff] %v7799_v10  ;;  %3014 = vmatmul.bf16.gmra.mxu0 %v10172_v1  ;;  %v1789_v1 = vadd.f32 %v10175_v59, %v6966_v4 }
 0x2c0   : > { %v2121_v17 = vpop.f32.mrf.mxu2 }
 0x2c1   : > { %v2122_v54 = vadd.f32 %v2121_v17, %v1953_v47  ;;  %v2290_v31 = vpop.f32.mrf.mxu3  ;;  %v7818_v47 = vpack.c.bf16 %v327_v3, %v320_v35 }
 0x2c2   : > { %v1954_v45 = vpop.f32.mrf.mxu1 }
 0x2c3   : > { %v1955_v57 = vadd.f32 %v1954_v45, %v1786_v61  ;;  %v2291_v14 = vadd.f32 %v2290_v31, %v2122_v54  ;;  %10177 = vst [vmem:[#allocation45_spill] sm:$0xff] %v7818_v47  ;;  %v5448_v31 = vld [vmem:[%s9742_s1 + $0x168] sm:$0xf0]  ;;  %v10179_v45 = vld [vmem:[#allocation13_spill] sm:$0xff] }
 0x2c4   : > { %v2461_v12 = vpop.f32.mrf.mxu0 }
 0x2c5   : > { %v7808_v25 = vadd.f32 %v2459_v21, %v2291_v14  ;;  %v10181_v14 = vld [vmem:[#allocation51_spill] sm:$0xff] }
 0x2c7   : > { %10174 = vst [vmem:[#allocation9_spill] sm:$0xff] %v7808_v25 }
 0x2c8   : > { %v2123_v49 = vpop.f32.mrf.mxu2 }
 0x2c9   : > { %v2124_v19 = vadd.f32 %v2123_v49, %v1955_v57  ;;  %v2292_v10 = vpop.f32.mrf.mxu3  ;;  %v5882_v49 = vld [vmem:[%s9742_s1 + $0x164] sm:$0xf] }
 0x2ca   : > { %v1957_v17 = vpop.f32.mrf.mxu1 }
 0x2cb   : > { %v1958_v36 = vadd.f32 %v1957_v17, %v1789_v1  ;;  %v2293_v61 = vadd.f32 %v2292_v10, %v2124_v19  ;;  %v5451_v19 = vor.u32 %v5882_v49, %v5448_v31  ;;  %v10180_v10 = vld [vmem:[#allocation46_spill] sm:$0xff]  ;;  %v10183_v31 = vld [vmem:[#allocation56_spill] sm:$0xff] }
 0x2cc   : > { %v2464_v54 = vpop.f32.mrf.mxu0 }
 0x2cd   : > { %v7820_v21 = vadd.f32 %v2461_v12, %v2293_v61  ;;  %2512 = vmatmul.bf16.gmra.mxu1 %v7816_v11  ;;  %5662 = vmatmul.msk.bf16.gmra.mxu2 %vm1552_vm0, %v7818_v47  ;;  %v1791_v12 = vadd.f32 %v10181_v14, %v6966_v4  ;;  %v333_v61 = vld [vmem:[%s6289_s13 + $0x178] sm:$0xff]  ;;  %v340_v47 = vld [vmem:[%s6289_s13 + $0x1b0] sm:$0xff] }
 0x2ce   : > { %2850 = vmatmul.bf16.gmra.mxu3 %v10179_v45  ;;  %3171 = vmatpush.bf16.msrb.mxu1 %v5451_v19  ;;  %v334_v45 = vld [vmem:[%s6289_s13 + $0x180] sm:$0xff]  ;;  %v341_v11 = vld [vmem:[%s6289_s13 + $0x1b8] sm:$0xff]  ;;  %v7843_v25 = vpack.c.bf16 %v340_v47, %v333_v61  ;;  %v10188_v47 = vld [vmem:[#allocation52_spill] sm:$0xff] }
 0x2cf   : > { %10178 = vst [vmem:[#allocation50_spill] sm:$0xff] %v7820_v21  ;;  %3019 = vmatmul.bf16.gmra.mxu0 %v10180_v10  ;;  %v1794_v10 = vadd.f32 %v10183_v31, %v6966_v4 }
 0x2d0   : > { %v2126_v57 = vpop.f32.mrf.mxu2  ;;  %10184 = vst [vmem:[#allocation46_spill] sm:$0xff] %v7843_v25 }
 0x2d1   : > { %v2127_v52 = vadd.f32 %v2126_v57, %v1958_v36  ;;  %v2295_v29 = vpop.f32.mrf.mxu3  ;;  %v7845_v36 = vpack.c.bf16 %v341_v11, %v334_v45 }
 0x2d2   : > { %v1959_v35 = vpop.f32.mrf.mxu1 }
 0x2d3   : > { %v1960_v3 = vadd.f32 %v1959_v35, %v1791_v12  ;;  %v2296_v59 = vadd.f32 %v2295_v29, %v2127_v52  ;;  %10185 = vst [vmem:[#allocation51_spill] sm:$0xff] %v7845_v36  ;;  %v10187_v29 = vld [vmem:[#allocation17_spill] sm:$0xff] }
 0x2d4   : > { %v2466_v1 = vpop.f32.mrf.mxu0  ;;  %v10189_v35 = vld [vmem:[#allocation57_spill] sm:$0xff] }
 0x2d5   : > { %v7835_v17 = vadd.f32 %v2464_v54, %v2296_v59 }
 0x2d7   : > { %10182 = vst [vmem:[#allocation13_spill] sm:$0xff] %v7835_v17 }
 0x2d8   : > { %v2128_v49 = vpop.f32.mrf.mxu2 }
 0x2d9   : > { %v2129_v19 = vadd.f32 %v2128_v49, %v1960_v3  ;;  %v2297_v21 = vpop.f32.mrf.mxu3 }
 0x2da   : > { %v1962_v57 = vpop.f32.mrf.mxu1 }
 0x2db   : > { %v1963_v14 = vadd.f32 %v1962_v57, %v1794_v10  ;;  %v2298_v12 = vadd.f32 %v2297_v21, %v2129_v19  ;;  %v1796_v21 = vadd.f32 %v10189_v35, %v6966_v4  ;;  %v347_v10 = vld [vmem:[%s6289_s13 + $0x1e8] sm:$0xff]  ;;  %v354_v19 = vld [vmem:[%s6289_s13 + $0x220] sm:$0xff]  ;;  %v348_v57 = vld [vmem:[%s6289_s13 + $0x1f0] sm:$0xff] }
 0x2dc   : > { %v2469_v54 = vpop.f32.mrf.mxu0  ;;  %v7864_v17 = vpack.c.bf16 %v354_v19, %v347_v10 }
 0x2dd   : > { %v7847_v52 = vadd.f32 %v2466_v1, %v2298_v12  ;;  %2517 = vmatmul.bf16.gmra.mxu1 %v7843_v25  ;;  %5663 = vmatmul.msk.bf16.gmra.mxu2 %vm1552_vm0, %v7845_v36  ;;  %v355_v12 = vld [vmem:[%s6289_s13 + $0x228] sm:$0xff] }
 0x2de   : > { %2855 = vmatmul.bf16.gmra.mxu3 %v10187_v29  ;;  %v10191_v29 = vld [vmem:[#allocation62_spill] sm:$0xff]  ;;  %10192 = vst [vmem:[#allocation52_spill] sm:$0xff] %v7864_v17 }
 0x2df   : > { %10186 = vst [vmem:[#allocation56_spill] sm:$0xff] %v7847_v52  ;;  %3024 = vmatmul.bf16.gmra.mxu0 %v10188_v47  ;;  %v1799_v47 = vadd.f32 %v10191_v29, %v6966_v4  ;;  %v361_v29 = vld [vmem:[%s6289_s13 + $0x258] sm:$0xff] }
 0x2e0   : > { %v2131_v11 = vpop.f32.mrf.mxu2 }
 0x2e1   : > { %v2132_v3 = vadd.f32 %v2131_v11, %v1963_v14  ;;  %v2300_v59 = vpop.f32.mrf.mxu3  ;;  %v7866_v14 = vpack.c.bf16 %v355_v12, %v348_v57 }
 0x2e2   : > { %v1964_v61 = vpop.f32.mrf.mxu1 }
 0x2e3   : > { %v1965_v1 = vadd.f32 %v1964_v61, %v1796_v21  ;;  %v2301_v45 = vadd.f32 %v2300_v59, %v2132_v3  ;;  %10193 = vst [vmem:[#allocation57_spill] sm:$0xff] %v7866_v14  ;;  %v10196_v59 = vld [vmem:[#allocation58_spill] sm:$0xff] }
 0x2e4   : > { %v2471_v49 = vpop.f32.mrf.mxu0 }
 0x2e5   : > { %v7856_v31 = vadd.f32 %v2469_v54, %v2301_v45 }
 0x2e7   : > { %10190 = vst [vmem:[#allocation17_spill] sm:$0xff] %v7856_v31 }
 0x2e8   : > { %v2133_v36 = vpop.f32.mrf.mxu2 }
 0x2e9   : > { %v2134_v25 = vadd.f32 %v2133_v36, %v1965_v1  ;;  %v2302_v52 = vpop.f32.mrf.mxu3  ;;  %v10195_v36 = vld [vmem:[#allocation21_spill] sm:$0xff]  ;;  %v10197_v1 = vld [vmem:[#allocation63_spill] sm:$0xff] }
 0x2ea   : > { %v1967_v11 = vpop.f32.mrf.mxu1 }
 0x2eb   : > { %v1968_v35 = vadd.f32 %v1967_v11, %v1799_v47  ;;  %v2303_v21 = vadd.f32 %v2302_v52, %v2134_v25  ;;  %v1801_v25 = vadd.f32 %v10197_v1, %v6966_v4  ;;  %v368_v47 = vld [vmem:[%s6289_s13 + $0x290] sm:$0xff]  ;;  %v362_v11 = vld [vmem:[%s6289_s13 + $0x260] sm:$0xff] }
 0x2ec   : > { %v2474_v54 = vpop.f32.mrf.mxu0  ;;  %v7885_v31 = vpack.c.bf16 %v368_v47, %v361_v29 }
 0x2ed   : > { %v7868_v3 = vadd.f32 %v2471_v49, %v2303_v21  ;;  %2522 = vmatmul.bf16.gmra.mxu1 %v7864_v17  ;;  %5664 = vmatmul.msk.bf16.gmra.mxu2 %vm1552_vm0, %v7866_v14  ;;  %v369_v21 = vld [vmem:[%s6289_s13 + $0x298] sm:$0xff] }
 0x2ee   : > { %2860 = vmatmul.bf16.gmra.mxu3 %v10195_v36  ;;  %v10199_v36 = vld [vmem:[#allocation68_spill] sm:$0xff]  ;;  %10200 = vst [vmem:[#allocation58_spill] sm:$0xff] %v7885_v31 }
 0x2ef   : > { %10194 = vst [vmem:[#allocation62_spill] sm:$0xff] %v7868_v3  ;;  %3029 = vmatmul.bf16.gmra.mxu0 %v10196_v59  ;;  %v1804_v59 = vadd.f32 %v10199_v36, %v6966_v4  ;;  %v375_v36 = vld [vmem:[%s6289_s13 + $0x2c8] sm:$0xff] }
 0x2f0   : > { %v2136_v61 = vpop.f32.mrf.mxu2 }
 0x2f1   : > { %v2137_v52 = vadd.f32 %v2136_v61, %v1968_v35  ;;  %v2305_v45 = vpop.f32.mrf.mxu3  ;;  %v7887_v35 = vpack.c.bf16 %v369_v21, %v362_v11 }
 0x2f2   : > { %v1969_v10 = vpop.f32.mrf.mxu1 }
 0x2f3   : > { %v1970_v49 = vadd.f32 %v1969_v10, %v1801_v25  ;;  %v2306_v19 = vadd.f32 %v2305_v45, %v2137_v52  ;;  %10201 = vst [vmem:[#allocation63_spill] sm:$0xff] %v7887_v35  ;;  %v10204_v45 = vld [vmem:[#allocation64_spill] sm:$0xff] }
 0x2f4   : > { %v2476_v57 = vpop.f32.mrf.mxu0 }
 0x2f5   : > { %v7877_v12 = vadd.f32 %v2474_v54, %v2306_v19 }
 0x2f7   : > { %10198 = vst [vmem:[#allocation21_spill] sm:$0xff] %v7877_v12 }
 0x2f8   : > { %v2138_v14 = vpop.f32.mrf.mxu2 }
 0x2f9   : > { %v2139_v17 = vadd.f32 %v2138_v14, %v1970_v49  ;;  %v2307_v3 = vpop.f32.mrf.mxu3  ;;  %v10203_v14 = vld [vmem:[#allocation25_spill] sm:$0xff]  ;;  %v10205_v49 = vld [vmem:[#allocation70_spill] sm:$0xff] }
 0x2fa   : > { %v1972_v61 = vpop.f32.mrf.mxu1 }
 0x2fb   : > { %v1973_v1 = vadd.f32 %v1972_v61, %v1804_v59  ;;  %v2308_v25 = vadd.f32 %v2307_v3, %v2139_v17  ;;  %v1806_v17 = vadd.f32 %v10205_v49, %v6966_v4  ;;  %v382_v59 = vld [vmem:[%s6289_s13 + $0x300] sm:$0xff]  ;;  %v376_v61 = vld [vmem:[%s6289_s13 + $0x2d0] sm:$0xff] }
 0x2fc   : > { %v2479_v54 = vpop.f32.mrf.mxu0  ;;  %v7906_v12 = vpack.c.bf16 %v382_v59, %v375_v36 }
 0x2fd   : > { %v7889_v52 = vadd.f32 %v2476_v57, %v2308_v25  ;;  %2527 = vmatmul.bf16.gmra.mxu1 %v7885_v31  ;;  %5665 = vmatmul.msk.bf16.gmra.mxu2 %vm1552_vm0, %v7887_v35  ;;  %v383_v25 = vld [vmem:[%s6289_s13 + $0x308] sm:$0xff] }
 0x2fe   : > { %2865 = vmatmul.bf16.gmra.mxu3 %v10203_v14  ;;  %v10206_v14 = vld [vmem:[#allocation76_spill] sm:$0xff]  ;;  %10207 = vst [vmem:[#allocation25_spill] sm:$0xff] %v7906_v12 }
 0x2ff   : > { %10202 = vst [vmem:[#allocation68_spill] sm:$0xff] %v7889_v52  ;;  %3034 = vmatmul.bf16.gmra.mxu0 %v10204_v45  ;;  %v1809_v45 = vadd.f32 %v10206_v14, %v6966_v4 }
 0x300   : > { %v2141_v10 = vpop.f32.mrf.mxu2 }
 0x301   : > { %v2142_v3 = vadd.f32 %v2141_v10, %v1973_v1  ;;  %v2310_v19 = vpop.f32.mrf.mxu3  ;;  %v7908_v1 = vpack.c.bf16 %v383_v25, %v376_v61 }
 0x302   : > { %v1974_v29 = vpop.f32.mrf.mxu1 }
 0x303   : > { %v1975_v57 = vadd.f32 %v1974_v29, %v1806_v17  ;;  %v2311_v47 = vadd.f32 %v2310_v19, %v2142_v3  ;;  %10208 = vst [vmem:[#allocation64_spill] sm:$0xff] %v7908_v1  ;;  %v5440_v19 = vld [vmem:[%s9742_s1 + $0x158] sm:$0xf0] }
 0x304   : > { %v2481_v11 = vpop.f32.mrf.mxu0  ;;  %v10210_v29 = vld [vmem:[#allocation29_spill] sm:$0xff] }
 0x305   : > { %v7898_v21 = vadd.f32 %v2479_v54, %v2311_v47  ;;  %v10212_v47 = vld [vmem:[#allocation78_spill] sm:$0xff] }
 0x308   : > { %v2143_v35 = vpop.f32.mrf.mxu2 }
 0x309   : > { %v2144_v31 = vadd.f32 %v2143_v35, %v1975_v57  ;;  %v2312_v52 = vpop.f32.mrf.mxu3  ;;  %v5880_v35 = vld [vmem:[%s9742_s1 + $0x154] sm:$0xf] }
 0x30a   : > { %v1977_v10 = vpop.f32.mrf.mxu1 }
 0x30b   : > { %v1978_v49 = vadd.f32 %v1977_v10, %v1809_v45  ;;  %v2313_v17 = vadd.f32 %v2312_v52, %v2144_v31  ;;  %v5443_v31 = vor.u32 %v5880_v35, %v5440_v19  ;;  %v10211_v52 = vld [vmem:[#allocation71_spill] sm:$0xff]  ;;  %v5900_v10 = vld [vmem:[%s9742_s1 + $0x1f4] sm:$0xf]  ;;  %v389_v19 = vld [vmem:[%s6289_s13 + $0x338] sm:$0xff] }
 0x30c   : > { %v2484_v3 = vpop.f32.mrf.mxu0 }
 0x30d   : > { %v7910_v54 = vadd.f32 %v2481_v11, %v2313_v17  ;;  %2532 = vmatmul.bf16.gmra.mxu1 %v7906_v12  ;;  %5666 = vmatmul.msk.bf16.gmra.mxu2 %vm1552_vm0, %v7908_v1  ;;  %v1811_v11 = vadd.f32 %v10212_v47, %v6966_v4  ;;  %v5520_v17 = vld [vmem:[%s9742_s1 + $0x1f8] sm:$0xf0]  ;;  %v10214_v47 = vld [vmem:[#allocation84_spill] sm:$0xff] }
 0x30e   : > { %2870 = vmatmul.bf16.gmra.mxu3 %v10210_v29  ;;  %3172 = vmatpush.bf16.msrb.mxu1 %v5443_v31  ;;  %v5523_v29 = vor.u32 %v5900_v10, %v5520_v17  ;;  %v396_v31 = vld [vmem:[%s6289_s13 + $0x370] sm:$0xff]  ;;  %v5584_v10 = vld [vmem:[%s9742_s1 + $0x278] sm:$0xf0]  ;;  %v10219_v17 = vld [vmem:[#allocation79_spill] sm:$0xff] }
 0x30f   : > { %10209 = vst [vmem:[#allocation70_spill] sm:$0xff] %v7910_v54  ;;  %3039 = vmatmul.bf16.gmra.mxu0 %v10211_v52  ;;  %v390_v52 = vld [vmem:[%s6289_s13 + $0x340] sm:$0xff] }
 0x310   : > { %v2146_v57 = vpop.f32.mrf.mxu2  ;;  %3339 = vmatpush.bf16.msrb.mxu2 %v5523_v29  ;;  %v10220_v29 = vld [vmem:[#allocation86_spill] sm:$0xff] }
 0x311   : > { %v2147_v36 = vadd.f32 %v2146_v57, %v1978_v49  ;;  %v2315_v59 = vpop.f32.mrf.mxu3  ;;  %v397_v49 = vld [vmem:[%s6289_s13 + $0x378] sm:$0xff] }
 0x312   : > { %v1979_v61 = vpop.f32.mrf.mxu1  ;;  %v7941_v1 = vpack.c.bf16 %v397_v49, %v390_v52 }
 0x313   : > { %v1980_v25 = vadd.f32 %v1979_v61, %v1811_v11  ;;  %v2316_v14 = vadd.f32 %v2315_v59, %v2147_v36  ;;  %v1814_v11 = vadd.f32 %v10214_v47, %v6966_v4  ;;  %v7939_v61 = vpack.c.bf16 %v396_v31, %v389_v19 }
 0x314   : > { %v2486_v45 = vpop.f32.mrf.mxu0  ;;  %10216 = vst [vmem:[#allocation71_spill] sm:$0xff] %v7941_v1  ;;  %v1816_v31 = vadd.f32 %v10220_v29, %v6966_v4 }
 0x315   : > { %v7931_v35 = vadd.f32 %v2484_v3, %v2316_v14  ;;  %10215 = vst [vmem:[#allocation29_spill] sm:$0xff] %v7939_v61 }
 0x317   : > { %10213 = vst [vmem:[#allocation76_spill] sm:$0xff] %v7931_v35 }
 0x318   : > { %v2148_v57 = vpop.f32.mrf.mxu2 }
 0x319   : > { %v2149_v36 = vadd.f32 %v2148_v57, %v1980_v25  ;;  %v2317_v59 = vpop.f32.mrf.mxu3  ;;  %v5916_v25 = vld [vmem:[%s9742_s1 + $0x274] sm:$0xf] }
 0x31a   : > { %v1982_v12 = vpop.f32.mrf.mxu1 }
 0x31b   : > { %v1983_v54 = vadd.f32 %v1982_v12, %v1814_v11  ;;  %v2318_v3 = vadd.f32 %v2317_v59, %v2149_v36  ;;  %v10218_v12 = vld [vmem:[#allocation33_spill] sm:$0xff] }
 0x31c   : > { %v2489_v14 = vpop.f32.mrf.mxu0 }
 0x31d   : > { %v7943_v35 = vadd.f32 %v2486_v45, %v2318_v3  ;;  %2537 = vmatmul.bf16.gmra.mxu1 %v7939_v61  ;;  %5667 = vmatmul.msk.bf16.gmra.mxu2 %vm1552_vm0, %v7941_v1  ;;  %v5587_v45 = vor.u32 %v5916_v25, %v5584_v10  ;;  %v403_v3 = vld [vmem:[%s6289_s13 + $0x3a8] sm:$0xff]  ;;  %v410_v1 = vld [vmem:[%s6289_s13 + $0x3e0] sm:$0xff] }
 0x31e   : > { %2875 = vmatmul.bf16.gmra.mxu3 %v10218_v12  ;;  %v404_v12 = vld [vmem:[%s6289_s13 + $0x3b0] sm:$0xff]  ;;  %v411_v61 = vld [vmem:[%s6289_s13 + $0x3e8] sm:$0xff] }
 0x31f   : > { %10217 = vst [vmem:[#allocation78_spill] sm:$0xff] %v7943_v35  ;;  %3044 = vmatmul.bf16.gmra.mxu0 %v10219_v17  ;;  %3508 = vmatpush.bf16.msrb.mxu3 %v5587_v45  ;;  %v7964_v35 = vpack.c.bf16 %v410_v1, %v403_v3  ;;  %v7966_v45 = vpack.c.bf16 %v411_v61, %v404_v12  ;;  %v6182_v1 = vld [vmem:[%s9743_s2] sm:$0x3] }
 0x320   : > { %v2151_v19 = vpop.f32.mrf.mxu2  ;;  %v7978_v61 = vperm.slane %v6182_v1, 1 }
 0x321   : > { %v2152_v52 = vadd.f32 %v2151_v19, %v1983_v54  ;;  %v2320_v49 = vpop.f32.mrf.mxu3  ;;  %10221 = vst [vmem:[#allocation84_spill] sm:$0xff] %v7964_v35  ;;  %v10223_v19 = vld [vmem:[#allocation91_spill] sm:$0xff] }
 0x322   : > { %v1984_v57 = vpop.f32.mrf.mxu1  ;;  %10222 = vst [vmem:[#allocation33_spill] sm:$0xff] %v7966_v45 }
 0x323   : > { %v1985_v47 = vadd.f32 %v1984_v57, %v1816_v31  ;;  %v2321_v11 = vadd.f32 %v2320_v49, %v2152_v52  ;;  %v10226_v49 = vld [vmem:[#allocation87_spill] sm:$0xff] }
 0x324   : > { %v2491_v36 = vpop.f32.mrf.mxu0 }
 0x325   : > { %v7958_v59 = vadd.f32 %v2489_v14, %v2321_v11  ;;  %v10225_v14 = vld [vmem:[#allocation2_spill] sm:$0xff] }
 0x328   : > { %v2153_v25 = vpop.f32.mrf.mxu2 }
 0x329   : > { %v2154_v10 = vadd.f32 %v2153_v25, %v1985_v47  ;;  %v2322_v17 = vpop.f32.mrf.mxu3 }
 0x32a   : > { %v2503_v4 = vpop.f32.mrf.mxu1 }
 0x32b   : > { %v2323_v54 = vadd.f32 %v2322_v17, %v2154_v10  ;;  %v2504_v29 = vadd.f32 %v2503_v4, %v10223_v19  ;;  %v417_v17 = vld [vmem:[%s6289_s13 + $0x418] sm:$0xff]  ;;  %v424_v4 = vld [vmem:[%s6289_s13 + $0x450] sm:$0xff] }
 0x32c   : > { %v3010_v31 = vpop.f32.mrf.mxu0  ;;  %v425_v19 = vld [vmem:[%s6289_s13 + $0x458] sm:$0xff] }
 0x32d   : > { %v7969_v52 = vadd.f32 %v2491_v36, %v2323_v54  ;;  %2542 = vmatmul.bf16.gmra.mxu1 %v7964_v35  ;;  %5668 = vmatmul.msk.bf16.gmra.mxu2 %vm1552_vm0, %v7966_v45  ;;  %v418_v54 = vld [vmem:[%s6289_s13 + $0x420] sm:$0xff]  ;;  %v7989_v35 = vpack.c.bf16 %v424_v4, %v417_v17 }
 0x32e   : > { %2880 = vmatmul.bf16.gmra.mxu3 %v10225_v14 }
 0x32f   : > { %10224 = vst [vmem:[#allocation79_spill] sm:$0xff] %v7969_v52  ;;  %3049 = vmatmul.bf16.gmra.mxu0 %v10226_v49  ;;  %v7991_v49 = vpack.c.bf16 %v425_v19, %v418_v54 }
 0x330   : > { %v2672_v57 = vpop.f32.mrf.mxu2  ;;  %10227 = vst [vmem:[#allocation86_spill] sm:$0xff] %v7989_v35 }
 0x331   : > { %v2673_v47 = vadd.f32 %v2672_v57, %v2504_v29  ;;  %v2841_v11 = vpop.f32.mrf.mxu3  ;;  %10228 = vst [vmem:[#allocation91_spill] sm:$0xff] %v7991_v49 }
 0x332   : > { %v2505_v36 = vpop.f32.mrf.mxu1  ;;  %v2842_v3 = vadd.f32 %v2841_v11, %v7978_v61 }
 0x333   : > { %v2506_v12 = vadd.f32 %v2505_v36, %v7016_v51  ;;  %v4015_v11 = vmax.f32 %v2673_v47, 0.0 }
 0x334   : > { %v7983_v25 = vadd.f32 %v3010_v31, %v2842_v3  ;;  %v3012_v10 = vpop.f32.mrf.mxu0 }
 0x338   : > { %v2674_v14 = vpop.f32.mrf.mxu2 }
 0x339   : > { %v2675_v1 = vadd.f32 %v2674_v14, %v2506_v12  ;;  %v2843_v45 = vpop.f32.mrf.mxu3  ;;  %v10230_v12 = vld [vmem:[#allocation6_spill] sm:$0xff]  ;;  %v431_v14 = vld [vmem:[%s6289_s13 + $0x488] sm:$0xff] }
 0x33a   : > { %v2508_v29 = vpop.f32.mrf.mxu1  ;;  %v2844_v57 = vadd.f32 %v2843_v45, %v7978_v61  ;;  %v10231_v45 = vld [vmem:[#allocation92_spill] sm:$0xff] }
 0x33b   : > { %v4017_v52 = vmax.f32 %v2675_v1, 0.0  ;;  %v2509_v51 = vadd.f32 %v2508_v29, %v7024_v42  ;;  %v438_v1 = vld [vmem:[%s6289_s13 + $0x4c0] sm:$0xff]  ;;  %v432_v29 = vld [vmem:[%s6289_s13 + $0x490] sm:$0xff] }
 0x33c   : > { %v7995_v31 = vadd.f32 %v3012_v10, %v2844_v57  ;;  %v3015_v36 = vpop.f32.mrf.mxu0  ;;  %v439_v57 = vld [vmem:[%s6289_s13 + $0x4c8] sm:$0xff] }
 0x33d   : > { %v7997_v3 = vpack.c.bf16 %v4017_v52, %v4015_v11  ;;  %2547 = vmatmul.bf16.gmra.mxu1 %v7989_v35  ;;  %5669 = vmatmul.msk.bf16.gmra.mxu2 %vm1552_vm0, %v7991_v49 }
 0x33e   : > { %2885 = vmatmul.bf16.gmra.mxu3 %v10230_v12 }
 0x33f   : > { %10229 = vst [vmem:[#allocation2_spill] sm:$0xff] %v7997_v3  ;;  %3054 = vmatmul.bf16.gmra.mxu0 %v10231_v45  ;;  %v8012_v3 = vpack.c.bf16 %v438_v1, %v431_v14  ;;  %v8014_v45 = vpack.c.bf16 %v439_v57, %v432_v29 }
 0x340   : > { %v2677_v47 = vpop.f32.mrf.mxu2 }
 0x341   : > { %v2678_v42 = vadd.f32 %v2677_v47, %v2509_v51  ;;  %v2846_v17 = vpop.f32.mrf.mxu3  ;;  %10232 = vst [vmem:[#allocation87_spill] sm:$0xff] %v8012_v3 }
 0x342   : > { %v2510_v10 = vpop.f32.mrf.mxu1  ;;  %v2847_v4 = vadd.f32 %v2846_v17, %v7978_v61  ;;  %10233 = vst [vmem:[#allocation6_spill] sm:$0xff] %v8014_v45 }
 0x343   : > { %v2511_v54 = vadd.f32 %v2510_v10, %v7044_v46  ;;  %v4019_v17 = vmax.f32 %v2678_v42, 0.0 }
 0x344   : > { %v8006_v52 = vadd.f32 %v3015_v36, %v2847_v4  ;;  %v3017_v19 = vpop.f32.mrf.mxu0  ;;  %v5878_v4 = vld [vmem:[%s9742_s1 + $0x144] sm:$0xf] }
 0x348   : > { %v2679_v11 = vpop.f32.mrf.mxu2 }
 0x349   : > { %v2680_v49 = vadd.f32 %v2679_v11, %v2511_v54  ;;  %v2848_v12 = vpop.f32.mrf.mxu3  ;;  %v5432_v54 = vld [vmem:[%s9742_s1 + $0x148] sm:$0xf0] }
 0x34a   : > { %v2513_v51 = vpop.f32.mrf.mxu1  ;;  %v2849_v47 = vadd.f32 %v2848_v12, %v7978_v61  ;;  %v5435_v42 = vor.u32 %v5878_v4, %v5432_v54  ;;  %v445_v4 = vld [vmem:[%s6289_s13 + $0x4f8] sm:$0xff] }
 0x34b   : > { %v4021_v35 = vmax.f32 %v2680_v49, 0.0  ;;  %v2514_v46 = vadd.f32 %v2513_v51, %v7058_v63  ;;  %v10235_v63 = vld [vmem:[#allocation10_spill] sm:$0xff] }
 0x34c   : > { %v8018_v36 = vadd.f32 %v3017_v19, %v2849_v47  ;;  %v3020_v10 = vpop.f32.mrf.mxu0  ;;  %v10236_v19 = vld [vmem:[#allocation96_spill] sm:$0xff]  ;;  %3173 = vmatpush.bf16.msrb.mxu1 %v5435_v42  ;;  %v5898_v47 = vld [vmem:[%s9742_s1 + $0x1e4] sm:$0xf]  ;;  %v453_v42 = vld [vmem:[%s6289_s13 + $0x538] sm:$0xff] }
 0x34d   : > { %2552 = vmatmul.bf16.gmra.mxu1 %v8012_v3  ;;  %5670 = vmatmul.msk.bf16.gmra.mxu2 %vm1552_vm0, %v8014_v45  ;;  %v8029_v49 = vpack.c.bf16 %v4021_v35, %v4019_v17  ;;  %v5512_v17 = vld [vmem:[%s9742_s1 + $0x1e8] sm:$0xf0] }
 0x34e   : > { %2890 = vmatmul.bf16.gmra.mxu3 %v10235_v63  ;;  %v5515_v54 = vor.u32 %v5898_v47, %v5512_v17  ;;  %v446_v63 = vld [vmem:[%s6289_s13 + $0x500] sm:$0xff] }
 0x34f   : > { %10234 = vst [vmem:[#allocation92_spill] sm:$0xff] %v8029_v49  ;;  %3059 = vmatmul.bf16.gmra.mxu0 %v10236_v19  ;;  %v5914_v47 = vld [vmem:[%s9742_s1 + $0x264] sm:$0xf] }
 0x350   : > { %v2682_v14 = vpop.f32.mrf.mxu2  ;;  %3340 = vmatpush.bf16.msrb.mxu2 %v5515_v54 }
 0x351   : > { %v2683_v1 = vadd.f32 %v2682_v14, %v2514_v46  ;;  %v2851_v29 = vpop.f32.mrf.mxu3  ;;  %v452_v46 = vld [vmem:[%s6289_s13 + $0x530] sm:$0xff] }
 0x352   : > { %v2515_v57 = vpop.f32.mrf.mxu1  ;;  %v2852_v11 = vadd.f32 %v2851_v29, %v7978_v61  ;;  %v8049_v29 = vpack.c.bf16 %v453_v42, %v446_v63 }
 0x353   : > { %v2516_v12 = vadd.f32 %v2515_v57, %v7084_v43  ;;  %v4023_v45 = vmax.f32 %v2683_v1, 0.0  ;;  %v10240_v1 = vld [vmem:[#allocation14_spill] sm:$0xff] }
 0x354   : > { %v8035_v51 = vadd.f32 %v3020_v10, %v2852_v11  ;;  %v3022_v35 = vpop.f32.mrf.mxu0  ;;  %v8047_v10 = vpack.c.bf16 %v452_v46, %v445_v4  ;;  %10238 = vst [vmem:[#allocation96_spill] sm:$0xff] %v8049_v29  ;;  %v10241_v46 = vld [vmem:[#allocation100_spill] sm:$0xff] }
 0x356   : > { %10237 = vst [vmem:[#allocation10_spill] sm:$0xff] %v8047_v10 }
 0x358   : > { %v2684_v19 = vpop.f32.mrf.mxu2 }
 0x359   : > { %v2685_v14 = vadd.f32 %v2684_v19, %v2516_v12  ;;  %v2853_v43 = vpop.f32.mrf.mxu3  ;;  %v5576_v12 = vld [vmem:[%s9742_s1 + $0x268] sm:$0xf0] }
 0x35a   : > { %v2518_v57 = vpop.f32.mrf.mxu1  ;;  %v2854_v11 = vadd.f32 %v2853_v43, %v7978_v61  ;;  %v5579_v54 = vor.u32 %v5914_v47, %v5576_v12  ;;  %v459_v47 = vld [vmem:[%s6289_s13 + $0x568] sm:$0xff]  ;;  %v466_v12 = vld [vmem:[%s6289_s13 + $0x5a0] sm:$0xff] }
 0x35b   : > { %v4025_v49 = vmax.f32 %v2685_v14, 0.0  ;;  %v2519_v3 = vadd.f32 %v2518_v57, %v7092_v39 }
 0x35c   : > { %v8059_v17 = vadd.f32 %v3022_v35, %v2854_v11  ;;  %v3025_v4 = vpop.f32.mrf.mxu0  ;;  %3509 = vmatpush.bf16.msrb.mxu3 %v5579_v54 }
 0x35d   : > { %2557 = vmatmul.bf16.gmra.mxu1 %v8047_v10  ;;  %5671 = vmatmul.msk.bf16.gmra.mxu2 %vm1552_vm0, %v8049_v29  ;;  %v8064_v39 = vpack.c.bf16 %v4025_v49, %v4023_v45  ;;  %v460_v45 = vld [vmem:[%s6289_s13 + $0x570] sm:$0xff]  ;;  %v467_v49 = vld [vmem:[%s6289_s13 + $0x5a8] sm:$0xff] }
 0x35e   : > { %2895 = vmatmul.bf16.gmra.mxu3 %v10240_v1  ;;  %v8078_v54 = vpack.c.bf16 %v467_v49, %v460_v45 }
 0x35f   : > { %10239 = vst [vmem:[#allocation186_spill] sm:$0xff] %v8064_v39  ;;  %3064 = vmatmul.bf16.gmra.mxu0 %v10241_v46  ;;  %v8076_v46 = vpack.c.bf16 %v466_v12, %v459_v47 }
 0x360   : > { %v2687_v35 = vpop.f32.mrf.mxu2  ;;  %10243 = vst [vmem:[#allocation100_spill] sm:$0xff] %v8078_v54 }
 0x361   : > { %v2688_v63 = vadd.f32 %v2687_v35, %v2519_v3  ;;  %v2856_v42 = vpop.f32.mrf.mxu3  ;;  %10242 = vst [vmem:[#allocation14_spill] sm:$0xff] %v8076_v46 }
 0x362   : > { %v2520_v19 = vpop.f32.mrf.mxu1  ;;  %v2857_v14 = vadd.f32 %v2856_v42, %v7978_v61 }
 0x363   : > { %v2521_v43 = vadd.f32 %v2520_v19, %v7112_v40  ;;  %v4027_v42 = vmax.f32 %v2688_v63, 0.0 }
 0x364   : > { %v8070_v57 = vadd.f32 %v3025_v4, %v2857_v14  ;;  %v3027_v11 = vpop.f32.mrf.mxu0  ;;  %v10245_v14 = vld [vmem:[#allocation18_spill] sm:$0xff] }
 0x368   : > { %v2689_v29 = vpop.f32.mrf.mxu2 }
 0x369   : > { %v2690_v1 = vadd.f32 %v2689_v29, %v2521_v43  ;;  %v2858_v39 = vpop.f32.mrf.mxu3 }
 0x36a   : > { %v2523_v3 = vpop.f32.mrf.mxu1  ;;  %v2859_v35 = vadd.f32 %v2858_v39, %v7978_v61  ;;  %v10246_v39 = vld [vmem:[#allocation104_spill] sm:$0xff] }
 0x36b   : > { %v4029_v10 = vmax.f32 %v2690_v1, 0.0  ;;  %v2524_v40 = vadd.f32 %v2523_v3, %v7120_v32  ;;  %v473_v1 = vld [vmem:[%s6289_s13 + $0x5d8] sm:$0xff]  ;;  %v480_v3 = vld [vmem:[%s6289_s13 + $0x610] sm:$0xff] }
 0x36c   : > { %v8082_v4 = vadd.f32 %v3027_v11, %v2859_v35  ;;  %v3030_v19 = vpop.f32.mrf.mxu0  ;;  %v474_v35 = vld [vmem:[%s6289_s13 + $0x5e0] sm:$0xff] }
 0x36d   : > { %2562 = vmatmul.bf16.gmra.mxu1 %v8076_v46  ;;  %5672 = vmatmul.msk.bf16.gmra.mxu2 %vm1552_vm0, %v8078_v54  ;;  %v8087_v29 = vpack.c.bf16 %v4029_v10, %v4027_v42  ;;  %v481_v10 = vld [vmem:[%s6289_s13 + $0x618] sm:$0xff] }
 0x36e   : > { %2900 = vmatmul.bf16.gmra.mxu3 %v10245_v14 }
 0x36f   : > { %10244 = vst [vmem:[#allocation187_spill] sm:$0xff] %v8087_v29  ;;  %3069 = vmatmul.bf16.gmra.mxu0 %v10246_v39  ;;  %v8099_v29 = vpack.c.bf16 %v480_v3, %v473_v1  ;;  %v8101_v39 = vpack.c.bf16 %v481_v10, %v474_v35 }
 0x370   : > { %v2692_v63 = vpop.f32.mrf.mxu2 }
 0x371   : > { %v2693_v32 = vadd.f32 %v2692_v63, %v2524_v40  ;;  %v2861_v43 = vpop.f32.mrf.mxu3  ;;  %10247 = vst [vmem:[#allocation18_spill] sm:$0xff] %v8099_v29 }
 0x372   : > { %v2525_v11 = vpop.f32.mrf.mxu1  ;;  %v2862_v47 = vadd.f32 %v2861_v43, %v7978_v61  ;;  %10248 = vst [vmem:[#allocation104_spill] sm:$0xff] %v8101_v39 }
 0x373   : > { %v2526_v12 = vadd.f32 %v2525_v11, %v7140_v53  ;;  %v4031_v43 = vmax.f32 %v2693_v32, 0.0  ;;  %v10251_v32 = vld [vmem:[#allocation108_spill] sm:$0xff] }
 0x374   : > { %v8093_v45 = vadd.f32 %v3030_v19, %v2862_v47  ;;  %v3032_v49 = vpop.f32.mrf.mxu0 }
 0x378   : > { %v2694_v42 = vpop.f32.mrf.mxu2 }
 0x379   : > { %v2695_v54 = vadd.f32 %v2694_v42, %v2526_v12  ;;  %v2863_v14 = vpop.f32.mrf.mxu3  ;;  %v10250_v12 = vld [vmem:[#allocation22_spill] sm:$0xff] }
 0x37a   : > { %v2528_v40 = vpop.f32.mrf.mxu1  ;;  %v2864_v63 = vadd.f32 %v2863_v14, %v7978_v61  ;;  %v487_v14 = vld [vmem:[%s6289_s13 + $0x648] sm:$0xff] }
 0x37b   : > { %v4033_v46 = vmax.f32 %v2695_v54, 0.0  ;;  %v2529_v53 = vadd.f32 %v2528_v40, %v7148_v55  ;;  %v494_v40 = vld [vmem:[%s6289_s13 + $0x680] sm:$0xff] }
 0x37c   : > { %v8105_v19 = vadd.f32 %v3032_v49, %v2864_v63  ;;  %v3035_v11 = vpop.f32.mrf.mxu0  ;;  %v488_v63 = vld [vmem:[%s6289_s13 + $0x650] sm:$0xff] }
 0x37d   : > { %2567 = vmatmul.bf16.gmra.mxu1 %v8099_v29  ;;  %5673 = vmatmul.msk.bf16.gmra.mxu2 %vm1552_vm0, %v8101_v39  ;;  %v8110_v47 = vpack.c.bf16 %v4033_v46, %v4031_v43  ;;  %v495_v46 = vld [vmem:[%s6289_s13 + $0x688] sm:$0xff] }
 0x37e   : > { %2905 = vmatmul.bf16.gmra.mxu3 %v10250_v12 }
 0x37f   : > { %10249 = vst [vmem:[#allocation188_spill] sm:$0xff] %v8110_v47  ;;  %3074 = vmatmul.bf16.gmra.mxu0 %v10251_v32  ;;  %v8122_v47 = vpack.c.bf16 %v494_v40, %v487_v14  ;;  %v8124_v32 = vpack.c.bf16 %v495_v46, %v488_v63 }
 0x380   : > { %v2697_v54 = vpop.f32.mrf.mxu2 }
 0x381   : > { %v2698_v55 = vadd.f32 %v2697_v54, %v2529_v53  ;;  %v2866_v1 = vpop.f32.mrf.mxu3  ;;  %10252 = vst [vmem:[#allocation22_spill] sm:$0xff] %v8122_v47 }
 0x382   : > { %v2530_v49 = vpop.f32.mrf.mxu1  ;;  %v2867_v3 = vadd.f32 %v2866_v1, %v7978_v61  ;;  %10253 = vst [vmem:[#allocation108_spill] sm:$0xff] %v8124_v32 }
 0x383   : > { %v2531_v35 = vadd.f32 %v2530_v49, %v7168_v22  ;;  %v4035_v1 = vmax.f32 %v2698_v55, 0.0 }
 0x384   : > { %v8116_v10 = vadd.f32 %v3035_v11, %v2867_v3  ;;  %v3037_v42 = vpop.f32.mrf.mxu0  ;;  %v5876_v3 = vld [vmem:[%s9742_s1 + $0x134] sm:$0xf] }
 0x388   : > { %v2699_v43 = vpop.f32.mrf.mxu2 }
 0x389   : > { %v2700_v39 = vadd.f32 %v2699_v43, %v2531_v35  ;;  %v2868_v12 = vpop.f32.mrf.mxu3  ;;  %v5424_v35 = vld [vmem:[%s9742_s1 + $0x138] sm:$0xf0] }
 0x38a   : > { %v2533_v53 = vpop.f32.mrf.mxu1  ;;  %v2869_v54 = vadd.f32 %v2868_v12, %v7978_v61  ;;  %v5427_v55 = vor.u32 %v5876_v3, %v5424_v35  ;;  %v501_v3 = vld [vmem:[%s6289_s13 + $0x6b8] sm:$0xff] }
 0x38b   : > { %v4037_v29 = vmax.f32 %v2700_v39, 0.0  ;;  %v2534_v22 = vadd.f32 %v2533_v53, %v7182_v56  ;;  %v10255_v56 = vld [vmem:[#allocation26_spill] sm:$0xff] }
 0x38c   : > { %v8128_v11 = vadd.f32 %v3037_v42, %v2869_v54  ;;  %v3040_v49 = vpop.f32.mrf.mxu0  ;;  %v10256_v42 = vld [vmem:[#allocation112_spill] sm:$0xff]  ;;  %3174 = vmatpush.bf16.msrb.mxu1 %v5427_v55  ;;  %v509_v55 = vld [vmem:[%s6289_s13 + $0x6f8] sm:$0xff] }
 0x38d   : > { %2572 = vmatmul.bf16.gmra.mxu1 %v8122_v47  ;;  %5674 = vmatmul.msk.bf16.gmra.mxu2 %vm1552_vm0, %v8124_v32  ;;  %v8139_v39 = vpack.c.bf16 %v4037_v29, %v4035_v1  ;;  %v5896_v54 = vld [vmem:[%s9742_s1 + $0x1d4] sm:$0xf]  ;;  %v5504_v1 = vld [vmem:[%s9742_s1 + $0x1d8] sm:$0xf0] }
 0x38e   : > { %2910 = vmatmul.bf16.gmra.mxu3 %v10255_v56  ;;  %v5507_v35 = vor.u32 %v5896_v54, %v5504_v1  ;;  %v502_v56 = vld [vmem:[%s6289_s13 + $0x6c0] sm:$0xff]  ;;  %v5912_v54 = vld [vmem:[%s9742_s1 + $0x254] sm:$0xf] }
 0x38f   : > { %10254 = vst [vmem:[#allocation189_spill] sm:$0xff] %v8139_v39  ;;  %3079 = vmatmul.bf16.gmra.mxu0 %v10256_v42 }
 0x390   : > { %v2702_v14 = vpop.f32.mrf.mxu2  ;;  %3341 = vmatpush.bf16.msrb.mxu2 %v5507_v35 }
 0x391   : > { %v2703_v40 = vadd.f32 %v2702_v14, %v2534_v22  ;;  %v2871_v63 = vpop.f32.mrf.mxu3  ;;  %v508_v22 = vld [vmem:[%s6289_s13 + $0x6f0] sm:$0xff] }
 0x392   : > { %v2535_v46 = vpop.f32.mrf.mxu1  ;;  %v2872_v43 = vadd.f32 %v2871_v63, %v7978_v61  ;;  %v8159_v63 = vpack.c.bf16 %v509_v55, %v502_v56 }
 0x393   : > { %v2536_v12 = vadd.f32 %v2535_v46, %v7208_v24  ;;  %v4039_v32 = vmax.f32 %v2703_v40, 0.0  ;;  %v10260_v40 = vld [vmem:[#allocation30_spill] sm:$0xff] }
 0x394   : > { %v8145_v53 = vadd.f32 %v3040_v49, %v2872_v43  ;;  %v3042_v29 = vpop.f32.mrf.mxu0  ;;  %v8157_v49 = vpack.c.bf16 %v508_v22, %v501_v3  ;;  %10258 = vst [vmem:[#allocation112_spill] sm:$0xff] %v8159_v63  ;;  %v10261_v22 = vld [vmem:[#allocation116_spill] sm:$0xff] }
 0x396   : > { %10257 = vst [vmem:[#allocation26_spill] sm:$0xff] %v8157_v49 }
 0x398   : > { %v2704_v42 = vpop.f32.mrf.mxu2 }
 0x399   : > { %v2705_v14 = vadd.f32 %v2704_v42, %v2536_v12  ;;  %v2873_v24 = vpop.f32.mrf.mxu3  ;;  %v5568_v12 = vld [vmem:[%s9742_s1 + $0x258] sm:$0xf0] }
 0x39a   : > { %v2538_v46 = vpop.f32.mrf.mxu1  ;;  %v2874_v43 = vadd.f32 %v2873_v24, %v7978_v61  ;;  %v5571_v35 = vor.u32 %v5912_v54, %v5568_v12  ;;  %v515_v54 = vld [vmem:[%s6289_s13 + $0x728] sm:$0xff]  ;;  %v522_v12 = vld [vmem:[%s6289_s13 + $0x760] sm:$0xff] }
 0x39b   : > { %v4041_v39 = vmax.f32 %v2705_v14, 0.0  ;;  %v2539_v47 = vadd.f32 %v2538_v46, %v7216_v41 }
 0x39c   : > { %v8169_v1 = vadd.f32 %v3042_v29, %v2874_v43  ;;  %v3045_v3 = vpop.f32.mrf.mxu0  ;;  %3510 = vmatpush.bf16.msrb.mxu3 %v5571_v35 }
 0x39d   : > { %2577 = vmatmul.bf16.gmra.mxu1 %v8157_v49  ;;  %5675 = vmatmul.msk.bf16.gmra.mxu2 %vm1552_vm0, %v8159_v63  ;;  %v8174_v41 = vpack.c.bf16 %v4041_v39, %v4039_v32  ;;  %v516_v32 = vld [vmem:[%s6289_s13 + $0x730] sm:$0xff]  ;;  %v523_v39 = vld [vmem:[%s6289_s13 + $0x768] sm:$0xff] }
 0x39e   : > { %2915 = vmatmul.bf16.gmra.mxu3 %v10260_v40  ;;  %v8188_v35 = vpack.c.bf16 %v523_v39, %v516_v32 }
 0x39f   : > { %10259 = vst [vmem:[#allocation190_spill] sm:$0xff] %v8174_v41  ;;  %3084 = vmatmul.bf16.gmra.mxu0 %v10261_v22  ;;  %v8186_v22 = vpack.c.bf16 %v522_v12, %v515_v54  ;;  %v10268_v12 = vld [vmem:[#allocation120_spill] sm:$0xff] }
 0x3a0   : > { %v2707_v29 = vpop.f32.mrf.mxu2  ;;  %10263 = vst [vmem:[#allocation116_spill] sm:$0xff] %v8188_v35 }
 0x3a1   : > { %v2708_v56 = vadd.f32 %v2707_v29, %v2539_v47  ;;  %v2876_v55 = vpop.f32.mrf.mxu3  ;;  %10262 = vst [vmem:[#allocation30_spill] sm:$0xff] %v8186_v22 }
 0x3a2   : > { %v2540_v42 = vpop.f32.mrf.mxu1  ;;  %v2877_v14 = vadd.f32 %v2876_v55, %v7978_v61 }
 0x3a3   : > { %v2541_v24 = vadd.f32 %v2540_v42, %v7242_v20  ;;  %v4043_v55 = vmax.f32 %v2708_v56, 0.0  ;;  %v10264_v20 = vld [vmem:[#allocation124_spill] sm:$0xff]  ;;  %v10267_v56 = vld [vmem:[#allocation3_spill] sm:$0xff] }
 0x3a4   : > { %v8180_v46 = vadd.f32 %v3045_v3, %v2877_v14  ;;  %v3047_v43 = vpop.f32.mrf.mxu0  ;;  %v5932_v42 = vld [vmem:[%s9742_s1 + $0x2f4] sm:$0xf] }
 0x3a8   : > { %v2709_v63 = vpop.f32.mrf.mxu2 }
 0x3a9   : > { %v2710_v40 = vadd.f32 %v2709_v63, %v2541_v24  ;;  %v2878_v41 = vpop.f32.mrf.mxu3  ;;  %v5648_v63 = vld [vmem:[%s9742_s1 + $0x2f8] sm:$0xf0] }
 0x3aa   : > { %v2543_v47 = vpop.f32.mrf.mxu1  ;;  %v2879_v29 = vadd.f32 %v2878_v41, %v7978_v61  ;;  %v5651_v54 = vor.u32 %v5932_v42, %v5648_v63  ;;  %v529_v63 = vld [vmem:[%s6289_s13 + $0x798] sm:$0xff] }
 0x3ab   : > { %v4045_v49 = vmax.f32 %v2710_v40, 0.0  ;;  %v2544_v3 = vadd.f32 %v2543_v47, %v10264_v20 }
 0x3ac   : > { %v8198_v14 = vadd.f32 %v3047_v43, %v2879_v29  ;;  %v3050_v24 = vpop.f32.mrf.mxu0  ;;  %3677 = vmatpush.bf16.msrb.mxu0 %v5651_v54 }
 0x3ad   : > { %2582 = vmatmul.bf16.gmra.mxu1 %v8186_v22  ;;  %5676 = vmatmul.msk.bf16.gmra.mxu2 %vm1552_vm0, %v8188_v35  ;;  %v8203_v41 = vpack.c.bf16 %v4045_v49, %v4043_v55  ;;  %v536_v35 = vld [vmem:[%s6289_s13 + $0x7d0] sm:$0xff]  ;;  %v530_v49 = vld [vmem:[%s6289_s13 + $0x7a0] sm:$0xff]  ;;  %v537_v55 = vld [vmem:[%s6289_s13 + $0x7d8] sm:$0xff] }
 0x3ae   : > { %10265 = vst [vmem:[#allocation124_spill] sm:$0xff] %v8198_v14  ;;  %2920 = vmatmul.bf16.gmra.mxu3 %v10267_v56  ;;  %v8215_v22 = vpack.c.bf16 %v536_v35, %v529_v63 }
 0x3af   : > { %10266 = vst [vmem:[#allocation191_spill] sm:$0xff] %v8203_v41  ;;  %3089 = vmatmul.bf16.gmra.mxu0 %v10268_v12  ;;  %v8217_v12 = vpack.c.bf16 %v537_v55, %v530_v49 }
 0x3b0   : > { %v2712_v43 = vpop.f32.mrf.mxu2  ;;  %10269 = vst [vmem:[#allocation3_spill] sm:$0xff] %v8215_v22 }
 0x3b1   : > { %v2713_v32 = vadd.f32 %v2712_v43, %v2544_v3  ;;  %v2881_v39 = vpop.f32.mrf.mxu3  ;;  %10270 = vst [vmem:[#allocation120_spill] sm:$0xff] %v8217_v12 }
 0x3b2   : > { %v2545_v40 = vpop.f32.mrf.mxu1  ;;  %v2882_v47 = vadd.f32 %v2881_v39, %v7978_v61 }
 0x3b3   : > { %v2546_v29 = vadd.f32 %v2545_v40, %v7270_v8  ;;  %v4047_v39 = vmax.f32 %v2713_v32, 0.0  ;;  %v10273_v32 = vld [vmem:[#allocation125_spill] sm:$0xff] }
 0x3b4   : > { %v8209_v20 = vadd.f32 %v3050_v24, %v2882_v47  ;;  %v3052_v42 = vpop.f32.mrf.mxu0 }
 0x3b8   : > { %v2714_v41 = vpop.f32.mrf.mxu2 }
 0x3b9   : > { %v2715_v56 = vadd.f32 %v2714_v41, %v2546_v29  ;;  %v2883_v54 = vpop.f32.mrf.mxu3  ;;  %v10272_v41 = vld [vmem:[#allocation7_spill] sm:$0xff] }
 0x3ba   : > { %v2548_v3 = vpop.f32.mrf.mxu1  ;;  %v2884_v43 = vadd.f32 %v2883_v54, %v7978_v61  ;;  %v543_v54 = vld [vmem:[%s6289_s13 + $0x808] sm:$0xff] }
 0x3bb   : > { %v4049_v14 = vmax.f32 %v2715_v56, 0.0  ;;  %v2549_v8 = vadd.f32 %v2548_v3, %v7278_v18  ;;  %v550_v3 = vld [vmem:[%s6289_s13 + $0x840] sm:$0xff] }
 0x3bc   : > { %v8221_v24 = vadd.f32 %v3052_v42, %v2884_v43  ;;  %v3055_v40 = vpop.f32.mrf.mxu0  ;;  %v544_v43 = vld [vmem:[%s6289_s13 + $0x810] sm:$0xff] }
 0x3bd   : > { %2587 = vmatmul.bf16.gmra.mxu1 %v8215_v22  ;;  %5677 = vmatmul.msk.bf16.gmra.mxu2 %vm1552_vm0, %v8217_v12  ;;  %v8226_v35 = vpack.c.bf16 %v4049_v14, %v4047_v39  ;;  %v551_v14 = vld [vmem:[%s6289_s13 + $0x848] sm:$0xff] }
 0x3be   : > { %2925 = vmatmul.bf16.gmra.mxu3 %v10272_v41 }
 0x3bf   : > { %10271 = vst [vmem:[#allocation192_spill] sm:$0xff] %v8226_v35  ;;  %3094 = vmatmul.bf16.gmra.mxu0 %v10273_v32  ;;  %v8238_v35 = vpack.c.bf16 %v550_v3, %v543_v54  ;;  %v8240_v32 = vpack.c.bf16 %v551_v14, %v544_v43 }
 0x3c0   : > { %v2717_v47 = vpop.f32.mrf.mxu2 }
 0x3c1   : > { %v2718_v18 = vadd.f32 %v2717_v47, %v2549_v8  ;;  %v2886_v29 = vpop.f32.mrf.mxu3  ;;  %10274 = vst [vmem:[#allocation7_spill] sm:$0xff] %v8240_v32 }
 0x3c2   : > { %v2550_v42 = vpop.f32.mrf.mxu1  ;;  %v2887_v63 = vadd.f32 %v2886_v29, %v7978_v61 }
 0x3c3   : > { %v2551_v49 = vadd.f32 %v2550_v42, %v7298_v15  ;;  %v4051_v29 = vmax.f32 %v2718_v18, 0.0 }
 0x3c4   : > { %v8232_v55 = vadd.f32 %v3055_v40, %v2887_v63  ;;  %v3057_v56 = vpop.f32.mrf.mxu0  ;;  %v5874_v63 = vld [vmem:[%s9742_s1 + $0x124] sm:$0xf] }
 0x3c8   : > { %v2719_v39 = vpop.f32.mrf.mxu2 }
 0x3c9   : > { %v2720_v12 = vadd.f32 %v2719_v39, %v2551_v49  ;;  %v2888_v41 = vpop.f32.mrf.mxu3  ;;  %v5416_v49 = vld [vmem:[%s9742_s1 + $0x128] sm:$0xf0] }
 0x3ca   : > { %v2553_v8 = vpop.f32.mrf.mxu1  ;;  %v2889_v47 = vadd.f32 %v2888_v41, %v7978_v61  ;;  %v5419_v18 = vor.u32 %v5874_v63, %v5416_v49  ;;  %v558_v63 = vld [vmem:[%s6289_s13 + $0x880] sm:$0xff]  ;;  %v565_v49 = vld [vmem:[%s6289_s13 + $0x8b8] sm:$0xff] }
 0x3cb   : > { %v4053_v22 = vmax.f32 %v2720_v12, 0.0  ;;  %v2554_v15 = vadd.f32 %v2553_v8, %v7312_v7  ;;  %v10276_v7 = vld [vmem:[#allocation11_spill] sm:$0xff]  ;;  %v5894_v8 = vld [vmem:[%s9742_s1 + $0x1c4] sm:$0xf] }
 0x3cc   : > { %v8244_v40 = vadd.f32 %v3057_v56, %v2889_v47  ;;  %v3060_v42 = vpop.f32.mrf.mxu0  ;;  %3175 = vmatpush.bf16.msrb.mxu1 %v5419_v18  ;;  %v557_v47 = vld [vmem:[%s6289_s13 + $0x878] sm:$0xff] }
 0x3cd   : > { %2592 = vmatmul.bf16.gmra.mxu1 %v8238_v35  ;;  %5678 = vmatmul.msk.bf16.gmra.mxu2 %vm1552_vm0, %v8240_v32  ;;  %v8255_v12 = vpack.c.bf16 %v4053_v22, %v4051_v29 }
 0x3ce   : > { %2930 = vmatmul.bf16.gmra.mxu3 %v10276_v7 }
 0x3cf   : > { %10275 = vst [vmem:[#allocation125_spill] sm:$0xff] %v8255_v12  ;;  %3099 = vmatmul.bf16.gmra.mxu0 %v7290_v38  ;;  %v5496_v38 = vld [vmem:[%s9742_s1 + $0x1c8] sm:$0xf0] }
 0x3d0   : > { %v2722_v56 = vpop.f32.mrf.mxu2  ;;  %v5499_v29 = vor.u32 %v5894_v8, %v5496_v38  ;;  %v5910_v8 = vld [vmem:[%s9742_s1 + $0x244] sm:$0xf] }
 0x3d1   : > { %v2723_v54 = vadd.f32 %v2722_v56, %v2554_v15  ;;  %v2891_v3 = vpop.f32.mrf.mxu3  ;;  %v564_v15 = vld [vmem:[%s6289_s13 + $0x8b0] sm:$0xff]  ;;  %v8275_v56 = vpack.c.bf16 %v565_v49, %v558_v63 }
 0x3d2   : > { %v2555_v43 = vpop.f32.mrf.mxu1  ;;  %v2892_v14 = vadd.f32 %v2891_v3, %v7978_v61  ;;  %3342 = vmatpush.bf16.msrb.mxu2 %v5499_v29 }
 0x3d3   : > { %v2556_v39 = vadd.f32 %v2555_v43, %v7338_v16  ;;  %10278 = vst [vmem:[#allocation193_spill] sm:$0xff] %v8275_v56 }
 0x3d4   : > { %v8261_v41 = vadd.f32 %v3060_v42, %v2892_v14  ;;  %v3062_v22 = vpop.f32.mrf.mxu0  ;;  %v8273_v42 = vpack.c.bf16 %v564_v15, %v557_v47  ;;  %v4055_v14 = vmax.f32 %v2723_v54, 0.0  ;;  %v10280_v54 = vld [vmem:[#allocation15_spill] sm:$0xff]  ;;  %v10281_v15 = vld [vmem:[#allocation132_spill] sm:$0xff] }
 0x3d6   : > { %10277 = vst [vmem:[#allocation11_spill] sm:$0xff] %v8273_v42 }
 0x3d8   : > { %v2724_v7 = vpop.f32.mrf.mxu2 }
 0x3d9   : > { %v2725_v18 = vadd.f32 %v2724_v7, %v2556_v39  ;;  %v2893_v16 = vpop.f32.mrf.mxu3  ;;  %v5560_v39 = vld [vmem:[%s9742_s1 + $0x248] sm:$0xf0] }
 0x3da   : > { %v2558_v3 = vpop.f32.mrf.mxu1  ;;  %v2894_v43 = vadd.f32 %v2893_v16, %v7978_v61  ;;  %v5563_v29 = vor.u32 %v5910_v8, %v5560_v39  ;;  %v571_v8 = vld [vmem:[%s6289_s13 + $0x8e8] sm:$0xff]  ;;  %v578_v39 = vld [vmem:[%s6289_s13 + $0x920] sm:$0xff] }
 0x3db   : > { %v4057_v32 = vmax.f32 %v2725_v18, 0.0  ;;  %v2559_v12 = vadd.f32 %v2558_v3, %v7346_v0 }
 0x3dc   : > { %v8285_v38 = vadd.f32 %v3062_v22, %v2894_v43  ;;  %v3065_v47 = vpop.f32.mrf.mxu0  ;;  %3511 = vmatpush.bf16.msrb.mxu3 %v5563_v29 }
 0x3dd   : > { %2597 = vmatmul.bf16.gmra.mxu1 %v8273_v42  ;;  %5679 = vmatmul.msk.bf16.gmra.mxu2 %vm1552_vm0, %v8275_v56  ;;  %v8290_v0 = vpack.c.bf16 %v4057_v32, %v4055_v14  ;;  %v572_v32 = vld [vmem:[%s6289_s13 + $0x8f0] sm:$0xff]  ;;  %v579_v14 = vld [vmem:[%s6289_s13 + $0x928] sm:$0xff] }
 0x3de   : > { %2935 = vmatmul.bf16.gmra.mxu3 %v10280_v54  ;;  %v8304_v29 = vpack.c.bf16 %v579_v14, %v572_v32 }
 0x3df   : > { %10279 = vst [vmem:[#allocation194_spill] sm:$0xff] %v8290_v0  ;;  %3104 = vmatmul.bf16.gmra.mxu0 %v10281_v15  ;;  %v8302_v15 = vpack.c.bf16 %v578_v39, %v571_v8  ;;  %v10288_v39 = vld [vmem:[#allocation136_spill] sm:$0xff] }
 0x3e0   : > { %v2727_v22 = vpop.f32.mrf.mxu2  ;;  %10283 = vst [vmem:[#allocation132_spill] sm:$0xff] %v8304_v29 }
 0x3e1   : > { %v2728_v63 = vadd.f32 %v2727_v22, %v2559_v12  ;;  %v2896_v49 = vpop.f32.mrf.mxu3  ;;  %10282 = vst [vmem:[#allocation15_spill] sm:$0xff] %v8302_v15 }
 0x3e2   : > { %v2560_v7 = vpop.f32.mrf.mxu1  ;;  %v2897_v18 = vadd.f32 %v2896_v49, %v7978_v61 }
 0x3e3   : > { %v2561_v16 = vadd.f32 %v2560_v7, %v7372_v58  ;;  %v4059_v49 = vmax.f32 %v2728_v63, 0.0  ;;  %v10284_v58 = vld [vmem:[#allocation140_spill] sm:$0xff]  ;;  %v5930_v7 = vld [vmem:[%s9742_s1 + $0x2e4] sm:$0xf]  ;;  %v10287_v63 = vld [vmem:[#allocation19_spill] sm:$0xff] }
 0x3e4   : > { %v8296_v3 = vadd.f32 %v3065_v47, %v2897_v18  ;;  %v3067_v43 = vpop.f32.mrf.mxu0 }
 0x3e8   : > { %v2729_v56 = vpop.f32.mrf.mxu2 }
 0x3e9   : > { %v2730_v54 = vadd.f32 %v2729_v56, %v2561_v16  ;;  %v2898_v0 = vpop.f32.mrf.mxu3  ;;  %v5640_v56 = vld [vmem:[%s9742_s1 + $0x2e8] sm:$0xf0] }
 0x3ea   : > { %v2563_v12 = vpop.f32.mrf.mxu1  ;;  %v2899_v22 = vadd.f32 %v2898_v0, %v7978_v61  ;;  %v5643_v8 = vor.u32 %v5930_v7, %v5640_v56  ;;  %v585_v56 = vld [vmem:[%s6289_s13 + $0x958] sm:$0xff] }
 0x3eb   : > { %v4061_v42 = vmax.f32 %v2730_v54, 0.0  ;;  %v2564_v47 = vadd.f32 %v2563_v12, %v10284_v58 }
 0x3ec   : > { %v8314_v18 = vadd.f32 %v3067_v43, %v2899_v22  ;;  %v3070_v16 = vpop.f32.mrf.mxu0  ;;  %3678 = vmatpush.bf16.msrb.mxu0 %v5643_v8 }
 0x3ed   : > { %2602 = vmatmul.bf16.gmra.mxu1 %v8302_v15  ;;  %5680 = vmatmul.msk.bf16.gmra.mxu2 %vm1552_vm0, %v8304_v29  ;;  %v8319_v0 = vpack.c.bf16 %v4061_v42, %v4059_v49  ;;  %v592_v29 = vld [vmem:[%s6289_s13 + $0x990] sm:$0xff]  ;;  %v586_v42 = vld [vmem:[%s6289_s13 + $0x960] sm:$0xff]  ;;  %v593_v49 = vld [vmem:[%s6289_s13 + $0x998] sm:$0xff] }
 0x3ee   : > { %10285 = vst [vmem:[#allocation140_spill] sm:$0xff] %v8314_v18  ;;  %2940 = vmatmul.bf16.gmra.mxu3 %v10287_v63  ;;  %v8331_v15 = vpack.c.bf16 %v592_v29, %v585_v56 }
 0x3ef   : > { %10286 = vst [vmem:[#allocation195_spill] sm:$0xff] %v8319_v0  ;;  %3109 = vmatmul.bf16.gmra.mxu0 %v10288_v39  ;;  %v8333_v39 = vpack.c.bf16 %v593_v49, %v586_v42 }
 0x3f0   : > { %v2732_v43 = vpop.f32.mrf.mxu2  ;;  %10289 = vst [vmem:[#allocation19_spill] sm:$0xff] %v8331_v15 }
 0x3f1   : > { %v2733_v32 = vadd.f32 %v2732_v43, %v2564_v47  ;;  %v2901_v14 = vpop.f32.mrf.mxu3  ;;  %10290 = vst [vmem:[#allocation136_spill] sm:$0xff] %v8333_v39 }
 0x3f2   : > { %v2565_v54 = vpop.f32.mrf.mxu1  ;;  %v2902_v12 = vadd.f32 %v2901_v14, %v7978_v61 }
 0x3f3   : > { %v2566_v22 = vadd.f32 %v2565_v54, %v7400_v6  ;;  %v4063_v14 = vmax.f32 %v2733_v32, 0.0  ;;  %v10293_v32 = vld [vmem:[#allocation141_spill] sm:$0xff] }
 0x3f4   : > { %v8325_v58 = vadd.f32 %v3070_v16, %v2902_v12  ;;  %v3072_v7 = vpop.f32.mrf.mxu0 }
 0x3f8   : > { %v2734_v0 = vpop.f32.mrf.mxu2 }
 0x3f9   : > { %v2735_v63 = vadd.f32 %v2734_v0, %v2566_v22  ;;  %v2903_v8 = vpop.f32.mrf.mxu3  ;;  %v10292_v0 = vld [vmem:[#allocation23_spill] sm:$0xff] }
 0x3fa   : > { %v2568_v47 = vpop.f32.mrf.mxu1  ;;  %v2904_v43 = vadd.f32 %v2903_v8, %v7978_v61  ;;  %v599_v8 = vld [vmem:[%s6289_s13 + $0x9c8] sm:$0xff] }
 0x3fb   : > { %v4065_v18 = vmax.f32 %v2735_v63, 0.0  ;;  %v2569_v6 = vadd.f32 %v2568_v47, %v7408_v27  ;;  %v606_v47 = vld [vmem:[%s6289_s13 + $0xa00] sm:$0xff] }
 0x3fc   : > { %v8337_v16 = vadd.f32 %v3072_v7, %v2904_v43  ;;  %v3075_v54 = vpop.f32.mrf.mxu0  ;;  %v600_v43 = vld [vmem:[%s6289_s13 + $0x9d0] sm:$0xff] }
 0x3fd   : > { %2607 = vmatmul.bf16.gmra.mxu1 %v8331_v15  ;;  %5681 = vmatmul.msk.bf16.gmra.mxu2 %vm1552_vm0, %v8333_v39  ;;  %v8342_v29 = vpack.c.bf16 %v4065_v18, %v4063_v14  ;;  %v607_v18 = vld [vmem:[%s6289_s13 + $0xa08] sm:$0xff] }
 0x3fe   : > { %2945 = vmatmul.bf16.gmra.mxu3 %v10292_v0 }
 0x3ff   : > { %10291 = vst [vmem:[#allocation196_spill] sm:$0xff] %v8342_v29  ;;  %3114 = vmatmul.bf16.gmra.mxu0 %v10293_v32  ;;  %v8354_v29 = vpack.c.bf16 %v606_v47, %v599_v8  ;;  %v8356_v32 = vpack.c.bf16 %v607_v18, %v600_v43 }
 0x400   : > { %v2737_v12 = vpop.f32.mrf.mxu2 }
 0x401   : > { %v2738_v27 = vadd.f32 %v2737_v12, %v2569_v6  ;;  %v2906_v22 = vpop.f32.mrf.mxu3  ;;  %10294 = vst [vmem:[#allocation23_spill] sm:$0xff] %v8356_v32 }
 0x402   : > { %v2570_v7 = vpop.f32.mrf.mxu1  ;;  %v2907_v56 = vadd.f32 %v2906_v22, %v7978_v61 }
 0x403   : > { %v2571_v42 = vadd.f32 %v2570_v7, %v7428_v13  ;;  %v4067_v22 = vmax.f32 %v2738_v27, 0.0 }
 0x404   : > { %v8348_v49 = vadd.f32 %v3075_v54, %v2907_v56  ;;  %v3077_v63 = vpop.f32.mrf.mxu0  ;;  %v5872_v56 = vld [vmem:[%s9742_s1 + $0x114] sm:$0xf] }
 0x408   : > { %v2739_v14 = vpop.f32.mrf.mxu2 }
 0x409   : > { %v2740_v39 = vadd.f32 %v2739_v14, %v2571_v42  ;;  %v2908_v0 = vpop.f32.mrf.mxu3  ;;  %v5408_v42 = vld [vmem:[%s9742_s1 + $0x118] sm:$0xf0] }
 0x40a   : > { %v2573_v6 = vpop.f32.mrf.mxu1  ;;  %v2909_v12 = vadd.f32 %v2908_v0, %v7978_v61  ;;  %v5411_v27 = vor.u32 %v5872_v56, %v5408_v42  ;;  %v614_v56 = vld [vmem:[%s6289_s13 + $0xa40] sm:$0xff]  ;;  %v621_v42 = vld [vmem:[%s6289_s13 + $0xa78] sm:$0xff] }
 0x40b   : > { %v4069_v15 = vmax.f32 %v2740_v39, 0.0  ;;  %v2574_v13 = vadd.f32 %v2573_v6, %v7442_v26  ;;  %v10296_v26 = vld [vmem:[#allocation27_spill] sm:$0xff]  ;;  %v5892_v6 = vld [vmem:[%s9742_s1 + $0x1b4] sm:$0xf] }
 0x40c   : > { %v8360_v54 = vadd.f32 %v3077_v63, %v2909_v12  ;;  %v3080_v7 = vpop.f32.mrf.mxu0  ;;  %3176 = vmatpush.bf16.msrb.mxu1 %v5411_v27  ;;  %v613_v12 = vld [vmem:[%s6289_s13 + $0xa38] sm:$0xff] }
 0x40d   : > { %2612 = vmatmul.bf16.gmra.mxu1 %v8354_v29  ;;  %5682 = vmatmul.msk.bf16.gmra.mxu2 %vm1552_vm0, %v8356_v32  ;;  %v8371_v39 = vpack.c.bf16 %v4069_v15, %v4067_v22 }
 0x40e   : > { %2950 = vmatmul.bf16.gmra.mxu3 %v10296_v26 }
 0x40f   : > { %10295 = vst [vmem:[#allocation141_spill] sm:$0xff] %v8371_v39  ;;  %3119 = vmatmul.bf16.gmra.mxu0 %v7420_v44  ;;  %v5488_v44 = vld [vmem:[%s9742_s1 + $0x1b8] sm:$0xf0] }
 0x410   : > { %v2742_v63 = vpop.f32.mrf.mxu2  ;;  %v5491_v22 = vor.u32 %v5892_v6, %v5488_v44  ;;  %v5908_v6 = vld [vmem:[%s9742_s1 + $0x234] sm:$0xf] }
 0x411   : > { %v2743_v8 = vadd.f32 %v2742_v63, %v2574_v13  ;;  %v2911_v47 = vpop.f32.mrf.mxu3  ;;  %v620_v13 = vld [vmem:[%s6289_s13 + $0xa70] sm:$0xff]  ;;  %v8391_v63 = vpack.c.bf16 %v621_v42, %v614_v56 }
 0x412   : > { %v2575_v43 = vpop.f32.mrf.mxu1  ;;  %v2912_v18 = vadd.f32 %v2911_v47, %v7978_v61  ;;  %3343 = vmatpush.bf16.msrb.mxu2 %v5491_v22 }
 0x413   : > { %v2576_v14 = vadd.f32 %v2575_v43, %v7468_v23  ;;  %10298 = vst [vmem:[#allocation197_spill] sm:$0xff] %v8391_v63 }
 0x414   : > { %v8377_v0 = vadd.f32 %v3080_v7, %v2912_v18  ;;  %v3082_v15 = vpop.f32.mrf.mxu0  ;;  %v8389_v7 = vpack.c.bf16 %v620_v13, %v613_v12  ;;  %v4071_v18 = vmax.f32 %v2743_v8, 0.0  ;;  %v10300_v8 = vld [vmem:[#allocation31_spill] sm:$0xff]  ;;  %v10301_v13 = vld [vmem:[#allocation148_spill] sm:$0xff] }
 0x416   : > { %10297 = vst [vmem:[#allocation27_spill] sm:$0xff] %v8389_v7 }
 0x418   : > { %v2744_v26 = vpop.f32.mrf.mxu2 }
 0x419   : > { %v2745_v27 = vadd.f32 %v2744_v26, %v2576_v14  ;;  %v2913_v23 = vpop.f32.mrf.mxu3  ;;  %v5552_v14 = vld [vmem:[%s9742_s1 + $0x238] sm:$0xf0] }
 0x41a   : > { %v2578_v47 = vpop.f32.mrf.mxu1  ;;  %v2914_v43 = vadd.f32 %v2913_v23, %v7978_v61  ;;  %v5555_v22 = vor.u32 %v5908_v6, %v5552_v14  ;;  %v627_v6 = vld [vmem:[%s6289_s13 + $0xaa8] sm:$0xff]  ;;  %v634_v14 = vld [vmem:[%s6289_s13 + $0xae0] sm:$0xff] }
 0x41b   : > { %v4073_v32 = vmax.f32 %v2745_v27, 0.0  ;;  %v2579_v39 = vadd.f32 %v2578_v47, %v7476_v30 }
 0x41c   : > { %v8401_v44 = vadd.f32 %v3082_v15, %v2914_v43  ;;  %v3085_v12 = vpop.f32.mrf.mxu0  ;;  %3512 = vmatpush.bf16.msrb.mxu3 %v5555_v22 }
 0x41d   : > { %2617 = vmatmul.bf16.gmra.mxu1 %v8389_v7  ;;  %5683 = vmatmul.msk.bf16.gmra.mxu2 %vm1552_vm0, %v8391_v63  ;;  %v8406_v30 = vpack.c.bf16 %v4073_v32, %v4071_v18  ;;  %v628_v32 = vld [vmem:[%s6289_s13 + $0xab0] sm:$0xff]  ;;  %v635_v18 = vld [vmem:[%s6289_s13 + $0xae8] sm:$0xff] }
 0x41e   : > { %2955 = vmatmul.bf16.gmra.mxu3 %v10300_v8  ;;  %v8420_v22 = vpack.c.bf16 %v635_v18, %v628_v32 }
 0x41f   : > { %10299 = vst [vmem:[#allocation198_spill] sm:$0xff] %v8406_v30  ;;  %3124 = vmatmul.bf16.gmra.mxu0 %v10301_v13  ;;  %v8418_v13 = vpack.c.bf16 %v634_v14, %v627_v6  ;;  %v10308_v14 = vld [vmem:[#allocation152_spill] sm:$0xff] }
 0x420   : > { %v2747_v15 = vpop.f32.mrf.mxu2  ;;  %10303 = vst [vmem:[#allocation148_spill] sm:$0xff] %v8420_v22 }
 0x421   : > { %v2748_v56 = vadd.f32 %v2747_v15, %v2579_v39  ;;  %v2916_v42 = vpop.f32.mrf.mxu3  ;;  %10302 = vst [vmem:[#allocation31_spill] sm:$0xff] %v8418_v13 }
 0x422   : > { %v2580_v26 = vpop.f32.mrf.mxu1  ;;  %v2917_v27 = vadd.f32 %v2916_v42, %v7978_v61 }
 0x423   : > { %v2581_v23 = vadd.f32 %v2580_v26, %v7502_v60  ;;  %v4075_v42 = vmax.f32 %v2748_v56, 0.0  ;;  %v10304_v60 = vld [vmem:[#allocation156_spill] sm:$0xff] }
 0x424   : > { %v8412_v47 = vadd.f32 %v3085_v12, %v2917_v27  ;;  %v3087_v43 = vpop.f32.mrf.mxu0  ;;  %v5928_v26 = vld [vmem:[%s9742_s1 + $0x2d4] sm:$0xf] }
 0x425   : > { %v10307_v56 = vld [vmem:[#allocation4_spill] sm:$0xff] }
 0x428   : > { %v2749_v63 = vpop.f32.mrf.mxu2 }
 0x429   : > { %v2750_v8 = vadd.f32 %v2749_v63, %v2581_v23  ;;  %v2918_v30 = vpop.f32.mrf.mxu3  ;;  %v5632_v63 = vld [vmem:[%s9742_s1 + $0x2d8] sm:$0xf0] }
 0x42a   : > { %v2583_v39 = vpop.f32.mrf.mxu1  ;;  %v2919_v15 = vadd.f32 %v2918_v30, %v7978_v61  ;;  %v5635_v6 = vor.u32 %v5928_v26, %v5632_v63  ;;  %v641_v63 = vld [vmem:[%s6289_s13 + $0xb18] sm:$0xff] }
 0x42b   : > { %v4077_v7 = vmax.f32 %v2750_v8, 0.0  ;;  %v2584_v12 = vadd.f32 %v2583_v39, %v10304_v60 }
 0x42c   : > { %v8430_v27 = vadd.f32 %v3087_v43, %v2919_v15  ;;  %v3090_v23 = vpop.f32.mrf.mxu0  ;;  %3679 = vmatpush.bf16.msrb.mxu0 %v5635_v6 }
 0x42d   : > { %2622 = vmatmul.bf16.gmra.mxu1 %v8418_v13  ;;  %5684 = vmatmul.msk.bf16.gmra.mxu2 %vm1552_vm0, %v8420_v22  ;;  %v8435_v30 = vpack.c.bf16 %v4077_v7, %v4075_v42  ;;  %v648_v22 = vld [vmem:[%s6289_s13 + $0xb50] sm:$0xff]  ;;  %v642_v7 = vld [vmem:[%s6289_s13 + $0xb20] sm:$0xff]  ;;  %v649_v42 = vld [vmem:[%s6289_s13 + $0xb58] sm:$0xff] }
 0x42e   : > { %10305 = vst [vmem:[#allocation156_spill] sm:$0xff] %v8430_v27  ;;  %2960 = vmatmul.bf16.gmra.mxu3 %v10307_v56  ;;  %v8447_v13 = vpack.c.bf16 %v648_v22, %v641_v63 }
 0x42f   : > { %10306 = vst [vmem:[#allocation199_spill] sm:$0xff] %v8435_v30  ;;  %3129 = vmatmul.bf16.gmra.mxu0 %v10308_v14  ;;  %v8449_v14 = vpack.c.bf16 %v649_v42, %v642_v7 }
 0x430   : > { %v2752_v43 = vpop.f32.mrf.mxu2  ;;  %10309 = vst [vmem:[#allocation4_spill] sm:$0xff] %v8447_v13 }
 0x431   : > { %v2753_v32 = vadd.f32 %v2752_v43, %v2584_v12  ;;  %v2921_v18 = vpop.f32.mrf.mxu3  ;;  %10310 = vst [vmem:[#allocation152_spill] sm:$0xff] %v8449_v14 }
 0x432   : > { %v2585_v8 = vpop.f32.mrf.mxu1  ;;  %v2922_v39 = vadd.f32 %v2921_v18, %v7978_v61 }
 0x433   : > { %v2586_v15 = vadd.f32 %v2585_v8, %v7530_v5  ;;  %v4079_v18 = vmax.f32 %v2753_v32, 0.0  ;;  %v10313_v32 = vld [vmem:[#allocation157_spill] sm:$0xff] }
 0x434   : > { %v8441_v60 = vadd.f32 %v3090_v23, %v2922_v39  ;;  %v3092_v26 = vpop.f32.mrf.mxu0 }
 0x438   : > { %v2754_v30 = vpop.f32.mrf.mxu2 }
 0x439   : > { %v2755_v56 = vadd.f32 %v2754_v30, %v2586_v15  ;;  %v2923_v6 = vpop.f32.mrf.mxu3  ;;  %v10312_v30 = vld [vmem:[#allocation8_spill] sm:$0xff] }
 0x43a   : > { %v2588_v12 = vpop.f32.mrf.mxu1  ;;  %v2924_v43 = vadd.f32 %v2923_v6, %v7978_v61  ;;  %v655_v6 = vld [vmem:[%s6289_s13 + $0xb88] sm:$0xff] }
 0x43b   : > { %v4081_v27 = vmax.f32 %v2755_v56, 0.0  ;;  %v2589_v5 = vadd.f32 %v2588_v12, %v7538_v34  ;;  %v662_v12 = vld [vmem:[%s6289_s13 + $0xbc0] sm:$0xff] }
 0x43c   : > { %v8453_v23 = vadd.f32 %v3092_v26, %v2924_v43  ;;  %v3095_v8 = vpop.f32.mrf.mxu0  ;;  %v656_v43 = vld [vmem:[%s6289_s13 + $0xb90] sm:$0xff] }
 0x43d   : > { %2627 = vmatmul.bf16.gmra.mxu1 %v8447_v13  ;;  %5685 = vmatmul.msk.bf16.gmra.mxu2 %vm1552_vm0, %v8449_v14  ;;  %v8458_v22 = vpack.c.bf16 %v4081_v27, %v4079_v18  ;;  %v663_v27 = vld [vmem:[%s6289_s13 + $0xbc8] sm:$0xff] }
 0x43e   : > { %2965 = vmatmul.bf16.gmra.mxu3 %v10312_v30 }
 0x43f   : > { %10311 = vst [vmem:[#allocation200_spill] sm:$0xff] %v8458_v22  ;;  %3134 = vmatmul.bf16.gmra.mxu0 %v10313_v32  ;;  %v8470_v22 = vpack.c.bf16 %v662_v12, %v655_v6  ;;  %v8472_v32 = vpack.c.bf16 %v663_v27, %v656_v43 }
 0x440   : > { %v2757_v39 = vpop.f32.mrf.mxu2 }
 0x441   : > { %v2758_v34 = vadd.f32 %v2757_v39, %v2589_v5  ;;  %v2926_v15 = vpop.f32.mrf.mxu3  ;;  %10314 = vst [vmem:[#allocation8_spill] sm:$0xff] %v8472_v32 }
 0x442   : > { %v2590_v26 = vpop.f32.mrf.mxu1  ;;  %v2927_v63 = vadd.f32 %v2926_v15, %v7978_v61 }
 0x443   : > { %v2591_v7 = vadd.f32 %v2590_v26, %v7558_v37  ;;  %v4083_v15 = vmax.f32 %v2758_v34, 0.0 }
 0x444   : > { %v8464_v42 = vadd.f32 %v3095_v8, %v2927_v63  ;;  %v3097_v56 = vpop.f32.mrf.mxu0  ;;  %v5870_v63 = vld [vmem:[%s9742_s1 + $0x104] sm:$0xf] }
 0x448   : > { %v2759_v18 = vpop.f32.mrf.mxu2 }
 0x449   : > { %v2760_v14 = vadd.f32 %v2759_v18, %v2591_v7  ;;  %v2928_v30 = vpop.f32.mrf.mxu3  ;;  %v5400_v7 = vld [vmem:[%s9742_s1 + $0x108] sm:$0xf0] }
 0x44a   : > { %v2593_v5 = vpop.f32.mrf.mxu1  ;;  %v2929_v39 = vadd.f32 %v2928_v30, %v7978_v61  ;;  %v5403_v34 = vor.u32 %v5870_v63, %v5400_v7  ;;  %v670_v63 = vld [vmem:[%s6289_s13 + $0xc00] sm:$0xff]  ;;  %v677_v7 = vld [vmem:[%s6289_s13 + $0xc38] sm:$0xff] }
 0x44b   : > { %v4085_v13 = vmax.f32 %v2760_v14, 0.0  ;;  %v2594_v37 = vadd.f32 %v2593_v5, %v7572_v9  ;;  %v10316_v9 = vld [vmem:[#allocation12_spill] sm:$0xff]  ;;  %v5890_v5 = vld [vmem:[%s9742_s1 + $0x1a4] sm:$0xf] }
 0x44c   : > { %v8476_v8 = vadd.f32 %v3097_v56, %v2929_v39  ;;  %v3100_v26 = vpop.f32.mrf.mxu0  ;;  %3177 = vmatpush.bf16.msrb.mxu1 %v5403_v34  ;;  %v669_v39 = vld [vmem:[%s6289_s13 + $0xbf8] sm:$0xff] }
 0x44d   : > { %2632 = vmatmul.bf16.gmra.mxu1 %v8470_v22  ;;  %5686 = vmatmul.msk.bf16.gmra.mxu2 %vm1552_vm0, %v8472_v32  ;;  %v8487_v14 = vpack.c.bf16 %v4085_v13, %v4083_v15 }
 0x44e   : > { %2970 = vmatmul.bf16.gmra.mxu3 %v10316_v9 }
 0x44f   : > { %10315 = vst [vmem:[#allocation157_spill] sm:$0xff] %v8487_v14  ;;  %3139 = vmatmul.bf16.gmra.mxu0 %v7550_v48  ;;  %v5480_v48 = vld [vmem:[%s9742_s1 + $0x1a8] sm:$0xf0] }
 0x450   : > { %v2762_v56 = vpop.f32.mrf.mxu2  ;;  %v5483_v15 = vor.u32 %v5890_v5, %v5480_v48  ;;  %v5906_v5 = vld [vmem:[%s9742_s1 + $0x224] sm:$0xf] }
 0x451   : > { %v2763_v6 = vadd.f32 %v2762_v56, %v2594_v37  ;;  %v2931_v12 = vpop.f32.mrf.mxu3  ;;  %v676_v37 = vld [vmem:[%s6289_s13 + $0xc30] sm:$0xff]  ;;  %v8507_v56 = vpack.c.bf16 %v677_v7, %v670_v63 }
 0x452   : > { %v2595_v43 = vpop.f32.mrf.mxu1  ;;  %v2932_v27 = vadd.f32 %v2931_v12, %v7978_v61  ;;  %3344 = vmatpush.bf16.msrb.mxu2 %v5483_v15 }
 0x453   : > { %v2596_v18 = vadd.f32 %v2595_v43, %v7598_v28  ;;  %10318 = vst [vmem:[#allocation201_spill] sm:$0xff] %v8507_v56 }
 0x454   : > { %v8493_v30 = vadd.f32 %v3100_v26, %v2932_v27  ;;  %v3102_v13 = vpop.f32.mrf.mxu0  ;;  %v8505_v26 = vpack.c.bf16 %v676_v37, %v669_v39  ;;  %v4087_v27 = vmax.f32 %v2763_v6, 0.0  ;;  %v10320_v6 = vld [vmem:[#allocation16_spill] sm:$0xff] }
 0x455   : > { %v10321_v37 = vld [vmem:[#allocation164_spill] sm:$0xff] }
 0x456   : > { %10317 = vst [vmem:[#allocation12_spill] sm:$0xff] %v8505_v26 }
 0x458   : > { %v2764_v9 = vpop.f32.mrf.mxu2 }
 0x459   : > { %v2765_v34 = vadd.f32 %v2764_v9, %v2596_v18  ;;  %v2933_v28 = vpop.f32.mrf.mxu3  ;;  %v5544_v18 = vld [vmem:[%s9742_s1 + $0x228] sm:$0xf0] }
 0x45a   : > { %v2598_v12 = vpop.f32.mrf.mxu1  ;;  %v2934_v43 = vadd.f32 %v2933_v28, %v7978_v61  ;;  %v5547_v15 = vor.u32 %v5906_v5, %v5544_v18  ;;  %v683_v5 = vld [vmem:[%s6289_s13 + $0xc68] sm:$0xff]  ;;  %v690_v18 = vld [vmem:[%s6289_s13 + $0xca0] sm:$0xff] }
 0x45b   : > { %v4089_v32 = vmax.f32 %v2765_v34, 0.0  ;;  %v2599_v14 = vadd.f32 %v2598_v12, %v7606_v50 }
 0x45c   : > { %v8517_v48 = vadd.f32 %v3102_v13, %v2934_v43  ;;  %v3105_v39 = vpop.f32.mrf.mxu0  ;;  %3513 = vmatpush.bf16.msrb.mxu3 %v5547_v15 }
 0x45d   : > { %2637 = vmatmul.bf16.gmra.mxu1 %v8505_v26  ;;  %5687 = vmatmul.msk.bf16.gmra.mxu2 %vm1552_vm0, %v8507_v56  ;;  %v8522_v50 = vpack.c.bf16 %v4089_v32, %v4087_v27  ;;  %v684_v32 = vld [vmem:[%s6289_s13 + $0xc70] sm:$0xff]  ;;  %v691_v27 = vld [vmem:[%s6289_s13 + $0xca8] sm:$0xff] }
 0x45e   : > { %2975 = vmatmul.bf16.gmra.mxu3 %v10320_v6  ;;  %v8536_v15 = vpack.c.bf16 %v691_v27, %v684_v32 }
 0x45f   : > { %10319 = vst [vmem:[#allocation202_spill] sm:$0xff] %v8522_v50  ;;  %3144 = vmatmul.bf16.gmra.mxu0 %v10321_v37  ;;  %v8534_v37 = vpack.c.bf16 %v690_v18, %v683_v5  ;;  %v10329_v18 = vld [vmem:[#allocation168_spill] sm:$0xff] }
 0x460   : > { %v2767_v13 = vpop.f32.mrf.mxu2  ;;  %10324 = vst [vmem:[#allocation203_spill] sm:$0xff] %v8536_v15 }
 0x461   : > { %v2768_v63 = vadd.f32 %v2767_v13, %v2599_v14  ;;  %v2936_v7 = vpop.f32.mrf.mxu3  ;;  %10323 = vst [vmem:[#allocation164_spill] sm:$0xff] %v8534_v37 }
 0x462   : > { %v2600_v9 = vpop.f32.mrf.mxu1  ;;  %v2937_v34 = vadd.f32 %v2936_v7, %v7978_v61 }
 0x463   : > { %v2601_v28 = vadd.f32 %v2600_v9, %v7632_v2  ;;  %v4091_v7 = vmax.f32 %v2768_v63, 0.0  ;;  %v10325_v2 = vld [vmem:[#allocation172_spill] sm:$0xff]  ;;  %v5926_v9 = vld [vmem:[%s9742_s1 + $0x2c4] sm:$0xf] }
 0x464   : > { %v8528_v12 = vadd.f32 %v3105_v39, %v2937_v34  ;;  %v3107_v43 = vpop.f32.mrf.mxu0  ;;  %v10328_v63 = vld [vmem:[#allocation20_spill] sm:$0xff] }
 0x466   : > { %10322 = vst [vmem:[#allocation16_spill] sm:$0xff] %v8528_v12 }
 0x468   : > { %v2769_v56 = vpop.f32.mrf.mxu2 }
 0x469   : > { %v2770_v6 = vadd.f32 %v2769_v56, %v2601_v28  ;;  %v2938_v50 = vpop.f32.mrf.mxu3  ;;  %v5624_v56 = vld [vmem:[%s9742_s1 + $0x2c8] sm:$0xf0] }
 0x46a   : > { %v2603_v14 = vpop.f32.mrf.mxu1  ;;  %v2939_v13 = vadd.f32 %v2938_v50, %v7978_v61  ;;  %v5627_v5 = vor.u32 %v5926_v9, %v5624_v56 }
 0x46b   : > { %v4093_v26 = vmax.f32 %v2770_v6, 0.0  ;;  %v2604_v39 = vadd.f32 %v2603_v14, %v10325_v2 }
 0x46c   : > { %v8546_v34 = vadd.f32 %v3107_v43, %v2939_v13  ;;  %v3110_v28 = vpop.f32.mrf.mxu0  ;;  %3680 = vmatpush.bf16.msrb.mxu0 %v5627_v5  ;;  %v10330_v13 = vld [vmem:[#allocation177_spill] sm:$0xff] }
 0x46d   : > { %2642 = vmatmul.bf16.gmra.mxu1 %v8534_v37  ;;  %5688 = vmatmul.msk.bf16.gmra.mxu2 %vm1552_vm0, %v8536_v15  ;;  %v8551_v50 = vpack.c.bf16 %v4093_v26, %v4091_v7  ;;  %v697_v15 = vld [vmem:[%s6289_s13 + $0xcd8] sm:$0xff]  ;;  %v704_v37 = vld [vmem:[%s6289_s13 + $0xd10] sm:$0xff]  ;;  %v698_v26 = vld [vmem:[%s6289_s13 + $0xce0] sm:$0xff] }
 0x46e   : > { %10326 = vst [vmem:[#allocation172_spill] sm:$0xff] %v8546_v34  ;;  %2980 = vmatmul.bf16.gmra.mxu3 %v10328_v63  ;;  %v705_v7 = vld [vmem:[%s6289_s13 + $0xd18] sm:$0xff]  ;;  %v8563_v34 = vpack.c.bf16 %v704_v37, %v697_v15  ;;  %v10337_v15 = vld [vmem:[#allocation24_spill] sm:$0xff] }
 0x46f   : > { %10327 = vst [vmem:[#allocation204_spill] sm:$0xff] %v8551_v50  ;;  %3149 = vmatmul.bf16.gmra.mxu0 %v10329_v18  ;;  %v8565_v18 = vpack.c.bf16 %v705_v7, %v698_v26 }
 0x470   : > { %v2772_v43 = vpop.f32.mrf.mxu2  ;;  %10332 = vst [vmem:[#allocation168_spill] sm:$0xff] %v8563_v34 }
 0x471   : > { %v2773_v32 = vadd.f32 %v2772_v43, %v2604_v39  ;;  %v2941_v27 = vpop.f32.mrf.mxu3  ;;  %10333 = vst [vmem:[#allocation177_spill] sm:$0xff] %v8565_v18 }
 0x472   : > { %v2605_v6 = vpop.f32.mrf.mxu1  ;;  %v2942_v14 = vadd.f32 %v2941_v27, %v7978_v61 }
 0x473   : > { %v2606_v2 = vadd.f32 %v2605_v6, %v10330_v13  ;;  %v4095_v27 = vmax.f32 %v2773_v32, 0.0  ;;  %v10334_v6 = vld [vmem:[#allocation69_spill] sm:$0xff] }
 0x474   : > { %v8557_v9 = vadd.f32 %v3110_v28, %v2942_v14  ;;  %v3112_v56 = vpop.f32.mrf.mxu0 }
 0x476   : > { %10331 = vst [vmem:[#allocation20_spill] sm:$0xff] %v8557_v9 }
 0x478   : > { %v2774_v50 = vpop.f32.mrf.mxu2 }
 0x479   : > { %v2775_v63 = vadd.f32 %v2774_v50, %v2606_v2  ;;  %v2943_v5 = vpop.f32.mrf.mxu3  ;;  %v10338_v50 = vld [vmem:[#allocation173_spill] sm:$0xff] }
 0x47a   : > { %v2608_v39 = vpop.f32.mrf.mxu1  ;;  %v2944_v43 = vadd.f32 %v2943_v5, %v7978_v61 }
 0x47b   : > { %v4097_v12 = vmax.f32 %v2775_v63, 0.0  ;;  %v2609_v28 = vadd.f32 %v2608_v39, %v10334_v6  ;;  %v10339_v63 = vld [vmem:[#allocation181_spill] sm:$0xff]  ;;  %v5888_v39 = vld [vmem:[%s9742_s1 + $0x194] sm:$0xf]  ;;  %v711_v6 = vld [vmem:[%s6289_s13 + $0xd48] sm:$0xff] }
 0x47c   : > { %v8569_v14 = vadd.f32 %v3112_v56, %v2944_v43  ;;  %v3115_v13 = vpop.f32.mrf.mxu0 }
 0x47d   : > { %2647 = vmatmul.bf16.gmra.mxu1 %v8563_v34  ;;  %5689 = vmatmul.msk.bf16.gmra.mxu2 %vm1552_vm0, %v8565_v18  ;;  %v8574_v37 = vpack.c.bf16 %v4097_v12, %v4095_v27  ;;  %v5472_v12 = vld [vmem:[%s9742_s1 + $0x198] sm:$0xf0]  ;;  %v5464_v18 = vld [vmem:[%s9742_s1 + $0x188] sm:$0xf0] }
 0x47e   : > { %10335 = vst [vmem:[#allocation69_spill] sm:$0xff] %v8569_v14  ;;  %2985 = vmatmul.bf16.gmra.mxu3 %v10337_v15  ;;  %v5475_v15 = vor.u32 %v5888_v39, %v5472_v12  ;;  %v5886_v12 = vld [vmem:[%s9742_s1 + $0x184] sm:$0xf] }
 0x47f   : > { %10336 = vst [vmem:[#allocation205_spill] sm:$0xff] %v8574_v37  ;;  %3154 = vmatmul.bf16.gmra.mxu0 %v10338_v50  ;;  %v5904_v50 = vld [vmem:[%s9742_s1 + $0x214] sm:$0xf]  ;;  %v5467_v34 = vor.u32 %v5886_v12, %v5464_v18 }
 0x480   : > { %v2777_v32 = vpop.f32.mrf.mxu2  ;;  %3345 = vmatpush.bf16.msrb.mxu2 %v5475_v15 }
 0x481   : > { %v2778_v2 = vadd.f32 %v2777_v32, %v2609_v28  ;;  %v2946_v56 = vpop.f32.mrf.mxu3  ;;  %v718_v28 = vld [vmem:[%s6289_s13 + $0xd80] sm:$0xff]  ;;  %v5536_v32 = vld [vmem:[%s9742_s1 + $0x218] sm:$0xf0] }
 0x482   : > { %v2610_v26 = vpop.f32.mrf.mxu1  ;;  %v2947_v7 = vadd.f32 %v2946_v56, %v7978_v61  ;;  %v5924_v56 = vld [vmem:[%s9742_s1 + $0x2b4] sm:$0xf]  ;;  %v8610_v15 = vpack.c.bf16 %v718_v28, %v711_v6  ;;  %v5608_v6 = vld [vmem:[%s9742_s1 + $0x2a8] sm:$0xf0] }
 0x483   : > { %v2611_v5 = vadd.f32 %v2610_v26, %v10339_v63  ;;  %v712_v26 = vld [vmem:[%s6289_s13 + $0xd50] sm:$0xff]  ;;  %v719_v63 = vld [vmem:[%s6289_s13 + $0xd88] sm:$0xff]  ;;  %v4099_v28 = vmax.f32 %v2778_v2, 0.0 }
 0x484   : > { %v8586_v43 = vadd.f32 %v3115_v13, %v2947_v7  ;;  %v3117_v27 = vpop.f32.mrf.mxu0  ;;  %v5539_v13 = vor.u32 %v5904_v50, %v5536_v32  ;;  %v5616_v7 = vld [vmem:[%s9742_s1 + $0x2b8] sm:$0xf0]  ;;  %10341 = vst [vmem:[#allocation173_spill] sm:$0xff] %v8610_v15  ;;  %v8612_v50 = vpack.c.bf16 %v719_v63, %v712_v26  ;;  %v5902_v32 = vld [vmem:[%s9742_s1 + $0x204] sm:$0xf]  ;;  %3346 = vmatpush.bf16.msrb.mxu2 %v5467_v34 }
 0x485   : > { %v5619_v39 = vor.u32 %v5924_v56, %v5616_v7  ;;  %v5528_v56 = vld [vmem:[%s9742_s1 + $0x208] sm:$0xf0]  ;;  %v10343_v63 = vld [vmem:[#allocation77_spill] sm:$0xff]  ;;  %v5934_v34 = vld [vmem:[%s9742_s1 + $0x304] sm:$0xf] }
 0x486   : > { %10340 = vst [vmem:[#allocation24_spill] sm:$0xff] %v8586_v43  ;;  %3514 = vmatpush.bf16.msrb.mxu3 %v5539_v13  ;;  %v5922_v13 = vld [vmem:[%s9742_s1 + $0x2a4] sm:$0xf]  ;;  %v5920_v2 = vld [vmem:[%s9742_s1 + $0x294] sm:$0xf] }
 0x487   : > { %10342 = vst [vmem:[#allocation181_spill] sm:$0xff] %v8612_v50  ;;  %3681 = vmatpush.bf16.msrb.mxu0 %v5619_v39  ;;  %v5611_v39 = vor.u32 %v5922_v13, %v5608_v6  ;;  %v10347_v13 = vld [vmem:[#allocation75_spill] sm:$0xff] }
 0x488   : > { %v2779_v37 = vpop.f32.mrf.mxu2 }
 0x489   : > { %v2780_v43 = vadd.f32 %v2779_v37, %v2611_v5  ;;  %v2948_v14 = vpop.f32.mrf.mxu3  ;;  %v5531_v5 = vor.u32 %v5902_v32, %v5528_v56  ;;  %v5600_v56 = vld [vmem:[%s9742_s1 + $0x298] sm:$0xf0] }
 0x48a   : > { %v2613_v18 = vpop.f32.mrf.mxu1  ;;  %v2949_v37 = vadd.f32 %v2948_v14, %v7978_v61  ;;  %v5656_v14 = vld [vmem:[%s9742_s1 + $0x308] sm:$0xf0] }
 0x48b   : > { %v4101_v26 = vmax.f32 %v2780_v43, 0.0  ;;  %v2614_v7 = vadd.f32 %v2613_v18, %v10343_v63  ;;  %3515 = vmatpush.bf16.msrb.mxu3 %v5531_v5  ;;  %3682 = vmatpush.bf16.msrb.mxu0 %v5611_v39  ;;  %v5659_v32 = vor.u32 %v5934_v34, %v5656_v14  ;;  %v5603_v18 = vor.u32 %v5920_v2, %v5600_v56  ;;  %v726_v56 = vld [vmem:[%s6289_s13 + $0xdc0] sm:$0xff] }
 0x48c   : > { %v8628_v12 = vadd.f32 %v3117_v27, %v2949_v37  ;;  %v3120_v9 = vpop.f32.mrf.mxu0  ;;  %v10346_v27 = vld [vmem:[#allocation28_spill] sm:$0xff] }
 0x48d   : > { %2652 = vmatmul.bf16.gmra.mxu1 %v8610_v15  ;;  %5690 = vmatmul.msk.bf16.gmra.mxu2 %vm1552_vm0, %v8612_v50  ;;  %v8642_v43 = vpack.c.bf16 %v4101_v26, %v4099_v28  ;;  %v5918_v28 = vld [vmem:[%s9742_s1 + $0x284] sm:$0xf]  ;;  %v5592_v26 = vld [vmem:[%s9742_s1 + $0x288] sm:$0xf0] }
 0x48e   : > { %10344 = vst [vmem:[#allocation77_spill] sm:$0xff] %v8628_v12  ;;  %2990 = vmatmul.bf16.gmra.mxu3 %v10346_v27  ;;  %3853 = vmatpush.bf16.msra.mxu1 %v5659_v32  ;;  %v5595_v34 = vor.u32 %v5918_v28, %v5592_v26  ;;  %v732_v32 = vld [vmem:[%s6289_s13 + $0xdf0] sm:$0xff] }
 0x48f   : > { %10345 = vst [vmem:[#allocation206_spill] sm:$0xff] %v8642_v43  ;;  %3159 = vmatmul.bf16.gmra.mxu0 %v10347_v13  ;;  %v733_v13 = vld [vmem:[%s6289_s13 + $0xdf8] sm:$0xff] }
 0x490   : > { %v2782_v37 = vpop.f32.mrf.mxu2  ;;  %3683 = vmatpush.bf16.msrb.mxu0 %v5603_v18  ;;  %v8665_v12 = vpack.c.bf16 %v733_v13, %v726_v56 }
 0x491   : > { %v2783_v5 = vadd.f32 %v2782_v37, %v2614_v7  ;;  %v2951_v6 = vpop.f32.mrf.mxu3  ;;  %v725_v7 = vld [vmem:[%s6289_s13 + $0xdb8] sm:$0xff] }
 0x492   : > { %v2615_v63 = vpop.f32.mrf.mxu1  ;;  %v2952_v39 = vadd.f32 %v2951_v6, %v7978_v61  ;;  %v8663_v15 = vpack.c.bf16 %v732_v32, %v725_v7  ;;  %10349 = vst [vmem:[#allocation75_spill] sm:$0xff] %v8665_v12 }
 0x493   : > { %v2616_v14 = vadd.f32 %v2615_v63, %v7758_v62  ;;  %v4103_v28 = vmax.f32 %v2783_v5, 0.0 }
 0x494   : > { %v8657_v2 = vadd.f32 %v3120_v9, %v2952_v39  ;;  %v3122_v27 = vpop.f32.mrf.mxu0  ;;  %3684 = vmatpush.bf16.msrb.mxu0 %v5595_v34  ;;  %10348 = vst [vmem:[#allocation28_spill] sm:$0xff] %v8663_v15  ;;  %v10351_v34 = vld [vmem:[#allocation32_spill] sm:$0xff] }
 0x498   : > { %v2784_v37 = vpop.f32.mrf.mxu2 }
 0x499   : > { %v2785_v50 = vadd.f32 %v2784_v37, %v2616_v14  ;;  %v2953_v43 = vpop.f32.mrf.mxu3  ;;  %v10352_v14 = vld [vmem:[#allocation83_spill] sm:$0xff] }
 0x49a   : > { %v2618_v6 = vpop.f32.mrf.mxu1  ;;  %v2954_v18 = vadd.f32 %v2953_v43, %v7978_v61 }
 0x49b   : > { %v4105_v62 = vmax.f32 %v2785_v50, 0.0  ;;  %v2619_v9 = vadd.f32 %v2618_v6, %v7766_v33 }
 0x49c   : > { %v8669_v26 = vadd.f32 %v3122_v27, %v2954_v18  ;;  %v3125_v63 = vpop.f32.mrf.mxu0  ;;  %v10353_v27 = vld [vmem:[#allocation185_spill] sm:$0xff] }
 0x49d   : > { %2657 = vmatmul.bf16.gmra.mxu1 %v8663_v15  ;;  %5691 = vmatmul.msk.bf16.gmra.mxu2 %vm1552_vm0, %v8665_v12  ;;  %v8674_v39 = vpack.c.bf16 %v4105_v62, %v4103_v28  ;;  %v10357_v15 = vld [vmem:[#allocation35_spill] sm:$0xff] }
 0x49e   : > { %2995 = vmatmul.bf16.gmra.mxu3 %v10351_v34 }
 0x49f   : > { %10350 = vst [vmem:[#allocation207_spill] sm:$0xff] %v8674_v39  ;;  %3164 = vmatmul.bf16.gmra.mxu0 %v10352_v14  ;;  %v10355_v14 = vld [vmem:[#allocation5_spill] sm:$0xff] }
 0x4a0   : > { %v2787_v7 = vpop.f32.mrf.mxu2 }
 0x4a1   : > { %v2788_v43 = vadd.f32 %v2787_v7, %v2619_v9  ;;  %v2956_v5 = vpop.f32.mrf.mxu3 }
 0x4a2   : > { %v2620_v50 = vpop.f32.mrf.mxu1  ;;  %v2957_v33 = vadd.f32 %v2956_v5, %v7978_v61  ;;  %v10358_v5 = vld [vmem:[#allocation36_spill] sm:$0xff] }
 0x4a3   : > { %v2621_v32 = vadd.f32 %v2620_v50, %v10353_v27  ;;  %v4107_v34 = vmax.f32 %v2788_v43, 0.0  ;;  %v10360_v50 = vld [vmem:[#allocation37_spill] sm:$0xff] }
 0x4a4   : > { %v8680_v56 = vadd.f32 %v3125_v63, %v2957_v33  ;;  %v3127_v13 = vpop.f32.mrf.mxu0  ;;  %v10361_v33 = vld [vmem:[#allocation85_spill] sm:$0xff] }
 0x4a6   : > { %10354 = vst [vmem:[#allocation32_spill] sm:$0xff] %v8680_v56  ;;  %v10366_v56 = vld [vmem:[#allocation41_spill] sm:$0xff] }
 0x4a8   : > { %v2789_v37 = vpop.f32.mrf.mxu2 }
 0x4a9   : > { %v2790_v6 = vadd.f32 %v2789_v37, %v2621_v32  ;;  %v2958_v18 = vpop.f32.mrf.mxu3 }
 0x4aa   : > { %v2623_v28 = vpop.f32.mrf.mxu1  ;;  %v2959_v62 = vadd.f32 %v2958_v18, %v7978_v61  ;;  %v10362_v18 = vld [vmem:[#allocation44_spill] sm:$0xff] }
 0x4ab   : > { %v4109_v12 = vmax.f32 %v2790_v6, 0.0  ;;  %v2624_v39 = vadd.f32 %v2623_v28, %v10355_v14 }
 0x4ac   : > { %v8684_v9 = vadd.f32 %v3127_v13, %v2959_v62  ;;  %v3130_v7 = vpop.f32.mrf.mxu0 }
 0x4ad   : > { %3178 = vmatmul.bf16.vlgmr.msrb.gmra.mxu1 %v10357_v15  ;;  %3347 = vmatmul.bf16.vlgmr.msrb.gmra.mxu2 %v10358_v5  ;;  %v8688_v63 = vpack.c.bf16 %v4109_v12, %v4107_v34 }
 0x4ae   : > { %10356 = vst [vmem:[#allocation83_spill] sm:$0xff] %v8684_v9  ;;  %3516 = vmatmul.bf16.vlgmr.msrb.gmra.mxu3 %v10360_v50 }
 0x4af   : > { %10359 = vst [vmem:[#allocation185_spill] sm:$0xff] %v8688_v63  ;;  %3685 = vmatmul.bf16.vlgmr.msrb.gmra.mxu0 %v10361_v33  ;;  %v10364_v33 = vld [vmem:[#allocation9_spill] sm:$0xff] }
 0x4b0   : > { %v2792_v27 = vpop.f32.mrf.mxu2 }
 0x4b1   : > { %v2793_v32 = vadd.f32 %v2792_v27, %v2624_v39  ;;  %v2961_v37 = vpop.f32.mrf.mxu3 }
 0x4b2   : > { %v2625_v43 = vpop.f32.mrf.mxu1  ;;  %v2962_v6 = vadd.f32 %v2961_v37, %v7978_v61  ;;  %v10367_v37 = vld [vmem:[#allocation42_spill] sm:$0xff] }
 0x4b3   : > { %v2626_v13 = vadd.f32 %v2625_v43, %v10362_v18  ;;  %v4111_v50 = vmax.f32 %v2793_v32, 0.0  ;;  %v10369_v43 = vld [vmem:[#allocation43_spill] sm:$0xff] }
 0x4b4   : > { %v8694_v28 = vadd.f32 %v3130_v7, %v2962_v6  ;;  %v3132_v62 = vpop.f32.mrf.mxu0  ;;  %v10370_v6 = vld [vmem:[#allocation34_spill] sm:$0xff] }
 0x4b6   : > { %10363 = vst [vmem:[#allocation5_spill] sm:$0xff] %v8694_v28  ;;  %v10375_v28 = vld [vmem:[#allocation47_spill] sm:$0xff] }
 0x4b8   : > { %v2794_v15 = vpop.f32.mrf.mxu2 }
 0x4b9   : > { %v2795_v14 = vadd.f32 %v2794_v15, %v2626_v13  ;;  %v2963_v5 = vpop.f32.mrf.mxu3 }
 0x4ba   : > { %v2628_v12 = vpop.f32.mrf.mxu1  ;;  %v2964_v34 = vadd.f32 %v2963_v5, %v7978_v61  ;;  %v10371_v5 = vld [vmem:[#allocation50_spill] sm:$0xff] }
 0x4bb   : > { %v4113_v63 = vmax.f32 %v2795_v14, 0.0  ;;  %v2629_v9 = vadd.f32 %v2628_v12, %v10364_v33 }
 0x4bc   : > { %v8698_v39 = vadd.f32 %v3132_v62, %v2964_v34  ;;  %v3135_v27 = vpop.f32.mrf.mxu0 }
 0x4bd   : > { %3183 = vmatmul.bf16.gmra.mxu1 %v10366_v56  ;;  %3352 = vmatmul.bf16.gmra.mxu2 %v10367_v37  ;;  %v8702_v7 = vpack.c.bf16 %v4113_v63, %v4111_v50 }
 0x4be   : > { %10365 = vst [vmem:[#allocation35_spill] sm:$0xff] %v8698_v39  ;;  %3521 = vmatmul.bf16.gmra.mxu3 %v10369_v43 }
 0x4bf   : > { %10368 = vst [vmem:[#allocation36_spill] sm:$0xff] %v8702_v7  ;;  %3690 = vmatmul.bf16.gmra.mxu0 %v10370_v6  ;;  %v10373_v6 = vld [vmem:[#allocation13_spill] sm:$0xff] }
 0x4c0   : > { %v2797_v18 = vpop.f32.mrf.mxu2 }
 0x4c1   : > { %v2798_v13 = vadd.f32 %v2797_v18, %v2629_v9  ;;  %v2966_v15 = vpop.f32.mrf.mxu3 }
 0x4c2   : > { %v2630_v32 = vpop.f32.mrf.mxu1  ;;  %v2967_v14 = vadd.f32 %v2966_v15, %v7978_v61  ;;  %v10376_v15 = vld [vmem:[#allocation48_spill] sm:$0xff] }
 0x4c3   : > { %v2631_v62 = vadd.f32 %v2630_v32, %v10371_v5  ;;  %v4115_v43 = vmax.f32 %v2798_v13, 0.0  ;;  %v10378_v32 = vld [vmem:[#allocation49_spill] sm:$0xff] }
 0x4c4   : > { %v8708_v12 = vadd.f32 %v3135_v27, %v2967_v14  ;;  %v3137_v34 = vpop.f32.mrf.mxu0  ;;  %v10379_v14 = vld [vmem:[#allocation40_spill] sm:$0xff] }
 0x4c6   : > { %10372 = vst [vmem:[#allocation37_spill] sm:$0xff] %v8708_v12  ;;  %v10384_v12 = vld [vmem:[#allocation53_spill] sm:$0xff] }
 0x4c8   : > { %v2799_v56 = vpop.f32.mrf.mxu2 }
 0x4c9   : > { %v2800_v33 = vadd.f32 %v2799_v56, %v2631_v62  ;;  %v2968_v37 = vpop.f32.mrf.mxu3 }
 0x4ca   : > { %v2633_v63 = vpop.f32.mrf.mxu1  ;;  %v2969_v50 = vadd.f32 %v2968_v37, %v7978_v61  ;;  %v10380_v37 = vld [vmem:[#allocation56_spill] sm:$0xff] }
 0x4cb   : > { %v4117_v7 = vmax.f32 %v2800_v33, 0.0  ;;  %v2634_v39 = vadd.f32 %v2633_v63, %v10373_v6 }
 0x4cc   : > { %v8712_v9 = vadd.f32 %v3137_v34, %v2969_v50  ;;  %v3140_v18 = vpop.f32.mrf.mxu0 }
 0x4cd   : > { %3188 = vmatmul.bf16.gmra.mxu1 %v10375_v28  ;;  %3357 = vmatmul.bf16.gmra.mxu2 %v10376_v15  ;;  %v8716_v27 = vpack.c.bf16 %v4117_v7, %v4115_v43 }
 0x4ce   : > { %10374 = vst [vmem:[#allocation85_spill] sm:$0xff] %v8712_v9  ;;  %3526 = vmatmul.bf16.gmra.mxu3 %v10378_v32 }
 0x4cf   : > { %10377 = vst [vmem:[#allocation44_spill] sm:$0xff] %v8716_v27  ;;  %3695 = vmatmul.bf16.gmra.mxu0 %v10379_v14  ;;  %v10382_v14 = vld [vmem:[#allocation17_spill] sm:$0xff] }
 0x4d0   : > { %v2802_v5 = vpop.f32.mrf.mxu2 }
 0x4d1   : > { %v2803_v62 = vadd.f32 %v2802_v5, %v2634_v39  ;;  %v2971_v56 = vpop.f32.mrf.mxu3 }
 0x4d2   : > { %v2635_v13 = vpop.f32.mrf.mxu1  ;;  %v2972_v33 = vadd.f32 %v2971_v56, %v7978_v61  ;;  %v10385_v56 = vld [vmem:[#allocation54_spill] sm:$0xff] }
 0x4d3   : > { %v2636_v34 = vadd.f32 %v2635_v13, %v10380_v37  ;;  %v4119_v32 = vmax.f32 %v2803_v62, 0.0  ;;  %v10387_v13 = vld [vmem:[#allocation55_spill] sm:$0xff] }
 0x4d4   : > { %v8722_v63 = vadd.f32 %v3140_v18, %v2972_v33  ;;  %v3142_v50 = vpop.f32.mrf.mxu0  ;;  %v10388_v33 = vld [vmem:[#allocation46_spill] sm:$0xff] }
 0x4d6   : > { %10381 = vst [vmem:[#allocation9_spill] sm:$0xff] %v8722_v63  ;;  %v10392_v63 = vld [vmem:[#allocation59_spill] sm:$0xff] }
 0x4d8   : > { %v2804_v28 = vpop.f32.mrf.mxu2 }
 0x4d9   : > { %v2805_v6 = vadd.f32 %v2804_v28, %v2636_v34  ;;  %v2973_v15 = vpop.f32.mrf.mxu3 }
 0x4da   : > { %v2638_v7 = vpop.f32.mrf.mxu1  ;;  %v2974_v43 = vadd.f32 %v2973_v15, %v7978_v61  ;;  %v10389_v15 = vld [vmem:[#allocation62_spill] sm:$0xff] }
 0x4db   : > { %v4121_v27 = vmax.f32 %v2805_v6, 0.0  ;;  %v2639_v9 = vadd.f32 %v2638_v7, %v10382_v14 }
 0x4dc   : > { %v8726_v39 = vadd.f32 %v3142_v50, %v2974_v43  ;;  %v3145_v5 = vpop.f32.mrf.mxu0 }
 0x4dd   : > { %3193 = vmatmul.bf16.gmra.mxu1 %v10384_v12  ;;  %3362 = vmatmul.bf16.gmra.mxu2 %v10385_v56  ;;  %v8730_v18 = vpack.c.bf16 %v4121_v27, %v4119_v32 }
 0x4de   : > { %10383 = vst [vmem:[#allocation41_spill] sm:$0xff] %v8726_v39  ;;  %3531 = vmatmul.bf16.gmra.mxu3 %v10387_v13 }
 0x4df   : > { %10386 = vst [vmem:[#allocation42_spill] sm:$0xff] %v8730_v18  ;;  %3700 = vmatmul.bf16.gmra.mxu0 %v10388_v33  ;;  %v10390_v33 = vld [vmem:[#allocation21_spill] sm:$0xff] }
 0x4e0   : > { %v2807_v37 = vpop.f32.mrf.mxu2 }
 0x4e1   : > { %v2808_v34 = vadd.f32 %v2807_v37, %v2639_v9  ;;  %v2976_v28 = vpop.f32.mrf.mxu3 }
 0x4e2   : > { %v2640_v62 = vpop.f32.mrf.mxu1  ;;  %v2977_v6 = vadd.f32 %v2976_v28, %v7978_v61  ;;  %v10393_v28 = vld [vmem:[#allocation60_spill] sm:$0xff] }
 0x4e3   : > { %v2641_v50 = vadd.f32 %v2640_v62, %v10389_v15  ;;  %v4123_v13 = vmax.f32 %v2808_v34, 0.0  ;;  %v10395_v62 = vld [vmem:[#allocation61_spill] sm:$0xff] }
 0x4e4   : > { %v8736_v7 = vadd.f32 %v3145_v5, %v2977_v6  ;;  %v3147_v43 = vpop.f32.mrf.mxu0  ;;  %v10396_v6 = vld [vmem:[#allocation52_spill] sm:$0xff] }
 0x4e8   : > { %v2809_v12 = vpop.f32.mrf.mxu2 }
 0x4e9   : > { %v2810_v14 = vadd.f32 %v2809_v12, %v2641_v50  ;;  %v2978_v56 = vpop.f32.mrf.mxu3 }
 0x4ea   : > { %v2643_v27 = vpop.f32.mrf.mxu1  ;;  %v2979_v32 = vadd.f32 %v2978_v56, %v7978_v61  ;;  %v10397_v56 = vld [vmem:[#allocation68_spill] sm:$0xff] }
 0x4eb   : > { %v4125_v18 = vmax.f32 %v2810_v14, 0.0  ;;  %v2644_v39 = vadd.f32 %v2643_v27, %v10390_v33 }
 0x4ec   : > { %v8740_v9 = vadd.f32 %v3147_v43, %v2979_v32  ;;  %v3150_v37 = vpop.f32.mrf.mxu0 }
 0x4ed   : > { %3198 = vmatmul.bf16.gmra.mxu1 %v10392_v63  ;;  %3367 = vmatmul.bf16.gmra.mxu2 %v10393_v28  ;;  %v8744_v5 = vpack.c.bf16 %v4125_v18, %v4123_v13 }
 0x4ee   : > { %10391 = vst [vmem:[#allocation43_spill] sm:$0xff] %v8740_v9  ;;  %3536 = vmatmul.bf16.gmra.mxu3 %v10395_v62  ;;  %v10400_v9 = vld [vmem:[#allocation65_spill] sm:$0xff] }
 0x4ef   : > { %10394 = vst [vmem:[#allocation34_spill] sm:$0xff] %v8744_v5  ;;  %3705 = vmatmul.bf16.gmra.mxu0 %v10396_v6 }
 0x4f0   : > { %v2812_v15 = vpop.f32.mrf.mxu2 }
 0x4f1   : > { %v2813_v50 = vadd.f32 %v2812_v15, %v2644_v39  ;;  %v2981_v12 = vpop.f32.mrf.mxu3 }
 0x4f2   : > { %v2645_v34 = vpop.f32.mrf.mxu1  ;;  %v2982_v14 = vadd.f32 %v2981_v12, %v7978_v61  ;;  %v10401_v12 = vld [vmem:[#allocation66_spill] sm:$0xff] }
 0x4f3   : > { %v2646_v43 = vadd.f32 %v2645_v34, %v10397_v56  ;;  %v4127_v62 = vmax.f32 %v2813_v50, 0.0  ;;  %v10403_v34 = vld [vmem:[#allocation67_spill] sm:$0xff] }
 0x4f4   : > { %v8750_v27 = vadd.f32 %v3150_v37, %v2982_v14  ;;  %v3152_v32 = vpop.f32.mrf.mxu0  ;;  %v10404_v14 = vld [vmem:[#allocation58_spill] sm:$0xff] }
 0x4f6   : > { %10398 = vst [vmem:[#allocation50_spill] sm:$0xff] %v8750_v27  ;;  %v10407_v27 = vld [vmem:[#allocation72_spill] sm:$0xff] }
 0x4f8   : > { %v2814_v63 = vpop.f32.mrf.mxu2 }
 0x4f9   : > { %v2815_v33 = vadd.f32 %v2814_v63, %v2646_v43  ;;  %v2983_v28 = vpop.f32.mrf.mxu3 }
 0x4fa   : > { %v2648_v18 = vpop.f32.mrf.mxu1  ;;  %v2984_v13 = vadd.f32 %v2983_v28, %v7978_v61 }
 0x4fb   : > { %v4129_v5 = vmax.f32 %v2815_v33, 0.0  ;;  %v2649_v6 = vadd.f32 %v2648_v18, %v7898_v21  ;;  %v10405_v21 = vld [vmem:[#allocation70_spill] sm:$0xff] }
 0x4fc   : > { %v8754_v39 = vadd.f32 %v3152_v32, %v2984_v13  ;;  %v3155_v15 = vpop.f32.mrf.mxu0 }
 0x4fd   : > { %3203 = vmatmul.bf16.gmra.mxu1 %v10400_v9  ;;  %3372 = vmatmul.bf16.gmra.mxu2 %v10401_v12  ;;  %v8758_v37 = vpack.c.bf16 %v4129_v5, %v4127_v62 }
 0x4fe   : > { %10399 = vst [vmem:[#allocation13_spill] sm:$0xff] %v8754_v39  ;;  %3541 = vmatmul.bf16.gmra.mxu3 %v10403_v34 }
 0x4ff   : > { %10402 = vst [vmem:[#allocation47_spill] sm:$0xff] %v8758_v37  ;;  %3710 = vmatmul.bf16.gmra.mxu0 %v10404_v14  ;;  %v10406_v14 = vld [vmem:[#allocation76_spill] sm:$0xff] }
 0x500   : > { %v2817_v56 = vpop.f32.mrf.mxu2 }
 0x501   : > { %v2818_v43 = vadd.f32 %v2817_v56, %v2649_v6  ;;  %v2986_v63 = vpop.f32.mrf.mxu3 }
 0x502   : > { %v2650_v50 = vpop.f32.mrf.mxu1  ;;  %v2987_v33 = vadd.f32 %v2986_v63, %v7978_v61  ;;  %v10408_v63 = vld [vmem:[#allocation73_spill] sm:$0xff] }
 0x503   : > { %v2651_v32 = vadd.f32 %v2650_v50, %v10405_v21  ;;  %v4131_v34 = vmax.f32 %v2818_v43, 0.0  ;;  %v10410_v50 = vld [vmem:[#allocation74_spill] sm:$0xff] }
 0x504   : > { %v8764_v28 = vadd.f32 %v3155_v15, %v2987_v33  ;;  %v3157_v18 = vpop.f32.mrf.mxu0  ;;  %v10411_v33 = vld [vmem:[#allocation25_spill] sm:$0xff] }
 0x508   : > { %v2819_v9 = vpop.f32.mrf.mxu2 }
 0x509   : > { %v2820_v13 = vadd.f32 %v2819_v9, %v2651_v32  ;;  %v2988_v12 = vpop.f32.mrf.mxu3 }
 0x50a   : > { %v2653_v5 = vpop.f32.mrf.mxu1  ;;  %v2989_v62 = vadd.f32 %v2988_v12, %v7978_v61  ;;  %v10412_v12 = vld [vmem:[#allocation78_spill] sm:$0xff] }
 0x50b   : > { %v4133_v37 = vmax.f32 %v2820_v13, 0.0  ;;  %v2654_v39 = vadd.f32 %v2653_v5, %v10406_v14 }
 0x50c   : > { %v8768_v6 = vadd.f32 %v3157_v18, %v2989_v62  ;;  %v3160_v56 = vpop.f32.mrf.mxu0 }
 0x50d   : > { %3208 = vmatmul.bf16.gmra.mxu1 %v10407_v27  ;;  %3377 = vmatmul.bf16.gmra.mxu2 %v10408_v63  ;;  %v8772_v15 = vpack.c.bf16 %v4133_v37, %v4131_v34  ;;  %v5943_v27 = vld [vmem:[%s9744_s3 + $0x38] sm:$0xff] }
 0x50e   : > { %3546 = vmatmul.bf16.gmra.mxu3 %v10410_v50  ;;  %4339 = vmatpush.bf16.msra.mxu2 %v5943_v27  ;;  %v10418_v27 = vld [vmem:[#allocation82_spill] sm:$0xff] }
 0x50f   : > { %10409 = vst [vmem:[#allocation48_spill] sm:$0xff] %v8772_v15  ;;  %3715 = vmatmul.bf16.gmra.mxu0 %v10411_v33 }
 0x510   : > { %v2822_v21 = vpop.f32.mrf.mxu2 }
 0x511   : > { %v2823_v32 = vadd.f32 %v2822_v21, %v2654_v39  ;;  %v2991_v9 = vpop.f32.mrf.mxu3  ;;  %v5951_v39 = vld [vmem:[%s9744_s3 + $0x78] sm:$0xff] }
 0x512   : > { %v2655_v43 = vpop.f32.mrf.mxu1  ;;  %v2992_v13 = vadd.f32 %v2991_v9, %v7978_v61  ;;  %4508 = vmatpush.bf16.msra.mxu3 %v5951_v39  ;;  %v10420_v39 = vld [vmem:[#allocation79_spill] sm:$0xff] }
 0x513   : > { %v2656_v18 = vadd.f32 %v2655_v43, %v10412_v12  ;;  %v4135_v33 = vmax.f32 %v2823_v32, 0.0  ;;  %v10416_v12 = vld [vmem:[#allocation81_spill] sm:$0xff] }
 0x514   : > { %v8778_v5 = vadd.f32 %v3160_v56, %v2992_v13  ;;  %v3162_v62 = vpop.f32.mrf.mxu0  ;;  %v10415_v13 = vld [vmem:[#allocation80_spill] sm:$0xff] }
 0x516   : > { %10413 = vst [vmem:[#allocation49_spill] sm:$0xff] %v8778_v5  ;;  %v10421_v5 = vld [vmem:[#allocation88_spill] sm:$0xff] }
 0x518   : > { %v2824_v37 = vpop.f32.mrf.mxu2 }
 0x519   : > { %v2825_v34 = vadd.f32 %v2824_v37, %v2656_v18  ;;  %v2993_v14 = vpop.f32.mrf.mxu3  ;;  %v10419_v37 = vld [vmem:[#allocation29_spill] sm:$0xff] }
 0x51a   : > { %v2658_v63 = vpop.f32.mrf.mxu1  ;;  %v2994_v50 = vadd.f32 %v2993_v14, %v7978_v61 }
 0x51b   : > { %v4137_v21 = vmax.f32 %v2825_v34, 0.0  ;;  %v2659_v56 = vadd.f32 %v2658_v63, %v7958_v59 }
 0x51c   : > { %v8788_v9 = vadd.f32 %v3162_v62, %v2994_v50  ;;  %v3165_v43 = vpop.f32.mrf.mxu0 }
 0x51d   : > { %3213 = vmatmul.bf16.gmra.mxu1 %v10415_v13  ;;  %3382 = vmatmul.bf16.gmra.mxu2 %v10416_v12  ;;  %v8792_v18 = vpack.c.bf16 %v4137_v21, %v4135_v33 }
 0x51e   : > { %10414 = vst [vmem:[#allocation40_spill] sm:$0xff] %v8788_v9  ;;  %3551 = vmatmul.bf16.gmra.mxu3 %v10418_v27 }
 0x51f   : > { %10417 = vst [vmem:[#allocation56_spill] sm:$0xff] %v8792_v18  ;;  %3720 = vmatmul.bf16.gmra.mxu0 %v10419_v37 }
 0x520   : > { %v2827_v15 = vpop.f32.mrf.mxu2 }
 0x521   : > { %v2828_v14 = vadd.f32 %v2827_v15, %v2659_v56  ;;  %v2996_v32 = vpop.f32.mrf.mxu3 }
 0x522   : > { %v2660_v34 = vpop.f32.mrf.mxu1  ;;  %v2997_v59 = vadd.f32 %v2996_v32, %v7978_v61  ;;  %v10422_v32 = vld [vmem:[#allocation89_spill] sm:$0xff] }
 0x523   : > { %v2661_v62 = vadd.f32 %v2660_v34, %v10420_v39  ;;  %v4139_v27 = vmax.f32 %v2828_v14, 0.0  ;;  %v10424_v34 = vld [vmem:[#allocation90_spill] sm:$0xff] }
 0x524   : > { %v8798_v63 = vadd.f32 %v3165_v43, %v2997_v59  ;;  %v3167_v50 = vpop.f32.mrf.mxu0  ;;  %v10425_v59 = vld [vmem:[#allocation84_spill] sm:$0xff] }
 0x528   : > { %v2829_v13 = vpop.f32.mrf.mxu2 }
 0x529   : > { %v2830_v9 = vadd.f32 %v2829_v13, %v2661_v62  ;;  %v2998_v12 = vpop.f32.mrf.mxu3 }
 0x52a   : > { %v2999_v33 = vadd.f32 %v2998_v12, %v7978_v61  ;;  %v3179_v21 = vpop.f32.mrf.mxu1 }
 0x52b   : > { %v4141_v18 = vmax.f32 %v2830_v9, 0.0  ;;  %v3180_v37 = vadd.f32 %v3179_v21, %v7983_v25 }
 0x52c   : > { %v8802_v15 = vadd.f32 %v3167_v50, %v2999_v33  ;;  %v3686_v56 = vpop.f32.mrf.mxu0 }
 0x52d   : > { %3218 = vmatmul.bf16.gmra.mxu1 %v10421_v5  ;;  %3387 = vmatmul.bf16.gmra.mxu2 %v10422_v32  ;;  %v8806_v43 = vpack.c.bf16 %v4141_v18, %v4139_v27 }
 0x52e   : > { %3556 = vmatmul.bf16.gmra.mxu3 %v10424_v34 }
 0x52f   : > { %10423 = vst [vmem:[#allocation17_spill] sm:$0xff] %v8806_v43  ;;  %3725 = vmatmul.bf16.gmra.mxu0 %v10425_v59  ;;  %v10426_v59 = vld [vmem:[#allocation93_spill] sm:$0xff] }
 0x530   : > { %v3348_v39 = vpop.f32.mrf.mxu2 }
 0x531   : > { %v3349_v61 = vadd.f32 %v3348_v39, %v3180_v37  ;;  %v3517_v62 = vpop.f32.mrf.mxu3  ;;  %v10427_v37 = vld [vmem:[#allocation94_spill] sm:$0xff]  ;;  %v10428_v39 = vld [vmem:[#allocation95_spill] sm:$0xff] }
 0x532   : > { %v3181_v14 = vpop.f32.mrf.mxu1 }
 0x533   : > { %v3182_v9 = vadd.f32 %v3181_v14, %v7995_v31  ;;  %v3518_v25 = vadd.f32 %v3517_v62, %v3349_v61  ;;  %v10429_v31 = vld [vmem:[#allocation86_spill] sm:$0xff] }
 0x534   : > { %v3688_v50 = vpop.f32.mrf.mxu0 }
 0x535   : > { %v8811_v13 = vadd.f32 %v3686_v56, %v3518_v25 }
 0x538   : > { %v3350_v12 = vpop.f32.mrf.mxu2 }
 0x539   : > { %v3351_v5 = vadd.f32 %v3350_v12, %v3182_v9  ;;  %v3519_v33 = vpop.f32.mrf.mxu3 }
 0x53a   : > { %v3184_v21 = vpop.f32.mrf.mxu1 }
 0x53b   : > { %v3185_v18 = vadd.f32 %v3184_v21, %v8006_v52  ;;  %v3520_v27 = vadd.f32 %v3519_v33, %v3351_v5 }
 0x53c   : > { %v3691_v32 = vpop.f32.mrf.mxu0 }
 0x53d   : > { %v8814_v34 = vadd.f32 %v3688_v50, %v3520_v27  ;;  %3223 = vmatmul.bf16.gmra.mxu1 %v10426_v59  ;;  %3392 = vmatmul.bf16.gmra.mxu2 %v10427_v37 }
 0x53e   : > { %3561 = vmatmul.bf16.gmra.mxu3 %v10428_v39 }
 0x53f   : > { %3730 = vmatmul.bf16.gmra.mxu0 %v10429_v31  ;;  %v10430_v31 = vld [vmem:[#allocation97_spill] sm:$0xff] }
 0x540   : > { %v3353_v56 = vpop.f32.mrf.mxu2 }
 0x541   : > { %v3354_v61 = vadd.f32 %v3353_v56, %v3185_v18  ;;  %v3522_v62 = vpop.f32.mrf.mxu3  ;;  %v10431_v18 = vld [vmem:[#allocation98_spill] sm:$0xff]  ;;  %v10432_v56 = vld [vmem:[#allocation99_spill] sm:$0xff] }
 0x542   : > { %v3186_v14 = vpop.f32.mrf.mxu1 }
 0x543   : > { %v3187_v9 = vadd.f32 %v3186_v14, %v8018_v36  ;;  %v3523_v25 = vadd.f32 %v3522_v62, %v3354_v61  ;;  %v10433_v36 = vld [vmem:[#allocation87_spill] sm:$0xff] }
 0x544   : > { %v3693_v52 = vpop.f32.mrf.mxu0 }
 0x545   : > { %v8821_v12 = vadd.f32 %v3691_v32, %v3523_v25 }
 0x548   : > { %v3355_v50 = vpop.f32.mrf.mxu2 }
 0x549   : > { %v3356_v5 = vadd.f32 %v3355_v50, %v3187_v9  ;;  %v3524_v33 = vpop.f32.mrf.mxu3 }
 0x54a   : > { %v3189_v21 = vpop.f32.mrf.mxu1 }
 0x54b   : > { %v3190_v27 = vadd.f32 %v3189_v21, %v8035_v51  ;;  %v3525_v59 = vadd.f32 %v3524_v33, %v3356_v5 }
 0x54c   : > { %v3696_v37 = vpop.f32.mrf.mxu0 }
 0x54d   : > { %v8824_v39 = vadd.f32 %v3693_v52, %v3525_v59  ;;  %3228 = vmatmul.bf16.gmra.mxu1 %v10430_v31  ;;  %3397 = vmatmul.bf16.gmra.mxu2 %v10431_v18  ;;  %v5942_v52 = vld [vmem:[%s9744_s3 + $0x30] sm:$0xff] }
 0x54e   : > { %3566 = vmatmul.bf16.gmra.mxu3 %v10432_v56  ;;  %4340 = vmatpush.bf16.msra.mxu2 %v5942_v52  ;;  %v10434_v56 = vld [vmem:[#allocation101_spill] sm:$0xff] }
 0x54f   : > { %3735 = vmatmul.bf16.gmra.mxu0 %v10433_v36  ;;  %v10435_v36 = vld [vmem:[#allocation102_spill] sm:$0xff] }
 0x550   : > { %v3358_v32 = vpop.f32.mrf.mxu2 }
 0x551   : > { %v3359_v61 = vadd.f32 %v3358_v32, %v3190_v27  ;;  %v3527_v62 = vpop.f32.mrf.mxu3  ;;  %v5950_v27 = vld [vmem:[%s9744_s3 + $0x70] sm:$0xff]  ;;  %v10436_v32 = vld [vmem:[#allocation103_spill] sm:$0xff] }
 0x552   : > { %v3191_v14 = vpop.f32.mrf.mxu1  ;;  %4509 = vmatpush.bf16.msra.mxu3 %v5950_v27 }
 0x553   : > { %v3192_v9 = vadd.f32 %v3191_v14, %v8059_v17  ;;  %v3528_v25 = vadd.f32 %v3527_v62, %v3359_v61  ;;  %v10437_v61 = vld [vmem:[#allocation10_spill] sm:$0xff] }
 0x554   : > { %v3698_v51 = vpop.f32.mrf.mxu0 }
 0x555   : > { %v8831_v50 = vadd.f32 %v3696_v37, %v3528_v25 }
 0x558   : > { %v3360_v5 = vpop.f32.mrf.mxu2 }
 0x559   : > { %v3361_v33 = vadd.f32 %v3360_v5, %v3192_v9  ;;  %v3529_v21 = vpop.f32.mrf.mxu3 }
 0x55a   : > { %v3194_v59 = vpop.f32.mrf.mxu1 }
 0x55b   : > { %v3195_v31 = vadd.f32 %v3194_v59, %v8070_v57  ;;  %v3530_v17 = vadd.f32 %v3529_v21, %v3361_v33 }
 0x55c   : > { %v3701_v18 = vpop.f32.mrf.mxu0 }
 0x55d   : > { %v8840_v37 = vadd.f32 %v3698_v51, %v3530_v17  ;;  %3233 = vmatmul.bf16.gmra.mxu1 %v10434_v56  ;;  %3402 = vmatmul.bf16.gmra.mxu2 %v10435_v36 }
 0x55e   : > { %3571 = vmatmul.bf16.gmra.mxu3 %v10436_v32 }
 0x55f   : > { %3740 = vmatmul.bf16.gmra.mxu0 %v10437_v61  ;;  %v10438_v61 = vld [vmem:[#allocation105_spill] sm:$0xff] }
 0x560   : > { %v3363_v62 = vpop.f32.mrf.mxu2 }
 0x561   : > { %v3364_v14 = vadd.f32 %v3363_v62, %v3195_v31  ;;  %v3532_v9 = vpop.f32.mrf.mxu3  ;;  %v10439_v31 = vld [vmem:[#allocation106_spill] sm:$0xff]  ;;  %v10440_v62 = vld [vmem:[#allocation107_spill] sm:$0xff] }
 0x562   : > { %v3196_v25 = vpop.f32.mrf.mxu1 }
 0x563   : > { %v3197_v52 = vadd.f32 %v3196_v25, %v8082_v4  ;;  %v3533_v57 = vadd.f32 %v3532_v9, %v3364_v14  ;;  %v10441_v4 = vld [vmem:[#allocation14_spill] sm:$0xff] }
 0x564   : > { %v3703_v5 = vpop.f32.mrf.mxu0 }
 0x565   : > { %v8847_v33 = vadd.f32 %v3701_v18, %v3533_v57 }
 0x568   : > { %v3365_v51 = vpop.f32.mrf.mxu2 }
 0x569   : > { %v3366_v21 = vadd.f32 %v3365_v51, %v3197_v52  ;;  %v3534_v27 = vpop.f32.mrf.mxu3 }
 0x56a   : > { %v3199_v59 = vpop.f32.mrf.mxu1 }
 0x56b   : > { %v3200_v17 = vadd.f32 %v3199_v59, %v8093_v45  ;;  %v3535_v56 = vadd.f32 %v3534_v27, %v3366_v21 }
 0x56c   : > { %v3706_v36 = vpop.f32.mrf.mxu0 }
 0x56d   : > { %v8850_v32 = vadd.f32 %v3703_v5, %v3535_v56  ;;  %3238 = vmatmul.bf16.gmra.mxu1 %v10438_v61  ;;  %3407 = vmatmul.bf16.gmra.mxu2 %v10439_v31 }
 0x56e   : > { %3576 = vmatmul.bf16.gmra.mxu3 %v10440_v62 }
 0x56f   : > { %3745 = vmatmul.bf16.gmra.mxu0 %v10441_v4  ;;  %v10442_v4 = vld [vmem:[#allocation109_spill] sm:$0xff] }
 0x570   : > { %v3368_v18 = vpop.f32.mrf.mxu2 }
 0x571   : > { %v3369_v14 = vadd.f32 %v3368_v18, %v3200_v17  ;;  %v3537_v9 = vpop.f32.mrf.mxu3  ;;  %v10443_v17 = vld [vmem:[#allocation110_spill] sm:$0xff]  ;;  %v10444_v18 = vld [vmem:[#allocation111_spill] sm:$0xff] }
 0x572   : > { %v3201_v25 = vpop.f32.mrf.mxu1 }
 0x573   : > { %v3202_v52 = vadd.f32 %v3201_v25, %v8105_v19  ;;  %v3538_v57 = vadd.f32 %v3537_v9, %v3369_v14  ;;  %v10445_v19 = vld [vmem:[#allocation18_spill] sm:$0xff] }
 0x574   : > { %v3708_v45 = vpop.f32.mrf.mxu0 }
 0x575   : > { %v8857_v51 = vadd.f32 %v3706_v36, %v3538_v57 }
 0x578   : > { %v3370_v5 = vpop.f32.mrf.mxu2 }
 0x579   : > { %v3371_v21 = vadd.f32 %v3370_v5, %v3202_v52  ;;  %v3539_v27 = vpop.f32.mrf.mxu3 }
 0x57a   : > { %v3204_v59 = vpop.f32.mrf.mxu1 }
 0x57b   : > { %v3205_v56 = vadd.f32 %v3204_v59, %v8116_v10  ;;  %v3540_v61 = vadd.f32 %v3539_v27, %v3371_v21 }
 0x57c   : > { %v3711_v31 = vpop.f32.mrf.mxu0 }
 0x57d   : > { %v8860_v62 = vadd.f32 %v3708_v45, %v3540_v61  ;;  %3243 = vmatmul.bf16.gmra.mxu1 %v10442_v4  ;;  %3412 = vmatmul.bf16.gmra.mxu2 %v10443_v17 }
 0x57e   : > { %3581 = vmatmul.bf16.gmra.mxu3 %v10444_v18 }
 0x57f   : > { %3750 = vmatmul.bf16.gmra.mxu0 %v10445_v19  ;;  %v10446_v19 = vld [vmem:[#allocation113_spill] sm:$0xff] }
 0x580   : > { %v3373_v36 = vpop.f32.mrf.mxu2 }
 0x581   : > { %v3374_v14 = vadd.f32 %v3373_v36, %v3205_v56  ;;  %v3542_v9 = vpop.f32.mrf.mxu3  ;;  %v10447_v56 = vld [vmem:[#allocation114_spill] sm:$0xff]  ;;  %v10448_v36 = vld [vmem:[#allocation115_spill] sm:$0xff] }
 0x582   : > { %v3206_v25 = vpop.f32.mrf.mxu1 }
 0x583   : > { %v3207_v52 = vadd.f32 %v3206_v25, %v8128_v11  ;;  %v3543_v57 = vadd.f32 %v3542_v9, %v3374_v14  ;;  %v10449_v11 = vld [vmem:[#allocation22_spill] sm:$0xff] }
 0x584   : > { %v3713_v10 = vpop.f32.mrf.mxu0 }
 0x585   : > { %v8867_v5 = vadd.f32 %v3711_v31, %v3543_v57 }
 0x588   : > { %v3375_v45 = vpop.f32.mrf.mxu2 }
 0x589   : > { %v3376_v21 = vadd.f32 %v3375_v45, %v3207_v52  ;;  %v3544_v27 = vpop.f32.mrf.mxu3 }
 0x58a   : > { %v3209_v59 = vpop.f32.mrf.mxu1 }
 0x58b   : > { %v3210_v61 = vadd.f32 %v3209_v59, %v8145_v53  ;;  %v3545_v4 = vadd.f32 %v3544_v27, %v3376_v21 }
 0x58c   : > { %v3716_v17 = vpop.f32.mrf.mxu0 }
 0x58d   : > { %v8870_v18 = vadd.f32 %v3713_v10, %v3545_v4  ;;  %3248 = vmatmul.bf16.gmra.mxu1 %v10446_v19  ;;  %3417 = vmatmul.bf16.gmra.mxu2 %v10447_v56  ;;  %v5941_v10 = vld [vmem:[%s9744_s3 + $0x28] sm:$0xff] }
 0x58e   : > { %3586 = vmatmul.bf16.gmra.mxu3 %v10448_v36  ;;  %4341 = vmatpush.bf16.msra.mxu2 %v5941_v10  ;;  %v10450_v36 = vld [vmem:[#allocation117_spill] sm:$0xff]  ;;  %v10454_v10 = vld [vmem:[#allocation124_spill] sm:$0xff] }
 0x58f   : > { %3755 = vmatmul.bf16.gmra.mxu0 %v10449_v11  ;;  %v10451_v11 = vld [vmem:[#allocation118_spill] sm:$0xff] }
 0x590   : > { %v3378_v31 = vpop.f32.mrf.mxu2 }
 0x591   : > { %v3379_v14 = vadd.f32 %v3378_v31, %v3210_v61  ;;  %v3547_v9 = vpop.f32.mrf.mxu3  ;;  %v5949_v61 = vld [vmem:[%s9744_s3 + $0x68] sm:$0xff] }
 0x592   : > { %v3211_v25 = vpop.f32.mrf.mxu1  ;;  %4510 = vmatpush.bf16.msra.mxu3 %v5949_v61  ;;  %v10452_v31 = vld [vmem:[#allocation119_spill] sm:$0xff] }
 0x593   : > { %v3212_v52 = vadd.f32 %v3211_v25, %v8169_v1  ;;  %v3548_v57 = vadd.f32 %v3547_v9, %v3379_v14  ;;  %v10453_v14 = vld [vmem:[#allocation26_spill] sm:$0xff] }
 0x594   : > { %v3718_v53 = vpop.f32.mrf.mxu0 }
 0x595   : > { %v8877_v45 = vadd.f32 %v3716_v17, %v3548_v57 }
 0x598   : > { %v3380_v21 = vpop.f32.mrf.mxu2 }
 0x599   : > { %v3381_v27 = vadd.f32 %v3380_v21, %v3212_v52  ;;  %v3549_v59 = vpop.f32.mrf.mxu3 }
 0x59a   : > { %v3214_v4 = vpop.f32.mrf.mxu1 }
 0x59b   : > { %v3215_v19 = vadd.f32 %v3214_v4, %v8180_v46  ;;  %v3550_v1 = vadd.f32 %v3549_v59, %v3381_v27 }
 0x59c   : > { %v3721_v56 = vpop.f32.mrf.mxu0 }
 0x59d   : > { %v8886_v17 = vadd.f32 %v3718_v53, %v3550_v1  ;;  %3253 = vmatmul.bf16.gmra.mxu1 %v10450_v36  ;;  %3422 = vmatmul.bf16.gmra.mxu2 %v10451_v11 }
 0x59e   : > { %3591 = vmatmul.bf16.gmra.mxu3 %v10452_v31  ;;  %v5955_v31 = vld [vmem:[%s9746_s5 + $0x18] sm:$0xff] }
 0x59f   : > { %3760 = vmatmul.bf16.gmra.mxu0 %v10453_v14 }
 0x5a0   : > { %v3383_v9 = vpop.f32.mrf.mxu2  ;;  %4910 = vmatpush.bf16.msra.mxu0 %v5955_v31 }
 0x5a1   : > { %v3384_v25 = vadd.f32 %v3383_v9, %v3215_v19  ;;  %v3552_v52 = vpop.f32.mrf.mxu3  ;;  %v10455_v9 = vld [vmem:[#allocation121_spill] sm:$0xff] }
 0x5a2   : > { %v3216_v57 = vpop.f32.mrf.mxu1 }
 0x5a3   : > { %v3217_v21 = vadd.f32 %v3216_v57, %v10454_v10  ;;  %v3553_v46 = vadd.f32 %v3552_v52, %v3384_v25  ;;  %v10456_v25 = vld [vmem:[#allocation122_spill] sm:$0xff] }
 0x5a4   : > { %v3723_v27 = vpop.f32.mrf.mxu0  ;;  %v10458_v52 = vld [vmem:[#allocation30_spill] sm:$0xff] }
 0x5a5   : > { %v8893_v59 = vadd.f32 %v3721_v56, %v3553_v46  ;;  %v10457_v56 = vld [vmem:[#allocation123_spill] sm:$0xff] }
 0x5a8   : > { %v3385_v53 = vpop.f32.mrf.mxu2 }
 0x5a9   : > { %v3386_v61 = vadd.f32 %v3385_v53, %v3217_v21  ;;  %v3554_v4 = vpop.f32.mrf.mxu3 }
 0x5aa   : > { %v3219_v1 = vpop.f32.mrf.mxu1 }
 0x5ab   : > { %v3220_v36 = vadd.f32 %v3219_v1, %v8209_v20  ;;  %v3555_v11 = vadd.f32 %v3554_v4, %v3386_v61 }
 0x5ac   : > { %v3726_v19 = vpop.f32.mrf.mxu0 }
 0x5ad   : > { %v8899_v14 = vadd.f32 %v3723_v27, %v3555_v11  ;;  %3258 = vmatmul.bf16.gmra.mxu1 %v10455_v9  ;;  %3427 = vmatmul.bf16.gmra.mxu2 %v10456_v25 }
 0x5ae   : > { %3596 = vmatmul.bf16.gmra.mxu3 %v10457_v56 }
 0x5af   : > { %3765 = vmatmul.bf16.gmra.mxu0 %v10458_v52  ;;  %v10459_v52 = vld [vmem:[#allocation126_spill] sm:$0xff] }
 0x5b0   : > { %v3388_v57 = vpop.f32.mrf.mxu2 }
 0x5b1   : > { %v3389_v10 = vadd.f32 %v3388_v57, %v3220_v36  ;;  %v3557_v20 = vpop.f32.mrf.mxu3  ;;  %v10460_v36 = vld [vmem:[#allocation127_spill] sm:$0xff]  ;;  %v10461_v57 = vld [vmem:[#allocation128_spill] sm:$0xff] }
 0x5b2   : > { %v3221_v21 = vpop.f32.mrf.mxu1 }
 0x5b3   : > { %v3222_v46 = vadd.f32 %v3221_v21, %v8221_v24  ;;  %v3558_v53 = vadd.f32 %v3557_v20, %v3389_v10  ;;  %v10462_v24 = vld [vmem:[#allocation3_spill] sm:$0xff] }
 0x5b4   : > { %v3728_v61 = vpop.f32.mrf.mxu0 }
 0x5b5   : > { %v8906_v4 = vadd.f32 %v3726_v19, %v3558_v53 }
 0x5b8   : > { %v3390_v27 = vpop.f32.mrf.mxu2 }
 0x5b9   : > { %v3391_v1 = vadd.f32 %v3390_v27, %v3222_v46  ;;  %v3559_v11 = vpop.f32.mrf.mxu3 }
 0x5ba   : > { %v3224_v9 = vpop.f32.mrf.mxu1 }
 0x5bb   : > { %v3225_v25 = vadd.f32 %v3224_v9, %v8232_v55  ;;  %v3560_v56 = vadd.f32 %v3559_v11, %v3391_v1 }
 0x5bc   : > { %v3731_v31 = vpop.f32.mrf.mxu0 }
 0x5bd   : > { %v8909_v43 = vadd.f32 %v3728_v61, %v3560_v56  ;;  %3263 = vmatmul.bf16.gmra.mxu1 %v10459_v52  ;;  %3432 = vmatmul.bf16.gmra.mxu2 %v10460_v36 }
 0x5be   : > { %3601 = vmatmul.bf16.gmra.mxu3 %v10461_v57 }
 0x5bf   : > { %3770 = vmatmul.bf16.gmra.mxu0 %v10462_v24  ;;  %v10463_v24 = vld [vmem:[#allocation129_spill] sm:$0xff] }
 0x5c0   : > { %v3393_v19 = vpop.f32.mrf.mxu2 }
 0x5c1   : > { %v3394_v10 = vadd.f32 %v3393_v19, %v3225_v25  ;;  %v3562_v20 = vpop.f32.mrf.mxu3  ;;  %v10464_v25 = vld [vmem:[#allocation130_spill] sm:$0xff]  ;;  %v10465_v19 = vld [vmem:[#allocation131_spill] sm:$0xff] }
 0x5c2   : > { %v3226_v21 = vpop.f32.mrf.mxu1 }
 0x5c3   : > { %v3227_v46 = vadd.f32 %v3226_v21, %v8244_v40  ;;  %v3563_v53 = vadd.f32 %v3562_v20, %v3394_v10 }
 0x5c4   : > { %v3733_v55 = vpop.f32.mrf.mxu0 }
 0x5c5   : > { %v8916_v27 = vadd.f32 %v3731_v31, %v3563_v53 }
 0x5c8   : > { %v3395_v61 = vpop.f32.mrf.mxu2 }
 0x5c9   : > { %v3396_v1 = vadd.f32 %v3395_v61, %v3227_v46  ;;  %v3564_v11 = vpop.f32.mrf.mxu3 }
 0x5ca   : > { %v3229_v9 = vpop.f32.mrf.mxu1 }
 0x5cb   : > { %v3230_v56 = vadd.f32 %v3229_v9, %v8261_v41  ;;  %v3565_v52 = vadd.f32 %v3564_v11, %v3396_v1 }
 0x5cc   : > { %v3736_v36 = vpop.f32.mrf.mxu0 }
 0x5cd   : > { %v8919_v57 = vadd.f32 %v3733_v55, %v3565_v52  ;;  %3268 = vmatmul.bf16.gmra.mxu1 %v10463_v24  ;;  %3437 = vmatmul.bf16.gmra.mxu2 %v10464_v25  ;;  %v5940_v55 = vld [vmem:[%s9744_s3 + $0x20] sm:$0xff]  ;;  %v10466_v24 = vld [vmem:[#allocation133_spill] sm:$0xff] }
 0x5ce   : > { %3606 = vmatmul.bf16.gmra.mxu3 %v10465_v19  ;;  %4342 = vmatpush.bf16.msra.mxu2 %v5940_v55  ;;  %v10467_v25 = vld [vmem:[#allocation134_spill] sm:$0xff]  ;;  %v10468_v19 = vld [vmem:[#allocation135_spill] sm:$0xff] }
 0x5cf   : > { %3775 = vmatmul.bf16.gmra.mxu0 %v8238_v35  ;;  %v5948_v35 = vld [vmem:[%s9744_s3 + $0x60] sm:$0xff] }
 0x5d0   : > { %v3398_v40 = vpop.f32.mrf.mxu2  ;;  %4511 = vmatpush.bf16.msra.mxu3 %v5948_v35 }
 0x5d1   : > { %v3399_v31 = vadd.f32 %v3398_v40, %v3230_v56  ;;  %v3567_v10 = vpop.f32.mrf.mxu3  ;;  %v10469_v40 = vld [vmem:[#allocation11_spill] sm:$0xff] }
 0x5d2   : > { %v3231_v20 = vpop.f32.mrf.mxu1 }
 0x5d3   : > { %v3232_v21 = vadd.f32 %v3231_v20, %v8285_v38  ;;  %v3568_v46 = vadd.f32 %v3567_v10, %v3399_v31 }
 0x5d4   : > { %v3738_v41 = vpop.f32.mrf.mxu0 }
 0x5d5   : > { %v8926_v53 = vadd.f32 %v3736_v36, %v3568_v46  ;;  %v10470_v46 = vld [vmem:[#allocation140_spill] sm:$0xff] }
 0x5d8   : > { %v3400_v61 = vpop.f32.mrf.mxu2 }
 0x5d9   : > { %v3401_v1 = vadd.f32 %v3400_v61, %v3232_v21  ;;  %v3569_v11 = vpop.f32.mrf.mxu3 }
 0x5da   : > { %v3234_v9 = vpop.f32.mrf.mxu1 }
 0x5db   : > { %v3235_v56 = vadd.f32 %v3234_v9, %v8296_v3  ;;  %v3570_v38 = vadd.f32 %v3569_v11, %v3401_v1 }
 0x5dc   : > { %v3741_v52 = vpop.f32.mrf.mxu0 }
 0x5dd   : > { %v8935_v36 = vadd.f32 %v3738_v41, %v3570_v38  ;;  %3273 = vmatmul.bf16.gmra.mxu1 %v10466_v24  ;;  %3442 = vmatmul.bf16.gmra.mxu2 %v10467_v25 }
 0x5de   : > { %3611 = vmatmul.bf16.gmra.mxu3 %v10468_v19 }
 0x5df   : > { %3780 = vmatmul.bf16.gmra.mxu0 %v10469_v40  ;;  %v10471_v40 = vld [vmem:[#allocation137_spill] sm:$0xff] }
 0x5e0   : > { %v3403_v31 = vpop.f32.mrf.mxu2 }
 0x5e1   : > { %v3404_v10 = vadd.f32 %v3403_v31, %v3235_v56  ;;  %v3572_v20 = vpop.f32.mrf.mxu3  ;;  %v10472_v56 = vld [vmem:[#allocation138_spill] sm:$0xff]  ;;  %v10473_v31 = vld [vmem:[#allocation139_spill] sm:$0xff] }
 0x5e2   : > { %v3236_v21 = vpop.f32.mrf.mxu1 }
 0x5e3   : > { %v3237_v55 = vadd.f32 %v3236_v21, %v10470_v46  ;;  %v3573_v3 = vadd.f32 %v3572_v20, %v3404_v10  ;;  %v10474_v10 = vld [vmem:[#allocation15_spill] sm:$0xff] }
 0x5e4   : > { %v3743_v61 = vpop.f32.mrf.mxu0 }
 0x5e5   : > { %v8942_v1 = vadd.f32 %v3741_v52, %v3573_v3 }
 0x5e8   : > { %v3405_v41 = vpop.f32.mrf.mxu2 }
 0x5e9   : > { %v3406_v11 = vadd.f32 %v3405_v41, %v3237_v55  ;;  %v3574_v35 = vpop.f32.mrf.mxu3 }
 0x5ea   : > { %v3239_v9 = vpop.f32.mrf.mxu1 }
 0x5eb   : > { %v3240_v38 = vadd.f32 %v3239_v9, %v8325_v58  ;;  %v3575_v24 = vadd.f32 %v3574_v35, %v3406_v11 }
 0x5ec   : > { %v3746_v25 = vpop.f32.mrf.mxu0 }
 0x5ed   : > { %v8945_v19 = vadd.f32 %v3743_v61, %v3575_v24  ;;  %3278 = vmatmul.bf16.gmra.mxu1 %v10471_v40  ;;  %3447 = vmatmul.bf16.gmra.mxu2 %v10472_v56 }
 0x5ee   : > { %3616 = vmatmul.bf16.gmra.mxu3 %v10473_v31 }
 0x5ef   : > { %3785 = vmatmul.bf16.gmra.mxu0 %v10474_v10  ;;  %v10475_v10 = vld [vmem:[#allocation142_spill] sm:$0xff] }
 0x5f0   : > { %v3408_v52 = vpop.f32.mrf.mxu2 }
 0x5f1   : > { %v3409_v20 = vadd.f32 %v3408_v52, %v3240_v38  ;;  %v3577_v21 = vpop.f32.mrf.mxu3  ;;  %v10476_v38 = vld [vmem:[#allocation143_spill] sm:$0xff]  ;;  %v10477_v52 = vld [vmem:[#allocation144_spill] sm:$0xff] }
 0x5f2   : > { %v3241_v46 = vpop.f32.mrf.mxu1 }
 0x5f3   : > { %v3242_v55 = vadd.f32 %v3241_v46, %v8337_v16  ;;  %v3578_v3 = vadd.f32 %v3577_v21, %v3409_v20  ;;  %v10478_v16 = vld [vmem:[#allocation19_spill] sm:$0xff] }
 0x5f4   : > { %v3748_v58 = vpop.f32.mrf.mxu0 }
 0x5f5   : > { %v8952_v41 = vadd.f32 %v3746_v25, %v3578_v3 }
 0x5f8   : > { %v3410_v61 = vpop.f32.mrf.mxu2 }
 0x5f9   : > { %v3411_v11 = vadd.f32 %v3410_v61, %v3242_v55  ;;  %v3579_v35 = vpop.f32.mrf.mxu3 }
 0x5fa   : > { %v3244_v9 = vpop.f32.mrf.mxu1 }
 0x5fb   : > { %v3245_v24 = vadd.f32 %v3244_v9, %v8348_v49  ;;  %v3580_v40 = vadd.f32 %v3579_v35, %v3411_v11 }
 0x5fc   : > { %v3751_v56 = vpop.f32.mrf.mxu0 }
 0x5fd   : > { %v8955_v31 = vadd.f32 %v3748_v58, %v3580_v40  ;;  %3283 = vmatmul.bf16.gmra.mxu1 %v10475_v10  ;;  %3452 = vmatmul.bf16.gmra.mxu2 %v10476_v38 }
 0x5fe   : > { %3621 = vmatmul.bf16.gmra.mxu3 %v10477_v52 }
 0x5ff   : > { %3790 = vmatmul.bf16.gmra.mxu0 %v10478_v16  ;;  %v10479_v16 = vld [vmem:[#allocation145_spill] sm:$0xff] }
 0x600   : > { %v3413_v25 = vpop.f32.mrf.mxu2 }
 0x601   : > { %v3414_v20 = vadd.f32 %v3413_v25, %v3245_v24  ;;  %v3582_v21 = vpop.f32.mrf.mxu3  ;;  %v10480_v24 = vld [vmem:[#allocation146_spill] sm:$0xff]  ;;  %v10481_v25 = vld [vmem:[#allocation147_spill] sm:$0xff] }
 0x602   : > { %v3246_v46 = vpop.f32.mrf.mxu1 }
 0x603   : > { %v3247_v55 = vadd.f32 %v3246_v46, %v8360_v54  ;;  %v3583_v3 = vadd.f32 %v3582_v21, %v3414_v20 }
 0x604   : > { %v3753_v49 = vpop.f32.mrf.mxu0 }
 0x605   : > { %v8962_v61 = vadd.f32 %v3751_v56, %v3583_v3 }
 0x608   : > { %v3415_v58 = vpop.f32.mrf.mxu2 }
 0x609   : > { %v3416_v11 = vadd.f32 %v3415_v58, %v3247_v55  ;;  %v3584_v35 = vpop.f32.mrf.mxu3 }
 0x60a   : > { %v3249_v9 = vpop.f32.mrf.mxu1 }
 0x60b   : > { %v3250_v40 = vadd.f32 %v3249_v9, %v8377_v0  ;;  %v3585_v10 = vadd.f32 %v3584_v35, %v3416_v11 }
 0x60c   : > { %v3756_v38 = vpop.f32.mrf.mxu0 }
 0x60d   : > { %v8965_v52 = vadd.f32 %v3753_v49, %v3585_v10  ;;  %3288 = vmatmul.bf16.gmra.mxu1 %v10479_v16  ;;  %3457 = vmatmul.bf16.gmra.mxu2 %v10480_v24  ;;  %v5939_v49 = vld [vmem:[%s9744_s3 + $0x18] sm:$0xff]  ;;  %v10483_v24 = vld [vmem:[#allocation150_spill] sm:$0xff] }
 0x60e   : > { %3626 = vmatmul.bf16.gmra.mxu3 %v10481_v25  ;;  %4343 = vmatpush.bf16.msra.mxu2 %v5939_v49  ;;  %v10482_v16 = vld [vmem:[#allocation149_spill] sm:$0xff]  ;;  %v10484_v25 = vld [vmem:[#allocation151_spill] sm:$0xff] }
 0x60f   : > { %3795 = vmatmul.bf16.gmra.mxu0 %v8354_v29  ;;  %v5947_v29 = vld [vmem:[%s9744_s3 + $0x58] sm:$0xff] }
 0x610   : > { %v3418_v54 = vpop.f32.mrf.mxu2  ;;  %4512 = vmatpush.bf16.msra.mxu3 %v5947_v29 }
 0x611   : > { %v3419_v56 = vadd.f32 %v3418_v54, %v3250_v40  ;;  %v3587_v20 = vpop.f32.mrf.mxu3  ;;  %v10485_v54 = vld [vmem:[#allocation27_spill] sm:$0xff] }
 0x612   : > { %v3251_v21 = vpop.f32.mrf.mxu1 }
 0x613   : > { %v3252_v46 = vadd.f32 %v3251_v21, %v8401_v44  ;;  %v3588_v55 = vadd.f32 %v3587_v20, %v3419_v56 }
 0x614   : > { %v3758_v0 = vpop.f32.mrf.mxu0 }
 0x615   : > { %v8972_v3 = vadd.f32 %v3756_v38, %v3588_v55  ;;  %v10486_v55 = vld [vmem:[#allocation156_spill] sm:$0xff] }
 0x618   : > { %v3420_v58 = vpop.f32.mrf.mxu2 }
 0x619   : > { %v3421_v11 = vadd.f32 %v3420_v58, %v3252_v46  ;;  %v3589_v35 = vpop.f32.mrf.mxu3 }
 0x61a   : > { %v3254_v9 = vpop.f32.mrf.mxu1 }
 0x61b   : > { %v3255_v40 = vadd.f32 %v3254_v9, %v8412_v47  ;;  %v3590_v44 = vadd.f32 %v3589_v35, %v3421_v11 }
 0x61c   : > { %v3761_v10 = vpop.f32.mrf.mxu0 }
 0x61d   : > { %v8981_v38 = vadd.f32 %v3758_v0, %v3590_v44  ;;  %3293 = vmatmul.bf16.gmra.mxu1 %v10482_v16  ;;  %3462 = vmatmul.bf16.gmra.mxu2 %v10483_v24  ;;  %v5954_v24 = vld [vmem:[%s9746_s5 + $0x10] sm:$0xff] }
 0x61e   : > { %3631 = vmatmul.bf16.gmra.mxu3 %v10484_v25  ;;  %4911 = vmatpush.bf16.msra.mxu0 %v5954_v24 }
 0x61f   : > { %3800 = vmatmul.bf16.gmra.mxu0 %v10485_v54  ;;  %v10487_v54 = vld [vmem:[#allocation153_spill] sm:$0xff] }
 0x620   : > { %v3423_v56 = vpop.f32.mrf.mxu2 }
 0x621   : > { %v3424_v20 = vadd.f32 %v3423_v56, %v3255_v40  ;;  %v3592_v21 = vpop.f32.mrf.mxu3  ;;  %v10488_v56 = vld [vmem:[#allocation154_spill] sm:$0xff] }
 0x622   : > { %v3256_v46 = vpop.f32.mrf.mxu1 }
 0x623   : > { %v3257_v49 = vadd.f32 %v3256_v46, %v10486_v55  ;;  %v3593_v47 = vadd.f32 %v3592_v21, %v3424_v20  ;;  %v10490_v20 = vld [vmem:[#allocation31_spill] sm:$0xff] }
 0x624   : > { %v3763_v58 = vpop.f32.mrf.mxu0 }
 0x625   : > { %v8988_v11 = vadd.f32 %v3761_v10, %v3593_v47  ;;  %v10489_v10 = vld [vmem:[#allocation155_spill] sm:$0xff] }
 0x628   : > { %v3425_v0 = vpop.f32.mrf.mxu2 }
 0x629   : > { %v3426_v35 = vadd.f32 %v3425_v0, %v3257_v49  ;;  %v3594_v29 = vpop.f32.mrf.mxu3 }
 0x62a   : > { %v3259_v9 = vpop.f32.mrf.mxu1 }
 0x62b   : > { %v3260_v44 = vadd.f32 %v3259_v9, %v8441_v60  ;;  %v3595_v16 = vadd.f32 %v3594_v29, %v3426_v35 }
 0x62c   : > { %v3766_v40 = vpop.f32.mrf.mxu0 }
 0x62d   : > { %v8994_v25 = vadd.f32 %v3763_v58, %v3595_v16  ;;  %3298 = vmatmul.bf16.gmra.mxu1 %v10487_v54  ;;  %3467 = vmatmul.bf16.gmra.mxu2 %v10488_v56 }
 0x62e   : > { %3636 = vmatmul.bf16.gmra.mxu3 %v10489_v10 }
 0x62f   : > { %3805 = vmatmul.bf16.gmra.mxu0 %v10490_v20  ;;  %v10491_v20 = vld [vmem:[#allocation158_spill] sm:$0xff] }
 0x630   : > { %v3428_v21 = vpop.f32.mrf.mxu2 }
 0x631   : > { %v3429_v46 = vadd.f32 %v3428_v21, %v3260_v44  ;;  %v3597_v60 = vpop.f32.mrf.mxu3  ;;  %v10492_v44 = vld [vmem:[#allocation159_spill] sm:$0xff]  ;;  %v10493_v21 = vld [vmem:[#allocation160_spill] sm:$0xff] }
 0x632   : > { %v3261_v55 = vpop.f32.mrf.mxu1 }
 0x633   : > { %v3262_v49 = vadd.f32 %v3261_v55, %v8453_v23  ;;  %v3598_v47 = vadd.f32 %v3597_v60, %v3429_v46  ;;  %v10494_v23 = vld [vmem:[#allocation4_spill] sm:$0xff] }
 0x634   : > { %v3768_v0 = vpop.f32.mrf.mxu0 }
 0x635   : > { %v9001_v35 = vadd.f32 %v3766_v40, %v3598_v47 }
 0x638   : > { %v3430_v58 = vpop.f32.mrf.mxu2 }
 0x639   : > { %v3431_v29 = vadd.f32 %v3430_v58, %v3262_v49  ;;  %v3599_v9 = vpop.f32.mrf.mxu3 }
 0x63a   : > { %v3264_v16 = vpop.f32.mrf.mxu1 }
 0x63b   : > { %v3265_v54 = vadd.f32 %v3264_v16, %v8464_v42  ;;  %v3600_v56 = vadd.f32 %v3599_v9, %v3431_v29 }
 0x63c   : > { %v3771_v24 = vpop.f32.mrf.mxu0 }
 0x63d   : > { %v9004_v10 = vadd.f32 %v3768_v0, %v3600_v56  ;;  %3303 = vmatmul.bf16.gmra.mxu1 %v10491_v20  ;;  %3472 = vmatmul.bf16.gmra.mxu2 %v10492_v44 }
 0x63e   : > { %3641 = vmatmul.bf16.gmra.mxu3 %v10493_v21 }
 0x63f   : > { %3810 = vmatmul.bf16.gmra.mxu0 %v10494_v23  ;;  %v10495_v23 = vld [vmem:[#allocation161_spill] sm:$0xff] }
 0x640   : > { %v3433_v40 = vpop.f32.mrf.mxu2 }
 0x641   : > { %v3434_v46 = vadd.f32 %v3433_v40, %v3265_v54  ;;  %v3602_v60 = vpop.f32.mrf.mxu3  ;;  %v10496_v54 = vld [vmem:[#allocation162_spill] sm:$0xff]  ;;  %v10497_v40 = vld [vmem:[#allocation163_spill] sm:$0xff] }
 0x642   : > { %v3266_v55 = vpop.f32.mrf.mxu1 }
 0x643   : > { %v3267_v49 = vadd.f32 %v3266_v55, %v8476_v8  ;;  %v3603_v47 = vadd.f32 %v3602_v60, %v3434_v46 }
 0x644   : > { %v3773_v42 = vpop.f32.mrf.mxu0 }
 0x645   : > { %v9011_v58 = vadd.f32 %v3771_v24, %v3603_v47 }
 0x648   : > { %v3435_v0 = vpop.f32.mrf.mxu2 }
 0x649   : > { %v3436_v29 = vadd.f32 %v3435_v0, %v3267_v49  ;;  %v3604_v9 = vpop.f32.mrf.mxu3 }
 0x64a   : > { %v3269_v16 = vpop.f32.mrf.mxu1 }
 0x64b   : > { %v3270_v56 = vadd.f32 %v3269_v16, %v8493_v30  ;;  %v3605_v20 = vadd.f32 %v3604_v9, %v3436_v29 }
 0x64c   : > { %v3776_v44 = vpop.f32.mrf.mxu0 }
 0x64d   : > { %v9014_v21 = vadd.f32 %v3773_v42, %v3605_v20  ;;  %3308 = vmatmul.bf16.gmra.mxu1 %v10495_v23  ;;  %3477 = vmatmul.bf16.gmra.mxu2 %v10496_v54  ;;  %v5938_v42 = vld [vmem:[%s9744_s3 + $0x10] sm:$0xff]  ;;  %v10501_v54 = vld [vmem:[#allocation165_spill] sm:$0xff] }
 0x64e   : > { %3646 = vmatmul.bf16.gmra.mxu3 %v10497_v40  ;;  %4344 = vmatpush.bf16.msra.mxu2 %v5938_v42  ;;  %v10502_v40 = vld [vmem:[#allocation166_spill] sm:$0xff]  ;;  %v10505_v42 = vld [vmem:[#allocation172_spill] sm:$0xff] }
 0x64f   : > { %3815 = vmatmul.bf16.gmra.mxu0 %v8470_v22  ;;  %v5946_v22 = vld [vmem:[%s9744_s3 + $0x50] sm:$0xff] }
 0x650   : > { %v3438_v8 = vpop.f32.mrf.mxu2  ;;  %4513 = vmatpush.bf16.msra.mxu3 %v5946_v22 }
 0x651   : > { %v3439_v24 = vadd.f32 %v3438_v8, %v3270_v56  ;;  %v3607_v46 = vpop.f32.mrf.mxu3  ;;  %v10499_v56 = vld [vmem:[#allocation16_spill] sm:$0xff]  ;;  %v10503_v8 = vld [vmem:[#allocation167_spill] sm:$0xff] }
 0x652   : > { %v3271_v60 = vpop.f32.mrf.mxu1 }
 0x653   : > { %v3272_v55 = vadd.f32 %v3271_v60, %v8517_v48  ;;  %v3608_v49 = vadd.f32 %v3607_v46, %v3439_v24  ;;  %v10504_v24 = vld [vmem:[#allocation12_spill] sm:$0xff] }
 0x654   : > { %v3778_v30 = vpop.f32.mrf.mxu0 }
 0x655   : > { %v9021_v47 = vadd.f32 %v3776_v44, %v3608_v49 }
 0x657   : > { %10498 = vst [vmem:[#allocation53_spill] sm:$0xff] %v9021_v47 }
 0x658   : > { %v3440_v0 = vpop.f32.mrf.mxu2 }
 0x659   : > { %v3441_v29 = vadd.f32 %v3440_v0, %v3272_v55  ;;  %v3609_v9 = vpop.f32.mrf.mxu3 }
 0x65a   : > { %v3274_v16 = vpop.f32.mrf.mxu1 }
 0x65b   : > { %v3275_v20 = vadd.f32 %v3274_v16, %v10499_v56  ;;  %v3610_v48 = vadd.f32 %v3609_v9, %v3441_v29 }
 0x65c   : > { %v3781_v23 = vpop.f32.mrf.mxu0 }
 0x65d   : > { %v9030_v44 = vadd.f32 %v3778_v30, %v3610_v48  ;;  %3313 = vmatmul.bf16.gmra.mxu1 %v10501_v54  ;;  %3482 = vmatmul.bf16.gmra.mxu2 %v10502_v40  ;;  %v10506_v54 = vld [vmem:[#allocation20_spill] sm:$0xff] }
 0x65e   : > { %3651 = vmatmul.bf16.gmra.mxu3 %v10503_v8 }
 0x65f   : > { %10500 = vst [vmem:[#allocation54_spill] sm:$0xff] %v9030_v44  ;;  %3820 = vmatmul.bf16.gmra.mxu0 %v10504_v24  ;;  %v10507_v24 = vld [vmem:[#allocation169_spill] sm:$0xff] }
 0x660   : > { %v3443_v46 = vpop.f32.mrf.mxu2 }
 0x661   : > { %v3444_v60 = vadd.f32 %v3443_v46, %v3275_v20  ;;  %v3612_v55 = vpop.f32.mrf.mxu3  ;;  %v10508_v20 = vld [vmem:[#allocation170_spill] sm:$0xff]  ;;  %v10509_v46 = vld [vmem:[#allocation171_spill] sm:$0xff] }
 0x662   : > { %v3276_v49 = vpop.f32.mrf.mxu1 }
 0x663   : > { %v3277_v0 = vadd.f32 %v3276_v49, %v10505_v42  ;;  %v3613_v16 = vadd.f32 %v3612_v55, %v3444_v60  ;;  %v10510_v60 = vld [vmem:[#allocation164_spill] sm:$0xff] }
 0x664   : > { %v3783_v29 = vpop.f32.mrf.mxu0 }
 0x665   : > { %v9037_v9 = vadd.f32 %v3781_v23, %v3613_v16 }
 0x668   : > { %v3445_v30 = vpop.f32.mrf.mxu2 }
 0x669   : > { %v3446_v22 = vadd.f32 %v3445_v30, %v3277_v0  ;;  %v3614_v56 = vpop.f32.mrf.mxu3  ;;  %v10511_v0 = vld [vmem:[#allocation69_spill] sm:$0xff] }
 0x66a   : > { %v3279_v48 = vpop.f32.mrf.mxu1 }
 0x66b   : > { %v3280_v40 = vadd.f32 %v3279_v48, %v10506_v54  ;;  %v3615_v44 = vadd.f32 %v3614_v56, %v3446_v22 }
 0x66c   : > { %v3786_v8 = vpop.f32.mrf.mxu0 }
 0x66d   : > { %v9040_v47 = vadd.f32 %v3783_v29, %v3615_v44  ;;  %3318 = vmatmul.bf16.gmra.mxu1 %v10507_v24  ;;  %3487 = vmatmul.bf16.gmra.mxu2 %v10508_v20  ;;  %v10514_v24 = vld [vmem:[#allocation24_spill] sm:$0xff] }
 0x66e   : > { %3656 = vmatmul.bf16.gmra.mxu3 %v10509_v46 }
 0x66f   : > { %3825 = vmatmul.bf16.gmra.mxu0 %v10510_v60  ;;  %v10515_v60 = vld [vmem:[#allocation174_spill] sm:$0xff] }
 0x670   : > { %v3448_v23 = vpop.f32.mrf.mxu2 }
 0x671   : > { %v3449_v55 = vadd.f32 %v3448_v23, %v3280_v40  ;;  %v3617_v49 = vpop.f32.mrf.mxu3  ;;  %v10516_v40 = vld [vmem:[#allocation175_spill] sm:$0xff]  ;;  %v10517_v23 = vld [vmem:[#allocation176_spill] sm:$0xff] }
 0x672   : > { %v3281_v42 = vpop.f32.mrf.mxu1 }
 0x673   : > { %v3282_v16 = vadd.f32 %v3281_v42, %v10511_v0  ;;  %v3618_v30 = vadd.f32 %v3617_v49, %v3449_v55  ;;  %v10518_v55 = vld [vmem:[#allocation168_spill] sm:$0xff] }
 0x674   : > { %v9047_v48 = vpop.f32.mrf.mxu0 }
 0x675   : > { %10512 = vst [vmem:[#allocation55_spill] sm:$0xff] %v9047_v48  ;;  %v9049_v22 = vadd.f32 %v3786_v8, %v3618_v30  ;;  %v10551_v48 = vld [vmem:[#allocation39_spill] sm:$0xff] }
 0x677   : > { %10513 = vst [vmem:[#allocation46_spill] sm:$0xff] %v9049_v22 }
 0x678   : > { %v3450_v44 = vpop.f32.mrf.mxu2 }
 0x679   : > { %v9051_v29 = vadd.f32 %v3450_v44, %v3282_v16  ;;  %v9053_v56 = vpop.f32.mrf.mxu3  ;;  %v10519_v16 = vld [vmem:[#allocation77_spill] sm:$0xff] }
 0x67a   : > { %v3284_v54 = vpop.f32.mrf.mxu1 }
 0x67b   : > { %v3285_v20 = vadd.f32 %v3284_v54, %v10514_v24  ;;  %v5937_v54 = vld [vmem:[%s9744_s3 + $0x8] sm:$0xff] }
 0x67c   : > { %v3791_v46 = vpop.f32.mrf.mxu0  ;;  %4345 = vmatpush.bf16.msra.mxu2 %v5937_v54 }
 0x67d   : > { %3323 = vmatmul.bf16.gmra.mxu1 %v10515_v60  ;;  %3492 = vmatmul.bf16.gmra.mxu2 %v10516_v40  ;;  %v5936_v40 = vld [vmem:[%s9744_s3] sm:$0xff] }
 0x67e   : > { %3661 = vmatmul.bf16.gmra.mxu3 %v10517_v23 }
 0x67f   : > { %3830 = vmatmul.bf16.gmra.mxu0 %v10518_v55 }
 0x680   : > { %v3453_v49 = vpop.f32.mrf.mxu2  ;;  %4346 = vmatpush.bf16.msra.mxu2 %v5936_v40 }
 0x681   : > { %v3454_v8 = vadd.f32 %v3453_v49, %v3285_v20  ;;  %v3622_v42 = vpop.f32.mrf.mxu3 }
 0x682   : > { %v3286_v0 = vpop.f32.mrf.mxu1 }
 0x683   : > { %v3287_v30 = vadd.f32 %v3286_v0, %v10519_v16  ;;  %v3623_v44 = vadd.f32 %v3622_v42, %v3454_v8  ;;  %v10524_v42 = vld [vmem:[#allocation178_spill] sm:$0xff]  ;;  %v10525_v0 = vld [vmem:[#allocation179_spill] sm:$0xff]  ;;  %v10527_v16 = vld [vmem:[#allocation173_spill] sm:$0xff] }
 0x684   : > { %v9061_v22 = vpop.f32.mrf.mxu0 }
 0x685   : > { %10520 = vst [vmem:[#allocation62_spill] sm:$0xff] %v9061_v22  ;;  %v9066_v24 = vadd.f32 %v3791_v46, %v3623_v44  ;;  %v10526_v46 = vld [vmem:[#allocation180_spill] sm:$0xff] }
 0x687   : > { %10521 = vst [vmem:[#allocation21_spill] sm:$0xff] %v9066_v24 }
 0x688   : > { %v3455_v60 = vpop.f32.mrf.mxu2 }
 0x689   : > { %v9071_v20 = vadd.f32 %v3455_v60, %v3287_v30  ;;  %v9073_v23 = vpop.f32.mrf.mxu3 }
 0x68a   : > { %10523 = vst [vmem:[#allocation60_spill] sm:$0xff] %v9073_v23  ;;  %v3289_v55 = vpop.f32.mrf.mxu1 }
 0x68b   : > { %10522 = vst [vmem:[#allocation59_spill] sm:$0xff] %v9071_v20  ;;  %v3290_v49 = vadd.f32 %v3289_v55, %v8657_v2 }
 0x68c   : > { %v3796_v8 = vpop.f32.mrf.mxu0 }
 0x68d   : > { %3328 = vmatmul.bf16.gmra.mxu1 %v10524_v42  ;;  %3497 = vmatmul.bf16.gmra.mxu2 %v10525_v0  ;;  %v5945_v0 = vld [vmem:[%s9744_s3 + $0x48] sm:$0xff] }
 0x68e   : > { %3666 = vmatmul.bf16.gmra.mxu3 %v10526_v46 }
 0x68f   : > { %3835 = vmatmul.bf16.gmra.mxu0 %v10527_v16  ;;  %4514 = vmatpush.bf16.msra.mxu3 %v5945_v0 }
 0x690   : > { %v3458_v44 = vpop.f32.mrf.mxu2 }
 0x691   : > { %v3459_v54 = vadd.f32 %v3458_v44, %v3290_v49  ;;  %v3627_v24 = vpop.f32.mrf.mxu3  ;;  %v10532_v49 = vld [vmem:[#allocation32_spill] sm:$0xff] }
 0x692   : > { %v3291_v30 = vpop.f32.mrf.mxu1 }
 0x693   : > { %v3292_v60 = vadd.f32 %v3291_v30, %v8669_v26  ;;  %v3628_v22 = vadd.f32 %v3627_v24, %v3459_v54  ;;  %v10533_v26 = vld [vmem:[#allocation182_spill] sm:$0xff]  ;;  %v10534_v24 = vld [vmem:[#allocation183_spill] sm:$0xff] }
 0x694   : > { %v9081_v23 = vpop.f32.mrf.mxu0 }
 0x695   : > { %10528 = vst [vmem:[#allocation61_spill] sm:$0xff] %v9081_v23  ;;  %v9083_v40 = vadd.f32 %v3796_v8, %v3628_v22  ;;  %v10535_v22 = vld [vmem:[#allocation184_spill] sm:$0xff] }
 0x696   : > { %v10536_v8 = vld [vmem:[#allocation28_spill] sm:$0xff] }
 0x697   : > { %10529 = vst [vmem:[#allocation52_spill] sm:$0xff] %v9083_v40  ;;  %v10537_v40 = vld [vmem:[#allocation83_spill] sm:$0xff] }
 0x698   : > { %v3460_v2 = vpop.f32.mrf.mxu2 }
 0x699   : > { %v9085_v55 = vadd.f32 %v3460_v2, %v3292_v60  ;;  %v9087_v42 = vpop.f32.mrf.mxu3 }
 0x69a   : > { %10531 = vst [vmem:[#allocation65_spill] sm:$0xff] %v9087_v42  ;;  %v3294_v46 = vpop.f32.mrf.mxu1 }
 0x69b   : > { %10530 = vst [vmem:[#allocation68_spill] sm:$0xff] %v9085_v55  ;;  %v3295_v16 = vadd.f32 %v3294_v46, %v10532_v49 }
 0x69c   : > { %v3801_v44 = vpop.f32.mrf.mxu0 }
 0x69d   : > { %3333 = vmatmul.bf16.gmra.mxu1 %v10533_v26  ;;  %3502 = vmatmul.bf16.gmra.mxu2 %v10534_v24 }
 0x69e   : > { %3671 = vmatmul.bf16.gmra.mxu3 %v10535_v22  ;;  %v10542_v22 = vld [vmem:[#allocation5_spill] sm:$0xff] }
 0x69f   : > { %3840 = vmatmul.bf16.gmra.mxu0 %v10536_v8 }
 0x6a0   : > { %v3463_v54 = vpop.f32.mrf.mxu2 }
 0x6a1   : > { %v3464_v30 = vadd.f32 %v3463_v54, %v3295_v16  ;;  %v3632_v60 = vpop.f32.mrf.mxu3  ;;  %v5953_v16 = vld [vmem:[%s9746_s5 + $0x8] sm:$0xff]  ;;  %v10543_v54 = vld [vmem:[#allocation38_spill] sm:$0xff] }
 0x6a2   : > { %v3296_v2 = vpop.f32.mrf.mxu1  ;;  %4912 = vmatpush.bf16.msra.mxu0 %v5953_v16 }
 0x6a3   : > { %v3297_v23 = vadd.f32 %v3296_v2, %v10537_v40  ;;  %v3633_v42 = vadd.f32 %v3632_v60, %v3464_v30  ;;  %v10544_v40 = vld [vmem:[#allocation2_spill] sm:$0xff]  ;;  %v10545_v60 = vld [vmem:[#allocation35_spill] sm:$0xff] }
 0x6a4   : > { %v9098_v55 = vpop.f32.mrf.mxu0 }
 0x6a5   : > { %10538 = vst [vmem:[#allocation66_spill] sm:$0xff] %v9098_v55  ;;  %v9100_v46 = vadd.f32 %v3801_v44, %v3633_v42 }
 0x6a7   : > { %10539 = vst [vmem:[#allocation67_spill] sm:$0xff] %v9100_v46 }
 0x6a8   : > { %v3465_v0 = vpop.f32.mrf.mxu2 }
 0x6a9   : > { %v9102_v49 = vadd.f32 %v3465_v0, %v3297_v23  ;;  %v9104_v26 = vpop.f32.mrf.mxu3 }
 0x6aa   : > { %10541 = vst [vmem:[#allocation70_spill] sm:$0xff] %v9104_v26  ;;  %v3299_v24 = vpop.f32.mrf.mxu1 }
 0x6ab   : > { %10540 = vst [vmem:[#allocation58_spill] sm:$0xff] %v9102_v49  ;;  %v3300_v20 = vadd.f32 %v3299_v24, %v10542_v22  ;;  %v10550_v49 = vld [vmem:[#allocation37_spill] sm:$0xff] }
 0x6ac   : > { %v3806_v8 = vpop.f32.mrf.mxu0 }
 0x6ad   : > { %5692 = vmatmul.msk.bf16.vlgmr.msra.gmra.mxu1 %vm1552_vm0, %v10543_v54  ;;  %4347 = vmatmul.bf16.vlgmr.msra.gmra.mxu2 %v10544_v40 }
 0x6b0   : > { %v3468_v42 = vpop.f32.mrf.mxu2 }
 0x6b1   : > { %v3469_v44 = vadd.f32 %v3468_v42, %v3300_v20  ;;  %v3637_v23 = vpop.f32.mrf.mxu3  ;;  %v10552_v20 = vld [vmem:[#allocation92_spill] sm:$0xff] }
 0x6b2   : > { %v3301_v30 = vpop.f32.mrf.mxu1 }
 0x6b3   : > { %v3302_v2 = vadd.f32 %v3301_v30, %v10545_v60  ;;  %v3638_v0 = vadd.f32 %v3637_v23, %v3469_v44 }
 0x6b4   : > { %v9114_v46 = vpop.f32.mrf.mxu0 }
 0x6b5   : > { %10546 = vst [vmem:[#allocation76_spill] sm:$0xff] %v9114_v46  ;;  %v9116_v24 = vadd.f32 %v3806_v8, %v3638_v0  ;;  %v10553_v8 = vld [vmem:[#allocation85_spill] sm:$0xff] }
 0x6b7   : > { %10547 = vst [vmem:[#allocation72_spill] sm:$0xff] %v9116_v24 }
 0x6b8   : > { %v3470_v22 = vpop.f32.mrf.mxu2 }
 0x6b9   : > { %v9118_v55 = vadd.f32 %v3470_v22, %v3302_v2  ;;  %v9120_v26 = vpop.f32.mrf.mxu3 }
 0x6ba   : > { %10549 = vst [vmem:[#allocation74_spill] sm:$0xff] %v9120_v26  ;;  %v3304_v54 = vpop.f32.mrf.mxu1 }
 0x6bb   : > { %10548 = vst [vmem:[#allocation73_spill] sm:$0xff] %v9118_v55  ;;  %v3305_v40 = vadd.f32 %v3304_v54, %v10550_v49  ;;  %v10558_v55 = vld [vmem:[#allocation45_spill] sm:$0xff] }
 0x6bc   : > { %v3811_v16 = vpop.f32.mrf.mxu0 }
 0x6bd   : > { %5693 = vmatmul.msk.bf16.gmra.mxu1 %vm1552_vm0, %v10551_v48  ;;  %4352 = vmatmul.bf16.gmra.mxu2 %v10552_v20  ;;  %v10557_v48 = vld [vmem:[#allocation9_spill] sm:$0xff] }
 0x6c0   : > { %v3473_v42 = vpop.f32.mrf.mxu2 }
 0x6c1   : > { %v3474_v44 = vadd.f32 %v3473_v42, %v3305_v40  ;;  %v3642_v23 = vpop.f32.mrf.mxu3  ;;  %v10559_v40 = vld [vmem:[#allocation186_spill] sm:$0xff] }
 0x6c2   : > { %v3306_v30 = vpop.f32.mrf.mxu1 }
 0x6c3   : > { %v3307_v60 = vadd.f32 %v3306_v30, %v10553_v8  ;;  %v3643_v0 = vadd.f32 %v3642_v23, %v3474_v44 }
 0x6c4   : > { %v9127_v2 = vpop.f32.mrf.mxu0 }
 0x6c5   : > { %10554 = vst [vmem:[#allocation25_spill] sm:$0xff] %v9127_v2  ;;  %v9129_v22 = vadd.f32 %v3811_v16, %v3643_v0  ;;  %v10560_v16 = vld [vmem:[#allocation41_spill] sm:$0xff] }
 0x6c7   : > { %10555 = vst [vmem:[#allocation78_spill] sm:$0xff] %v9129_v22 }
 0x6c8   : > { %v3475_v24 = vpop.f32.mrf.mxu2 }
 0x6c9   : > { %v9131_v46 = vadd.f32 %v3475_v24, %v3307_v60  ;;  %v9133_v49 = vpop.f32.mrf.mxu3 }
 0x6ca   : > { %10556 = vst [vmem:[#allocation80_spill] sm:$0xff] %v9133_v49  ;;  %v3309_v54 = vpop.f32.mrf.mxu1  ;;  %v10572_v49 = vld [vmem:[#allocation57_spill] sm:$0xff] }
 0x6cb   : > { %v3310_v26 = vadd.f32 %v3309_v54, %v10557_v48 }
 0x6cc   : > { %v3816_v20 = vpop.f32.mrf.mxu0 }
 0x6cd   : > { %5694 = vmatmul.msk.bf16.gmra.mxu1 %vm1552_vm0, %v10558_v55  ;;  %4357 = vmatmul.bf16.gmra.mxu2 %v10559_v40  ;;  %v5944_v55 = vld [vmem:[%s9744_s3 + $0x40] sm:$0xff] }
 0x6ce   : > { %4515 = vmatpush.bf16.msra.mxu3 %v5944_v55 }
 0x6d0   : > { %v3478_v42 = vpop.f32.mrf.mxu2 }
 0x6d1   : > { %v3479_v44 = vadd.f32 %v3478_v42, %v3310_v26  ;;  %v3647_v23 = vpop.f32.mrf.mxu3  ;;  %v10565_v42 = vld [vmem:[#allocation51_spill] sm:$0xff] }
 0x6d2   : > { %v3311_v30 = vpop.f32.mrf.mxu1 }
 0x6d3   : > { %v3312_v8 = vadd.f32 %v3311_v30, %v10560_v16  ;;  %v3648_v0 = vadd.f32 %v3647_v23, %v3479_v44  ;;  %v10566_v44 = vld [vmem:[#allocation187_spill] sm:$0xff] }
 0x6d4   : > { %v9140_v24 = vpop.f32.mrf.mxu0  ;;  %v10567_v16 = vld [vmem:[#allocation43_spill] sm:$0xff] }
 0x6d5   : > { %10561 = vst [vmem:[#allocation81_spill] sm:$0xff] %v9140_v24  ;;  %v9142_v60 = vadd.f32 %v3816_v20, %v3648_v0 }
 0x6d7   : > { %10562 = vst [vmem:[#allocation82_spill] sm:$0xff] %v9142_v60 }
 0x6d8   : > { %v3480_v22 = vpop.f32.mrf.mxu2 }
 0x6d9   : > { %v9144_v2 = vadd.f32 %v3480_v22, %v3312_v8  ;;  %v9146_v54 = vpop.f32.mrf.mxu3 }
 0x6da   : > { %10564 = vst [vmem:[#allocation79_spill] sm:$0xff] %v9146_v54  ;;  %v3314_v48 = vpop.f32.mrf.mxu1 }
 0x6db   : > { %10563 = vst [vmem:[#allocation29_spill] sm:$0xff] %v9144_v2  ;;  %v3315_v26 = vadd.f32 %v3314_v48, %v8736_v7 }
 0x6dc   : > { %v3821_v40 = vpop.f32.mrf.mxu0 }
 0x6dd   : > { %5695 = vmatmul.msk.bf16.gmra.mxu1 %vm1552_vm0, %v10565_v42  ;;  %4362 = vmatmul.bf16.gmra.mxu2 %v10566_v44  ;;  %v10571_v42 = vld [vmem:[#allocation50_spill] sm:$0xff] }
 0x6e0   : > { %v3483_v20 = vpop.f32.mrf.mxu2 }
 0x6e1   : > { %v3484_v23 = vadd.f32 %v3483_v20, %v3315_v26  ;;  %v3652_v22 = vpop.f32.mrf.mxu3  ;;  %v10573_v26 = vld [vmem:[#allocation188_spill] sm:$0xff] }
 0x6e2   : > { %v3316_v30 = vpop.f32.mrf.mxu1 }
 0x6e3   : > { %v3317_v8 = vadd.f32 %v3316_v30, %v10567_v16  ;;  %v3653_v0 = vadd.f32 %v3652_v22, %v3484_v23 }
 0x6e4   : > { %v9156_v60 = vpop.f32.mrf.mxu0 }
 0x6e5   : > { %10568 = vst [vmem:[#allocation88_spill] sm:$0xff] %v9156_v60  ;;  %v9158_v24 = vadd.f32 %v3821_v40, %v3653_v0  ;;  %v10574_v40 = vld [vmem:[#allocation13_spill] sm:$0xff] }
 0x6e7   : > { %10569 = vst [vmem:[#allocation89_spill] sm:$0xff] %v9158_v24 }
 0x6e8   : > { %v3485_v54 = vpop.f32.mrf.mxu2 }
 0x6e9   : > { %v9160_v7 = vadd.f32 %v3485_v54, %v3317_v8  ;;  %v9162_v55 = vpop.f32.mrf.mxu3 }
 0x6ea   : > { %10570 = vst [vmem:[#allocation90_spill] sm:$0xff] %v9162_v55  ;;  %v3319_v48 = vpop.f32.mrf.mxu1  ;;  %v10577_v55 = vld [vmem:[#allocation63_spill] sm:$0xff] }
 0x6eb   : > { %v3320_v2 = vadd.f32 %v3319_v48, %v10571_v42 }
 0x6ec   : > { %v3826_v44 = vpop.f32.mrf.mxu0 }
 0x6ed   : > { %5696 = vmatmul.msk.bf16.gmra.mxu1 %vm1552_vm0, %v10572_v49  ;;  %4367 = vmatmul.bf16.gmra.mxu2 %v10573_v26 }
 0x6f0   : > { %v3488_v20 = vpop.f32.mrf.mxu2 }
 0x6f1   : > { %v3489_v23 = vadd.f32 %v3488_v20, %v3320_v2  ;;  %v3657_v22 = vpop.f32.mrf.mxu3  ;;  %v10578_v2 = vld [vmem:[#allocation189_spill] sm:$0xff] }
 0x6f2   : > { %v3321_v30 = vpop.f32.mrf.mxu1 }
 0x6f3   : > { %v3322_v16 = vadd.f32 %v3321_v30, %v10574_v40  ;;  %v3658_v0 = vadd.f32 %v3657_v22, %v3489_v23 }
 0x6f4   : > { %v9169_v54 = vpop.f32.mrf.mxu0 }
 0x6f5   : > { %10575 = vst [vmem:[#allocation84_spill] sm:$0xff] %v9169_v54  ;;  %v9171_v8 = vadd.f32 %v3826_v44, %v3658_v0 }
 0x6f7   : > { %10576 = vst [vmem:[#allocation93_spill] sm:$0xff] %v9171_v8 }
 0x6f8   : > { %v3490_v24 = vpop.f32.mrf.mxu2 }
 0x6f9   : > { %v9173_v60 = vadd.f32 %v3490_v24, %v3322_v16  ;;  %v9175_v48 = vpop.f32.mrf.mxu3 }
 0x6fa   : > { %v3324_v42 = vpop.f32.mrf.mxu1 }
 0x6fb   : > { %v3325_v49 = vadd.f32 %v3324_v42, %v8764_v28 }
 0x6fc   : > { %v3831_v26 = vpop.f32.mrf.mxu0 }
 0x6fd   : > { %5697 = vmatmul.msk.bf16.gmra.mxu1 %vm1552_vm0, %v10577_v55  ;;  %4372 = vmatmul.bf16.gmra.mxu2 %v10578_v2  ;;  %v10582_v55 = vld [vmem:[#allocation49_spill] sm:$0xff]  ;;  %v10583_v2 = vld [vmem:[#allocation64_spill] sm:$0xff] }
 0x700   : > { %v3493_v20 = vpop.f32.mrf.mxu2 }
 0x701   : > { %v3494_v23 = vadd.f32 %v3493_v20, %v3325_v49  ;;  %v3662_v22 = vpop.f32.mrf.mxu3  ;;  %v10584_v49 = vld [vmem:[#allocation190_spill] sm:$0xff] }
 0x702   : > { %v3326_v30 = vpop.f32.mrf.mxu1 }
 0x703   : > { %v3327_v44 = vadd.f32 %v3326_v30, %v8768_v6  ;;  %v3663_v40 = vadd.f32 %v3662_v22, %v3494_v23 }
 0x704   : > { %v9182_v24 = vpop.f32.mrf.mxu0 }
 0x705   : > { %10579 = vst [vmem:[#allocation94_spill] sm:$0xff] %v9182_v24  ;;  %v9184_v16 = vadd.f32 %v3831_v26, %v3663_v40  ;;  %v10585_v26 = vld [vmem:[#allocation40_spill] sm:$0xff] }
 0x707   : > { %10580 = vst [vmem:[#allocation95_spill] sm:$0xff] %v9184_v16 }
 0x708   : > { %v3495_v0 = vpop.f32.mrf.mxu2 }
 0x709   : > { %v9186_v8 = vadd.f32 %v3495_v0, %v3327_v44  ;;  %v9188_v28 = vpop.f32.mrf.mxu3 }
 0x70a   : > { %10581 = vst [vmem:[#allocation86_spill] sm:$0xff] %v9188_v28  ;;  %v3329_v42 = vpop.f32.mrf.mxu1 }
 0x70b   : > { %v3330_v54 = vadd.f32 %v3329_v42, %v10582_v55 }
 0x70c   : > { %v3836_v20 = vpop.f32.mrf.mxu0 }
 0x70d   : > { %5698 = vmatmul.msk.bf16.gmra.mxu1 %vm1552_vm0, %v10583_v2  ;;  %4377 = vmatmul.bf16.gmra.mxu2 %v10584_v49  ;;  %v10589_v49 = vld [vmem:[#allocation71_spill] sm:$0xff] }
 0x710   : > { %v3498_v6 = vpop.f32.mrf.mxu2 }
 0x711   : > { %v3499_v23 = vadd.f32 %v3498_v6, %v3330_v54  ;;  %v3667_v22 = vpop.f32.mrf.mxu3  ;;  %v10590_v54 = vld [vmem:[#allocation191_spill] sm:$0xff] }
 0x712   : > { %v3331_v30 = vpop.f32.mrf.mxu1 }
 0x713   : > { %v3332_v40 = vadd.f32 %v3331_v30, %v10585_v26  ;;  %v3668_v16 = vadd.f32 %v3667_v22, %v3499_v23 }
 0x714   : > { %v9197_v24 = vpop.f32.mrf.mxu0 }
 0x715   : > { %v9195_v44 = vadd.f32 %v3836_v20, %v3668_v16  ;;  %10587 = vst [vmem:[#allocation98_spill] sm:$0xff] %v9197_v24 }
 0x717   : > { %10586 = vst [vmem:[#allocation97_spill] sm:$0xff] %v9195_v44 }
 0x718   : > { %v3500_v0 = vpop.f32.mrf.mxu2 }
 0x719   : > { %v9199_v28 = vadd.f32 %v3500_v0, %v3332_v40  ;;  %v9201_v42 = vpop.f32.mrf.mxu3 }
 0x71a   : > { %10588 = vst [vmem:[#allocation99_spill] sm:$0xff] %v9201_v42  ;;  %v3334_v55 = vpop.f32.mrf.mxu1 }
 0x71b   : > { %v3335_v2 = vadd.f32 %v3334_v55, %v8798_v63  ;;  %v10593_v63 = vld [vmem:[#allocation33_spill] sm:$0xff]  ;;  %v10594_v55 = vld [vmem:[#allocation192_spill] sm:$0xff] }
 0x71c   : > { %v3841_v20 = vpop.f32.mrf.mxu0 }
 0x71d   : > { %5699 = vmatmul.msk.bf16.gmra.mxu1 %vm1552_vm0, %v10589_v49  ;;  %4382 = vmatmul.bf16.gmra.mxu2 %v10590_v54 }
 0x720   : > { %v3503_v6 = vpop.f32.mrf.mxu2 }
 0x721   : > { %v3504_v30 = vadd.f32 %v3503_v6, %v3335_v2  ;;  %v3672_v23 = vpop.f32.mrf.mxu3  ;;  %v5952_v2 = vld [vmem:[%s9746_s5] sm:$0xff] }
 0x722   : > { %v3336_v16 = vpop.f32.mrf.mxu1  ;;  %4913 = vmatpush.bf16.msra.mxu0 %v5952_v2 }
 0x723   : > { %v3337_v22 = vadd.f32 %v3336_v16, %v8802_v15  ;;  %v3673_v26 = vadd.f32 %v3672_v23, %v3504_v30 }
 0x725   : > { %v9208_v40 = vadd.f32 %v3841_v20, %v3673_v26  ;;  %v10595_v26 = vld [vmem:[#allocation91_spill] sm:$0xff] }
 0x727   : > { %10591 = vst [vmem:[#allocation87_spill] sm:$0xff] %v9208_v40 }
 0x728   : > { %v3505_v0 = vpop.f32.mrf.mxu2 }
 0x729   : > { %v9210_v44 = vadd.f32 %v3505_v0, %v3337_v22  ;;  %v10596_v0 = vld [vmem:[#allocation125_spill] sm:$0xff] }
 0x72a   : > { %v3855_v24 = vpop.f32.mrf.mxu1 }
 0x72b   : > { %10592 = vst [vmem:[#allocation101_spill] sm:$0xff] %v9210_v44  ;;  %v3856_v15 = vadd.f32 %v3855_v24, %v8811_v13 }
 0x72d   : > { %5700 = vmatmul.msk.bf16.gmra.mxu1 %vm1552_vm0, %v10593_v63  ;;  %4387 = vmatmul.bf16.gmra.mxu2 %v10594_v55  ;;  %v4016_v30 = vmax.f32 %v3856_v15, 0.0 }
 0x730   : > { %v9218_v49 = vpop.f32.mrf.mxu2 }
 0x732   : > { %v3857_v54 = vpop.f32.mrf.mxu1 }
 0x733   : > { %v3858_v6 = vadd.f32 %v3857_v54, %v8814_v34 }
 0x735   : > { %v4018_v23 = vmax.f32 %v3858_v6, 0.0 }
 0x737   : > { %v4144_v16 = vpack.c.bf16 %v4018_v23, %v4016_v30  ;;  %v10597_v30 = vld [vmem:[#allocation6_spill] sm:$0xff] }
 0x738   : > { %v9222_v20 = vpop.f32.mrf.mxu2  ;;  %v10598_v23 = vld [vmem:[#allocation194_spill] sm:$0xff] }
 0x739   : > { %4516 = vmatmul.bf16.vlgmr.msra.gmra.mxu3 %v4144_v16 }
 0x73a   : > { %v3860_v22 = vpop.f32.mrf.mxu1 }
 0x73b   : > { %v3861_v55 = vadd.f32 %v3860_v22, %v8821_v12 }
 0x73d   : > { %5701 = vmatmul.msk.bf16.gmra.mxu1 %vm1552_vm0, %v10595_v26  ;;  %4392 = vmatmul.bf16.gmra.mxu2 %v10596_v0  ;;  %v4020_v34 = vmax.f32 %v3861_v55, 0.0 }
 0x740   : > { %v9227_v63 = vpop.f32.mrf.mxu2 }
 0x742   : > { %v3862_v13 = vpop.f32.mrf.mxu1 }
 0x743   : > { %v3863_v24 = vadd.f32 %v3862_v13, %v8824_v39 }
 0x745   : > { %v4022_v2 = vmax.f32 %v3863_v24, 0.0 }
 0x747   : > { %v4146_v15 = vpack.c.bf16 %v4022_v2, %v4020_v34  ;;  %v10599_v34 = vld [vmem:[#allocation96_spill] sm:$0xff]  ;;  %v10600_v2 = vld [vmem:[#allocation195_spill] sm:$0xff] }
 0x748   : > { %v9231_v54 = vpop.f32.mrf.mxu2 }
 0x749   : > { %4521 = vmatmul.bf16.gmra.mxu3 %v4146_v15 }
 0x74a   : > { %v3865_v6 = vpop.f32.mrf.mxu1 }
 0x74b   : > { %v3866_v26 = vadd.f32 %v3865_v6, %v8831_v50 }
 0x74d   : > { %5702 = vmatmul.msk.bf16.gmra.mxu1 %vm1552_vm0, %v10597_v30  ;;  %4397 = vmatmul.bf16.gmra.mxu2 %v10598_v23  ;;  %v4024_v39 = vmax.f32 %v3866_v26, 0.0 }
 0x750   : > { %v9236_v16 = vpop.f32.mrf.mxu2 }
 0x752   : > { %v3867_v12 = vpop.f32.mrf.mxu1 }
 0x753   : > { %v3868_v22 = vadd.f32 %v3867_v12, %v8840_v37 }
 0x755   : > { %v4026_v0 = vmax.f32 %v3868_v22, 0.0 }
 0x757   : > { %v4148_v55 = vpack.c.bf16 %v4026_v0, %v4024_v39  ;;  %v10601_v39 = vld [vmem:[#allocation100_spill] sm:$0xff] }
 0x758   : > { %v9240_v13 = vpop.f32.mrf.mxu2  ;;  %v10602_v0 = vld [vmem:[#allocation196_spill] sm:$0xff] }
 0x759   : > { %4526 = vmatmul.bf16.gmra.mxu3 %v4148_v55 }
 0x75a   : > { %v3870_v24 = vpop.f32.mrf.mxu1 }
 0x75b   : > { %v3871_v30 = vadd.f32 %v3870_v24, %v8847_v33 }
 0x75d   : > { %5703 = vmatmul.msk.bf16.gmra.mxu1 %vm1552_vm0, %v10599_v34  ;;  %4402 = vmatmul.bf16.gmra.mxu2 %v10600_v2  ;;  %v4028_v37 = vmax.f32 %v3871_v30, 0.0 }
 0x760   : > { %v9245_v15 = vpop.f32.mrf.mxu2 }
 0x762   : > { %v3872_v50 = vpop.f32.mrf.mxu1 }
 0x763   : > { %v3873_v6 = vadd.f32 %v3872_v50, %v8850_v32 }
 0x765   : > { %v4030_v23 = vmax.f32 %v3873_v6, 0.0 }
 0x767   : > { %v4150_v26 = vpack.c.bf16 %v4030_v23, %v4028_v37  ;;  %v10603_v37 = vld [vmem:[#allocation104_spill] sm:$0xff]  ;;  %v10604_v23 = vld [vmem:[#allocation141_spill] sm:$0xff] }
 0x768   : > { %v9249_v12 = vpop.f32.mrf.mxu2 }
 0x769   : > { %4531 = vmatmul.bf16.gmra.mxu3 %v4150_v26 }
 0x76a   : > { %v3875_v22 = vpop.f32.mrf.mxu1 }
 0x76b   : > { %v3876_v34 = vadd.f32 %v3875_v22, %v8857_v51 }
 0x76d   : > { %5704 = vmatmul.msk.bf16.gmra.mxu1 %vm1552_vm0, %v10601_v39  ;;  %4407 = vmatmul.bf16.gmra.mxu2 %v10602_v0  ;;  %v4032_v32 = vmax.f32 %v3876_v34, 0.0 }
 0x770   : > { %v9254_v55 = vpop.f32.mrf.mxu2 }
 0x772   : > { %v3877_v33 = vpop.f32.mrf.mxu1 }
 0x773   : > { %v3878_v24 = vadd.f32 %v3877_v33, %v8860_v62 }
 0x775   : > { %v4034_v2 = vmax.f32 %v3878_v24, 0.0 }
 0x777   : > { %v4152_v30 = vpack.c.bf16 %v4034_v2, %v4032_v32  ;;  %v10605_v32 = vld [vmem:[#allocation108_spill] sm:$0xff]  ;;  %v10606_v2 = vld [vmem:[#allocation198_spill] sm:$0xff] }
 0x778   : > { %v9258_v50 = vpop.f32.mrf.mxu2 }
 0x779   : > { %4536 = vmatmul.bf16.gmra.mxu3 %v4152_v30 }
 0x77a   : > { %v3880_v6 = vpop.f32.mrf.mxu1 }
 0x77b   : > { %v3881_v39 = vadd.f32 %v3880_v6, %v8867_v5 }
 0x77d   : > { %5705 = vmatmul.msk.bf16.gmra.mxu1 %vm1552_vm0, %v10603_v37  ;;  %4412 = vmatmul.bf16.gmra.mxu2 %v10604_v23  ;;  %v4036_v62 = vmax.f32 %v3881_v39, 0.0 }
 0x780   : > { %v9263_v26 = vpop.f32.mrf.mxu2 }
 0x782   : > { %v3882_v51 = vpop.f32.mrf.mxu1 }
 0x783   : > { %v3883_v22 = vadd.f32 %v3882_v51, %v8870_v18 }
 0x785   : > { %v4038_v0 = vmax.f32 %v3883_v22, 0.0 }
 0x787   : > { %v4154_v34 = vpack.c.bf16 %v4038_v0, %v4036_v62  ;;  %v10607_v62 = vld [vmem:[#allocation112_spill] sm:$0xff]  ;;  %v10608_v0 = vld [vmem:[#allocation199_spill] sm:$0xff] }
 0x788   : > { %v9267_v33 = vpop.f32.mrf.mxu2 }
 0x789   : > { %4541 = vmatmul.bf16.gmra.mxu3 %v4154_v34 }
 0x78a   : > { %v3885_v24 = vpop.f32.mrf.mxu1 }
 0x78b   : > { %v3886_v37 = vadd.f32 %v3885_v24, %v8877_v45 }
 0x78d   : > { %5706 = vmatmul.msk.bf16.gmra.mxu1 %vm1552_vm0, %v10605_v32  ;;  %4417 = vmatmul.bf16.gmra.mxu2 %v10606_v2  ;;  %v4040_v18 = vmax.f32 %v3886_v37, 0.0 }
 0x790   : > { %v9272_v30 = vpop.f32.mrf.mxu2 }
 0x792   : > { %v3887_v5 = vpop.f32.mrf.mxu1 }
 0x793   : > { %v3888_v6 = vadd.f32 %v3887_v5, %v8886_v17 }
 0x795   : > { %v4042_v23 = vmax.f32 %v3888_v6, 0.0 }
 0x797   : > { %v4156_v39 = vpack.c.bf16 %v4042_v23, %v4040_v18  ;;  %v10609_v18 = vld [vmem:[#allocation116_spill] sm:$0xff] }
 0x798   : > { %v9276_v51 = vpop.f32.mrf.mxu2  ;;  %v10610_v23 = vld [vmem:[#allocation200_spill] sm:$0xff] }
 0x799   : > { %4546 = vmatmul.bf16.gmra.mxu3 %v4156_v39 }
 0x79a   : > { %v3890_v22 = vpop.f32.mrf.mxu1 }
 0x79b   : > { %v3891_v34 = vadd.f32 %v3890_v22, %v8893_v59 }
 0x79d   : > { %5707 = vmatmul.msk.bf16.gmra.mxu1 %vm1552_vm0, %v10607_v62  ;;  %4422 = vmatmul.bf16.gmra.mxu2 %v10608_v0  ;;  %v4044_v17 = vmax.f32 %v3891_v34, 0.0  ;;  %v9292_v62 = vpop.f32.mrf.mxu3 }
 0x79e   : > { %10611 = vst [vmem:[#allocation102_spill] sm:$0xff] %v9292_v62 }
 0x7a0   : > { %v9282_v2 = vpop.f32.mrf.mxu2 }
 0x7a2   : > { %v3892_v32 = vpop.f32.mrf.mxu1 }
 0x7a3   : > { %v3893_v45 = vadd.f32 %v3892_v32, %v8899_v14 }
 0x7a5   : > { %v4046_v24 = vmax.f32 %v3893_v45, 0.0 }
 0x7a7   : > { %v4158_v37 = vpack.c.bf16 %v4046_v24, %v4044_v17  ;;  %v9299_v24 = vld [vmem:[%s9745_s4] ss:$0 sm:$0xff] }
 0x7a8   : > { %v9285_v6 = vpop.f32.mrf.mxu2 }
 0x7a9   : > { %4551 = vmatmul.bf16.gmra.mxu3 %v4158_v37  ;;  %v10612_v37 = vld [vmem:[#allocation120_spill] sm:$0xff] }
 0x7aa   : > { %v3895_v5 = vpop.f32.mrf.mxu1 }
 0x7ab   : > { %v3896_v39 = vadd.f32 %v3895_v5, %v8906_v4  ;;  %v10613_v4 = vld [vmem:[#allocation157_spill] sm:$0xff] }
 0x7ad   : > { %5708 = vmatmul.msk.bf16.gmra.mxu1 %vm1552_vm0, %v10609_v18  ;;  %4427 = vmatmul.bf16.gmra.mxu2 %v10610_v23  ;;  %v4048_v14 = vmax.f32 %v3896_v39, 0.0  ;;  %v4351_v39 = vadd.f32 %v9299_v24, %v9222_v20  ;;  %v10614_v20 = vld [vmem:[#allocation7_spill] sm:$0xff] }
 0x7b0   : > { %v9294_v34 = vpop.f32.mrf.mxu2 }
 0x7b2   : > { %v3897_v59 = vpop.f32.mrf.mxu1 }
 0x7b3   : > { %v3898_v22 = vadd.f32 %v3897_v59, %v8909_v43  ;;  %v4349_v43 = vadd.f32 %v9299_v24, %v9218_v49 }
 0x7b5   : > { %v4050_v0 = vmax.f32 %v3898_v22, 0.0 }
 0x7b7   : > { %v4160_v32 = vpack.c.bf16 %v4050_v0, %v4048_v14 }
 0x7b8   : > { %v9306_v5 = vpop.f32.mrf.mxu2 }
 0x7b9   : > { %4556 = vmatmul.bf16.gmra.mxu3 %v4160_v32 }
 0x7ba   : > { %v3900_v45 = vpop.f32.mrf.mxu1 }
 0x7bb   : > { %v3901_v18 = vadd.f32 %v3900_v45, %v8916_v27  ;;  %v4354_v45 = vadd.f32 %v9299_v24, %v9227_v63 }
 0x7bc   : > { %v4517_v17 = vpop.f32.mrf.mxu3 }
 0x7bd   : > { %5709 = vmatmul.msk.bf16.gmra.mxu1 %vm1552_vm0, %v10612_v37  ;;  %4432 = vmatmul.bf16.gmra.mxu2 %v10613_v4  ;;  %v4518_v59 = vadd.f32 %v4517_v17, %v4349_v43  ;;  %v4052_v0 = vmax.f32 %v3901_v18, 0.0 }
 0x7bf   : > { %v4677_v40 = vmax.f32 %v4518_v59, 0.0 }
 0x7c0   : > { %v9312_v42 = vpop.f32.mrf.mxu2 }
 0x7c2   : > { %v3902_v23 = vpop.f32.mrf.mxu1 }
 0x7c3   : > { %v3903_v22 = vadd.f32 %v3902_v23, %v8919_v57  ;;  %v10615_v57 = vld [vmem:[#allocation202_spill] sm:$0xff] }
 0x7c4   : > { %v4519_v14 = vpop.f32.mrf.mxu3 }
 0x7c5   : > { %v4054_v32 = vmax.f32 %v3903_v22, 0.0  ;;  %v4520_v37 = vadd.f32 %v4519_v14, %v4351_v39 }
 0x7c7   : > { %v4678_v4 = vmax.f32 %v4520_v37, 0.0  ;;  %v4162_v62 = vpack.c.bf16 %v4054_v32, %v4052_v0 }
 0x7c8   : > { %v9324_v39 = vpop.f32.mrf.mxu2 }
 0x7c9   : > { %v4741_v49 = vpack.c.bf16 %v4678_v4, %v4677_v40  ;;  %4561 = vmatmul.bf16.gmra.mxu3 %v4162_v62  ;;  %v4356_v40 = vadd.f32 %v9299_v24, %v9231_v54  ;;  %v10617_v54 = vld [vmem:[#allocation204_spill] sm:$0xff] }
 0x7ca   : > { %v3905_v44 = vpop.f32.mrf.mxu1 }
 0x7cb   : > { %5804 = vmatmul.msk.bf16.vlgmr.msra.gmra.mxu0 %vm4809_vm1, %v4741_v49  ;;  %v3906_v17 = vadd.f32 %v3905_v44, %v8926_v53  ;;  %v10616_v44 = vld [vmem:[#allocation193_spill] sm:$0xff]  ;;  %v4359_v49 = vadd.f32 %v9299_v24, %v9236_v16 }
 0x7cc   : > { %v4522_v27 = vpop.f32.mrf.mxu3 }
 0x7cd   : > { %5710 = vmatmul.msk.bf16.gmra.mxu1 %vm1552_vm0, %v10614_v20  ;;  %4437 = vmatmul.bf16.gmra.mxu2 %v10615_v57  ;;  %v4523_v62 = vadd.f32 %v4522_v27, %v4354_v45  ;;  %v4056_v59 = vmax.f32 %v3906_v17, 0.0  ;;  %v4361_v57 = vadd.f32 %v9299_v24, %v9240_v13  ;;  %v10619_v13 = vld [vmem:[#allocation205_spill] sm:$0xff] }
 0x7cf   : > { %v4679_v0 = vmax.f32 %v4523_v62, 0.0 }
 0x7d2   : > { %v3907_v43 = vpop.f32.mrf.mxu1 }
 0x7d3   : > { %v3908_v18 = vadd.f32 %v3907_v43, %v8935_v36  ;;  %v9330_v36 = vpop.f32.mrf.mxu2 }
 0x7d4   : > { %v4524_v23 = vpop.f32.mrf.mxu3 }
 0x7d5   : > { %v4058_v22 = vmax.f32 %v3908_v18, 0.0  ;;  %v4525_v14 = vadd.f32 %v4524_v23, %v4356_v40 }
 0x7d7   : > { %v4680_v32 = vmax.f32 %v4525_v14, 0.0  ;;  %v4164_v37 = vpack.c.bf16 %v4058_v22, %v4056_v59 }
 0x7d9   : > { %v4742_v4 = vpack.c.bf16 %v4680_v32, %v4679_v0  ;;  %4566 = vmatmul.bf16.gmra.mxu3 %v4164_v37  ;;  %v10618_v32 = vld [vmem:[#allocation132_spill] sm:$0xff] }
 0x7da   : > { %v3910_v63 = vpop.f32.mrf.mxu1 }
 0x7db   : > { %5805 = vmatmul.msk.bf16.gmra.mxu0 %vm4809_vm1, %v4742_v4  ;;  %v3911_v27 = vadd.f32 %v3910_v63, %v8942_v1  ;;  %v9338_v14 = vpop.f32.mrf.mxu2  ;;  %v4366_v63 = vadd.f32 %v9299_v24, %v9249_v12  ;;  %v10620_v12 = vld [vmem:[#allocation136_spill] sm:$0xff] }
 0x7dc   : > { %v4527_v53 = vpop.f32.mrf.mxu3 }
 0x7dd   : > { %5711 = vmatmul.msk.bf16.gmra.mxu1 %vm1552_vm0, %v10616_v44  ;;  %4442 = vmatmul.bf16.gmra.mxu2 %v10617_v54  ;;  %v4528_v45 = vadd.f32 %v4527_v53, %v4359_v49  ;;  %v4060_v40 = vmax.f32 %v3911_v27, 0.0 }
 0x7df   : > { %v4681_v23 = vmax.f32 %v4528_v45, 0.0 }
 0x7e2   : > { %v3912_v20 = vpop.f32.mrf.mxu1 }
 0x7e3   : > { %v3913_v17 = vadd.f32 %v3912_v20, %v8945_v19  ;;  %v4364_v19 = vadd.f32 %v9299_v24, %v9245_v15  ;;  %v9349_v53 = vpop.f32.mrf.mxu2 }
 0x7e4   : > { %v4529_v43 = vpop.f32.mrf.mxu3 }
 0x7e5   : > { %v4062_v62 = vmax.f32 %v3913_v17, 0.0  ;;  %v4530_v18 = vadd.f32 %v4529_v43, %v4361_v57 }
 0x7e7   : > { %v4682_v59 = vmax.f32 %v4530_v18, 0.0  ;;  %v4166_v22 = vpack.c.bf16 %v4062_v62, %v4060_v40  ;;  %v10621_v18 = vld [vmem:[#allocation206_spill] sm:$0xff] }
 0x7e9   : > { %v4743_v0 = vpack.c.bf16 %v4682_v59, %v4681_v23  ;;  %4571 = vmatmul.bf16.gmra.mxu3 %v4166_v22  ;;  %v4371_v22 = vadd.f32 %v9299_v24, %v9258_v50  ;;  %v10623_v50 = vld [vmem:[#allocation207_spill] sm:$0xff] }
 0x7ea   : > { %v3915_v16 = vpop.f32.mrf.mxu1 }
 0x7eb   : > { %5806 = vmatmul.msk.bf16.gmra.mxu0 %vm4809_vm1, %v4743_v0  ;;  %v3916_v37 = vadd.f32 %v3915_v16, %v8952_v41  ;;  %v9353_v62 = vpop.f32.mrf.mxu2 }
 0x7ec   : > { %v4532_v1 = vpop.f32.mrf.mxu3 }
 0x7ed   : > { %5712 = vmatmul.msk.bf16.gmra.mxu1 %vm1552_vm0, %v10618_v32  ;;  %4447 = vmatmul.bf16.gmra.mxu2 %v10619_v13  ;;  %v4533_v44 = vadd.f32 %v4532_v1, %v4364_v19  ;;  %v4064_v27 = vmax.f32 %v3916_v37, 0.0 }
 0x7ef   : > { %v4683_v45 = vmax.f32 %v4533_v44, 0.0 }
 0x7f2   : > { %v3917_v4 = vpop.f32.mrf.mxu1 }
 0x7f3   : > { %v3918_v54 = vadd.f32 %v3917_v4, %v8955_v31  ;;  %v4369_v31 = vadd.f32 %v9299_v24, %v9254_v55  ;;  %v9364_v37 = vpop.f32.mrf.mxu2 }
 0x7f4   : > { %v4534_v49 = vpop.f32.mrf.mxu3 }
 0x7f5   : > { %v4066_v20 = vmax.f32 %v3918_v54, 0.0  ;;  %v4535_v57 = vadd.f32 %v4534_v49, %v4366_v63  ;;  %v10622_v49 = vld [vmem:[#allocation23_spill] sm:$0xff] }
 0x7f7   : > { %v4684_v17 = vmax.f32 %v4535_v57, 0.0  ;;  %v4168_v43 = vpack.c.bf16 %v4066_v20, %v4064_v27 }
 0x7f9   : > { %v4744_v40 = vpack.c.bf16 %v4684_v17, %v4683_v45  ;;  %4576 = vmatmul.bf16.gmra.mxu3 %v4168_v43  ;;  %v4376_v45 = vadd.f32 %v9299_v24, %v9267_v33  ;;  %v10625_v33 = vld [vmem:[#allocation185_spill] sm:$0xff] }
 0x7fa   : > { %v3920_v15 = vpop.f32.mrf.mxu1 }
 0x7fb   : > { %5807 = vmatmul.msk.bf16.gmra.mxu0 %vm4809_vm1, %v4744_v40  ;;  %v3921_v23 = vadd.f32 %v3920_v15, %v8962_v61  ;;  %v9372_v27 = vpop.f32.mrf.mxu2 }
 0x7fc   : > { %v4537_v41 = vpop.f32.mrf.mxu3 }
 0x7fd   : > { %5713 = vmatmul.msk.bf16.gmra.mxu1 %vm1552_vm0, %v10620_v12  ;;  %4452 = vmatmul.bf16.gmra.mxu2 %v10621_v18  ;;  %v4538_v0 = vadd.f32 %v4537_v41, %v4369_v31  ;;  %v4068_v32 = vmax.f32 %v3921_v23, 0.0 }
 0x7ff   : > { %v4685_v4 = vmax.f32 %v4538_v0, 0.0  ;;  %v10624_v0 = vld [vmem:[#allocation197_spill] sm:$0xff] }
 0x802   : > { %v3922_v59 = vpop.f32.mrf.mxu1 }
 0x803   : > { %v3923_v16 = vadd.f32 %v3922_v59, %v8965_v52  ;;  %v4374_v52 = vadd.f32 %v9299_v24, %v9263_v26 }
 0x804   : > { %v4539_v1 = vpop.f32.mrf.mxu3 }
 0x805   : > { %v4070_v13 = vmax.f32 %v3923_v16, 0.0  ;;  %v4540_v19 = vadd.f32 %v4539_v1, %v4371_v22  ;;  %v9378_v22 = vpop.f32.mrf.mxu2 }
 0x807   : > { %v4686_v63 = vmax.f32 %v4540_v19, 0.0  ;;  %v4170_v44 = vpack.c.bf16 %v4070_v13, %v4068_v32  ;;  %v4381_v32 = vadd.f32 %v9299_v24, %v9276_v51  ;;  %v10627_v51 = vld [vmem:[#allocation36_spill] sm:$0xff] }
 0x809   : > { %v4745_v54 = vpack.c.bf16 %v4686_v63, %v4685_v4  ;;  %4581 = vmatmul.bf16.gmra.mxu3 %v4170_v44 }
 0x80a   : > { %v3925_v55 = vpop.f32.mrf.mxu1 }
 0x80b   : > { %5808 = vmatmul.msk.bf16.gmra.mxu0 %vm4809_vm1, %v4745_v54  ;;  %v3926_v20 = vadd.f32 %v3925_v55, %v8972_v3 }
 0x80c   : > { %v4542_v61 = vpop.f32.mrf.mxu3 }
 0x80d   : > { %5714 = vmatmul.msk.bf16.gmra.mxu1 %vm1552_vm0, %v10622_v49  ;;  %4457 = vmatmul.bf16.gmra.mxu2 %v10623_v50  ;;  %v4543_v17 = vadd.f32 %v4542_v61, %v4374_v52  ;;  %v4072_v15 = vmax.f32 %v3926_v20, 0.0  ;;  %v9390_v63 = vpop.f32.mrf.mxu2  ;;  %v10626_v20 = vld [vmem:[#allocation148_spill] sm:$0xff] }
 0x80f   : > { %v4687_v18 = vmax.f32 %v4543_v17, 0.0 }
 0x812   : > { %v3927_v57 = vpop.f32.mrf.mxu1 }
 0x813   : > { %v3928_v43 = vadd.f32 %v3927_v57, %v8981_v38  ;;  %v4379_v38 = vadd.f32 %v9299_v24, %v9272_v30  ;;  %v4384_v57 = vadd.f32 %v9299_v24, %v9282_v2 }
 0x814   : > { %v4544_v40 = vpop.f32.mrf.mxu3 }
 0x815   : > { %v4074_v41 = vmax.f32 %v3928_v43, 0.0  ;;  %v4545_v12 = vadd.f32 %v4544_v40, %v4376_v45  ;;  %v4386_v43 = vadd.f32 %v9299_v24, %v9285_v6  ;;  %v10629_v6 = vld [vmem:[#allocation44_spill] sm:$0xff] }
 0x817   : > { %v4688_v31 = vmax.f32 %v4545_v12, 0.0  ;;  %v4172_v23 = vpack.c.bf16 %v4074_v41, %v4072_v15 }
 0x819   : > { %v4746_v59 = vpack.c.bf16 %v4688_v31, %v4687_v18  ;;  %4586 = vmatmul.bf16.gmra.mxu3 %v4172_v23 }
 0x81a   : > { %v3930_v26 = vpop.f32.mrf.mxu1 }
 0x81b   : > { %5809 = vmatmul.msk.bf16.gmra.mxu0 %vm4809_vm1, %v4746_v59  ;;  %v3931_v16 = vadd.f32 %v3930_v26, %v8988_v11 }
 0x81c   : > { %v4547_v3 = vpop.f32.mrf.mxu3 }
 0x81d   : > { %5715 = vmatmul.msk.bf16.gmra.mxu1 %vm1552_vm0, %v10624_v0  ;;  %4462 = vmatmul.bf16.gmra.mxu2 %v10625_v33  ;;  %v4548_v13 = vadd.f32 %v4547_v3, %v4379_v38  ;;  %v4076_v44 = vmax.f32 %v3931_v16, 0.0  ;;  %v10628_v33 = vld [vmem:[#allocation152_spill] sm:$0xff]  ;;  %v4389_v38 = vadd.f32 %v9299_v24, %v9294_v34 }
 0x81f   : > { %v4689_v61 = vmax.f32 %v4548_v13, 0.0 }
 0x822   : > { %v3932_v1 = vpop.f32.mrf.mxu1 }
 0x823   : > { %v3933_v19 = vadd.f32 %v3932_v1, %v8994_v25  ;;  %v9396_v25 = vpop.f32.mrf.mxu2 }
 0x824   : > { %v4549_v4 = vpop.f32.mrf.mxu3 }
 0x825   : > { %v4078_v54 = vmax.f32 %v3933_v19, 0.0  ;;  %v4550_v55 = vadd.f32 %v4549_v4, %v4381_v32  ;;  %v4391_v32 = vadd.f32 %v9299_v24, %v9306_v5 }
 0x827   : > { %v4690_v49 = vmax.f32 %v4550_v55, 0.0  ;;  %v4174_v50 = vpack.c.bf16 %v4078_v54, %v4076_v44 }
 0x829   : > { %v4747_v52 = vpack.c.bf16 %v4690_v49, %v4689_v61  ;;  %4591 = vmatmul.bf16.gmra.mxu3 %v4174_v50 }
 0x82a   : > { %v3935_v30 = vpop.f32.mrf.mxu1 }
 0x82b   : > { %5810 = vmatmul.msk.bf16.gmra.mxu0 %vm4809_vm1, %v4747_v52  ;;  %v3936_v45 = vadd.f32 %v3935_v30, %v9001_v35  ;;  %v9404_v3 = vpop.f32.mrf.mxu2 }
 0x82c   : > { %v4552_v11 = vpop.f32.mrf.mxu3 }
 0x82d   : > { %5716 = vmatmul.msk.bf16.gmra.mxu1 %vm1552_vm0, %v10626_v20  ;;  %4467 = vmatmul.bf16.gmra.mxu2 %v10627_v51  ;;  %v4553_v40 = vadd.f32 %v4552_v11, %v4384_v57  ;;  %v4080_v12 = vmax.f32 %v3936_v45, 0.0  ;;  %v10630_v20 = vld [vmem:[#allocation8_spill] sm:$0xff]  ;;  %v10631_v51 = vld [vmem:[#allocation42_spill] sm:$0xff]  ;;  %v4394_v45 = vadd.f32 %v9299_v24, %v9312_v42 }
 0x82f   : > { %v4691_v23 = vmax.f32 %v4553_v40, 0.0 }
 0x832   : > { %v3937_v17 = vpop.f32.mrf.mxu1 }
 0x833   : > { %v3938_v15 = vadd.f32 %v3937_v17, %v9004_v10  ;;  %v9410_v10 = vpop.f32.mrf.mxu0  ;;  %v9417_v13 = vpop.f32.mrf.mxu2 }
 0x834   : > { %v4554_v41 = vpop.f32.mrf.mxu3 }
 0x835   : > { %v4082_v18 = vmax.f32 %v3938_v15, 0.0  ;;  %v4555_v31 = vadd.f32 %v4554_v41, %v4386_v43  ;;  %v10632_v43 = vld [vmem:[#allocation53_spill] sm:$0xff] }
 0x837   : > { %v4692_v59 = vmax.f32 %v4555_v31, 0.0  ;;  %v4176_v26 = vpack.c.bf16 %v4082_v18, %v4080_v12  ;;  %v4396_v12 = vadd.f32 %v9299_v24, %v9324_v39 }
 0x839   : > { %v4748_v0 = vpack.c.bf16 %v4692_v59, %v4691_v23  ;;  %4596 = vmatmul.bf16.gmra.mxu3 %v4176_v26  ;;  %v10633_v23 = vld [vmem:[#allocation54_spill] sm:$0xff] }
 0x83a   : > { %v3940_v2 = vpop.f32.mrf.mxu1 }
 0x83b   : > { %5811 = vmatmul.msk.bf16.gmra.mxu0 %vm4809_vm1, %v4748_v0  ;;  %v3941_v16 = vadd.f32 %v3940_v2, %v9011_v58  ;;  %v9421_v11 = vpop.f32.mrf.mxu2 }
 0x83c   : > { %v4557_v35 = vpop.f32.mrf.mxu3 }
 0x83d   : > { %5717 = vmatmul.msk.bf16.gmra.mxu1 %vm1552_vm0, %v10628_v33  ;;  %4472 = vmatmul.bf16.gmra.mxu2 %v10629_v6  ;;  %v4558_v19 = vadd.f32 %v4557_v35, %v4389_v38  ;;  %v4084_v54 = vmax.f32 %v3941_v16, 0.0 }
 0x83f   : > { %v4693_v49 = vmax.f32 %v4558_v19, 0.0  ;;  %v10634_v19 = vld [vmem:[#allocation201_spill] sm:$0xff] }
 0x842   : > { %v3942_v1 = vpop.f32.mrf.mxu1 }
 0x843   : > { %v3943_v4 = vadd.f32 %v3942_v1, %v9014_v21  ;;  %v9426_v21 = vld [vmem:[%s9747_s6] ss:$0 sm:$0xff]  ;;  %v9446_v35 = vpop.f32.mrf.mxu2 }
 0x844   : > { %v4559_v44 = vpop.f32.mrf.mxu3 }
 0x845   : > { %v4086_v55 = vmax.f32 %v3943_v4, 0.0  ;;  %v4560_v61 = vadd.f32 %v4559_v44, %v4391_v32  ;;  %v10635_v4 = vld [vmem:[#allocation34_spill] sm:$0xff] }
 0x847   : > { %v4694_v50 = vmax.f32 %v4560_v61, 0.0  ;;  %v4178_v52 = vpack.c.bf16 %v4086_v55, %v4084_v54  ;;  %v4399_v54 = vadd.f32 %v9299_v24, %v9330_v36 }
 0x848   : > { %v4915_v34 = vpop.f32.mrf.mxu0 }
 0x849   : > { %v4749_v30 = vpack.c.bf16 %v4694_v50, %v4693_v49  ;;  %4601 = vmatmul.bf16.gmra.mxu3 %v4178_v52  ;;  %v4916_v17 = vadd.f32 %v9426_v21, %v4915_v34  ;;  %v4401_v34 = vadd.f32 %v9299_v24, %v9338_v14  ;;  %v3620_v14 = vadd.f32 %v9053_v56, %v9051_v29 }
 0x84a   : > { %v3945_v58 = vpop.f32.mrf.mxu1  ;;  %v4406_v56 = vadd.f32 %v9299_v24, %v9353_v62  ;;  %v10640_v62 = vld [vmem:[#allocation59_spill] sm:$0xff] }
 0x84b   : > { %5812 = vmatmul.msk.bf16.gmra.mxu0 %vm4809_vm1, %v4749_v30  ;;  %v3946_v40 = vadd.f32 %v3945_v58, %v10632_v43  ;;  %v9454_v55 = vpop.f32.mrf.mxu2 }
 0x84c   : > { %v4562_v5 = vpop.f32.mrf.mxu3 }
 0x84d   : > { %5718 = vmatmul.msk.bf16.gmra.mxu1 %vm1552_vm0, %v10630_v20  ;;  %4477 = vmatmul.bf16.gmra.mxu2 %v10631_v51  ;;  %v4563_v18 = vadd.f32 %v4562_v5, %v4394_v45  ;;  %v4088_v26 = vmax.f32 %v3946_v40, 0.0 }
 0x84f   : > { %v4695_v33 = vmax.f32 %v4563_v18, 0.0  ;;  %v10637_v18 = vld [vmem:[#allocation47_spill] sm:$0xff] }
 0x850   : > { %v4917_v57 = vpop.f32.mrf.mxu0 }
 0x851   : > { %v4918_v15 = vadd.f32 %v9426_v21, %v4917_v57 }
 0x852   : > { %v3947_v41 = vpop.f32.mrf.mxu1 }
 0x853   : > { %v5959_v31 = vpack.c.bf16 %v4918_v15, %v4916_v17  ;;  %v3948_v42 = vadd.f32 %v3947_v41, %v10633_v23  ;;  %v9463_v41 = vpop.f32.mrf.mxu2 }
 0x854   : > { %v4564_v59 = vpop.f32.mrf.mxu3 }
 0x855   : > { %5960 = vst [vmem:[%s9440_s28] sm:$0xff] %v5959_v31   ;;  %v4090_v0 = vmax.f32 %v3948_v42, 0.0  ;;  %v4565_v2 = vadd.f32 %v4564_v59, %v4396_v12  ;;  %v10636_v12 = vld [vmem:[#allocation203_spill] sm:$0xff]  ;;  %v4404_v59 = vadd.f32 %v9299_v24, %v9349_v53 }
 0x856   : > { %v10638_v31 = vld [vmem:[#allocation55_spill] sm:$0xff] }
 0x857   : > { %v4696_v6 = vmax.f32 %v4565_v2, 0.0  ;;  %v4180_v38 = vpack.c.bf16 %v4090_v0, %v4088_v26  ;;  %v3789_v23 = vadd.f32 %v10638_v31, %v3620_v14  ;;  %v10639_v0 = vld [vmem:[#allocation46_spill] sm:$0xff]  ;;  %v4411_v14 = vadd.f32 %v9299_v24, %v9372_v27  ;;  %v10646_v27 = vld [vmem:[#allocation68_spill] sm:$0xff] }
 0x858   : > { %v4920_v16 = vpop.f32.mrf.mxu0 }
 0x859   : > { %v4750_v1 = vpack.c.bf16 %v4696_v6, %v4695_v33  ;;  %4606 = vmatmul.bf16.gmra.mxu3 %v4180_v38  ;;  %v4921_v61 = vadd.f32 %v9426_v21, %v4920_v16 }
 0x85a   : > { %v3950_v32 = vpop.f32.mrf.mxu1 }
 0x85b   : > { %5813 = vmatmul.msk.bf16.gmra.mxu0 %vm4809_vm1, %v4750_v1  ;;  %v3951_v49 = vadd.f32 %v3950_v32, %v9037_v9  ;;  %v9479_v32 = vpop.f32.mrf.mxu2 }
 0x85c   : > { %v4567_v39 = vpop.f32.mrf.mxu3 }
 0x85d   : > { %5719 = vmatmul.msk.bf16.gmra.mxu1 %vm1552_vm0, %v10634_v19  ;;  %4482 = vmatmul.bf16.gmra.mxu2 %v10635_v4  ;;  %v4568_v30 = vadd.f32 %v4567_v39, %v4399_v54  ;;  %v4092_v51 = vmax.f32 %v3951_v49, 0.0 }
 0x85f   : > { %v4697_v45 = vmax.f32 %v4568_v30, 0.0 }
 0x860   : > { %v4922_v44 = vpop.f32.mrf.mxu0 }
 0x861   : > { %v4923_v50 = vadd.f32 %v9426_v21, %v4922_v44 }
 0x862   : > { %v3952_v52 = vpop.f32.mrf.mxu1 }
 0x863   : > { %v5964_v58 = vpack.c.bf16 %v4923_v50, %v4921_v61  ;;  %v3953_v5 = vadd.f32 %v3952_v52, %v9040_v47  ;;  %v10641_v52 = vld [vmem:[#allocation60_spill] sm:$0xff] }
 0x864   : > { %v4569_v20 = vpop.f32.mrf.mxu3 }
 0x865   : > { %6116 = vst [vmem:[%s9440_s28 + $0x8] sm:$0xff] %v5964_v58   ;;  %v4094_v36 = vmax.f32 %v3953_v5, 0.0  ;;  %v4570_v57 = vadd.f32 %v4569_v20, %v4401_v34  ;;  %v3625_v34 = vadd.f32 %v10641_v52, %v10640_v62  ;;  %v10642_v58 = vld [vmem:[#allocation177_spill] sm:$0xff]  ;;  %v10643_v5 = vld [vmem:[#allocation48_spill] sm:$0xff]  ;;  %v9488_v20 = vpop.f32.mrf.mxu2  ;;  %v4416_v52 = vadd.f32 %v9299_v24, %v9390_v63  ;;  %v10652_v63 = vld [vmem:[#allocation58_spill] sm:$0xff] }
 0x867   : > { %v4698_v17 = vmax.f32 %v4570_v57, 0.0  ;;  %v4182_v43 = vpack.c.bf16 %v4094_v36, %v4092_v51  ;;  %v10644_v51 = vld [vmem:[#allocation62_spill] sm:$0xff] }
 0x868   : > { %v4925_v40 = vpop.f32.mrf.mxu0  ;;  %v3794_v36 = vadd.f32 %v10644_v51, %v3625_v34 }
 0x869   : > { %v4751_v9 = vpack.c.bf16 %v4698_v17, %v4697_v45  ;;  %4611 = vmatmul.bf16.gmra.mxu3 %v4182_v43  ;;  %v4926_v26 = vadd.f32 %v9426_v21, %v4925_v40  ;;  %v4409_v45 = vadd.f32 %v9299_v24, %v9364_v37  ;;  %v10645_v43 = vld [vmem:[#allocation21_spill] sm:$0xff] }
 0x86a   : > { %v3955_v15 = vpop.f32.mrf.mxu1 }
 0x86b   : > { %5814 = vmatmul.msk.bf16.gmra.mxu0 %vm4809_vm1, %v4751_v9  ;;  %v3956_v2 = vadd.f32 %v3955_v15, %v10639_v0 }
 0x86c   : > { %v4572_v47 = vpop.f32.mrf.mxu3 }
 0x86d   : > { %5720 = vmatmul.msk.bf16.gmra.mxu1 %vm1552_vm0, %v10636_v12  ;;  %4487 = vmatmul.bf16.gmra.mxu2 %v10637_v18  ;;  %v4573_v6 = vadd.f32 %v4572_v47, %v4404_v59  ;;  %v4096_v39 = vmax.f32 %v3956_v2, 0.0 }
 0x86f   : > { %v4699_v4 = vmax.f32 %v4573_v6, 0.0  ;;  %v10647_v6 = vld [vmem:[#allocation65_spill] sm:$0xff] }
 0x870   : > { %v4927_v42 = vpop.f32.mrf.mxu0 }
 0x871   : > { %v4928_v33 = vadd.f32 %v9426_v21, %v4927_v42 }
 0x872   : > { %v3957_v29 = vpop.f32.mrf.mxu1 }
 0x873   : > { %v5969_v38 = vpack.c.bf16 %v4928_v33, %v4926_v26  ;;  %v3958_v16 = vadd.f32 %v3957_v29, %v3789_v23  ;;  %v9499_v33 = vpop.f32.mrf.mxu2 }
 0x874   : > { %v4574_v1 = vpop.f32.mrf.mxu3 }
 0x875   : > { %6117 = vst [vmem:[%s9440_s28 + $0x10] sm:$0xff] %v5969_v38   ;;  %v4098_v19 = vmax.f32 %v3958_v16, 0.0  ;;  %v4575_v53 = vadd.f32 %v4574_v1, %v4406_v56  ;;  %v3630_v38 = vadd.f32 %v10647_v6, %v10646_v27  ;;  %v10648_v1 = vld [vmem:[#allocation181_spill] sm:$0xff]  ;;  %v4421_v6 = vadd.f32 %v9299_v24, %v9404_v3 }
 0x877   : > { %v4184_v44 = vpack.c.bf16 %v4098_v19, %v4096_v39  ;;  %v4700_v54 = vmax.f32 %v4575_v53, 0.0  ;;  %v10649_v39 = vld [vmem:[#allocation56_spill] sm:$0xff]  ;;  %v10650_v19 = vld [vmem:[#allocation61_spill] sm:$0xff] }
 0x878   : > { %v4930_v61 = vpop.f32.mrf.mxu0  ;;  %v3799_v53 = vadd.f32 %v10650_v19, %v3630_v38 }
 0x879   : > { %v4752_v49 = vpack.c.bf16 %v4700_v54, %v4699_v4  ;;  %4616 = vmatmul.bf16.gmra.mxu3 %v4184_v44  ;;  %v4931_v17 = vadd.f32 %v9426_v21, %v4930_v61  ;;  %v4414_v44 = vadd.f32 %v9299_v24, %v9378_v22  ;;  %v10651_v61 = vld [vmem:[#allocation52_spill] sm:$0xff] }
 0x87a   : > { %v3960_v50 = vpop.f32.mrf.mxu1 }
 0x87b   : > { %5815 = vmatmul.msk.bf16.gmra.mxu0 %vm4809_vm1, %v4752_v49  ;;  %v3961_v40 = vadd.f32 %v3960_v50, %v10645_v43  ;;  %v9515_v34 = vpop.f32.mrf.mxu2 }
 0x87c   : > { %v4577_v30 = vpop.f32.mrf.mxu3 }
 0x87d   : > { %5721 = vmatmul.msk.bf16.gmra.mxu1 %vm1552_vm0, %v10642_v58  ;;  %4492 = vmatmul.bf16.gmra.mxu2 %v10643_v5  ;;  %v4578_v47 = vadd.f32 %v4577_v30, %v4409_v45  ;;  %v4100_v23 = vmax.f32 %v3961_v40, 0.0 }
 0x87f   : > { %v4701_v26 = vmax.f32 %v4578_v47, 0.0 }
 0x880   : > { %v4932_v57 = vpop.f32.mrf.mxu0 }
 0x881   : > { %v4933_v9 = vadd.f32 %v9426_v21, %v4932_v57 }
 0x882   : > { %v3962_v15 = vpop.f32.mrf.mxu1 }
 0x883   : > { %v5974_v12 = vpack.c.bf16 %v4933_v9, %v4931_v17  ;;  %v3963_v18 = vadd.f32 %v3962_v15, %v3794_v36 }
 0x884   : > { %v4579_v31 = vpop.f32.mrf.mxu3 }
 0x885   : > { %6118 = vst [vmem:[%s9440_s28 + $0x18] sm:$0xff] %v5974_v12   ;;  %v4102_v42 = vmax.f32 %v3963_v18, 0.0  ;;  %v4580_v59 = vadd.f32 %v4579_v31, %v4411_v14  ;;  %v10653_v14 = vld [vmem:[#allocation70_spill] sm:$0xff]  ;;  %v9521_v18 = vpop.f32.mrf.mxu2  ;;  %v10654_v31 = vld [vmem:[#allocation75_spill] sm:$0xff] }
 0x886   : > { %v3635_v47 = vadd.f32 %v10653_v14, %v10652_v63 }
 0x887   : > { %v4186_v37 = vpack.c.bf16 %v4102_v42, %v4100_v23  ;;  %v4702_v0 = vmax.f32 %v4580_v59, 0.0  ;;  %v10655_v23 = vld [vmem:[#allocation17_spill] sm:$0xff]  ;;  %v10656_v42 = vld [vmem:[#allocation66_spill] sm:$0xff] }
 0x888   : > { %v4935_v2 = vpop.f32.mrf.mxu0  ;;  %v3804_v59 = vadd.f32 %v10656_v42, %v3635_v47 }
 0x889   : > { %v4753_v29 = vpack.c.bf16 %v4702_v0, %v4701_v26  ;;  %4621 = vmatmul.bf16.gmra.mxu3 %v4186_v37  ;;  %v4936_v54 = vadd.f32 %v9426_v21, %v4935_v2  ;;  %v4419_v37 = vadd.f32 %v9299_v24, %v9396_v25  ;;  %v10657_v2 = vld [vmem:[#allocation67_spill] sm:$0xff] }
 0x88a   : > { %v3965_v56 = vpop.f32.mrf.mxu1 }
 0x88b   : > { %5816 = vmatmul.msk.bf16.gmra.mxu0 %vm4809_vm1, %v4753_v29  ;;  %v3966_v49 = vadd.f32 %v3965_v56, %v10651_v61 }
 0x88c   : > { %v4582_v16 = vpop.f32.mrf.mxu3 }
 0x88d   : > { %5722 = vmatmul.msk.bf16.gmra.mxu1 %vm1552_vm0, %v10648_v1  ;;  %4497 = vmatmul.bf16.gmra.mxu2 %v10649_v39  ;;  %v4583_v30 = vadd.f32 %v4582_v16, %v4414_v44  ;;  %v4104_v36 = vmax.f32 %v3966_v49, 0.0 }
 0x88f   : > { %v4703_v45 = vmax.f32 %v4583_v30, 0.0 }
 0x890   : > { %v4937_v4 = vpop.f32.mrf.mxu0 }
 0x891   : > { %v4938_v50 = vadd.f32 %v9426_v21, %v4937_v4 }
 0x892   : > { %v3967_v62 = vpop.f32.mrf.mxu1 }
 0x893   : > { %v5979_v58 = vpack.c.bf16 %v4938_v50, %v4936_v54  ;;  %v3968_v5 = vadd.f32 %v3967_v62, %v3799_v53  ;;  %v10658_v62 = vld [vmem:[#allocation73_spill] sm:$0xff] }
 0x894   : > { %v4584_v51 = vpop.f32.mrf.mxu3 }
 0x895   : > { %6119 = vst [vmem:[%s9440_s28 + $0x20] sm:$0xff] %v5979_v58   ;;  %v4106_v57 = vmax.f32 %v3968_v5, 0.0  ;;  %v4585_v22 = vadd.f32 %v4584_v51, %v4416_v52  ;;  %v10659_v52 = vld [vmem:[#allocation74_spill] sm:$0xff]  ;;  %v10660_v58 = vld [vmem:[#allocation76_spill] sm:$0xff] }
 0x896   : > { %v3640_v3 = vadd.f32 %v10659_v52, %v10658_v62 }
 0x897   : > { %v4188_v17 = vpack.c.bf16 %v4106_v57, %v4104_v36  ;;  %v4704_v43 = vmax.f32 %v4585_v22, 0.0  ;;  %v4424_v36 = vadd.f32 %v9299_v24, %v9417_v13  ;;  %v10661_v22 = vld [vmem:[#allocation72_spill] sm:$0xff] }
 0x898   : > { %v4940_v40 = vpop.f32.mrf.mxu0  ;;  %v3809_v5 = vadd.f32 %v10660_v58, %v3640_v3 }
 0x899   : > { %v4754_v9 = vpack.c.bf16 %v4704_v43, %v4703_v45  ;;  %4626 = vmatmul.bf16.gmra.mxu3 %v4188_v17  ;;  %v4941_v0 = vadd.f32 %v9426_v21, %v4940_v40  ;;  %v4426_v40 = vadd.f32 %v9299_v24, %v9421_v11 }
 0x89a   : > { %v3970_v15 = vpop.f32.mrf.mxu1 }
 0x89b   : > { %5817 = vmatmul.msk.bf16.gmra.mxu0 %vm4809_vm1, %v4754_v9  ;;  %v3971_v29 = vadd.f32 %v3970_v15, %v10657_v2 }
 0x89c   : > { %v4587_v12 = vpop.f32.mrf.mxu3 }
 0x89d   : > { %5723 = vmatmul.msk.bf16.gmra.mxu1 %vm1552_vm0, %v10654_v31  ;;  %4502 = vmatmul.bf16.gmra.mxu2 %v10655_v23  ;;  %v4588_v38 = vadd.f32 %v4587_v12, %v4419_v37  ;;  %v4108_v19 = vmax.f32 %v3971_v29, 0.0  ;;  %v10663_v29 = vld [vmem:[#allocation25_spill] sm:$0xff] }
 0x89f   : > { %v4705_v44 = vmax.f32 %v4588_v38, 0.0 }
 0x8a0   : > { %v4942_v26 = vpop.f32.mrf.mxu0 }
 0x8a1   : > { %v4943_v56 = vadd.f32 %v9426_v21, %v4942_v26 }
 0x8a2   : > { %v3972_v27 = vpop.f32.mrf.mxu1 }
 0x8a3   : > { %v5984_v16 = vpack.c.bf16 %v4943_v56, %v4941_v0  ;;  %v3973_v1 = vadd.f32 %v3972_v27, %v3804_v59  ;;  %v10662_v0 = vld [vmem:[#allocation80_spill] sm:$0xff] }
 0x8a4   : > { %v4589_v39 = vpop.f32.mrf.mxu3  ;;  %v3645_v11 = vadd.f32 %v10662_v0, %v9131_v46 }
 0x8a5   : > { %6120 = vst [vmem:[%s9440_s28 + $0x28] sm:$0xff] %v5984_v16   ;;  %v4110_v53 = vmax.f32 %v3973_v1, 0.0  ;;  %v4590_v4 = vadd.f32 %v4589_v39, %v4421_v6  ;;  %v4429_v6 = vadd.f32 %v9299_v24, %v9446_v35  ;;  %v10664_v16 = vld [vmem:[#allocation78_spill] sm:$0xff] }
 0x8a6   : > { %v3814_v56 = vadd.f32 %v10663_v29, %v3645_v11 }
 0x8a7   : > { %v4190_v25 = vpack.c.bf16 %v4110_v53, %v4108_v19  ;;  %v4706_v54 = vmax.f32 %v4590_v4, 0.0  ;;  %v4431_v53 = vadd.f32 %v9299_v24, %v9454_v55  ;;  %v10665_v55 = vld [vmem:[#allocation29_spill] sm:$0xff] }
 0x8a8   : > { %v4945_v61 = vpop.f32.mrf.mxu0 }
 0x8a9   : > { %v4755_v49 = vpack.c.bf16 %v4706_v54, %v4705_v44  ;;  %4631 = vmatmul.bf16.gmra.mxu3 %v4190_v25  ;;  %v4946_v57 = vadd.f32 %v9426_v21, %v4945_v61 }
 0x8aa   : > { %v3975_v50 = vpop.f32.mrf.mxu1 }
 0x8ab   : > { %5818 = vmatmul.msk.bf16.gmra.mxu0 %vm4809_vm1, %v4755_v49  ;;  %v3976_v45 = vadd.f32 %v3975_v50, %v10661_v22 }
 0x8ac   : > { %v4592_v30 = vpop.f32.mrf.mxu3 }
 0x8ad   : > { %v4593_v9 = vadd.f32 %v4592_v30, %v4424_v36  ;;  %v4112_v47 = vmax.f32 %v3976_v45, 0.0  ;;  %v9559_v30 = vpop.f32.mrf.mxu2 }
 0x8af   : > { %v4707_v23 = vmax.f32 %v4593_v9, 0.0 }
 0x8b0   : > { %v4947_v51 = vpop.f32.mrf.mxu0 }
 0x8b1   : > { %v4948_v17 = vadd.f32 %v9426_v21, %v4947_v51 }
 0x8b2   : > { %v3977_v43 = vpop.f32.mrf.mxu1 }
 0x8b3   : > { %v5989_v15 = vpack.c.bf16 %v4948_v17, %v4946_v57  ;;  %v3978_v63 = vadd.f32 %v3977_v43, %v3809_v5  ;;  %v10666_v5 = vld [vmem:[#allocation79_spill] sm:$0xff]  ;;  %v10667_v57 = vld [vmem:[#allocation81_spill] sm:$0xff]  ;;  %v4434_v17 = vadd.f32 %v9299_v24, %v9463_v41 }
 0x8b4   : > { %v4594_v14 = vpop.f32.mrf.mxu3  ;;  %v3650_v51 = vadd.f32 %v10666_v5, %v10665_v55 }
 0x8b5   : > { %6121 = vst [vmem:[%s9440_s28 + $0x30] sm:$0xff] %v5989_v15   ;;  %v4114_v12 = vmax.f32 %v3978_v63, 0.0  ;;  %v4595_v31 = vadd.f32 %v4594_v14, %v4426_v40  ;;  %v10668_v40 = vld [vmem:[#allocation82_spill] sm:$0xff]  ;;  %v4436_v14 = vadd.f32 %v9299_v24, %v9479_v32 }
 0x8b6   : > { %v3819_v22 = vadd.f32 %v10667_v57, %v3650_v51  ;;  %v10669_v32 = vld [vmem:[#allocation90_spill] sm:$0xff]  ;;  %v10672_v57 = vld [vmem:[#allocation84_spill] sm:$0xff] }
 0x8b7   : > { %v4192_v13 = vpack.c.bf16 %v4114_v12, %v4112_v47  ;;  %v4708_v42 = vmax.f32 %v4595_v31, 0.0 }
 0x8b8   : > { %v4950_v59 = vpop.f32.mrf.mxu0 }
 0x8b9   : > { %v4756_v26 = vpack.c.bf16 %v4708_v42, %v4707_v23  ;;  %4636 = vmatmul.bf16.gmra.mxu3 %v4192_v13  ;;  %v4951_v38 = vadd.f32 %v9426_v21, %v4950_v59  ;;  %v9572_v23 = vpop.f32.mrf.mxu2 }
 0x8ba   : > { %v3980_v37 = vpop.f32.mrf.mxu1 }
 0x8bb   : > { %5819 = vmatmul.msk.bf16.gmra.mxu0 %vm4809_vm1, %v4756_v26  ;;  %v3981_v1 = vadd.f32 %v3980_v37, %v10664_v16 }
 0x8bc   : > { %v4597_v2 = vpop.f32.mrf.mxu3 }
 0x8bd   : > { %v4598_v4 = vadd.f32 %v4597_v2, %v4429_v6  ;;  %v4116_v54 = vmax.f32 %v3981_v1, 0.0 }
 0x8bf   : > { %v4709_v50 = vmax.f32 %v4598_v4, 0.0 }
 0x8c0   : > { %v4952_v27 = vpop.f32.mrf.mxu0 }
 0x8c1   : > { %v4953_v39 = vadd.f32 %v9426_v21, %v4952_v27  ;;  %v9578_v6 = vpop.f32.mrf.mxu2 }
 0x8c2   : > { %v3982_v19 = vpop.f32.mrf.mxu1 }
 0x8c3   : > { %v5994_v44 = vpack.c.bf16 %v4953_v39, %v4951_v38  ;;  %v3983_v46 = vadd.f32 %v3982_v19, %v3814_v56  ;;  %v3655_v56 = vadd.f32 %v10669_v32, %v9160_v7  ;;  %v10670_v38 = vld [vmem:[#allocation88_spill] sm:$0xff]  ;;  %v4439_v39 = vadd.f32 %v9299_v24, %v9488_v20  ;;  %v10675_v32 = vld [vmem:[#allocation94_spill] sm:$0xff] }
 0x8c4   : > { %v4599_v25 = vpop.f32.mrf.mxu3  ;;  %v4441_v7 = vadd.f32 %v9299_v24, %v9499_v33  ;;  %v3660_v33 = vadd.f32 %v9175_v48, %v9173_v60  ;;  %v4446_v60 = vadd.f32 %v9299_v24, %v9521_v18 }
 0x8c5   : > { %6122 = vst [vmem:[%s9440_s28 + $0x38] sm:$0xff] %v5994_v44   ;;  %v4118_v61 = vmax.f32 %v3983_v46, 0.0  ;;  %v4600_v49 = vadd.f32 %v4599_v25, %v4431_v53  ;;  %v3824_v16 = vadd.f32 %v10670_v38, %v3655_v56  ;;  %v10671_v53 = vld [vmem:[#allocation89_spill] sm:$0xff]  ;;  %v9614_v38 = vld [vmem:[%s9745_s4] ss:$0 sm:$0xff] }
 0x8c7   : > { %v4194_v35 = vpack.c.bf16 %v4118_v61, %v4116_v54  ;;  %v4710_v62 = vmax.f32 %v4600_v49, 0.0 }
 0x8c8   : > { %v4955_v52 = vpop.f32.mrf.mxu0 }
 0x8c9   : > { %v4757_v3 = vpack.c.bf16 %v4710_v62, %v4709_v50  ;;  %4641 = vmatmul.bf16.gmra.mxu3 %v4194_v35  ;;  %v4956_v43 = vadd.f32 %v9426_v21, %v4955_v52 }
 0x8ca   : > { %v3985_v58 = vpop.f32.mrf.mxu1 }
 0x8cb   : > { %5820 = vmatmul.msk.bf16.gmra.mxu0 %vm4809_vm1, %v4757_v3  ;;  %v3986_v9 = vadd.f32 %v3985_v58, %v10668_v40  ;;  %v9589_v58 = vpop.f32.mrf.mxu2  ;;  %v10673_v40 = vld [vmem:[#allocation93_spill] sm:$0xff] }
 0x8cc   : > { %v4602_v36 = vpop.f32.mrf.mxu3 }
 0x8cd   : > { %v4603_v47 = vadd.f32 %v4602_v36, %v4434_v17  ;;  %v4120_v42 = vmax.f32 %v3986_v9, 0.0  ;;  %v4444_v17 = vadd.f32 %v9299_v24, %v9515_v34 }
 0x8cf   : > { %v4711_v26 = vmax.f32 %v4603_v47, 0.0 }
 0x8d0   : > { %v4957_v45 = vpop.f32.mrf.mxu0 }
 0x8d1   : > { %v4958_v15 = vadd.f32 %v9426_v21, %v4957_v45 }
 0x8d2   : > { %v3987_v63 = vpop.f32.mrf.mxu1 }
 0x8d3   : > { %v5999_v12 = vpack.c.bf16 %v4958_v15, %v4956_v43  ;;  %v3988_v31 = vadd.f32 %v3987_v63, %v3819_v22  ;;  %v3829_v22 = vadd.f32 %v10672_v57, %v3660_v33  ;;  %v9600_v63 = vpop.f32.mrf.mxu2 }
 0x8d4   : > { %v4604_v13 = vpop.f32.mrf.mxu3 }
 0x8d5   : > { %6123 = vst [vmem:[%s9440_s28 + $0x40] sm:$0xff] %v5999_v12   ;;  %v4122_v59 = vmax.f32 %v3988_v31, 0.0  ;;  %v4605_v41 = vadd.f32 %v4604_v13, %v4436_v14 }
 0x8d7   : > { %v4196_v37 = vpack.c.bf16 %v4122_v59, %v4120_v42  ;;  %v4712_v0 = vmax.f32 %v4605_v41, 0.0 }
 0x8d8   : > { %v4960_v11 = vpop.f32.mrf.mxu0 }
 0x8d9   : > { %v4758_v2 = vpack.c.bf16 %v4712_v0, %v4711_v26  ;;  %4646 = vmatmul.bf16.gmra.mxu3 %v4196_v37  ;;  %v4961_v19 = vadd.f32 %v9426_v21, %v4960_v11 }
 0x8da   : > { %v3990_v29 = vpop.f32.mrf.mxu1 }
 0x8db   : > { %5821 = vmatmul.msk.bf16.gmra.mxu0 %vm4809_vm1, %v4758_v2  ;;  %v3991_v4 = vadd.f32 %v3990_v29, %v10671_v53  ;;  %v10674_v2 = vld [vmem:[#allocation86_spill] sm:$0xff]  ;;  %v9608_v18 = vpop.f32.mrf.mxu2 }
 0x8dc   : > { %v4607_v27 = vpop.f32.mrf.mxu3  ;;  %v3665_v24 = vadd.f32 %v10674_v2, %v9186_v8 }
 0x8dd   : > { %v4608_v25 = vadd.f32 %v4607_v27, %v4439_v39  ;;  %v4124_v50 = vmax.f32 %v3991_v4, 0.0  ;;  %v10676_v39 = vld [vmem:[#allocation95_spill] sm:$0xff]  ;;  %v4451_v4 = vadd.f32 %v9614_v38, %v9572_v23 }
 0x8de   : > { %v3834_v56 = vadd.f32 %v10675_v32, %v3665_v24  ;;  %v10677_v23 = vld [vmem:[#allocation99_spill] sm:$0xff] }
 0x8df   : > { %v4713_v52 = vmax.f32 %v4608_v25, 0.0 }
 0x8e0   : > { %v4962_v1 = vpop.f32.mrf.mxu0 }
 0x8e1   : > { %v4963_v44 = vadd.f32 %v9426_v21, %v4962_v1 }
 0x8e2   : > { %v3992_v46 = vpop.f32.mrf.mxu1 }
 0x8e3   : > { %v6004_v54 = vpack.c.bf16 %v4963_v44, %v4961_v19  ;;  %v3993_v61 = vadd.f32 %v3992_v46, %v3824_v16  ;;  %v4449_v16 = vadd.f32 %v9614_v38, %v9559_v30 }
 0x8e4   : > { %v4609_v49 = vpop.f32.mrf.mxu3 }
 0x8e5   : > { %6124 = vst [vmem:[%s9440_s28 + $0x48] sm:$0xff] %v6004_v54   ;;  %v4126_v35 = vmax.f32 %v3993_v61, 0.0  ;;  %v4610_v62 = vadd.f32 %v4609_v49, %v4441_v7 }
 0x8e7   : > { %v4198_v20 = vpack.c.bf16 %v4126_v35, %v4124_v50  ;;  %v4714_v3 = vmax.f32 %v4610_v62, 0.0  ;;  %v9624_v50 = vpop.f32.mrf.mxu2 }
 0x8e8   : > { %v4965_v55 = vpop.f32.mrf.mxu0 }
 0x8e9   : > { %v4759_v5 = vpack.c.bf16 %v4714_v3, %v4713_v52  ;;  %4651 = vmatmul.bf16.gmra.mxu3 %v4198_v20  ;;  %v4966_v43 = vadd.f32 %v9426_v21, %v4965_v55  ;;  %v3670_v55 = vadd.f32 %v10677_v23, %v9199_v28 }
 0x8ea   : > { %v3995_v51 = vpop.f32.mrf.mxu1 }
 0x8eb   : > { %5822 = vmatmul.msk.bf16.gmra.mxu0 %vm4809_vm1, %v4759_v5  ;;  %v3996_v9 = vadd.f32 %v3995_v51, %v10673_v40  ;;  %v10678_v51 = vld [vmem:[#allocation98_spill] sm:$0xff] }
 0x8ec   : > { %v4612_v36 = vpop.f32.mrf.mxu3  ;;  %v3839_v33 = vadd.f32 %v10678_v51, %v3670_v55 }
 0x8ed   : > { %v4613_v48 = vadd.f32 %v4612_v36, %v4444_v17  ;;  %v4128_v13 = vmax.f32 %v3996_v9, 0.0  ;;  %v10679_v17 = vld [vmem:[#allocation97_spill] sm:$0xff] }
 0x8ef   : > { %v4715_v59 = vmax.f32 %v4613_v48, 0.0  ;;  %v4465_v36 = vpop.f32.mrf.mxu2 }
 0x8f0   : > { %v4967_v45 = vpop.f32.mrf.mxu0 }
 0x8f1   : > { %v4968_v15 = vadd.f32 %v9426_v21, %v4967_v45 }
 0x8f2   : > { %v3997_v14 = vpop.f32.mrf.mxu1 }
 0x8f3   : > { %v6009_v47 = vpack.c.bf16 %v4968_v15, %v4966_v43  ;;  %v3998_v12 = vadd.f32 %v3997_v14, %v3829_v22  ;;  %v4454_v22 = vadd.f32 %v9614_v38, %v9578_v6  ;;  %v4456_v15 = vadd.f32 %v9614_v38, %v9589_v58  ;;  %v10681_v58 = vld [vmem:[#allocation102_spill] sm:$0xff] }
 0x8f4   : > { %v4614_v31 = vpop.f32.mrf.mxu3 }
 0x8f5   : > { %6125 = vst [vmem:[%s9440_s28 + $0x50] sm:$0xff] %v6009_v47   ;;  %v4130_v42 = vmax.f32 %v3998_v12, 0.0  ;;  %v4615_v34 = vadd.f32 %v4614_v31, %v4446_v60 }
 0x8f7   : > { %v4200_v41 = vpack.c.bf16 %v4130_v42, %v4128_v13  ;;  %v4716_v26 = vmax.f32 %v4615_v34, 0.0 }
 0x8f8   : > { %v4970_v37 = vpop.f32.mrf.mxu0 }
 0x8f9   : > { %v4760_v0 = vpack.c.bf16 %v4716_v26, %v4715_v59  ;;  %4656 = vmatmul.bf16.gmra.mxu3 %v4200_v41  ;;  %v4971_v1 = vadd.f32 %v9426_v21, %v4970_v37  ;;  %v4468_v41 = vpop.f32.mrf.mxu2  ;;  %v10680_v37 = vld [vmem:[#allocation101_spill] sm:$0xff] }
 0x8fa   : > { %v4000_v11 = vpop.f32.mrf.mxu1 }
 0x8fb   : > { %5823 = vmatmul.msk.bf16.gmra.mxu0 %vm4809_vm1, %v4760_v0  ;;  %v4001_v19 = vadd.f32 %v4000_v11, %v10676_v39  ;;  %v3675_v0 = vadd.f32 %v10681_v58, %v10680_v37  ;;  %v4461_v39 = vadd.f32 %v9614_v38, %v9608_v18 }
 0x8fc   : > { %v4617_v29 = vpop.f32.mrf.mxu3 }
 0x8fd   : > { %v4618_v44 = vadd.f32 %v4617_v29, %v4449_v16  ;;  %v4132_v54 = vmax.f32 %v4001_v19, 0.0  ;;  %v3844_v2 = vadd.f32 %v9410_v10, %v3675_v0  ;;  %v4459_v29 = vadd.f32 %v9614_v38, %v9600_v63 }
 0x8ff   : > { %v4717_v30 = vmax.f32 %v4618_v44, 0.0 }
 0x900   : > { %v4972_v27 = vpop.f32.mrf.mxu0 }
 0x901   : > { %v4973_v8 = vadd.f32 %v9426_v21, %v4972_v27 }
 0x902   : > { %v4002_v53 = vpop.f32.mrf.mxu1 }
 0x903   : > { %v6014_v46 = vpack.c.bf16 %v4973_v8, %v4971_v1  ;;  %v4003_v7 = vadd.f32 %v4002_v53, %v3834_v56  ;;  %v10682_v56 = vld [vmem:[#allocation87_spill] sm:$0xff] }
 0x904   : > { %v4619_v25 = vpop.f32.mrf.mxu3 }
 0x905   : > { %6126 = vst [vmem:[%s9440_s28 + $0x58] sm:$0xff] %v6014_v46   ;;  %v4134_v61 = vmax.f32 %v4003_v7, 0.0  ;;  %v4620_v49 = vadd.f32 %v4619_v25, %v4451_v4  ;;  %v4470_v4 = vpop.f32.mrf.mxu2 }
 0x907   : > { %v4202_v35 = vpack.c.bf16 %v4134_v61, %v4132_v54  ;;  %v4718_v62 = vmax.f32 %v4620_v49, 0.0 }
 0x908   : > { %v4975_v52 = vpop.f32.mrf.mxu0 }
 0x909   : > { %v4761_v20 = vpack.c.bf16 %v4718_v62, %v4717_v30  ;;  %4661 = vmatmul.bf16.gmra.mxu3 %v4202_v35  ;;  %v4976_v45 = vadd.f32 %v9426_v21, %v4975_v52  ;;  %v4464_v62 = vadd.f32 %v9614_v38, %v9624_v50 }
 0x90a   : > { %v4005_v3 = vpop.f32.mrf.mxu1 }
 0x90b   : > { %5824 = vmatmul.msk.bf16.gmra.mxu0 %vm4809_vm1, %v4761_v20  ;;  %v4006_v43 = vadd.f32 %v4005_v3, %v10679_v17  ;;  %v4466_v3 = vadd.f32 %v9614_v38, %v4465_v36 }
 0x90c   : > { %v4622_v5 = vpop.f32.mrf.mxu3 }
 0x90d   : > { %v4623_v28 = vadd.f32 %v4622_v5, %v4454_v22  ;;  %v4136_v47 = vmax.f32 %v4006_v43, 0.0  ;;  %v4473_v18 = vpop.f32.mrf.mxu2 }
 0x90f   : > { %v4719_v13 = vmax.f32 %v4623_v28, 0.0  ;;  %v4471_v28 = vadd.f32 %v9614_v38, %v4470_v4 }
 0x910   : > { %v4977_v57 = vpop.f32.mrf.mxu0 }
 0x911   : > { %v4978_v40 = vadd.f32 %v9426_v21, %v4977_v57 }
 0x912   : > { %v4007_v9 = vpop.f32.mrf.mxu1 }
 0x913   : > { %v6019_v14 = vpack.c.bf16 %v4978_v40, %v4976_v45  ;;  %v4008_v60 = vadd.f32 %v4007_v9, %v3839_v33  ;;  %v4469_v40 = vadd.f32 %v9614_v38, %v4468_v41  ;;  %v4474_v41 = vadd.f32 %v9614_v38, %v4473_v18 }
 0x914   : > { %v4624_v48 = vpop.f32.mrf.mxu3 }
 0x915   : > { %6127 = vst [vmem:[%s9440_s28 + $0x60] sm:$0xff] %v6019_v14   ;;  %v4138_v12 = vmax.f32 %v4008_v60, 0.0  ;;  %v4625_v31 = vadd.f32 %v4624_v48, %v4456_v15  ;;  %v4475_v22 = vpop.f32.mrf.mxu2 }
 0x916   : > { %v4476_v58 = vadd.f32 %v9614_v38, %v4475_v22 }
 0x917   : > { %v4204_v6 = vpack.c.bf16 %v4138_v12, %v4136_v47  ;;  %v4720_v42 = vmax.f32 %v4625_v31, 0.0 }
 0x918   : > { %v4980_v34 = vpop.f32.mrf.mxu0 }
 0x919   : > { %v4762_v59 = vpack.c.bf16 %v4720_v42, %v4719_v13  ;;  %4666 = vmatmul.bf16.gmra.mxu3 %v4204_v6  ;;  %v4981_v32 = vadd.f32 %v9426_v21, %v4980_v34 }
 0x91a   : > { %v4010_v26 = vpop.f32.mrf.mxu1 }
 0x91b   : > { %5825 = vmatmul.msk.bf16.gmra.mxu0 %vm4809_vm1, %v4762_v59  ;;  %v4011_v27 = vadd.f32 %v4010_v26, %v10682_v56 }
 0x91c   : > { %v4627_v11 = vpop.f32.mrf.mxu3 }
 0x91d   : > { %v4628_v19 = vadd.f32 %v4627_v11, %v4459_v29  ;;  %v4140_v10 = vmax.f32 %v4011_v27, 0.0  ;;  %v4478_v15 = vpop.f32.mrf.mxu2 }
 0x91f   : > { %v4721_v63 = vmax.f32 %v4628_v19, 0.0 }
 0x920   : > { %v4982_v24 = vpop.f32.mrf.mxu0 }
 0x921   : > { %v4983_v16 = vadd.f32 %v9426_v21, %v4982_v24 }
 0x922   : > { %v4012_v1 = vpop.f32.mrf.mxu1 }
 0x923   : > { %v6024_v8 = vpack.c.bf16 %v4983_v16, %v4981_v32  ;;  %v4013_v53 = vadd.f32 %v4012_v1, %v3844_v2 }
 0x924   : > { %v4629_v44 = vpop.f32.mrf.mxu3 }
 0x925   : > { %6128 = vst [vmem:[%s9440_s28 + $0x68] sm:$0xff] %v6024_v8   ;;  %v4142_v46 = vmax.f32 %v4013_v53, 0.0  ;;  %v4630_v7 = vadd.f32 %v4629_v44, %v4461_v39  ;;  %v4480_v42 = vpop.f32.mrf.mxu2  ;;  %v4479_v8 = vadd.f32 %v9614_v38, %v4478_v15 }
 0x926   : > { %v4481_v44 = vadd.f32 %v9614_v38, %v4480_v42 }
 0x927   : > { %v4206_v25 = vpack.c.bf16 %v4142_v46, %v4140_v10  ;;  %v4722_v54 = vmax.f32 %v4630_v7, 0.0 }
 0x928   : > { %v4985_v61 = vpop.f32.mrf.mxu0 }
 0x929   : > { %v4763_v49 = vpack.c.bf16 %v4722_v54, %v4721_v63  ;;  %4671 = vmatmul.bf16.gmra.mxu3 %v4206_v25  ;;  %v4986_v52 = vadd.f32 %v9426_v21, %v4985_v61 }
 0x92b   : > { %5826 = vmatmul.msk.bf16.gmra.mxu0 %vm4809_vm1, %v4763_v49 }
 0x92c   : > { %v4632_v30 = vpop.f32.mrf.mxu3 }
 0x92d   : > { %v4633_v23 = vadd.f32 %v4632_v30, %v4464_v62  ;;  %v4483_v29 = vpop.f32.mrf.mxu2 }
 0x92e   : > { %v4484_v62 = vadd.f32 %v9614_v38, %v4483_v29 }
 0x92f   : > { %v4723_v33 = vmax.f32 %v4633_v23, 0.0 }
 0x930   : > { %v4987_v35 = vpop.f32.mrf.mxu0 }
 0x931   : > { %v4988_v20 = vadd.f32 %v9426_v21, %v4987_v35 }
 0x933   : > { %v6029_v55 = vpack.c.bf16 %v4988_v20, %v4986_v52 }
 0x934   : > { %v4634_v5 = vpop.f32.mrf.mxu3 }
 0x935   : > { %6129 = vst [vmem:[%s9440_s28 + $0x70] sm:$0xff] %v6029_v55   ;;  %v4635_v51 = vadd.f32 %v4634_v5, %v4466_v3  ;;  %v4485_v39 = vpop.f32.mrf.mxu2 }
 0x936   : > { %v4486_v3 = vadd.f32 %v9614_v38, %v4485_v39 }
 0x937   : > { %v4724_v57 = vmax.f32 %v4635_v51, 0.0 }
 0x938   : > { %v4990_v45 = vpop.f32.mrf.mxu0 }
 0x939   : > { %v4764_v17 = vpack.c.bf16 %v4724_v57, %v4723_v33  ;;  %v4991_v9 = vadd.f32 %v9426_v21, %v4990_v45 }
 0x93b   : > { %5827 = vmatmul.msk.bf16.gmra.mxu0 %vm4809_vm1, %v4764_v17 }
 0x93c   : > { %v4637_v50 = vpop.f32.mrf.mxu3 }
 0x93d   : > { %v4638_v14 = vadd.f32 %v4637_v50, %v4469_v40  ;;  %v4488_v30 = vpop.f32.mrf.mxu2 }
 0x93f   : > { %v4725_v12 = vmax.f32 %v4638_v14, 0.0 }
 0x940   : > { %v4992_v43 = vpop.f32.mrf.mxu0 }
 0x941   : > { %v4993_v36 = vadd.f32 %v9426_v21, %v4992_v43 }
 0x943   : > { %v6034_v60 = vpack.c.bf16 %v4993_v36, %v4991_v9  ;;  %v4489_v9 = vadd.f32 %v9614_v38, %v4488_v30 }
 0x944   : > { %v4639_v48 = vpop.f32.mrf.mxu3 }
 0x945   : > { %6130 = vst [vmem:[%s9440_s28 + $0x78] sm:$0xff] %v6034_v60   ;;  %v4640_v47 = vadd.f32 %v4639_v48, %v4471_v28  ;;  %v4490_v5 = vpop.f32.mrf.mxu2 }
 0x946   : > { %v4491_v28 = vadd.f32 %v9614_v38, %v4490_v5 }
 0x947   : > { %v4726_v31 = vmax.f32 %v4640_v47, 0.0 }
 0x948   : > { %v4995_v13 = vpop.f32.mrf.mxu0 }
 0x949   : > { %v4765_v6 = vpack.c.bf16 %v4726_v31, %v4725_v12  ;;  %v4996_v26 = vadd.f32 %v9426_v21, %v4995_v13 }
 0x94b   : > { %5828 = vmatmul.msk.bf16.gmra.mxu0 %vm4809_vm1, %v4765_v6 }
 0x94c   : > { %v4642_v34 = vpop.f32.mrf.mxu3 }
 0x94d   : > { %v4643_v0 = vadd.f32 %v4642_v34, %v4474_v41  ;;  %v4493_v43 = vpop.f32.mrf.mxu2 }
 0x94e   : > { %v4494_v41 = vadd.f32 %v9614_v38, %v4493_v43 }
 0x94f   : > { %v4727_v32 = vmax.f32 %v4643_v0, 0.0 }
 0x950   : > { %v4997_v59 = vpop.f32.mrf.mxu0 }
 0x951   : > { %v4998_v37 = vadd.f32 %v9426_v21, %v4997_v59 }
 0x953   : > { %v6039_v11 = vpack.c.bf16 %v4998_v37, %v4996_v26 }
 0x954   : > { %v4644_v2 = vpop.f32.mrf.mxu3 }
 0x955   : > { %6131 = vst [vmem:[%s9440_s28 + $0x80] sm:$0xff] %v6039_v11   ;;  %v4645_v24 = vadd.f32 %v4644_v2, %v4476_v58  ;;  %v4495_v13 = vpop.f32.mrf.mxu2 }
 0x956   : > { %v4496_v0 = vadd.f32 %v9614_v38, %v4495_v13 }
 0x957   : > { %v4728_v56 = vmax.f32 %v4645_v24, 0.0 }
 0x958   : > { %v5000_v27 = vpop.f32.mrf.mxu0 }
 0x959   : > { %v4766_v16 = vpack.c.bf16 %v4728_v56, %v4727_v32  ;;  %v5001_v53 = vadd.f32 %v9426_v21, %v5000_v27 }
 0x95b   : > { %5829 = vmatmul.msk.bf16.gmra.mxu0 %vm4809_vm1, %v4766_v16 }
 0x95c   : > { %v4647_v1 = vpop.f32.mrf.mxu3 }
 0x95d   : > { %v4648_v10 = vadd.f32 %v4647_v1, %v4479_v8  ;;  %v4498_v58 = vpop.f32.mrf.mxu2  ;;  %v9698_v8 = vld [vmem:[%s9747_s6] ss:$0 sm:$0xff] }
 0x95f   : > { %v4729_v25 = vmax.f32 %v4648_v10, 0.0 }
 0x960   : > { %v5002_v19 = vpop.f32.mrf.mxu0 }
 0x961   : > { %v5003_v4 = vadd.f32 %v9426_v21, %v5002_v19 }
 0x963   : > { %v6044_v46 = vpack.c.bf16 %v5003_v4, %v5001_v53 }
 0x964   : > { %v4649_v7 = vpop.f32.mrf.mxu3 }
 0x965   : > { %6132 = vst [vmem:[%s9440_s28 + $0x88] sm:$0xff] %v6044_v46   ;;  %v4650_v63 = vadd.f32 %v4649_v7, %v4481_v44  ;;  %v4500_v1 = vpop.f32.mrf.mxu2 }
 0x966   : > { %v4501_v44 = vadd.f32 %v9614_v38, %v4500_v1 }
 0x967   : > { %v4730_v54 = vmax.f32 %v4650_v63, 0.0 }
 0x968   : > { %v5005_v61 = vpop.f32.mrf.mxu0 }
 0x969   : > { %v4767_v49 = vpack.c.bf16 %v4730_v54, %v4729_v25  ;;  %v5006_v52 = vadd.f32 %v9426_v21, %v5005_v61 }
 0x96b   : > { %5830 = vmatmul.msk.bf16.gmra.mxu0 %vm4809_vm1, %v4767_v49 }
 0x96c   : > { %v4652_v18 = vpop.f32.mrf.mxu3 }
 0x96d   : > { %v4653_v23 = vadd.f32 %v4652_v18, %v4484_v62  ;;  %v4503_v25 = vpop.f32.mrf.mxu2 }
 0x96f   : > { %v4731_v57 = vmax.f32 %v4653_v23, 0.0 }
 0x970   : > { %v5007_v35 = vpop.f32.mrf.mxu0 }
 0x971   : > { %v5008_v20 = vadd.f32 %v9426_v21, %v5007_v35 }
 0x973   : > { %v6049_v55 = vpack.c.bf16 %v5008_v20, %v5006_v52  ;;  %v4504_v52 = vadd.f32 %v9614_v38, %v4503_v25 }
 0x974   : > { %v4654_v51 = vpop.f32.mrf.mxu3 }
 0x975   : > { %6133 = vst [vmem:[%s9440_s28 + $0x90] sm:$0xff] %v6049_v55   ;;  %v4655_v33 = vadd.f32 %v4654_v51, %v4486_v3  ;;  %v4505_v35 = vpop.f32.mrf.mxu2 }
 0x976   : > { %v4506_v23 = vadd.f32 %v9614_v38, %v4505_v35 }
 0x977   : > { %v4732_v22 = vmax.f32 %v4655_v33, 0.0 }
 0x978   : > { %v5010_v45 = vpop.f32.mrf.mxu0 }
 0x979   : > { %v4768_v17 = vpack.c.bf16 %v4732_v22, %v4731_v57  ;;  %v5011_v36 = vadd.f32 %v9426_v21, %v5010_v45 }
 0x97b   : > { %5831 = vmatmul.msk.bf16.gmra.mxu0 %vm4809_vm1, %v4768_v17 }
 0x97c   : > { %v4657_v50 = vpop.f32.mrf.mxu3 }
 0x97d   : > { %v4658_v14 = vadd.f32 %v4657_v50, %v4489_v9 }
 0x97f   : > { %v4733_v12 = vmax.f32 %v4658_v14, 0.0 }
 0x980   : > { %v5012_v40 = vpop.f32.mrf.mxu0 }
 0x981   : > { %v5013_v15 = vadd.f32 %v9426_v21, %v5012_v40 }
 0x983   : > { %v6054_v60 = vpack.c.bf16 %v5013_v15, %v5011_v36 }
 0x984   : > { %v4659_v48 = vpop.f32.mrf.mxu3 }
 0x985   : > { %6134 = vst [vmem:[%s9440_s28 + $0x98] sm:$0xff] %v6054_v60   ;;  %v4660_v47 = vadd.f32 %v4659_v48, %v4491_v28 }
 0x987   : > { %v4734_v31 = vmax.f32 %v4660_v47, 0.0 }
 0x988   : > { %v5015_v6 = vpop.f32.mrf.mxu0 }
 0x989   : > { %v4769_v42 = vpack.c.bf16 %v4734_v31, %v4733_v12  ;;  %v5016_v26 = vadd.f32 %v9426_v21, %v5015_v6 }
 0x98b   : > { %5832 = vmatmul.msk.bf16.gmra.mxu0 %vm4809_vm1, %v4769_v42 }
 0x98c   : > { %v4662_v34 = vpop.f32.mrf.mxu3 }
 0x98d   : > { %v4663_v11 = vadd.f32 %v4662_v34, %v4494_v41 }
 0x98f   : > { %v4735_v32 = vmax.f32 %v4663_v11, 0.0 }
 0x990   : > { %v5017_v59 = vpop.f32.mrf.mxu0 }
 0x991   : > { %v5018_v37 = vadd.f32 %v9426_v21, %v5017_v59  ;;  %v4499_v21 = vadd.f32 %v9614_v38, %v4498_v58 }
 0x993   : > { %v6059_v2 = vpack.c.bf16 %v5018_v37, %v5016_v26 }
 0x994   : > { %v4664_v24 = vpop.f32.mrf.mxu3 }
 0x995   : > { %6135 = vst [vmem:[%s9440_s28 + $0xa0] sm:$0xff] %v6059_v2   ;;  %v4665_v29 = vadd.f32 %v4664_v24, %v4496_v0 }
 0x997   : > { %v4736_v56 = vmax.f32 %v4665_v29, 0.0 }
 0x998   : > { %v5020_v27 = vpop.f32.mrf.mxu0 }
 0x999   : > { %v4770_v16 = vpack.c.bf16 %v4736_v56, %v4735_v32  ;;  %v5021_v53 = vadd.f32 %v9698_v8, %v5020_v27 }
 0x99b   : > { %5833 = vmatmul.msk.bf16.gmra.mxu0 %vm4809_vm1, %v4770_v16 }
 0x99c   : > { %v4667_v39 = vpop.f32.mrf.mxu3 }
 0x99d   : > { %v4668_v10 = vadd.f32 %v4667_v39, %v4499_v21 }
 0x99f   : > { %v4737_v54 = vmax.f32 %v4668_v10, 0.0 }
 0x9a0   : > { %v5022_v19 = vpop.f32.mrf.mxu0 }
 0x9a1   : > { %v5023_v4 = vadd.f32 %v9698_v8, %v5022_v19 }
 0x9a3   : > { %v6064_v46 = vpack.c.bf16 %v5023_v4, %v5021_v53 }
 0x9a4   : > { %v4669_v7 = vpop.f32.mrf.mxu3 }
 0x9a5   : > { %6136 = vst [vmem:[%s9440_s28 + $0xa8] sm:$0xff] %v6064_v46   ;;  %v4670_v63 = vadd.f32 %v4669_v7, %v4501_v44 }
 0x9a7   : > { %v4738_v61 = vmax.f32 %v4670_v63, 0.0 }
 0x9a8   : > { %v5025_v49 = vpop.f32.mrf.mxu0 }
 0x9a9   : > { %v4771_v30 = vpack.c.bf16 %v4738_v61, %v4737_v54  ;;  %v5026_v20 = vadd.f32 %v9698_v8, %v5025_v49 }
 0x9ab   : > { %5834 = vmatmul.msk.bf16.gmra.mxu0 %vm4809_vm1, %v4771_v30 }
 0x9ac   : > { %v4672_v18 = vpop.f32.mrf.mxu3 }
 0x9ad   : > { %v4673_v55 = vadd.f32 %v4672_v18, %v4504_v52 }
 0x9af   : > { %v4739_v57 = vmax.f32 %v4673_v55, 0.0 }
 0x9b0   : > { %v5027_v62 = vpop.f32.mrf.mxu0 }
 0x9b1   : > { %v5028_v3 = vadd.f32 %v9698_v8, %v5027_v62 }
 0x9b3   : > { %v6069_v5 = vpack.c.bf16 %v5028_v3, %v5026_v20 }
 0x9b4   : > { %v4674_v51 = vpop.f32.mrf.mxu3 }
 0x9b5   : > { %6137 = vst [vmem:[%s9440_s28 + $0xb0] sm:$0xff] %v6069_v5   ;;  %v4675_v33 = vadd.f32 %v4674_v51, %v4506_v23 }
 0x9b7   : > { %v4740_v22 = vmax.f32 %v4675_v33, 0.0 }
 0x9b8   : > { %v5030_v45 = vpop.f32.mrf.mxu0 }
 0x9b9   : > { %v4772_v17 = vpack.c.bf16 %v4740_v22, %v4739_v57  ;;  %v5031_v43 = vadd.f32 %v9698_v8, %v5030_v45 }
 0x9bb   : > { %5835 = vmatmul.msk.bf16.gmra.mxu0 %vm4809_vm1, %v4772_v17 }
 0x9c0   : > { %v5032_v50 = vpop.f32.mrf.mxu0 }
 0x9c1   : > { %v5033_v40 = vadd.f32 %v9698_v8, %v5032_v50 }
 0x9c3   : > { %v6074_v9 = vpack.c.bf16 %v5033_v40, %v5031_v43 }
 0x9c5   : > { %6138 = vst [vmem:[%s9440_s28 + $0xb8] sm:$0xff] %v6074_v9  }
 0x9c8   : > { %v5035_v38 = vpop.f32.mrf.mxu0 }
 0x9c9   : > { %v5036_v15 = vadd.f32 %v9698_v8, %v5035_v38 }
 0x9d0   : > { %v5037_v36 = vpop.f32.mrf.mxu0 }
 0x9d1   : > { %v5038_v28 = vadd.f32 %v9698_v8, %v5037_v36 }
 0x9d3   : > { %v6079_v14 = vpack.c.bf16 %v5038_v28, %v5036_v15 }
 0x9d5   : > { %6139 = vst [vmem:[%s9440_s28 + $0xc0] sm:$0xff] %v6079_v14  }
 0x9d8   : > { %v5040_v60 = vpop.f32.mrf.mxu0 }
 0x9d9   : > { %v5041_v47 = vadd.f32 %v9698_v8, %v5040_v60 }
 0x9e0   : > { %v5042_v48 = vpop.f32.mrf.mxu0 }
 0x9e1   : > { %v5043_v12 = vadd.f32 %v9698_v8, %v5042_v48 }
 0x9e3   : > { %v6084_v31 = vpack.c.bf16 %v5043_v12, %v5041_v47 }
 0x9e5   : > { %6140 = vst [vmem:[%s9440_s28 + $0xc8] sm:$0xff] %v6084_v31  }
 0x9e8   : > { %v5045_v13 = vpop.f32.mrf.mxu0 }
 0x9e9   : > { %v5046_v42 = vadd.f32 %v9698_v8, %v5045_v13 }
 0x9f0   : > { %v5047_v6 = vpop.f32.mrf.mxu0 }
 0x9f1   : > { %v5048_v34 = vadd.f32 %v9698_v8, %v5047_v6 }
 0x9f3   : > { %v6089_v59 = vpack.c.bf16 %v5048_v34, %v5046_v42 }
 0x9f5   : > { %6141 = vst [vmem:[%s9440_s28 + $0xd0] sm:$0xff] %v6089_v59  }
 0x9f8   : > { %v5050_v41 = vpop.f32.mrf.mxu0 }
 0x9f9   : > { %v5051_v37 = vadd.f32 %v9698_v8, %v5050_v41 }
 0xa00   : > { %v5052_v26 = vpop.f32.mrf.mxu0 }
 0xa01   : > { %v5053_v58 = vadd.f32 %v9698_v8, %v5052_v26 }
 0xa03   : > { %v6094_v0 = vpack.c.bf16 %v5053_v58, %v5051_v37 }
 0xa05   : > { %6142 = vst [vmem:[%s9440_s28 + $0xd8] sm:$0xff] %v6094_v0  }
 0xa08   : > { %v5055_v11 = vpop.f32.mrf.mxu0 }
 0xa09   : > { %v5056_v24 = vadd.f32 %v9698_v8, %v5055_v11 }
 0xa10   : > { %v5057_v2 = vpop.f32.mrf.mxu0 }
 0xa11   : > { %v5058_v29 = vadd.f32 %v9698_v8, %v5057_v2 }
 0xa13   : > { %v6099_v32 = vpack.c.bf16 %v5058_v29, %v5056_v24 }
 0xa15   : > { %6143 = vst [vmem:[%s9440_s28 + $0xe0] sm:$0xff] %v6099_v32  }
 0xa18   : > { %v5060_v56 = vpop.f32.mrf.mxu0 }
 0xa19   : > { %v5061_v16 = vadd.f32 %v9698_v8, %v5060_v56 }
 0xa20   : > { %v5062_v27 = vpop.f32.mrf.mxu0 }
 0xa21   : > { %v5063_v1 = vadd.f32 %v9698_v8, %v5062_v27 }
 0xa23   : > { %v6104_v39 = vpack.c.bf16 %v5063_v1, %v5061_v16 }
 0xa25   : > { %6144 = vst [vmem:[%s9440_s28 + $0xe8] sm:$0xff] %v6104_v39  }
 0xa28   : > { %v5065_v19 = vpop.f32.mrf.mxu0 }
 0xa29   : > { %v5066_v53 = vadd.f32 %v9698_v8, %v5065_v19 }
 0xa30   : > { %v5067_v21 = vpop.f32.mrf.mxu0 }
 0xa31   : > { %v5068_v4 = vadd.f32 %v9698_v8, %v5067_v21 }
 0xa33   : > { %v6109_v44 = vpack.c.bf16 %v5068_v4, %v5066_v53 }
 0xa35   : > { %6145 = vst [vmem:[%s9440_s28 + $0xf0] sm:$0xff] %v6109_v44  }
 0xa38   : > { %v5070_v10 = vpop.f32.mrf.mxu0 }
 0xa39   : > { %v5071_v7 = vadd.f32 %v9698_v8, %v5070_v10 }
 0xa40   : > { %v5072_v46 = vpop.f32.mrf.mxu0 }
 0xa41   : > { %v5073_v63 = vadd.f32 %v9698_v8, %v5072_v46 }
 0xa43   : > { %v6114_v25 = vpack.c.bf16 %v5073_v63, %v5071_v7 }
 0xa45   : > { %6146 = vst [vmem:[%s9440_s28 + $0xf8] sm:$0xff] %v6114_v25  }
 0xa46 PF: > { %s17_s24 = sadd.s32 1, %s6191_s24  }
 0xa47   : > { %p14_p4 = scmp.ge.s32.totalorder %s17_s24, 4  }
 0xa49   :  { %16 = sbr.rel (!%p14_p4) target bundleno = 1 (0x1), region = 78 }

</bundles_post_ra>
